<compile_context>
chip_gen: v5e
topology: v5e:2x2
jax: 0.10.0
libtpu: 0.0.40
codegen_flags: <defaults>
</compile_context>

<pallas_src>
import jax
import jax.numpy as jnp
from jax.experimental import pallas as pl
from jax.experimental.pallas import tpu as pltpu

# ---------------- model config (small, consistent with the module) ----------------
VOCAB = 50
EMB_DIM = 32
HIDDEN = 32
OUT_DIM = 4
BATCH = 2
SEQ = 16
PAD_IDX = 0
LANE_PAD = 128   # lane-dense padded output width


def _gru_cell(xp, h_prev, whh, bhh):
    """One PyTorch-semantics GRU step. xp = W_ih @ x_t + b_ih, gate order [r|z|n]."""
    H = HIDDEN
    hp = jnp.dot(h_prev, whh, preferred_element_type=jnp.float32) + bhh     # (B, 3H)
    r = jax.nn.sigmoid(xp[:, 0:H] + hp[:, 0:H])
    z = jax.nn.sigmoid(xp[:, H:2 * H] + hp[:, H:2 * H])
    n = jnp.tanh(xp[:, 2 * H:3 * H] + r * hp[:, 2 * H:3 * H])
    return (1.0 - z) * n + z * h_prev


def _rnn_kernel(tok_ref, emb_ref,
                wih_f0_ref, whh_f0_ref, bih_f0_ref, bhh_f0_ref,
                wih_b0_ref, whh_b0_ref, bih_b0_ref, bhh_b0_ref,
                wih_f1_ref, whh_f1_ref, bih_f1_ref, bhh_f1_ref,
                wih_b1_ref, whh_b1_ref, bih_b1_ref, bhh_b1_ref,
                fcw_ref, fcb_ref,
                o_ref,
                xpf0_ref, xpb0_ref, xpf1_ref, xpb1_ref, l0f_ref, l0b_ref):
    B, L, H = BATCH, SEQ, HIDDEN

    # ---- fused embedding lookup: one-hot MXU matmul (rows are time-major: t*B + b) ----
    tok = tok_ref[...]                                                      # (L*B, 1) int32
    iota = jax.lax.broadcasted_iota(jnp.int32, (L * B, VOCAB), 1)
    onehot = (iota == tok).astype(jnp.float32)                              # (L*B, V)
    x = jnp.dot(onehot, emb_ref[...], preferred_element_type=jnp.float32)   # (L*B, E)

    # ---- layer 0: hoisted per-sequence input projections (one fat matmul / direction) ----
    xpf0_ref[...] = jnp.dot(x, wih_f0_ref[...],
                            preferred_element_type=jnp.float32) + bih_f0_ref[...]
    xpb0_ref[...] = jnp.dot(x, wih_b0_ref[...],
                            preferred_element_type=jnp.float32) + bih_b0_ref[...]

    whh_f0, bhh_f0 = whh_f0_ref[...], bhh_f0_ref[...]
    whh_b0, bhh_b0 = whh_b0_ref[...], bhh_b0_ref[...]

    h_f = jnp.zeros((B, H), jnp.float32)
    h_b = jnp.zeros((B, H), jnp.float32)
    # L is small & static -> fully unrolled at trace time, all slice offsets static.
    for i in range(L):
        tf = i * B
        tb = (L - 1 - i) * B
        h_f = _gru_cell(xpf0_ref[tf:tf + B, :], h_f, whh_f0, bhh_f0)
        h_b = _gru_cell(xpb0_ref[tb:tb + B, :], h_b, whh_b0, bhh_b0)
        l0f_ref[tf:tf + B, :] = h_f
        l0b_ref[tb:tb + B, :] = h_b

    # ---- layer 1 ----
    # TODO(synk): GRU inter-layer dropout(0.3) and the pre-FC Dropout(0.3) are identity in
    # eval mode; training-mode masking is not implemented.
    l0f = l0f_ref[...]                                                      # (L*B, H)
    l0b = l0b_ref[...]
    # Split matmuls over the fwd/bwd halves of weight_ih_l1 (no lane-axis concat).
    xpf1_ref[...] = (jnp.dot(l0f, wih_f1_ref[0:H, :], preferred_element_type=jnp.float32)
                     + jnp.dot(l0b, wih_f1_ref[H:2 * H, :], preferred_element_type=jnp.float32)
                     + bih_f1_ref[...])
    xpb1_ref[...] = (jnp.dot(l0f, wih_b1_ref[0:H, :], preferred_element_type=jnp.float32)
                     + jnp.dot(l0b, wih_b1_ref[H:2 * H, :], preferred_element_type=jnp.float32)
                     + bih_b1_ref[...])

    whh_f1, bhh_f1 = whh_f1_ref[...], bhh_f1_ref[...]
    whh_b1, bhh_b1 = whh_b1_ref[...], bhh_b1_ref[...]

    h1f = jnp.zeros((B, H), jnp.float32)
    h1b = jnp.zeros((B, H), jnp.float32)
    for i in range(L):
        tf = i * B
        tb = (L - 1 - i) * B
        h1f = _gru_cell(xpf1_ref[tf:tf + B, :], h1f, whh_f1, bhh_f1)
        h1b = _gru_cell(xpb1_ref[tb:tb + B, :], h1b, whh_b1, bhh_b1)

    # ---- FC on concat(h[-2], h[-1]) as a split matmul; lane-dense (B, 128) store ----
    out = (jnp.dot(h1f, fcw_ref[0:H, :], preferred_element_type=jnp.float32)
           + jnp.dot(h1b, fcw_ref[H:2 * H, :], preferred_element_type=jnp.float32)
           + fcb_ref[...])
    o_ref[...] = out.astype(o_ref.dtype)


def rnn_classifier_forward(tokens, emb, gru_params, fcw_pad, fcb_pad):
    """tokens: (B, L) int32. Returns logits (B, OUT_DIM)."""
    B, L = tokens.shape
    # time-major flat token ids: row index = t*B + b  (contiguous per-timestep slices)
    tok_tm = jnp.transpose(tokens).reshape(L * B, 1).astype(jnp.int32)

    args = (tok_tm, emb) + tuple(gru_params) + (fcw_pad, fcb_pad)

    def full_spec(a):
        nd = a.ndim
        return pl.BlockSpec(a.shape, lambda i, _nd=nd: (0,) * _nd)

    out_pad = pl.pallas_call(
        _rnn_kernel,
        out_shape=jax.ShapeDtypeStruct((B, LANE_PAD), jnp.float32),
        grid=(1,),
        in_specs=[full_spec(a) for a in args],
        out_specs=pl.BlockSpec((B, LANE_PAD), lambda i: (0, 0)),
        scratch_shapes=[
            pltpu.VMEM((L * B, 3 * HIDDEN), jnp.float32),   # xp fwd, layer 0
            pltpu.VMEM((L * B, 3 * HIDDEN), jnp.float32),   # xp bwd, layer 0
            pltpu.VMEM((L * B, 3 * HIDDEN), jnp.float32),   # xp fwd, layer 1
            pltpu.VMEM((L * B, 3 * HIDDEN), jnp.float32),   # xp bwd, layer 1
            pltpu.VMEM((L * B, HIDDEN), jnp.float32),       # layer-0 fwd outputs
            pltpu.VMEM((L * B, HIDDEN), jnp.float32),       # layer-0 bwd outputs
        ],
        # Whole problem fits in VMEM at one grid point; on v7x, grid over batch with
        # dimension_semantics=("parallel",) once B grows so both TensorCores are used.
        compiler_params=pltpu.CompilerParams(dimension_semantics=("arbitrary",)),
    )(*args)
    return out_pad[:, :OUT_DIM]


def _init_params(key):
    ks = jax.random.split(key, 20)
    it = iter(ks)

    emb = 0.1 * jax.random.normal(next(it), (VOCAB, EMB_DIM), jnp.float32)
    emb = emb.at[PAD_IDX].set(0.0)   # padding_idx=0 row is zero (frozen embedding)

    def gru_dir_params(in_dim):
        w_ih = 0.1 * jax.random.normal(next(it), (in_dim, 3 * HIDDEN), jnp.float32)
        w_hh = 0.1 * jax.random.normal(next(it), (HIDDEN, 3 * HIDDEN), jnp.float32)
        b_ih = 0.05 * jax.random.normal(next(it), (1, 3 * HIDDEN), jnp.float32)
        b_hh = 0.05 * jax.random.normal(next(it), (1, 3 * HIDDEN), jnp.float32)
        return w_ih, w_hh, b_ih, b_hh

    l0_f = gru_dir_params(EMB_DIM)
    l0_b = gru_dir_params(EMB_DIM)
    l1_f = gru_dir_params(2 * HIDDEN)
    l1_b = gru_dir_params(2 * HIDDEN)
    gru = l0_f + l0_b + l1_f + l1_b   # order matches kernel argument order

    fcw = 0.1 * jax.random.normal(next(it), (2 * HIDDEN, OUT_DIM), jnp.float32)
    fcb = 0.05 * jax.random.normal(next(it), (1, OUT_DIM), jnp.float32)
    fcw_pad = jnp.zeros((2 * HIDDEN, LANE_PAD), jnp.float32).at[:, :OUT_DIM].set(fcw)
    fcb_pad = jnp.zeros((1, LANE_PAD), jnp.float32).at[:, :OUT_DIM].set(fcb)

    return emb, gru, fcw_pad, fcb_pad


if __name__ == "__main__":
    key = jax.random.PRNGKey(0)
    pkey, tkey = jax.random.split(key)
    emb, gru, fcw_pad, fcb_pad = _init_params(pkey)
    tokens = jax.random.randint(tkey, (BATCH, SEQ), 0, VOCAB, dtype=jnp.int32)

    logits = rnn_classifier_forward(tokens, emb, gru, fcw_pad, fcb_pad)
    jax.block_until_ready(logits)
    assert logits.shape == (BATCH, OUT_DIM)
    print("KERNEL_OK")
</pallas_src>

<mosaic_0001>
module attributes {stable_mosaic.version = 11 : i64} {
  func.func @_rnn_kernel(%arg0: i32, %arg1: memref<32x1xi32, #tpu.memory_space<vmem>>, %arg2: memref<50x32xf32, #tpu.memory_space<vmem>>, %arg3: memref<32x96xf32, #tpu.memory_space<vmem>>, %arg4: memref<32x96xf32, #tpu.memory_space<vmem>>, %arg5: memref<1x96xf32, #tpu.memory_space<vmem>>, %arg6: memref<1x96xf32, #tpu.memory_space<vmem>>, %arg7: memref<32x96xf32, #tpu.memory_space<vmem>>, %arg8: memref<32x96xf32, #tpu.memory_space<vmem>>, %arg9: memref<1x96xf32, #tpu.memory_space<vmem>>, %arg10: memref<1x96xf32, #tpu.memory_space<vmem>>, %arg11: memref<64x96xf32, #tpu.memory_space<vmem>>, %arg12: memref<32x96xf32, #tpu.memory_space<vmem>>, %arg13: memref<1x96xf32, #tpu.memory_space<vmem>>, %arg14: memref<1x96xf32, #tpu.memory_space<vmem>>, %arg15: memref<64x96xf32, #tpu.memory_space<vmem>>, %arg16: memref<32x96xf32, #tpu.memory_space<vmem>>, %arg17: memref<1x96xf32, #tpu.memory_space<vmem>>, %arg18: memref<1x96xf32, #tpu.memory_space<vmem>>, %arg19: memref<64x128xf32, #tpu.memory_space<vmem>>, %arg20: memref<1x128xf32, #tpu.memory_space<vmem>>, %arg21: memref<2x128xf32, #tpu.memory_space<vmem>>, %arg22: memref<32x96xf32, #tpu.memory_space<vmem>>, %arg23: memref<32x96xf32, #tpu.memory_space<vmem>>, %arg24: memref<32x96xf32, #tpu.memory_space<vmem>>, %arg25: memref<32x96xf32, #tpu.memory_space<vmem>>, %arg26: memref<32x32xf32, #tpu.memory_space<vmem>>, %arg27: memref<32x32xf32, #tpu.memory_space<vmem>>) attributes {dimension_semantics = [#tpu.dimension_semantics<arbitrary>], iteration_bounds = array<i64: 1>, scalar_prefetch = 0 : i64, scratch_operands = 6 : i64, tpu.core_type = #tpu.core_type<tc>, window_params = [{pipeline_mode = #tpu.pipeline_mode<synchronous>, transform_indices = @transform_0, window_bounds = array<i64: 32, 1>}, {pipeline_mode = #tpu.pipeline_mode<synchronous>, transform_indices = @transform_1, window_bounds = array<i64: 50, 32>}, {pipeline_mode = #tpu.pipeline_mode<synchronous>, transform_indices = @transform_2, window_bounds = array<i64: 32, 96>}, {pipeline_mode = #tpu.pipeline_mode<synchronous>, transform_indices = @transform_3, window_bounds = array<i64: 32, 96>}, {pipeline_mode = #tpu.pipeline_mode<synchronous>, transform_indices = @transform_4, window_bounds = array<i64: 1, 96>}, {pipeline_mode = #tpu.pipeline_mode<synchronous>, transform_indices = @transform_5, window_bounds = array<i64: 1, 96>}, {pipeline_mode = #tpu.pipeline_mode<synchronous>, transform_indices = @transform_6, window_bounds = array<i64: 32, 96>}, {pipeline_mode = #tpu.pipeline_mode<synchronous>, transform_indices = @transform_7, window_bounds = array<i64: 32, 96>}, {pipeline_mode = #tpu.pipeline_mode<synchronous>, transform_indices = @transform_8, window_bounds = array<i64: 1, 96>}, {pipeline_mode = #tpu.pipeline_mode<synchronous>, transform_indices = @transform_9, window_bounds = array<i64: 1, 96>}, {pipeline_mode = #tpu.pipeline_mode<synchronous>, transform_indices = @transform_10, window_bounds = array<i64: 64, 96>}, {pipeline_mode = #tpu.pipeline_mode<synchronous>, transform_indices = @transform_11, window_bounds = array<i64: 32, 96>}, {pipeline_mode = #tpu.pipeline_mode<synchronous>, transform_indices = @transform_12, window_bounds = array<i64: 1, 96>}, {pipeline_mode = #tpu.pipeline_mode<synchronous>, transform_indices = @transform_13, window_bounds = array<i64: 1, 96>}, {pipeline_mode = #tpu.pipeline_mode<synchronous>, transform_indices = @transform_14, window_bounds = array<i64: 64, 96>}, {pipeline_mode = #tpu.pipeline_mode<synchronous>, transform_indices = @transform_15, window_bounds = array<i64: 32, 96>}, {pipeline_mode = #tpu.pipeline_mode<synchronous>, transform_indices = @transform_16, window_bounds = array<i64: 1, 96>}, {pipeline_mode = #tpu.pipeline_mode<synchronous>, transform_indices = @transform_17, window_bounds = array<i64: 1, 96>}, {pipeline_mode = #tpu.pipeline_mode<synchronous>, transform_indices = @transform_18, window_bounds = array<i64: 64, 128>}, {pipeline_mode = #tpu.pipeline_mode<synchronous>, transform_indices = @transform_19, window_bounds = array<i64: 1, 128>}, {pipeline_mode = #tpu.pipeline_mode<synchronous>, transform_indices = @transform_20, window_bounds = array<i64: 2, 128>}]} {
    %c0 = arith.constant 0 : index
    %c0_0 = arith.constant 0 : index
    %0 = vector.load %arg1[%c0, %c0_0] : memref<32x1xi32, #tpu.memory_space<vmem>>, vector<32x1xi32>
    %1 = tpu.iota {dimensions = array<i32: 1>} : vector<32x50xi32>
    %2 = vector.broadcast %0 : vector<32x1xi32> to vector<32x50xi32>
    %3 = arith.cmpi eq, %1, %2 : vector<32x50xi32>
    %4 = arith.extui %3 : vector<32x50xi1> to vector<32x50xi32>
    %5 = arith.sitofp %4 : vector<32x50xi32> to vector<32x50xf32>
    %c0_1 = arith.constant 0 : index
    %c0_2 = arith.constant 0 : index
    %6 = vector.load %arg2[%c0_1, %c0_2] : memref<50x32xf32, #tpu.memory_space<vmem>>, vector<50x32xf32>
    %cst = arith.constant dense<0.000000e+00> : vector<32x32xf32>
    %7 = tpu.matmul %5, %6, %cst {dimension_numbers = #tpu.dot_dimension_numbers<[1], [0], [0], [1], [0, 0, 1, 1], [], []>} : vector<32x50xf32>, vector<50x32xf32>, vector<32x32xf32> -> vector<32x32xf32>
    %c0_3 = arith.constant 0 : index
    %c0_4 = arith.constant 0 : index
    %8 = vector.load %arg3[%c0_3, %c0_4] : memref<32x96xf32, #tpu.memory_space<vmem>>, vector<32x96xf32>
    %cst_5 = arith.constant dense<0.000000e+00> : vector<32x96xf32>
    %9 = tpu.matmul %7, %8, %cst_5 {dimension_numbers = #tpu.dot_dimension_numbers<[1], [0], [0], [1], [0, 0, 1, 1], [], []>} : vector<32x32xf32>, vector<32x96xf32>, vector<32x96xf32> -> vector<32x96xf32>
    %c0_6 = arith.constant 0 : index
    %c0_7 = arith.constant 0 : index
    %10 = vector.load %arg5[%c0_6, %c0_7] : memref<1x96xf32, #tpu.memory_space<vmem>>, vector<1x96xf32>
    %11 = vector.broadcast %10 : vector<1x96xf32> to vector<32x96xf32>
    %12 = arith.addf %9, %11 : vector<32x96xf32>
    %c0_8 = arith.constant 0 : index
    %c0_9 = arith.constant 0 : index
    %13 = vector.load %arg22[%c0_8, %c0_9] : memref<32x96xf32, #tpu.memory_space<vmem>>, vector<32x96xf32>
    tpu.vector_store %arg22[%c0_8, %c0_9], %12 {strides = array<i32>} : memref<32x96xf32, #tpu.memory_space<vmem>>, vector<32x96xf32>,
    %c0_10 = arith.constant 0 : index
    %c0_11 = arith.constant 0 : index
    %14 = vector.load %arg7[%c0_10, %c0_11] : memref<32x96xf32, #tpu.memory_space<vmem>>, vector<32x96xf32>
    %cst_12 = arith.constant dense<0.000000e+00> : vector<32x96xf32>
    %15 = tpu.matmul %7, %14, %cst_12 {dimension_numbers = #tpu.dot_dimension_numbers<[1], [0], [0], [1], [0, 0, 1, 1], [], []>} : vector<32x32xf32>, vector<32x96xf32>, vector<32x96xf32> -> vector<32x96xf32>
    %c0_13 = arith.constant 0 : index
    %c0_14 = arith.constant 0 : index
    %16 = vector.load %arg9[%c0_13, %c0_14] : memref<1x96xf32, #tpu.memory_space<vmem>>, vector<1x96xf32>
    %17 = vector.broadcast %16 : vector<1x96xf32> to vector<32x96xf32>
    %18 = arith.addf %15, %17 : vector<32x96xf32>
    %c0_15 = arith.constant 0 : index
    %c0_16 = arith.constant 0 : index
    %19 = vector.load %arg23[%c0_15, %c0_16] : memref<32x96xf32, #tpu.memory_space<vmem>>, vector<32x96xf32>
    tpu.vector_store %arg23[%c0_15, %c0_16], %18 {strides = array<i32>} : memref<32x96xf32, #tpu.memory_space<vmem>>, vector<32x96xf32>,
    %c0_17 = arith.constant 0 : index
    %c0_18 = arith.constant 0 : index
    %20 = vector.load %arg4[%c0_17, %c0_18] : memref<32x96xf32, #tpu.memory_space<vmem>>, vector<32x96xf32>
    %c0_19 = arith.constant 0 : index
    %c0_20 = arith.constant 0 : index
    %21 = vector.load %arg6[%c0_19, %c0_20] : memref<1x96xf32, #tpu.memory_space<vmem>>, vector<1x96xf32>
    %c0_21 = arith.constant 0 : index
    %c0_22 = arith.constant 0 : index
    %22 = vector.load %arg8[%c0_21, %c0_22] : memref<32x96xf32, #tpu.memory_space<vmem>>, vector<32x96xf32>
    %c0_23 = arith.constant 0 : index
    %c0_24 = arith.constant 0 : index
    %23 = vector.load %arg10[%c0_23, %c0_24] : memref<1x96xf32, #tpu.memory_space<vmem>>, vector<1x96xf32>
    %cst_25 = arith.constant 0.000000e+00 : f32
    %24 = vector.broadcast %cst_25 : f32 to vector<2x32xf32>
    %cst_26 = arith.constant 0.000000e+00 : f32
    %25 = vector.broadcast %cst_26 : f32 to vector<2x32xf32>
    %c0_27 = arith.constant 0 : index
    %c0_28 = arith.constant 0 : index
    %26 = vector.load %arg22[%c0_27, %c0_28] : memref<32x96xf32, #tpu.memory_space<vmem>>, vector<2x96xf32>
    %cst_29 = arith.constant dense<0.000000e+00> : vector<2x96xf32>
    %27 = tpu.matmul %24, %20, %cst_29 {dimension_numbers = #tpu.dot_dimension_numbers<[1], [0], [0], [1], [0, 0, 1, 1], [], []>} : vector<2x32xf32>, vector<32x96xf32>, vector<2x96xf32> -> vector<2x96xf32>
    %28 = vector.broadcast %21 : vector<1x96xf32> to vector<2x96xf32>
    %29 = arith.addf %27, %28 : vector<2x96xf32>
    %30 = vector.extract_strided_slice %26 {offsets = [0, 0], sizes = [2, 32], strides = [1, 1]} : vector<2x96xf32> to vector<2x32xf32>
    %31 = vector.extract_strided_slice %29 {offsets = [0, 0], sizes = [2, 32], strides = [1, 1]} : vector<2x96xf32> to vector<2x32xf32>
    %32 = arith.addf %30, %31 : vector<2x32xf32>
    %33 = arith.negf %32 : vector<2x32xf32>
    %34 = math.exp %33 : vector<2x32xf32>
    %cst_30 = arith.constant 1.000000e+00 : f32
    %35 = vector.broadcast %cst_30 : f32 to vector<2x32xf32>
    %36 = arith.addf %35, %34 : vector<2x32xf32>
    %37 = arith.divf %35, %36 : vector<2x32xf32>
    %38 = vector.extract_strided_slice %26 {offsets = [0, 32], sizes = [2, 32], strides = [1, 1]} : vector<2x96xf32> to vector<2x32xf32>
    %39 = vector.extract_strided_slice %29 {offsets = [0, 32], sizes = [2, 32], strides = [1, 1]} : vector<2x96xf32> to vector<2x32xf32>
    %40 = arith.addf %38, %39 : vector<2x32xf32>
    %41 = arith.negf %40 : vector<2x32xf32>
    %42 = math.exp %41 : vector<2x32xf32>
    %cst_31 = arith.constant 1.000000e+00 : f32
    %43 = vector.broadcast %cst_31 : f32 to vector<2x32xf32>
    %44 = arith.addf %43, %42 : vector<2x32xf32>
    %45 = arith.divf %43, %44 : vector<2x32xf32>
    %46 = vector.extract_strided_slice %26 {offsets = [0, 64], sizes = [2, 32], strides = [1, 1]} : vector<2x96xf32> to vector<2x32xf32>
    %47 = vector.extract_strided_slice %29 {offsets = [0, 64], sizes = [2, 32], strides = [1, 1]} : vector<2x96xf32> to vector<2x32xf32>
    %48 = arith.mulf %37, %47 : vector<2x32xf32>
    %49 = arith.addf %46, %48 : vector<2x32xf32>
    %50 = math.tanh %49 : vector<2x32xf32>
    %cst_32 = arith.constant 1.000000e+00 : f32
    %51 = vector.broadcast %cst_32 : f32 to vector<2x32xf32>
    %52 = arith.subf %51, %45 : vector<2x32xf32>
    %53 = arith.mulf %52, %50 : vector<2x32xf32>
    %54 = arith.mulf %45, %24 : vector<2x32xf32>
    %55 = arith.addf %53, %54 : vector<2x32xf32>
    %c30 = arith.constant 30 : index
    %c0_33 = arith.constant 0 : index
    %56 = vector.load %arg23[%c30, %c0_33] : memref<32x96xf32, #tpu.memory_space<vmem>>, vector<2x96xf32>
    %cst_34 = arith.constant dense<0.000000e+00> : vector<2x96xf32>
    %57 = tpu.matmul %25, %22, %cst_34 {dimension_numbers = #tpu.dot_dimension_numbers<[1], [0], [0], [1], [0, 0, 1, 1], [], []>} : vector<2x32xf32>, vector<32x96xf32>, vector<2x96xf32> -> vector<2x96xf32>
    %58 = vector.broadcast %23 : vector<1x96xf32> to vector<2x96xf32>
    %59 = arith.addf %57, %58 : vector<2x96xf32>
    %60 = vector.extract_strided_slice %56 {offsets = [0, 0], sizes = [2, 32], strides = [1, 1]} : vector<2x96xf32> to vector<2x32xf32>
    %61 = vector.extract_strided_slice %59 {offsets = [0, 0], sizes = [2, 32], strides = [1, 1]} : vector<2x96xf32> to vector<2x32xf32>
    %62 = arith.addf %60, %61 : vector<2x32xf32>
    %63 = arith.negf %62 : vector<2x32xf32>
    %64 = math.exp %63 : vector<2x32xf32>
    %cst_35 = arith.constant 1.000000e+00 : f32
    %65 = vector.broadcast %cst_35 : f32 to vector<2x32xf32>
    %66 = arith.addf %65, %64 : vector<2x32xf32>
    %67 = arith.divf %65, %66 : vector<2x32xf32>
    %68 = vector.extract_strided_slice %56 {offsets = [0, 32], sizes = [2, 32], strides = [1, 1]} : vector<2x96xf32> to vector<2x32xf32>
    %69 = vector.extract_strided_slice %59 {offsets = [0, 32], sizes = [2, 32], strides = [1, 1]} : vector<2x96xf32> to vector<2x32xf32>
    %70 = arith.addf %68, %69 : vector<2x32xf32>
    %71 = arith.negf %70 : vector<2x32xf32>
    %72 = math.exp %71 : vector<2x32xf32>
    %cst_36 = arith.constant 1.000000e+00 : f32
    %73 = vector.broadcast %cst_36 : f32 to vector<2x32xf32>
    %74 = arith.addf %73, %72 : vector<2x32xf32>
    %75 = arith.divf %73, %74 : vector<2x32xf32>
    %76 = vector.extract_strided_slice %56 {offsets = [0, 64], sizes = [2, 32], strides = [1, 1]} : vector<2x96xf32> to vector<2x32xf32>
    %77 = vector.extract_strided_slice %59 {offsets = [0, 64], sizes = [2, 32], strides = [1, 1]} : vector<2x96xf32> to vector<2x32xf32>
    %78 = arith.mulf %67, %77 : vector<2x32xf32>
    %79 = arith.addf %76, %78 : vector<2x32xf32>
    %80 = math.tanh %79 : vector<2x32xf32>
    %cst_37 = arith.constant 1.000000e+00 : f32
    %81 = vector.broadcast %cst_37 : f32 to vector<2x32xf32>
    %82 = arith.subf %81, %75 : vector<2x32xf32>
    %83 = arith.mulf %82, %80 : vector<2x32xf32>
    %84 = arith.mulf %75, %25 : vector<2x32xf32>
    %85 = arith.addf %83, %84 : vector<2x32xf32>
    %c0_38 = arith.constant 0 : index
    %c0_39 = arith.constant 0 : index
    %86 = vector.load %arg26[%c0_38, %c0_39] : memref<32x32xf32, #tpu.memory_space<vmem>>, vector<2x32xf32>
    tpu.vector_store %arg26[%c0_38, %c0_39], %55 {strides = array<i32>} : memref<32x32xf32, #tpu.memory_space<vmem>>, vector<2x32xf32>,
    %c30_40 = arith.constant 30 : index
    %c0_41 = arith.constant 0 : index
    %87 = vector.load %arg27[%c30_40, %c0_41] : memref<32x32xf32, #tpu.memory_space<vmem>>, vector<2x32xf32>
    tpu.vector_store %arg27[%c30_40, %c0_41], %85 {strides = array<i32>} : memref<32x32xf32, #tpu.memory_space<vmem>>, vector<2x32xf32>,
    %c2 = arith.constant 2 : index
    %c0_42 = arith.constant 0 : index
    %88 = vector.load %arg22[%c2, %c0_42] : memref<32x96xf32, #tpu.memory_space<vmem>>, vector<2x96xf32>
    %cst_43 = arith.constant dense<0.000000e+00> : vector<2x96xf32>
    %89 = tpu.matmul %55, %20, %cst_43 {dimension_numbers = #tpu.dot_dimension_numbers<[1], [0], [0], [1], [0, 0, 1, 1], [], []>} : vector<2x32xf32>, vector<32x96xf32>, vector<2x96xf32> -> vector<2x96xf32>
    %90 = vector.broadcast %21 : vector<1x96xf32> to vector<2x96xf32>
    %91 = arith.addf %89, %90 : vector<2x96xf32>
    %92 = vector.extract_strided_slice %88 {offsets = [0, 0], sizes = [2, 32], strides = [1, 1]} : vector<2x96xf32> to vector<2x32xf32>
    %93 = vector.extract_strided_slice %91 {offsets = [0, 0], sizes = [2, 32], strides = [1, 1]} : vector<2x96xf32> to vector<2x32xf32>
    %94 = arith.addf %92, %93 : vector<2x32xf32>
    %95 = arith.negf %94 : vector<2x32xf32>
    %96 = math.exp %95 : vector<2x32xf32>
    %cst_44 = arith.constant 1.000000e+00 : f32
    %97 = vector.broadcast %cst_44 : f32 to vector<2x32xf32>
    %98 = arith.addf %97, %96 : vector<2x32xf32>
    %99 = arith.divf %97, %98 : vector<2x32xf32>
    %100 = vector.extract_strided_slice %88 {offsets = [0, 32], sizes = [2, 32], strides = [1, 1]} : vector<2x96xf32> to vector<2x32xf32>
    %101 = vector.extract_strided_slice %91 {offsets = [0, 32], sizes = [2, 32], strides = [1, 1]} : vector<2x96xf32> to vector<2x32xf32>
    %102 = arith.addf %100, %101 : vector<2x32xf32>
    %103 = arith.negf %102 : vector<2x32xf32>
    %104 = math.exp %103 : vector<2x32xf32>
    %cst_45 = arith.constant 1.000000e+00 : f32
    %105 = vector.broadcast %cst_45 : f32 to vector<2x32xf32>
    %106 = arith.addf %105, %104 : vector<2x32xf32>
    %107 = arith.divf %105, %106 : vector<2x32xf32>
    %108 = vector.extract_strided_slice %88 {offsets = [0, 64], sizes = [2, 32], strides = [1, 1]} : vector<2x96xf32> to vector<2x32xf32>
    %109 = vector.extract_strided_slice %91 {offsets = [0, 64], sizes = [2, 32], strides = [1, 1]} : vector<2x96xf32> to vector<2x32xf32>
    %110 = arith.mulf %99, %109 : vector<2x32xf32>
    %111 = arith.addf %108, %110 : vector<2x32xf32>
    %112 = math.tanh %111 : vector<2x32xf32>
    %cst_46 = arith.constant 1.000000e+00 : f32
    %113 = vector.broadcast %cst_46 : f32 to vector<2x32xf32>
    %114 = arith.subf %113, %107 : vector<2x32xf32>
    %115 = arith.mulf %114, %112 : vector<2x32xf32>
    %116 = arith.mulf %107, %55 : vector<2x32xf32>
    %117 = arith.addf %115, %116 : vector<2x32xf32>
    %c28 = arith.constant 28 : index
    %c0_47 = arith.constant 0 : index
    %118 = vector.load %arg23[%c28, %c0_47] : memref<32x96xf32, #tpu.memory_space<vmem>>, vector<2x96xf32>
    %cst_48 = arith.constant dense<0.000000e+00> : vector<2x96xf32>
    %119 = tpu.matmul %85, %22, %cst_48 {dimension_numbers = #tpu.dot_dimension_numbers<[1], [0], [0], [1], [0, 0, 1, 1], [], []>} : vector<2x32xf32>, vector<32x96xf32>, vector<2x96xf32> -> vector<2x96xf32>
    %120 = vector.broadcast %23 : vector<1x96xf32> to vector<2x96xf32>
    %121 = arith.addf %119, %120 : vector<2x96xf32>
    %122 = vector.extract_strided_slice %118 {offsets = [0, 0], sizes = [2, 32], strides = [1, 1]} : vector<2x96xf32> to vector<2x32xf32>
    %123 = vector.extract_strided_slice %121 {offsets = [0, 0], sizes = [2, 32], strides = [1, 1]} : vector<2x96xf32> to vector<2x32xf32>
    %124 = arith.addf %122, %123 : vector<2x32xf32>
    %125 = arith.negf %124 : vector<2x32xf32>
    %126 = math.exp %125 : vector<2x32xf32>
    %cst_49 = arith.constant 1.000000e+00 : f32
    %127 = vector.broadcast %cst_49 : f32 to vector<2x32xf32>
    %128 = arith.addf %127, %126 : vector<2x32xf32>
    %129 = arith.divf %127, %128 : vector<2x32xf32>
    %130 = vector.extract_strided_slice %118 {offsets = [0, 32], sizes = [2, 32], strides = [1, 1]} : vector<2x96xf32> to vector<2x32xf32>
    %131 = vector.extract_strided_slice %121 {offsets = [0, 32], sizes = [2, 32], strides = [1, 1]} : vector<2x96xf32> to vector<2x32xf32>
    %132 = arith.addf %130, %131 : vector<2x32xf32>
    %133 = arith.negf %132 : vector<2x32xf32>
    %134 = math.exp %133 : vector<2x32xf32>
    %cst_50 = arith.constant 1.000000e+00 : f32
    %135 = vector.broadcast %cst_50 : f32 to vector<2x32xf32>
    %136 = arith.addf %135, %134 : vector<2x32xf32>
    %137 = arith.divf %135, %136 : vector<2x32xf32>
    %138 = vector.extract_strided_slice %118 {offsets = [0, 64], sizes = [2, 32], strides = [1, 1]} : vector<2x96xf32> to vector<2x32xf32>
    %139 = vector.extract_strided_slice %121 {offsets = [0, 64], sizes = [2, 32], strides = [1, 1]} : vector<2x96xf32> to vector<2x32xf32>
    %140 = arith.mulf %129, %139 : vector<2x32xf32>
    %141 = arith.addf %138, %140 : vector<2x32xf32>
    %142 = math.tanh %141 : vector<2x32xf32>
    %cst_51 = arith.constant 1.000000e+00 : f32
    %143 = vector.broadcast %cst_51 : f32 to vector<2x32xf32>
    %144 = arith.subf %143, %137 : vector<2x32xf32>
    %145 = arith.mulf %144, %142 : vector<2x32xf32>
    %146 = arith.mulf %137, %85 : vector<2x32xf32>
    %147 = arith.addf %145, %146 : vector<2x32xf32>
    %c2_52 = arith.constant 2 : index
    %c0_53 = arith.constant 0 : index
    %148 = vector.load %arg26[%c2_52, %c0_53] : memref<32x32xf32, #tpu.memory_space<vmem>>, vector<2x32xf32>
    tpu.vector_store %arg26[%c2_52, %c0_53], %117 {strides = array<i32>} : memref<32x32xf32, #tpu.memory_space<vmem>>, vector<2x32xf32>,
    %c28_54 = arith.constant 28 : index
    %c0_55 = arith.constant 0 : index
    %149 = vector.load %arg27[%c28_54, %c0_55] : memref<32x32xf32, #tpu.memory_space<vmem>>, vector<2x32xf32>
    tpu.vector_store %arg27[%c28_54, %c0_55], %147 {strides = array<i32>} : memref<32x32xf32, #tpu.memory_space<vmem>>, vector<2x32xf32>,
    %c4 = arith.constant 4 : index
    %c0_56 = arith.constant 0 : index
    %150 = vector.load %arg22[%c4, %c0_56] : memref<32x96xf32, #tpu.memory_space<vmem>>, vector<2x96xf32>
    %cst_57 = arith.constant dense<0.000000e+00> : vector<2x96xf32>
    %151 = tpu.matmul %117, %20, %cst_57 {dimension_numbers = #tpu.dot_dimension_numbers<[1], [0], [0], [1], [0, 0, 1, 1], [], []>} : vector<2x32xf32>, vector<32x96xf32>, vector<2x96xf32> -> vector<2x96xf32>
    %152 = vector.broadcast %21 : vector<1x96xf32> to vector<2x96xf32>
    %153 = arith.addf %151, %152 : vector<2x96xf32>
    %154 = vector.extract_strided_slice %150 {offsets = [0, 0], sizes = [2, 32], strides = [1, 1]} : vector<2x96xf32> to vector<2x32xf32>
    %155 = vector.extract_strided_slice %153 {offsets = [0, 0], sizes = [2, 32], strides = [1, 1]} : vector<2x96xf32> to vector<2x32xf32>
    %156 = arith.addf %154, %155 : vector<2x32xf32>
    %157 = arith.negf %156 : vector<2x32xf32>
    %158 = math.exp %157 : vector<2x32xf32>
    %cst_58 = arith.constant 1.000000e+00 : f32
    %159 = vector.broadcast %cst_58 : f32 to vector<2x32xf32>
    %160 = arith.addf %159, %158 : vector<2x32xf32>
    %161 = arith.divf %159, %160 : vector<2x32xf32>
    %162 = vector.extract_strided_slice %150 {offsets = [0, 32], sizes = [2, 32], strides = [1, 1]} : vector<2x96xf32> to vector<2x32xf32>
    %163 = vector.extract_strided_slice %153 {offsets = [0, 32], sizes = [2, 32], strides = [1, 1]} : vector<2x96xf32> to vector<2x32xf32>
    %164 = arith.addf %162, %163 : vector<2x32xf32>
    %165 = arith.negf %164 : vector<2x32xf32>
    %166 = math.exp %165 : vector<2x32xf32>
    %cst_59 = arith.constant 1.000000e+00 : f32
    %167 = vector.broadcast %cst_59 : f32 to vector<2x32xf32>
    %168 = arith.addf %167, %166 : vector<2x32xf32>
    %169 = arith.divf %167, %168 : vector<2x32xf32>
    %170 = vector.extract_strided_slice %150 {offsets = [0, 64], sizes = [2, 32], strides = [1, 1]} : vector<2x96xf32> to vector<2x32xf32>
    %171 = vector.extract_strided_slice %153 {offsets = [0, 64], sizes = [2, 32], strides = [1, 1]} : vector<2x96xf32> to vector<2x32xf32>
    %172 = arith.mulf %161, %171 : vector<2x32xf32>
    %173 = arith.addf %170, %172 : vector<2x32xf32>
    %174 = math.tanh %173 : vector<2x32xf32>
    %cst_60 = arith.constant 1.000000e+00 : f32
    %175 = vector.broadcast %cst_60 : f32 to vector<2x32xf32>
    %176 = arith.subf %175, %169 : vector<2x32xf32>
    %177 = arith.mulf %176, %174 : vector<2x32xf32>
    %178 = arith.mulf %169, %117 : vector<2x32xf32>
    %179 = arith.addf %177, %178 : vector<2x32xf32>
    %c26 = arith.constant 26 : index
    %c0_61 = arith.constant 0 : index
    %180 = vector.load %arg23[%c26, %c0_61] : memref<32x96xf32, #tpu.memory_space<vmem>>, vector<2x96xf32>
    %cst_62 = arith.constant dense<0.000000e+00> : vector<2x96xf32>
    %181 = tpu.matmul %147, %22, %cst_62 {dimension_numbers = #tpu.dot_dimension_numbers<[1], [0], [0], [1], [0, 0, 1, 1], [], []>} : vector<2x32xf32>, vector<32x96xf32>, vector<2x96xf32> -> vector<2x96xf32>
    %182 = vector.broadcast %23 : vector<1x96xf32> to vector<2x96xf32>
    %183 = arith.addf %181, %182 : vector<2x96xf32>
    %184 = vector.extract_strided_slice %180 {offsets = [0, 0], sizes = [2, 32], strides = [1, 1]} : vector<2x96xf32> to vector<2x32xf32>
    %185 = vector.extract_strided_slice %183 {offsets = [0, 0], sizes = [2, 32], strides = [1, 1]} : vector<2x96xf32> to vector<2x32xf32>
    %186 = arith.addf %184, %185 : vector<2x32xf32>
    %187 = arith.negf %186 : vector<2x32xf32>
    %188 = math.exp %187 : vector<2x32xf32>
    %cst_63 = arith.constant 1.000000e+00 : f32
    %189 = vector.broadcast %cst_63 : f32 to vector<2x32xf32>
    %190 = arith.addf %189, %188 : vector<2x32xf32>
    %191 = arith.divf %189, %190 : vector<2x32xf32>
    %192 = vector.extract_strided_slice %180 {offsets = [0, 32], sizes = [2, 32], strides = [1, 1]} : vector<2x96xf32> to vector<2x32xf32>
    %193 = vector.extract_strided_slice %183 {offsets = [0, 32], sizes = [2, 32], strides = [1, 1]} : vector<2x96xf32> to vector<2x32xf32>
    %194 = arith.addf %192, %193 : vector<2x32xf32>
    %195 = arith.negf %194 : vector<2x32xf32>
    %196 = math.exp %195 : vector<2x32xf32>
    %cst_64 = arith.constant 1.000000e+00 : f32
    %197 = vector.broadcast %cst_64 : f32 to vector<2x32xf32>
    %198 = arith.addf %197, %196 : vector<2x32xf32>
    %199 = arith.divf %197, %198 : vector<2x32xf32>
    %200 = vector.extract_strided_slice %180 {offsets = [0, 64], sizes = [2, 32], strides = [1, 1]} : vector<2x96xf32> to vector<2x32xf32>
    %201 = vector.extract_strided_slice %183 {offsets = [0, 64], sizes = [2, 32], strides = [1, 1]} : vector<2x96xf32> to vector<2x32xf32>
    %202 = arith.mulf %191, %201 : vector<2x32xf32>
    %203 = arith.addf %200, %202 : vector<2x32xf32>
    %204 = math.tanh %203 : vector<2x32xf32>
    %cst_65 = arith.constant 1.000000e+00 : f32
    %205 = vector.broadcast %cst_65 : f32 to vector<2x32xf32>
    %206 = arith.subf %205, %199 : vector<2x32xf32>
    %207 = arith.mulf %206, %204 : vector<2x32xf32>
    %208 = arith.mulf %199, %147 : vector<2x32xf32>
    %209 = arith.addf %207, %208 : vector<2x32xf32>
    %c4_66 = arith.constant 4 : index
    %c0_67 = arith.constant 0 : index
    %210 = vector.load %arg26[%c4_66, %c0_67] : memref<32x32xf32, #tpu.memory_space<vmem>>, vector<2x32xf32>
    tpu.vector_store %arg26[%c4_66, %c0_67], %179 {strides = array<i32>} : memref<32x32xf32, #tpu.memory_space<vmem>>, vector<2x32xf32>,
    %c26_68 = arith.constant 26 : index
    %c0_69 = arith.constant 0 : index
    %211 = vector.load %arg27[%c26_68, %c0_69] : memref<32x32xf32, #tpu.memory_space<vmem>>, vector<2x32xf32>
    tpu.vector_store %arg27[%c26_68, %c0_69], %209 {strides = array<i32>} : memref<32x32xf32, #tpu.memory_space<vmem>>, vector<2x32xf32>,
    %c6 = arith.constant 6 : index
    %c0_70 = arith.constant 0 : index
    %212 = vector.load %arg22[%c6, %c0_70] : memref<32x96xf32, #tpu.memory_space<vmem>>, vector<2x96xf32>
    %cst_71 = arith.constant dense<0.000000e+00> : vector<2x96xf32>
    %213 = tpu.matmul %179, %20, %cst_71 {dimension_numbers = #tpu.dot_dimension_numbers<[1], [0], [0], [1], [0, 0, 1, 1], [], []>} : vector<2x32xf32>, vector<32x96xf32>, vector<2x96xf32> -> vector<2x96xf32>
    %214 = vector.broadcast %21 : vector<1x96xf32> to vector<2x96xf32>
    %215 = arith.addf %213, %214 : vector<2x96xf32>
    %216 = vector.extract_strided_slice %212 {offsets = [0, 0], sizes = [2, 32], strides = [1, 1]} : vector<2x96xf32> to vector<2x32xf32>
    %217 = vector.extract_strided_slice %215 {offsets = [0, 0], sizes = [2, 32], strides = [1, 1]} : vector<2x96xf32> to vector<2x32xf32>
    %218 = arith.addf %216, %217 : vector<2x32xf32>
    %219 = arith.negf %218 : vector<2x32xf32>
    %220 = math.exp %219 : vector<2x32xf32>
    %cst_72 = arith.constant 1.000000e+00 : f32
    %221 = vector.broadcast %cst_72 : f32 to vector<2x32xf32>
    %222 = arith.addf %221, %220 : vector<2x32xf32>
    %223 = arith.divf %221, %222 : vector<2x32xf32>
    %224 = vector.extract_strided_slice %212 {offsets = [0, 32], sizes = [2, 32], strides = [1, 1]} : vector<2x96xf32> to vector<2x32xf32>
    %225 = vector.extract_strided_slice %215 {offsets = [0, 32], sizes = [2, 32], strides = [1, 1]} : vector<2x96xf32> to vector<2x32xf32>
    %226 = arith.addf %224, %225 : vector<2x32xf32>
    %227 = arith.negf %226 : vector<2x32xf32>
    %228 = math.exp %227 : vector<2x32xf32>
    %cst_73 = arith.constant 1.000000e+00 : f32
    %229 = vector.broadcast %cst_73 : f32 to vector<2x32xf32>
    %230 = arith.addf %229, %228 : vector<2x32xf32>
    %231 = arith.divf %229, %230 : vector<2x32xf32>
    %232 = vector.extract_strided_slice %212 {offsets = [0, 64], sizes = [2, 32], strides = [1, 1]} : vector<2x96xf32> to vector<2x32xf32>
    %233 = vector.extract_strided_slice %215 {offsets = [0, 64], sizes = [2, 32], strides = [1, 1]} : vector<2x96xf32> to vector<2x32xf32>
    %234 = arith.mulf %223, %233 : vector<2x32xf32>
    %235 = arith.addf %232, %234 : vector<2x32xf32>
    %236 = math.tanh %235 : vector<2x32xf32>
    %cst_74 = arith.constant 1.000000e+00 : f32
    %237 = vector.broadcast %cst_74 : f32 to vector<2x32xf32>
    %238 = arith.subf %237, %231 : vector<2x32xf32>
    %239 = arith.mulf %238, %236 : vector<2x32xf32>
    %240 = arith.mulf %231, %179 : vector<2x32xf32>
    %241 = arith.addf %239, %240 : vector<2x32xf32>
    %c24 = arith.constant 24 : index
    %c0_75 = arith.constant 0 : index
    %242 = vector.load %arg23[%c24, %c0_75] : memref<32x96xf32, #tpu.memory_space<vmem>>, vector<2x96xf32>
    %cst_76 = arith.constant dense<0.000000e+00> : vector<2x96xf32>
    %243 = tpu.matmul %209, %22, %cst_76 {dimension_numbers = #tpu.dot_dimension_numbers<[1], [0], [0], [1], [0, 0, 1, 1], [], []>} : vector<2x32xf32>, vector<32x96xf32>, vector<2x96xf32> -> vector<2x96xf32>
    %244 = vector.broadcast %23 : vector<1x96xf32> to vector<2x96xf32>
    %245 = arith.addf %243, %244 : vector<2x96xf32>
    %246 = vector.extract_strided_slice %242 {offsets = [0, 0], sizes = [2, 32], strides = [1, 1]} : vector<2x96xf32> to vector<2x32xf32>
    %247 = vector.extract_strided_slice %245 {offsets = [0, 0], sizes = [2, 32], strides = [1, 1]} : vector<2x96xf32> to vector<2x32xf32>
    %248 = arith.addf %246, %247 : vector<2x32xf32>
    %249 = arith.negf %248 : vector<2x32xf32>
    %250 = math.exp %249 : vector<2x32xf32>
    %cst_77 = arith.constant 1.000000e+00 : f32
    %251 = vector.broadcast %cst_77 : f32 to vector<2x32xf32>
    %252 = arith.addf %251, %250 : vector<2x32xf32>
    %253 = arith.divf %251, %252 : vector<2x32xf32>
    %254 = vector.extract_strided_slice %242 {offsets = [0, 32], sizes = [2, 32], strides = [1, 1]} : vector<2x96xf32> to vector<2x32xf32>
    %255 = vector.extract_strided_slice %245 {offsets = [0, 32], sizes = [2, 32], strides = [1, 1]} : vector<2x96xf32> to vector<2x32xf32>
    %256 = arith.addf %254, %255 : vector<2x32xf32>
    %257 = arith.negf %256 : vector<2x32xf32>
    %258 = math.exp %257 : vector<2x32xf32>
    %cst_78 = arith.constant 1.000000e+00 : f32
    %259 = vector.broadcast %cst_78 : f32 to vector<2x32xf32>
    %260 = arith.addf %259, %258 : vector<2x32xf32>
    %261 = arith.divf %259, %260 : vector<2x32xf32>
    %262 = vector.extract_strided_slice %242 {offsets = [0, 64], sizes = [2, 32], strides = [1, 1]} : vector<2x96xf32> to vector<2x32xf32>
    %263 = vector.extract_strided_slice %245 {offsets = [0, 64], sizes = [2, 32], strides = [1, 1]} : vector<2x96xf32> to vector<2x32xf32>
    %264 = arith.mulf %253, %263 : vector<2x32xf32>
    %265 = arith.addf %262, %264 : vector<2x32xf32>
    %266 = math.tanh %265 : vector<2x32xf32>
    %cst_79 = arith.constant 1.000000e+00 : f32
    %267 = vector.broadcast %cst_79 : f32 to vector<2x32xf32>
    %268 = arith.subf %267, %261 : vector<2x32xf32>
    %269 = arith.mulf %268, %266 : vector<2x32xf32>
    %270 = arith.mulf %261, %209 : vector<2x32xf32>
    %271 = arith.addf %269, %270 : vector<2x32xf32>
    %c6_80 = arith.constant 6 : index
    %c0_81 = arith.constant 0 : index
    %272 = vector.load %arg26[%c6_80, %c0_81] : memref<32x32xf32, #tpu.memory_space<vmem>>, vector<2x32xf32>
    tpu.vector_store %arg26[%c6_80, %c0_81], %241 {strides = array<i32>} : memref<32x32xf32, #tpu.memory_space<vmem>>, vector<2x32xf32>,
    %c24_82 = arith.constant 24 : index
    %c0_83 = arith.constant 0 : index
    %273 = vector.load %arg27[%c24_82, %c0_83] : memref<32x32xf32, #tpu.memory_space<vmem>>, vector<2x32xf32>
    tpu.vector_store %arg27[%c24_82, %c0_83], %271 {strides = array<i32>} : memref<32x32xf32, #tpu.memory_space<vmem>>, vector<2x32xf32>,
    %c8 = arith.constant 8 : index
    %c0_84 = arith.constant 0 : index
    %274 = vector.load %arg22[%c8, %c0_84] : memref<32x96xf32, #tpu.memory_space<vmem>>, vector<2x96xf32>
    %cst_85 = arith.constant dense<0.000000e+00> : vector<2x96xf32>
    %275 = tpu.matmul %241, %20, %cst_85 {dimension_numbers = #tpu.dot_dimension_numbers<[1], [0], [0], [1], [0, 0, 1, 1], [], []>} : vector<2x32xf32>, vector<32x96xf32>, vector<2x96xf32> -> vector<2x96xf32>
    %276 = vector.broadcast %21 : vector<1x96xf32> to vector<2x96xf32>
    %277 = arith.addf %275, %276 : vector<2x96xf32>
    %278 = vector.extract_strided_slice %274 {offsets = [0, 0], sizes = [2, 32], strides = [1, 1]} : vector<2x96xf32> to vector<2x32xf32>
    %279 = vector.extract_strided_slice %277 {offsets = [0, 0], sizes = [2, 32], strides = [1, 1]} : vector<2x96xf32> to vector<2x32xf32>
    %280 = arith.addf %278, %279 : vector<2x32xf32>
    %281 = arith.negf %280 : vector<2x32xf32>
    %282 = math.exp %281 : vector<2x32xf32>
    %cst_86 = arith.constant 1.000000e+00 : f32
    %283 = vector.broadcast %cst_86 : f32 to vector<2x32xf32>
    %284 = arith.addf %283, %282 : vector<2x32xf32>
    %285 = arith.divf %283, %284 : vector<2x32xf32>
    %286 = vector.extract_strided_slice %274 {offsets = [0, 32], sizes = [2, 32], strides = [1, 1]} : vector<2x96xf32> to vector<2x32xf32>
    %287 = vector.extract_strided_slice %277 {offsets = [0, 32], sizes = [2, 32], strides = [1, 1]} : vector<2x96xf32> to vector<2x32xf32>
    %288 = arith.addf %286, %287 : vector<2x32xf32>
    %289 = arith.negf %288 : vector<2x32xf32>
    %290 = math.exp %289 : vector<2x32xf32>
    %cst_87 = arith.constant 1.000000e+00 : f32
    %291 = vector.broadcast %cst_87 : f32 to vector<2x32xf32>
    %292 = arith.addf %291, %290 : vector<2x32xf32>
    %293 = arith.divf %291, %292 : vector<2x32xf32>
    %294 = vector.extract_strided_slice %274 {offsets = [0, 64], sizes = [2, 32], strides = [1, 1]} : vector<2x96xf32> to vector<2x32xf32>
    %295 = vector.extract_strided_slice %277 {offsets = [0, 64], sizes = [2, 32], strides = [1, 1]} : vector<2x96xf32> to vector<2x32xf32>
    %296 = arith.mulf %285, %295 : vector<2x32xf32>
    %297 = arith.addf %294, %296 : vector<2x32xf32>
    %298 = math.tanh %297 : vector<2x32xf32>
    %cst_88 = arith.constant 1.000000e+00 : f32
    %299 = vector.broadcast %cst_88 : f32 to vector<2x32xf32>
    %300 = arith.subf %299, %293 : vector<2x32xf32>
    %301 = arith.mulf %300, %298 : vector<2x32xf32>
    %302 = arith.mulf %293, %241 : vector<2x32xf32>
    %303 = arith.addf %301, %302 : vector<2x32xf32>
    %c22 = arith.constant 22 : index
    %c0_89 = arith.constant 0 : index
    %304 = vector.load %arg23[%c22, %c0_89] : memref<32x96xf32, #tpu.memory_space<vmem>>, vector<2x96xf32>
    %cst_90 = arith.constant dense<0.000000e+00> : vector<2x96xf32>
    %305 = tpu.matmul %271, %22, %cst_90 {dimension_numbers = #tpu.dot_dimension_numbers<[1], [0], [0], [1], [0, 0, 1, 1], [], []>} : vector<2x32xf32>, vector<32x96xf32>, vector<2x96xf32> -> vector<2x96xf32>
    %306 = vector.broadcast %23 : vector<1x96xf32> to vector<2x96xf32>
    %307 = arith.addf %305, %306 : vector<2x96xf32>
    %308 = vector.extract_strided_slice %304 {offsets = [0, 0], sizes = [2, 32], strides = [1, 1]} : vector<2x96xf32> to vector<2x32xf32>
    %309 = vector.extract_strided_slice %307 {offsets = [0, 0], sizes = [2, 32], strides = [1, 1]} : vector<2x96xf32> to vector<2x32xf32>
    %310 = arith.addf %308, %309 : vector<2x32xf32>
    %311 = arith.negf %310 : vector<2x32xf32>
    %312 = math.exp %311 : vector<2x32xf32>
    %cst_91 = arith.constant 1.000000e+00 : f32
    %313 = vector.broadcast %cst_91 : f32 to vector<2x32xf32>
    %314 = arith.addf %313, %312 : vector<2x32xf32>
    %315 = arith.divf %313, %314 : vector<2x32xf32>
    %316 = vector.extract_strided_slice %304 {offsets = [0, 32], sizes = [2, 32], strides = [1, 1]} : vector<2x96xf32> to vector<2x32xf32>
    %317 = vector.extract_strided_slice %307 {offsets = [0, 32], sizes = [2, 32], strides = [1, 1]} : vector<2x96xf32> to vector<2x32xf32>
    %318 = arith.addf %316, %317 : vector<2x32xf32>
    %319 = arith.negf %318 : vector<2x32xf32>
    %320 = math.exp %319 : vector<2x32xf32>
    %cst_92 = arith.constant 1.000000e+00 : f32
    %321 = vector.broadcast %cst_92 : f32 to vector<2x32xf32>
    %322 = arith.addf %321, %320 : vector<2x32xf32>
    %323 = arith.divf %321, %322 : vector<2x32xf32>
    %324 = vector.extract_strided_slice %304 {offsets = [0, 64], sizes = [2, 32], strides = [1, 1]} : vector<2x96xf32> to vector<2x32xf32>
    %325 = vector.extract_strided_slice %307 {offsets = [0, 64], sizes = [2, 32], strides = [1, 1]} : vector<2x96xf32> to vector<2x32xf32>
    %326 = arith.mulf %315, %325 : vector<2x32xf32>
    %327 = arith.addf %324, %326 : vector<2x32xf32>
    %328 = math.tanh %327 : vector<2x32xf32>
    %cst_93 = arith.constant 1.000000e+00 : f32
    %329 = vector.broadcast %cst_93 : f32 to vector<2x32xf32>
    %330 = arith.subf %329, %323 : vector<2x32xf32>
    %331 = arith.mulf %330, %328 : vector<2x32xf32>
    %332 = arith.mulf %323, %271 : vector<2x32xf32>
    %333 = arith.addf %331, %332 : vector<2x32xf32>
    %c8_94 = arith.constant 8 : index
    %c0_95 = arith.constant 0 : index
    %334 = vector.load %arg26[%c8_94, %c0_95] : memref<32x32xf32, #tpu.memory_space<vmem>>, vector<2x32xf32>
    tpu.vector_store %arg26[%c8_94, %c0_95], %303 {strides = array<i32>} : memref<32x32xf32, #tpu.memory_space<vmem>>, vector<2x32xf32>,
    %c22_96 = arith.constant 22 : index
    %c0_97 = arith.constant 0 : index
    %335 = vector.load %arg27[%c22_96, %c0_97] : memref<32x32xf32, #tpu.memory_space<vmem>>, vector<2x32xf32>
    tpu.vector_store %arg27[%c22_96, %c0_97], %333 {strides = array<i32>} : memref<32x32xf32, #tpu.memory_space<vmem>>, vector<2x32xf32>,
    %c10 = arith.constant 10 : index
    %c0_98 = arith.constant 0 : index
    %336 = vector.load %arg22[%c10, %c0_98] : memref<32x96xf32, #tpu.memory_space<vmem>>, vector<2x96xf32>
    %cst_99 = arith.constant dense<0.000000e+00> : vector<2x96xf32>
    %337 = tpu.matmul %303, %20, %cst_99 {dimension_numbers = #tpu.dot_dimension_numbers<[1], [0], [0], [1], [0, 0, 1, 1], [], []>} : vector<2x32xf32>, vector<32x96xf32>, vector<2x96xf32> -> vector<2x96xf32>
    %338 = vector.broadcast %21 : vector<1x96xf32> to vector<2x96xf32>
    %339 = arith.addf %337, %338 : vector<2x96xf32>
    %340 = vector.extract_strided_slice %336 {offsets = [0, 0], sizes = [2, 32], strides = [1, 1]} : vector<2x96xf32> to vector<2x32xf32>
    %341 = vector.extract_strided_slice %339 {offsets = [0, 0], sizes = [2, 32], strides = [1, 1]} : vector<2x96xf32> to vector<2x32xf32>
    %342 = arith.addf %340, %341 : vector<2x32xf32>
    %343 = arith.negf %342 : vector<2x32xf32>
    %344 = math.exp %343 : vector<2x32xf32>
    %cst_100 = arith.constant 1.000000e+00 : f32
    %345 = vector.broadcast %cst_100 : f32 to vector<2x32xf32>
    %346 = arith.addf %345, %344 : vector<2x32xf32>
    %347 = arith.divf %345, %346 : vector<2x32xf32>
    %348 = vector.extract_strided_slice %336 {offsets = [0, 32], sizes = [2, 32], strides = [1, 1]} : vector<2x96xf32> to vector<2x32xf32>
    %349 = vector.extract_strided_slice %339 {offsets = [0, 32], sizes = [2, 32], strides = [1, 1]} : vector<2x96xf32> to vector<2x32xf32>
    %350 = arith.addf %348, %349 : vector<2x32xf32>
    %351 = arith.negf %350 : vector<2x32xf32>
    %352 = math.exp %351 : vector<2x32xf32>
    %cst_101 = arith.constant 1.000000e+00 : f32
    %353 = vector.broadcast %cst_101 : f32 to vector<2x32xf32>
    %354 = arith.addf %353, %352 : vector<2x32xf32>
    %355 = arith.divf %353, %354 : vector<2x32xf32>
    %356 = vector.extract_strided_slice %336 {offsets = [0, 64], sizes = [2, 32], strides = [1, 1]} : vector<2x96xf32> to vector<2x32xf32>
    %357 = vector.extract_strided_slice %339 {offsets = [0, 64], sizes = [2, 32], strides = [1, 1]} : vector<2x96xf32> to vector<2x32xf32>
    %358 = arith.mulf %347, %357 : vector<2x32xf32>
    %359 = arith.addf %356, %358 : vector<2x32xf32>
    %360 = math.tanh %359 : vector<2x32xf32>
    %cst_102 = arith.constant 1.000000e+00 : f32
    %361 = vector.broadcast %cst_102 : f32 to vector<2x32xf32>
    %362 = arith.subf %361, %355 : vector<2x32xf32>
    %363 = arith.mulf %362, %360 : vector<2x32xf32>
    %364 = arith.mulf %355, %303 : vector<2x32xf32>
    %365 = arith.addf %363, %364 : vector<2x32xf32>
    %c20 = arith.constant 20 : index
    %c0_103 = arith.constant 0 : index
    %366 = vector.load %arg23[%c20, %c0_103] : memref<32x96xf32, #tpu.memory_space<vmem>>, vector<2x96xf32>
    %cst_104 = arith.constant dense<0.000000e+00> : vector<2x96xf32>
    %367 = tpu.matmul %333, %22, %cst_104 {dimension_numbers = #tpu.dot_dimension_numbers<[1], [0], [0], [1], [0, 0, 1, 1], [], []>} : vector<2x32xf32>, vector<32x96xf32>, vector<2x96xf32> -> vector<2x96xf32>
    %368 = vector.broadcast %23 : vector<1x96xf32> to vector<2x96xf32>
    %369 = arith.addf %367, %368 : vector<2x96xf32>
    %370 = vector.extract_strided_slice %366 {offsets = [0, 0], sizes = [2, 32], strides = [1, 1]} : vector<2x96xf32> to vector<2x32xf32>
    %371 = vector.extract_strided_slice %369 {offsets = [0, 0], sizes = [2, 32], strides = [1, 1]} : vector<2x96xf32> to vector<2x32xf32>
    %372 = arith.addf %370, %371 : vector<2x32xf32>
    %373 = arith.negf %372 : vector<2x32xf32>
    %374 = math.exp %373 : vector<2x32xf32>
    %cst_105 = arith.constant 1.000000e+00 : f32
    %375 = vector.broadcast %cst_105 : f32 to vector<2x32xf32>
    %376 = arith.addf %375, %374 : vector<2x32xf32>
    %377 = arith.divf %375, %376 : vector<2x32xf32>
    %378 = vector.extract_strided_slice %366 {offsets = [0, 32], sizes = [2, 32], strides = [1, 1]} : vector<2x96xf32> to vector<2x32xf32>
    %379 = vector.extract_strided_slice %369 {offsets = [0, 32], sizes = [2, 32], strides = [1, 1]} : vector<2x96xf32> to vector<2x32xf32>
    %380 = arith.addf %378, %379 : vector<2x32xf32>
    %381 = arith.negf %380 : vector<2x32xf32>
    %382 = math.exp %381 : vector<2x32xf32>
    %cst_106 = arith.constant 1.000000e+00 : f32
    %383 = vector.broadcast %cst_106 : f32 to vector<2x32xf32>
    %384 = arith.addf %383, %382 : vector<2x32xf32>
    %385 = arith.divf %383, %384 : vector<2x32xf32>
    %386 = vector.extract_strided_slice %366 {offsets = [0, 64], sizes = [2, 32], strides = [1, 1]} : vector<2x96xf32> to vector<2x32xf32>
    %387 = vector.extract_strided_slice %369 {offsets = [0, 64], sizes = [2, 32], strides = [1, 1]} : vector<2x96xf32> to vector<2x32xf32>
    %388 = arith.mulf %377, %387 : vector<2x32xf32>
    %389 = arith.addf %386, %388 : vector<2x32xf32>
    %390 = math.tanh %389 : vector<2x32xf32>
    %cst_107 = arith.constant 1.000000e+00 : f32
    %391 = vector.broadcast %cst_107 : f32 to vector<2x32xf32>
    %392 = arith.subf %391, %385 : vector<2x32xf32>
    %393 = arith.mulf %392, %390 : vector<2x32xf32>
    %394 = arith.mulf %385, %333 : vector<2x32xf32>
    %395 = arith.addf %393, %394 : vector<2x32xf32>
    %c10_108 = arith.constant 10 : index
    %c0_109 = arith.constant 0 : index
    %396 = vector.load %arg26[%c10_108, %c0_109] : memref<32x32xf32, #tpu.memory_space<vmem>>, vector<2x32xf32>
    tpu.vector_store %arg26[%c10_108, %c0_109], %365 {strides = array<i32>} : memref<32x32xf32, #tpu.memory_space<vmem>>, vector<2x32xf32>,
    %c20_110 = arith.constant 20 : index
    %c0_111 = arith.constant 0 : index
    %397 = vector.load %arg27[%c20_110, %c0_111] : memref<32x32xf32, #tpu.memory_space<vmem>>, vector<2x32xf32>
    tpu.vector_store %arg27[%c20_110, %c0_111], %395 {strides = array<i32>} : memref<32x32xf32, #tpu.memory_space<vmem>>, vector<2x32xf32>,
    %c12 = arith.constant 12 : index
    %c0_112 = arith.constant 0 : index
    %398 = vector.load %arg22[%c12, %c0_112] : memref<32x96xf32, #tpu.memory_space<vmem>>, vector<2x96xf32>
    %cst_113 = arith.constant dense<0.000000e+00> : vector<2x96xf32>
    %399 = tpu.matmul %365, %20, %cst_113 {dimension_numbers = #tpu.dot_dimension_numbers<[1], [0], [0], [1], [0, 0, 1, 1], [], []>} : vector<2x32xf32>, vector<32x96xf32>, vector<2x96xf32> -> vector<2x96xf32>
    %400 = vector.broadcast %21 : vector<1x96xf32> to vector<2x96xf32>
    %401 = arith.addf %399, %400 : vector<2x96xf32>
    %402 = vector.extract_strided_slice %398 {offsets = [0, 0], sizes = [2, 32], strides = [1, 1]} : vector<2x96xf32> to vector<2x32xf32>
    %403 = vector.extract_strided_slice %401 {offsets = [0, 0], sizes = [2, 32], strides = [1, 1]} : vector<2x96xf32> to vector<2x32xf32>
    %404 = arith.addf %402, %403 : vector<2x32xf32>
    %405 = arith.negf %404 : vector<2x32xf32>
    %406 = math.exp %405 : vector<2x32xf32>
    %cst_114 = arith.constant 1.000000e+00 : f32
    %407 = vector.broadcast %cst_114 : f32 to vector<2x32xf32>
    %408 = arith.addf %407, %406 : vector<2x32xf32>
    %409 = arith.divf %407, %408 : vector<2x32xf32>
    %410 = vector.extract_strided_slice %398 {offsets = [0, 32], sizes = [2, 32], strides = [1, 1]} : vector<2x96xf32> to vector<2x32xf32>
    %411 = vector.extract_strided_slice %401 {offsets = [0, 32], sizes = [2, 32], strides = [1, 1]} : vector<2x96xf32> to vector<2x32xf32>
    %412 = arith.addf %410, %411 : vector<2x32xf32>
    %413 = arith.negf %412 : vector<2x32xf32>
    %414 = math.exp %413 : vector<2x32xf32>
    %cst_115 = arith.constant 1.000000e+00 : f32
    %415 = vector.broadcast %cst_115 : f32 to vector<2x32xf32>
    %416 = arith.addf %415, %414 : vector<2x32xf32>
    %417 = arith.divf %415, %416 : vector<2x32xf32>
    %418 = vector.extract_strided_slice %398 {offsets = [0, 64], sizes = [2, 32], strides = [1, 1]} : vector<2x96xf32> to vector<2x32xf32>
    %419 = vector.extract_strided_slice %401 {offsets = [0, 64], sizes = [2, 32], strides = [1, 1]} : vector<2x96xf32> to vector<2x32xf32>
    %420 = arith.mulf %409, %419 : vector<2x32xf32>
    %421 = arith.addf %418, %420 : vector<2x32xf32>
    %422 = math.tanh %421 : vector<2x32xf32>
    %cst_116 = arith.constant 1.000000e+00 : f32
    %423 = vector.broadcast %cst_116 : f32 to vector<2x32xf32>
    %424 = arith.subf %423, %417 : vector<2x32xf32>
    %425 = arith.mulf %424, %422 : vector<2x32xf32>
    %426 = arith.mulf %417, %365 : vector<2x32xf32>
    %427 = arith.addf %425, %426 : vector<2x32xf32>
    %c18 = arith.constant 18 : index
    %c0_117 = arith.constant 0 : index
    %428 = vector.load %arg23[%c18, %c0_117] : memref<32x96xf32, #tpu.memory_space<vmem>>, vector<2x96xf32>
    %cst_118 = arith.constant dense<0.000000e+00> : vector<2x96xf32>
    %429 = tpu.matmul %395, %22, %cst_118 {dimension_numbers = #tpu.dot_dimension_numbers<[1], [0], [0], [1], [0, 0, 1, 1], [], []>} : vector<2x32xf32>, vector<32x96xf32>, vector<2x96xf32> -> vector<2x96xf32>
    %430 = vector.broadcast %23 : vector<1x96xf32> to vector<2x96xf32>
    %431 = arith.addf %429, %430 : vector<2x96xf32>
    %432 = vector.extract_strided_slice %428 {offsets = [0, 0], sizes = [2, 32], strides = [1, 1]} : vector<2x96xf32> to vector<2x32xf32>
    %433 = vector.extract_strided_slice %431 {offsets = [0, 0], sizes = [2, 32], strides = [1, 1]} : vector<2x96xf32> to vector<2x32xf32>
    %434 = arith.addf %432, %433 : vector<2x32xf32>
    %435 = arith.negf %434 : vector<2x32xf32>
    %436 = math.exp %435 : vector<2x32xf32>
    %cst_119 = arith.constant 1.000000e+00 : f32
    %437 = vector.broadcast %cst_119 : f32 to vector<2x32xf32>
    %438 = arith.addf %437, %436 : vector<2x32xf32>
    %439 = arith.divf %437, %438 : vector<2x32xf32>
    %440 = vector.extract_strided_slice %428 {offsets = [0, 32], sizes = [2, 32], strides = [1, 1]} : vector<2x96xf32> to vector<2x32xf32>
    %441 = vector.extract_strided_slice %431 {offsets = [0, 32], sizes = [2, 32], strides = [1, 1]} : vector<2x96xf32> to vector<2x32xf32>
    %442 = arith.addf %440, %441 : vector<2x32xf32>
    %443 = arith.negf %442 : vector<2x32xf32>
    %444 = math.exp %443 : vector<2x32xf32>
    %cst_120 = arith.constant 1.000000e+00 : f32
    %445 = vector.broadcast %cst_120 : f32 to vector<2x32xf32>
    %446 = arith.addf %445, %444 : vector<2x32xf32>
    %447 = arith.divf %445, %446 : vector<2x32xf32>
    %448 = vector.extract_strided_slice %428 {offsets = [0, 64], sizes = [2, 32], strides = [1, 1]} : vector<2x96xf32> to vector<2x32xf32>
    %449 = vector.extract_strided_slice %431 {offsets = [0, 64], sizes = [2, 32], strides = [1, 1]} : vector<2x96xf32> to vector<2x32xf32>
    %450 = arith.mulf %439, %449 : vector<2x32xf32>
    %451 = arith.addf %448, %450 : vector<2x32xf32>
    %452 = math.tanh %451 : vector<2x32xf32>
    %cst_121 = arith.constant 1.000000e+00 : f32
    %453 = vector.broadcast %cst_121 : f32 to vector<2x32xf32>
    %454 = arith.subf %453, %447 : vector<2x32xf32>
    %455 = arith.mulf %454, %452 : vector<2x32xf32>
    %456 = arith.mulf %447, %395 : vector<2x32xf32>
    %457 = arith.addf %455, %456 : vector<2x32xf32>
    %c12_122 = arith.constant 12 : index
    %c0_123 = arith.constant 0 : index
    %458 = vector.load %arg26[%c12_122, %c0_123] : memref<32x32xf32, #tpu.memory_space<vmem>>, vector<2x32xf32>
    tpu.vector_store %arg26[%c12_122, %c0_123], %427 {strides = array<i32>} : memref<32x32xf32, #tpu.memory_space<vmem>>, vector<2x32xf32>,
    %c18_124 = arith.constant 18 : index
    %c0_125 = arith.constant 0 : index
    %459 = vector.load %arg27[%c18_124, %c0_125] : memref<32x32xf32, #tpu.memory_space<vmem>>, vector<2x32xf32>
    tpu.vector_store %arg27[%c18_124, %c0_125], %457 {strides = array<i32>} : memref<32x32xf32, #tpu.memory_space<vmem>>, vector<2x32xf32>,
    %c14 = arith.constant 14 : index
    %c0_126 = arith.constant 0 : index
    %460 = vector.load %arg22[%c14, %c0_126] : memref<32x96xf32, #tpu.memory_space<vmem>>, vector<2x96xf32>
    %cst_127 = arith.constant dense<0.000000e+00> : vector<2x96xf32>
    %461 = tpu.matmul %427, %20, %cst_127 {dimension_numbers = #tpu.dot_dimension_numbers<[1], [0], [0], [1], [0, 0, 1, 1], [], []>} : vector<2x32xf32>, vector<32x96xf32>, vector<2x96xf32> -> vector<2x96xf32>
    %462 = vector.broadcast %21 : vector<1x96xf32> to vector<2x96xf32>
    %463 = arith.addf %461, %462 : vector<2x96xf32>
    %464 = vector.extract_strided_slice %460 {offsets = [0, 0], sizes = [2, 32], strides = [1, 1]} : vector<2x96xf32> to vector<2x32xf32>
    %465 = vector.extract_strided_slice %463 {offsets = [0, 0], sizes = [2, 32], strides = [1, 1]} : vector<2x96xf32> to vector<2x32xf32>
    %466 = arith.addf %464, %465 : vector<2x32xf32>
    %467 = arith.negf %466 : vector<2x32xf32>
    %468 = math.exp %467 : vector<2x32xf32>
    %cst_128 = arith.constant 1.000000e+00 : f32
    %469 = vector.broadcast %cst_128 : f32 to vector<2x32xf32>
    %470 = arith.addf %469, %468 : vector<2x32xf32>
    %471 = arith.divf %469, %470 : vector<2x32xf32>
    %472 = vector.extract_strided_slice %460 {offsets = [0, 32], sizes = [2, 32], strides = [1, 1]} : vector<2x96xf32> to vector<2x32xf32>
    %473 = vector.extract_strided_slice %463 {offsets = [0, 32], sizes = [2, 32], strides = [1, 1]} : vector<2x96xf32> to vector<2x32xf32>
    %474 = arith.addf %472, %473 : vector<2x32xf32>
    %475 = arith.negf %474 : vector<2x32xf32>
    %476 = math.exp %475 : vector<2x32xf32>
    %cst_129 = arith.constant 1.000000e+00 : f32
    %477 = vector.broadcast %cst_129 : f32 to vector<2x32xf32>
    %478 = arith.addf %477, %476 : vector<2x32xf32>
    %479 = arith.divf %477, %478 : vector<2x32xf32>
    %480 = vector.extract_strided_slice %460 {offsets = [0, 64], sizes = [2, 32], strides = [1, 1]} : vector<2x96xf32> to vector<2x32xf32>
    %481 = vector.extract_strided_slice %463 {offsets = [0, 64], sizes = [2, 32], strides = [1, 1]} : vector<2x96xf32> to vector<2x32xf32>
    %482 = arith.mulf %471, %481 : vector<2x32xf32>
    %483 = arith.addf %480, %482 : vector<2x32xf32>
    %484 = math.tanh %483 : vector<2x32xf32>
    %cst_130 = arith.constant 1.000000e+00 : f32
    %485 = vector.broadcast %cst_130 : f32 to vector<2x32xf32>
    %486 = arith.subf %485, %479 : vector<2x32xf32>
    %487 = arith.mulf %486, %484 : vector<2x32xf32>
    %488 = arith.mulf %479, %427 : vector<2x32xf32>
    %489 = arith.addf %487, %488 : vector<2x32xf32>
    %c16 = arith.constant 16 : index
    %c0_131 = arith.constant 0 : index
    %490 = vector.load %arg23[%c16, %c0_131] : memref<32x96xf32, #tpu.memory_space<vmem>>, vector<2x96xf32>
    %cst_132 = arith.constant dense<0.000000e+00> : vector<2x96xf32>
    %491 = tpu.matmul %457, %22, %cst_132 {dimension_numbers = #tpu.dot_dimension_numbers<[1], [0], [0], [1], [0, 0, 1, 1], [], []>} : vector<2x32xf32>, vector<32x96xf32>, vector<2x96xf32> -> vector<2x96xf32>
    %492 = vector.broadcast %23 : vector<1x96xf32> to vector<2x96xf32>
    %493 = arith.addf %491, %492 : vector<2x96xf32>
    %494 = vector.extract_strided_slice %490 {offsets = [0, 0], sizes = [2, 32], strides = [1, 1]} : vector<2x96xf32> to vector<2x32xf32>
    %495 = vector.extract_strided_slice %493 {offsets = [0, 0], sizes = [2, 32], strides = [1, 1]} : vector<2x96xf32> to vector<2x32xf32>
    %496 = arith.addf %494, %495 : vector<2x32xf32>
    %497 = arith.negf %496 : vector<2x32xf32>
    %498 = math.exp %497 : vector<2x32xf32>
    %cst_133 = arith.constant 1.000000e+00 : f32
    %499 = vector.broadcast %cst_133 : f32 to vector<2x32xf32>
    %500 = arith.addf %499, %498 : vector<2x32xf32>
    %501 = arith.divf %499, %500 : vector<2x32xf32>
    %502 = vector.extract_strided_slice %490 {offsets = [0, 32], sizes = [2, 32], strides = [1, 1]} : vector<2x96xf32> to vector<2x32xf32>
    %503 = vector.extract_strided_slice %493 {offsets = [0, 32], sizes = [2, 32], strides = [1, 1]} : vector<2x96xf32> to vector<2x32xf32>
    %504 = arith.addf %502, %503 : vector<2x32xf32>
    %505 = arith.negf %504 : vector<2x32xf32>
    %506 = math.exp %505 : vector<2x32xf32>
    %cst_134 = arith.constant 1.000000e+00 : f32
    %507 = vector.broadcast %cst_134 : f32 to vector<2x32xf32>
    %508 = arith.addf %507, %506 : vector<2x32xf32>
    %509 = arith.divf %507, %508 : vector<2x32xf32>
    %510 = vector.extract_strided_slice %490 {offsets = [0, 64], sizes = [2, 32], strides = [1, 1]} : vector<2x96xf32> to vector<2x32xf32>
    %511 = vector.extract_strided_slice %493 {offsets = [0, 64], sizes = [2, 32], strides = [1, 1]} : vector<2x96xf32> to vector<2x32xf32>
    %512 = arith.mulf %501, %511 : vector<2x32xf32>
    %513 = arith.addf %510, %512 : vector<2x32xf32>
    %514 = math.tanh %513 : vector<2x32xf32>
    %cst_135 = arith.constant 1.000000e+00 : f32
    %515 = vector.broadcast %cst_135 : f32 to vector<2x32xf32>
    %516 = arith.subf %515, %509 : vector<2x32xf32>
    %517 = arith.mulf %516, %514 : vector<2x32xf32>
    %518 = arith.mulf %509, %457 : vector<2x32xf32>
    %519 = arith.addf %517, %518 : vector<2x32xf32>
    %c14_136 = arith.constant 14 : index
    %c0_137 = arith.constant 0 : index
    %520 = vector.load %arg26[%c14_136, %c0_137] : memref<32x32xf32, #tpu.memory_space<vmem>>, vector<2x32xf32>
    tpu.vector_store %arg26[%c14_136, %c0_137], %489 {strides = array<i32>} : memref<32x32xf32, #tpu.memory_space<vmem>>, vector<2x32xf32>,
    %c16_138 = arith.constant 16 : index
    %c0_139 = arith.constant 0 : index
    %521 = vector.load %arg27[%c16_138, %c0_139] : memref<32x32xf32, #tpu.memory_space<vmem>>, vector<2x32xf32>
    tpu.vector_store %arg27[%c16_138, %c0_139], %519 {strides = array<i32>} : memref<32x32xf32, #tpu.memory_space<vmem>>, vector<2x32xf32>,
    %c16_140 = arith.constant 16 : index
    %c0_141 = arith.constant 0 : index
    %522 = vector.load %arg22[%c16_140, %c0_141] : memref<32x96xf32, #tpu.memory_space<vmem>>, vector<2x96xf32>
    %cst_142 = arith.constant dense<0.000000e+00> : vector<2x96xf32>
    %523 = tpu.matmul %489, %20, %cst_142 {dimension_numbers = #tpu.dot_dimension_numbers<[1], [0], [0], [1], [0, 0, 1, 1], [], []>} : vector<2x32xf32>, vector<32x96xf32>, vector<2x96xf32> -> vector<2x96xf32>
    %524 = vector.broadcast %21 : vector<1x96xf32> to vector<2x96xf32>
    %525 = arith.addf %523, %524 : vector<2x96xf32>
    %526 = vector.extract_strided_slice %522 {offsets = [0, 0], sizes = [2, 32], strides = [1, 1]} : vector<2x96xf32> to vector<2x32xf32>
    %527 = vector.extract_strided_slice %525 {offsets = [0, 0], sizes = [2, 32], strides = [1, 1]} : vector<2x96xf32> to vector<2x32xf32>
    %528 = arith.addf %526, %527 : vector<2x32xf32>
    %529 = arith.negf %528 : vector<2x32xf32>
    %530 = math.exp %529 : vector<2x32xf32>
    %cst_143 = arith.constant 1.000000e+00 : f32
    %531 = vector.broadcast %cst_143 : f32 to vector<2x32xf32>
    %532 = arith.addf %531, %530 : vector<2x32xf32>
    %533 = arith.divf %531, %532 : vector<2x32xf32>
    %534 = vector.extract_strided_slice %522 {offsets = [0, 32], sizes = [2, 32], strides = [1, 1]} : vector<2x96xf32> to vector<2x32xf32>
    %535 = vector.extract_strided_slice %525 {offsets = [0, 32], sizes = [2, 32], strides = [1, 1]} : vector<2x96xf32> to vector<2x32xf32>
    %536 = arith.addf %534, %535 : vector<2x32xf32>
    %537 = arith.negf %536 : vector<2x32xf32>
    %538 = math.exp %537 : vector<2x32xf32>
    %cst_144 = arith.constant 1.000000e+00 : f32
    %539 = vector.broadcast %cst_144 : f32 to vector<2x32xf32>
    %540 = arith.addf %539, %538 : vector<2x32xf32>
    %541 = arith.divf %539, %540 : vector<2x32xf32>
    %542 = vector.extract_strided_slice %522 {offsets = [0, 64], sizes = [2, 32], strides = [1, 1]} : vector<2x96xf32> to vector<2x32xf32>
    %543 = vector.extract_strided_slice %525 {offsets = [0, 64], sizes = [2, 32], strides = [1, 1]} : vector<2x96xf32> to vector<2x32xf32>
    %544 = arith.mulf %533, %543 : vector<2x32xf32>
    %545 = arith.addf %542, %544 : vector<2x32xf32>
    %546 = math.tanh %545 : vector<2x32xf32>
    %cst_145 = arith.constant 1.000000e+00 : f32
    %547 = vector.broadcast %cst_145 : f32 to vector<2x32xf32>
    %548 = arith.subf %547, %541 : vector<2x32xf32>
    %549 = arith.mulf %548, %546 : vector<2x32xf32>
    %550 = arith.mulf %541, %489 : vector<2x32xf32>
    %551 = arith.addf %549, %550 : vector<2x32xf32>
    %c14_146 = arith.constant 14 : index
    %c0_147 = arith.constant 0 : index
    %552 = vector.load %arg23[%c14_146, %c0_147] : memref<32x96xf32, #tpu.memory_space<vmem>>, vector<2x96xf32>
    %cst_148 = arith.constant dense<0.000000e+00> : vector<2x96xf32>
    %553 = tpu.matmul %519, %22, %cst_148 {dimension_numbers = #tpu.dot_dimension_numbers<[1], [0], [0], [1], [0, 0, 1, 1], [], []>} : vector<2x32xf32>, vector<32x96xf32>, vector<2x96xf32> -> vector<2x96xf32>
    %554 = vector.broadcast %23 : vector<1x96xf32> to vector<2x96xf32>
    %555 = arith.addf %553, %554 : vector<2x96xf32>
    %556 = vector.extract_strided_slice %552 {offsets = [0, 0], sizes = [2, 32], strides = [1, 1]} : vector<2x96xf32> to vector<2x32xf32>
    %557 = vector.extract_strided_slice %555 {offsets = [0, 0], sizes = [2, 32], strides = [1, 1]} : vector<2x96xf32> to vector<2x32xf32>
    %558 = arith.addf %556, %557 : vector<2x32xf32>
    %559 = arith.negf %558 : vector<2x32xf32>
    %560 = math.exp %559 : vector<2x32xf32>
    %cst_149 = arith.constant 1.000000e+00 : f32
    %561 = vector.broadcast %cst_149 : f32 to vector<2x32xf32>
    %562 = arith.addf %561, %560 : vector<2x32xf32>
    %563 = arith.divf %561, %562 : vector<2x32xf32>
    %564 = vector.extract_strided_slice %552 {offsets = [0, 32], sizes = [2, 32], strides = [1, 1]} : vector<2x96xf32> to vector<2x32xf32>
    %565 = vector.extract_strided_slice %555 {offsets = [0, 32], sizes = [2, 32], strides = [1, 1]} : vector<2x96xf32> to vector<2x32xf32>
    %566 = arith.addf %564, %565 : vector<2x32xf32>
    %567 = arith.negf %566 : vector<2x32xf32>
    %568 = math.exp %567 : vector<2x32xf32>
    %cst_150 = arith.constant 1.000000e+00 : f32
    %569 = vector.broadcast %cst_150 : f32 to vector<2x32xf32>
    %570 = arith.addf %569, %568 : vector<2x32xf32>
    %571 = arith.divf %569, %570 : vector<2x32xf32>
    %572 = vector.extract_strided_slice %552 {offsets = [0, 64], sizes = [2, 32], strides = [1, 1]} : vector<2x96xf32> to vector<2x32xf32>
    %573 = vector.extract_strided_slice %555 {offsets = [0, 64], sizes = [2, 32], strides = [1, 1]} : vector<2x96xf32> to vector<2x32xf32>
    %574 = arith.mulf %563, %573 : vector<2x32xf32>
    %575 = arith.addf %572, %574 : vector<2x32xf32>
    %576 = math.tanh %575 : vector<2x32xf32>
    %cst_151 = arith.constant 1.000000e+00 : f32
    %577 = vector.broadcast %cst_151 : f32 to vector<2x32xf32>
    %578 = arith.subf %577, %571 : vector<2x32xf32>
    %579 = arith.mulf %578, %576 : vector<2x32xf32>
    %580 = arith.mulf %571, %519 : vector<2x32xf32>
    %581 = arith.addf %579, %580 : vector<2x32xf32>
    %c16_152 = arith.constant 16 : index
    %c0_153 = arith.constant 0 : index
    %582 = vector.load %arg26[%c16_152, %c0_153] : memref<32x32xf32, #tpu.memory_space<vmem>>, vector<2x32xf32>
    tpu.vector_store %arg26[%c16_152, %c0_153], %551 {strides = array<i32>} : memref<32x32xf32, #tpu.memory_space<vmem>>, vector<2x32xf32>,
    %c14_154 = arith.constant 14 : index
    %c0_155 = arith.constant 0 : index
    %583 = vector.load %arg27[%c14_154, %c0_155] : memref<32x32xf32, #tpu.memory_space<vmem>>, vector<2x32xf32>
    tpu.vector_store %arg27[%c14_154, %c0_155], %581 {strides = array<i32>} : memref<32x32xf32, #tpu.memory_space<vmem>>, vector<2x32xf32>,
    %c18_156 = arith.constant 18 : index
    %c0_157 = arith.constant 0 : index
    %584 = vector.load %arg22[%c18_156, %c0_157] : memref<32x96xf32, #tpu.memory_space<vmem>>, vector<2x96xf32>
    %cst_158 = arith.constant dense<0.000000e+00> : vector<2x96xf32>
    %585 = tpu.matmul %551, %20, %cst_158 {dimension_numbers = #tpu.dot_dimension_numbers<[1], [0], [0], [1], [0, 0, 1, 1], [], []>} : vector<2x32xf32>, vector<32x96xf32>, vector<2x96xf32> -> vector<2x96xf32>
    %586 = vector.broadcast %21 : vector<1x96xf32> to vector<2x96xf32>
    %587 = arith.addf %585, %586 : vector<2x96xf32>
    %588 = vector.extract_strided_slice %584 {offsets = [0, 0], sizes = [2, 32], strides = [1, 1]} : vector<2x96xf32> to vector<2x32xf32>
    %589 = vector.extract_strided_slice %587 {offsets = [0, 0], sizes = [2, 32], strides = [1, 1]} : vector<2x96xf32> to vector<2x32xf32>
    %590 = arith.addf %588, %589 : vector<2x32xf32>
    %591 = arith.negf %590 : vector<2x32xf32>
    %592 = math.exp %591 : vector<2x32xf32>
    %cst_159 = arith.constant 1.000000e+00 : f32
    %593 = vector.broadcast %cst_159 : f32 to vector<2x32xf32>
    %594 = arith.addf %593, %592 : vector<2x32xf32>
    %595 = arith.divf %593, %594 : vector<2x32xf32>
    %596 = vector.extract_strided_slice %584 {offsets = [0, 32], sizes = [2, 32], strides = [1, 1]} : vector<2x96xf32> to vector<2x32xf32>
    %597 = vector.extract_strided_slice %587 {offsets = [0, 32], sizes = [2, 32], strides = [1, 1]} : vector<2x96xf32> to vector<2x32xf32>
    %598 = arith.addf %596, %597 : vector<2x32xf32>
    %599 = arith.negf %598 : vector<2x32xf32>
    %600 = math.exp %599 : vector<2x32xf32>
    %cst_160 = arith.constant 1.000000e+00 : f32
    %601 = vector.broadcast %cst_160 : f32 to vector<2x32xf32>
    %602 = arith.addf %601, %600 : vector<2x32xf32>
    %603 = arith.divf %601, %602 : vector<2x32xf32>
    %604 = vector.extract_strided_slice %584 {offsets = [0, 64], sizes = [2, 32], strides = [1, 1]} : vector<2x96xf32> to vector<2x32xf32>
    %605 = vector.extract_strided_slice %587 {offsets = [0, 64], sizes = [2, 32], strides = [1, 1]} : vector<2x96xf32> to vector<2x32xf32>
    %606 = arith.mulf %595, %605 : vector<2x32xf32>
    %607 = arith.addf %604, %606 : vector<2x32xf32>
    %608 = math.tanh %607 : vector<2x32xf32>
    %cst_161 = arith.constant 1.000000e+00 : f32
    %609 = vector.broadcast %cst_161 : f32 to vector<2x32xf32>
    %610 = arith.subf %609, %603 : vector<2x32xf32>
    %611 = arith.mulf %610, %608 : vector<2x32xf32>
    %612 = arith.mulf %603, %551 : vector<2x32xf32>
    %613 = arith.addf %611, %612 : vector<2x32xf32>
    %c12_162 = arith.constant 12 : index
    %c0_163 = arith.constant 0 : index
    %614 = vector.load %arg23[%c12_162, %c0_163] : memref<32x96xf32, #tpu.memory_space<vmem>>, vector<2x96xf32>
    %cst_164 = arith.constant dense<0.000000e+00> : vector<2x96xf32>
    %615 = tpu.matmul %581, %22, %cst_164 {dimension_numbers = #tpu.dot_dimension_numbers<[1], [0], [0], [1], [0, 0, 1, 1], [], []>} : vector<2x32xf32>, vector<32x96xf32>, vector<2x96xf32> -> vector<2x96xf32>
    %616 = vector.broadcast %23 : vector<1x96xf32> to vector<2x96xf32>
    %617 = arith.addf %615, %616 : vector<2x96xf32>
    %618 = vector.extract_strided_slice %614 {offsets = [0, 0], sizes = [2, 32], strides = [1, 1]} : vector<2x96xf32> to vector<2x32xf32>
    %619 = vector.extract_strided_slice %617 {offsets = [0, 0], sizes = [2, 32], strides = [1, 1]} : vector<2x96xf32> to vector<2x32xf32>
    %620 = arith.addf %618, %619 : vector<2x32xf32>
    %621 = arith.negf %620 : vector<2x32xf32>
    %622 = math.exp %621 : vector<2x32xf32>
    %cst_165 = arith.constant 1.000000e+00 : f32
    %623 = vector.broadcast %cst_165 : f32 to vector<2x32xf32>
    %624 = arith.addf %623, %622 : vector<2x32xf32>
    %625 = arith.divf %623, %624 : vector<2x32xf32>
    %626 = vector.extract_strided_slice %614 {offsets = [0, 32], sizes = [2, 32], strides = [1, 1]} : vector<2x96xf32> to vector<2x32xf32>
    %627 = vector.extract_strided_slice %617 {offsets = [0, 32], sizes = [2, 32], strides = [1, 1]} : vector<2x96xf32> to vector<2x32xf32>
    %628 = arith.addf %626, %627 : vector<2x32xf32>
    %629 = arith.negf %628 : vector<2x32xf32>
    %630 = math.exp %629 : vector<2x32xf32>
    %cst_166 = arith.constant 1.000000e+00 : f32
    %631 = vector.broadcast %cst_166 : f32 to vector<2x32xf32>
    %632 = arith.addf %631, %630 : vector<2x32xf32>
    %633 = arith.divf %631, %632 : vector<2x32xf32>
    %634 = vector.extract_strided_slice %614 {offsets = [0, 64], sizes = [2, 32], strides = [1, 1]} : vector<2x96xf32> to vector<2x32xf32>
    %635 = vector.extract_strided_slice %617 {offsets = [0, 64], sizes = [2, 32], strides = [1, 1]} : vector<2x96xf32> to vector<2x32xf32>
    %636 = arith.mulf %625, %635 : vector<2x32xf32>
    %637 = arith.addf %634, %636 : vector<2x32xf32>
    %638 = math.tanh %637 : vector<2x32xf32>
    %cst_167 = arith.constant 1.000000e+00 : f32
    %639 = vector.broadcast %cst_167 : f32 to vector<2x32xf32>
    %640 = arith.subf %639, %633 : vector<2x32xf32>
    %641 = arith.mulf %640, %638 : vector<2x32xf32>
    %642 = arith.mulf %633, %581 : vector<2x32xf32>
    %643 = arith.addf %641, %642 : vector<2x32xf32>
    %c18_168 = arith.constant 18 : index
    %c0_169 = arith.constant 0 : index
    %644 = vector.load %arg26[%c18_168, %c0_169] : memref<32x32xf32, #tpu.memory_space<vmem>>, vector<2x32xf32>
    tpu.vector_store %arg26[%c18_168, %c0_169], %613 {strides = array<i32>} : memref<32x32xf32, #tpu.memory_space<vmem>>, vector<2x32xf32>,
    %c12_170 = arith.constant 12 : index
    %c0_171 = arith.constant 0 : index
    %645 = vector.load %arg27[%c12_170, %c0_171] : memref<32x32xf32, #tpu.memory_space<vmem>>, vector<2x32xf32>
    tpu.vector_store %arg27[%c12_170, %c0_171], %643 {strides = array<i32>} : memref<32x32xf32, #tpu.memory_space<vmem>>, vector<2x32xf32>,
    %c20_172 = arith.constant 20 : index
    %c0_173 = arith.constant 0 : index
    %646 = vector.load %arg22[%c20_172, %c0_173] : memref<32x96xf32, #tpu.memory_space<vmem>>, vector<2x96xf32>
    %cst_174 = arith.constant dense<0.000000e+00> : vector<2x96xf32>
    %647 = tpu.matmul %613, %20, %cst_174 {dimension_numbers = #tpu.dot_dimension_numbers<[1], [0], [0], [1], [0, 0, 1, 1], [], []>} : vector<2x32xf32>, vector<32x96xf32>, vector<2x96xf32> -> vector<2x96xf32>
    %648 = vector.broadcast %21 : vector<1x96xf32> to vector<2x96xf32>
    %649 = arith.addf %647, %648 : vector<2x96xf32>
    %650 = vector.extract_strided_slice %646 {offsets = [0, 0], sizes = [2, 32], strides = [1, 1]} : vector<2x96xf32> to vector<2x32xf32>
    %651 = vector.extract_strided_slice %649 {offsets = [0, 0], sizes = [2, 32], strides = [1, 1]} : vector<2x96xf32> to vector<2x32xf32>
    %652 = arith.addf %650, %651 : vector<2x32xf32>
    %653 = arith.negf %652 : vector<2x32xf32>
    %654 = math.exp %653 : vector<2x32xf32>
    %cst_175 = arith.constant 1.000000e+00 : f32
    %655 = vector.broadcast %cst_175 : f32 to vector<2x32xf32>
    %656 = arith.addf %655, %654 : vector<2x32xf32>
    %657 = arith.divf %655, %656 : vector<2x32xf32>
    %658 = vector.extract_strided_slice %646 {offsets = [0, 32], sizes = [2, 32], strides = [1, 1]} : vector<2x96xf32> to vector<2x32xf32>
    %659 = vector.extract_strided_slice %649 {offsets = [0, 32], sizes = [2, 32], strides = [1, 1]} : vector<2x96xf32> to vector<2x32xf32>
    %660 = arith.addf %658, %659 : vector<2x32xf32>
    %661 = arith.negf %660 : vector<2x32xf32>
    %662 = math.exp %661 : vector<2x32xf32>
    %cst_176 = arith.constant 1.000000e+00 : f32
    %663 = vector.broadcast %cst_176 : f32 to vector<2x32xf32>
    %664 = arith.addf %663, %662 : vector<2x32xf32>
    %665 = arith.divf %663, %664 : vector<2x32xf32>
    %666 = vector.extract_strided_slice %646 {offsets = [0, 64], sizes = [2, 32], strides = [1, 1]} : vector<2x96xf32> to vector<2x32xf32>
    %667 = vector.extract_strided_slice %649 {offsets = [0, 64], sizes = [2, 32], strides = [1, 1]} : vector<2x96xf32> to vector<2x32xf32>
    %668 = arith.mulf %657, %667 : vector<2x32xf32>
    %669 = arith.addf %666, %668 : vector<2x32xf32>
    %670 = math.tanh %669 : vector<2x32xf32>
    %cst_177 = arith.constant 1.000000e+00 : f32
    %671 = vector.broadcast %cst_177 : f32 to vector<2x32xf32>
    %672 = arith.subf %671, %665 : vector<2x32xf32>
    %673 = arith.mulf %672, %670 : vector<2x32xf32>
    %674 = arith.mulf %665, %613 : vector<2x32xf32>
    %675 = arith.addf %673, %674 : vector<2x32xf32>
    %c10_178 = arith.constant 10 : index
    %c0_179 = arith.constant 0 : index
    %676 = vector.load %arg23[%c10_178, %c0_179] : memref<32x96xf32, #tpu.memory_space<vmem>>, vector<2x96xf32>
    %cst_180 = arith.constant dense<0.000000e+00> : vector<2x96xf32>
    %677 = tpu.matmul %643, %22, %cst_180 {dimension_numbers = #tpu.dot_dimension_numbers<[1], [0], [0], [1], [0, 0, 1, 1], [], []>} : vector<2x32xf32>, vector<32x96xf32>, vector<2x96xf32> -> vector<2x96xf32>
    %678 = vector.broadcast %23 : vector<1x96xf32> to vector<2x96xf32>
    %679 = arith.addf %677, %678 : vector<2x96xf32>
    %680 = vector.extract_strided_slice %676 {offsets = [0, 0], sizes = [2, 32], strides = [1, 1]} : vector<2x96xf32> to vector<2x32xf32>
    %681 = vector.extract_strided_slice %679 {offsets = [0, 0], sizes = [2, 32], strides = [1, 1]} : vector<2x96xf32> to vector<2x32xf32>
    %682 = arith.addf %680, %681 : vector<2x32xf32>
    %683 = arith.negf %682 : vector<2x32xf32>
    %684 = math.exp %683 : vector<2x32xf32>
    %cst_181 = arith.constant 1.000000e+00 : f32
    %685 = vector.broadcast %cst_181 : f32 to vector<2x32xf32>
    %686 = arith.addf %685, %684 : vector<2x32xf32>
    %687 = arith.divf %685, %686 : vector<2x32xf32>
    %688 = vector.extract_strided_slice %676 {offsets = [0, 32], sizes = [2, 32], strides = [1, 1]} : vector<2x96xf32> to vector<2x32xf32>
    %689 = vector.extract_strided_slice %679 {offsets = [0, 32], sizes = [2, 32], strides = [1, 1]} : vector<2x96xf32> to vector<2x32xf32>
    %690 = arith.addf %688, %689 : vector<2x32xf32>
    %691 = arith.negf %690 : vector<2x32xf32>
    %692 = math.exp %691 : vector<2x32xf32>
    %cst_182 = arith.constant 1.000000e+00 : f32
    %693 = vector.broadcast %cst_182 : f32 to vector<2x32xf32>
    %694 = arith.addf %693, %692 : vector<2x32xf32>
    %695 = arith.divf %693, %694 : vector<2x32xf32>
    %696 = vector.extract_strided_slice %676 {offsets = [0, 64], sizes = [2, 32], strides = [1, 1]} : vector<2x96xf32> to vector<2x32xf32>
    %697 = vector.extract_strided_slice %679 {offsets = [0, 64], sizes = [2, 32], strides = [1, 1]} : vector<2x96xf32> to vector<2x32xf32>
    %698 = arith.mulf %687, %697 : vector<2x32xf32>
    %699 = arith.addf %696, %698 : vector<2x32xf32>
    %700 = math.tanh %699 : vector<2x32xf32>
    %cst_183 = arith.constant 1.000000e+00 : f32
    %701 = vector.broadcast %cst_183 : f32 to vector<2x32xf32>
    %702 = arith.subf %701, %695 : vector<2x32xf32>
    %703 = arith.mulf %702, %700 : vector<2x32xf32>
    %704 = arith.mulf %695, %643 : vector<2x32xf32>
    %705 = arith.addf %703, %704 : vector<2x32xf32>
    %c20_184 = arith.constant 20 : index
    %c0_185 = arith.constant 0 : index
    %706 = vector.load %arg26[%c20_184, %c0_185] : memref<32x32xf32, #tpu.memory_space<vmem>>, vector<2x32xf32>
    tpu.vector_store %arg26[%c20_184, %c0_185], %675 {strides = array<i32>} : memref<32x32xf32, #tpu.memory_space<vmem>>, vector<2x32xf32>,
    %c10_186 = arith.constant 10 : index
    %c0_187 = arith.constant 0 : index
    %707 = vector.load %arg27[%c10_186, %c0_187] : memref<32x32xf32, #tpu.memory_space<vmem>>, vector<2x32xf32>
    tpu.vector_store %arg27[%c10_186, %c0_187], %705 {strides = array<i32>} : memref<32x32xf32, #tpu.memory_space<vmem>>, vector<2x32xf32>,
    %c22_188 = arith.constant 22 : index
    %c0_189 = arith.constant 0 : index
    %708 = vector.load %arg22[%c22_188, %c0_189] : memref<32x96xf32, #tpu.memory_space<vmem>>, vector<2x96xf32>
    %cst_190 = arith.constant dense<0.000000e+00> : vector<2x96xf32>
    %709 = tpu.matmul %675, %20, %cst_190 {dimension_numbers = #tpu.dot_dimension_numbers<[1], [0], [0], [1], [0, 0, 1, 1], [], []>} : vector<2x32xf32>, vector<32x96xf32>, vector<2x96xf32> -> vector<2x96xf32>
    %710 = vector.broadcast %21 : vector<1x96xf32> to vector<2x96xf32>
    %711 = arith.addf %709, %710 : vector<2x96xf32>
    %712 = vector.extract_strided_slice %708 {offsets = [0, 0], sizes = [2, 32], strides = [1, 1]} : vector<2x96xf32> to vector<2x32xf32>
    %713 = vector.extract_strided_slice %711 {offsets = [0, 0], sizes = [2, 32], strides = [1, 1]} : vector<2x96xf32> to vector<2x32xf32>
    %714 = arith.addf %712, %713 : vector<2x32xf32>
    %715 = arith.negf %714 : vector<2x32xf32>
    %716 = math.exp %715 : vector<2x32xf32>
    %cst_191 = arith.constant 1.000000e+00 : f32
    %717 = vector.broadcast %cst_191 : f32 to vector<2x32xf32>
    %718 = arith.addf %717, %716 : vector<2x32xf32>
    %719 = arith.divf %717, %718 : vector<2x32xf32>
    %720 = vector.extract_strided_slice %708 {offsets = [0, 32], sizes = [2, 32], strides = [1, 1]} : vector<2x96xf32> to vector<2x32xf32>
    %721 = vector.extract_strided_slice %711 {offsets = [0, 32], sizes = [2, 32], strides = [1, 1]} : vector<2x96xf32> to vector<2x32xf32>
    %722 = arith.addf %720, %721 : vector<2x32xf32>
    %723 = arith.negf %722 : vector<2x32xf32>
    %724 = math.exp %723 : vector<2x32xf32>
    %cst_192 = arith.constant 1.000000e+00 : f32
    %725 = vector.broadcast %cst_192 : f32 to vector<2x32xf32>
    %726 = arith.addf %725, %724 : vector<2x32xf32>
    %727 = arith.divf %725, %726 : vector<2x32xf32>
    %728 = vector.extract_strided_slice %708 {offsets = [0, 64], sizes = [2, 32], strides = [1, 1]} : vector<2x96xf32> to vector<2x32xf32>
    %729 = vector.extract_strided_slice %711 {offsets = [0, 64], sizes = [2, 32], strides = [1, 1]} : vector<2x96xf32> to vector<2x32xf32>
    %730 = arith.mulf %719, %729 : vector<2x32xf32>
    %731 = arith.addf %728, %730 : vector<2x32xf32>
    %732 = math.tanh %731 : vector<2x32xf32>
    %cst_193 = arith.constant 1.000000e+00 : f32
    %733 = vector.broadcast %cst_193 : f32 to vector<2x32xf32>
    %734 = arith.subf %733, %727 : vector<2x32xf32>
    %735 = arith.mulf %734, %732 : vector<2x32xf32>
    %736 = arith.mulf %727, %675 : vector<2x32xf32>
    %737 = arith.addf %735, %736 : vector<2x32xf32>
    %c8_194 = arith.constant 8 : index
    %c0_195 = arith.constant 0 : index
    %738 = vector.load %arg23[%c8_194, %c0_195] : memref<32x96xf32, #tpu.memory_space<vmem>>, vector<2x96xf32>
    %cst_196 = arith.constant dense<0.000000e+00> : vector<2x96xf32>
    %739 = tpu.matmul %705, %22, %cst_196 {dimension_numbers = #tpu.dot_dimension_numbers<[1], [0], [0], [1], [0, 0, 1, 1], [], []>} : vector<2x32xf32>, vector<32x96xf32>, vector<2x96xf32> -> vector<2x96xf32>
    %740 = vector.broadcast %23 : vector<1x96xf32> to vector<2x96xf32>
    %741 = arith.addf %739, %740 : vector<2x96xf32>
    %742 = vector.extract_strided_slice %738 {offsets = [0, 0], sizes = [2, 32], strides = [1, 1]} : vector<2x96xf32> to vector<2x32xf32>
    %743 = vector.extract_strided_slice %741 {offsets = [0, 0], sizes = [2, 32], strides = [1, 1]} : vector<2x96xf32> to vector<2x32xf32>
    %744 = arith.addf %742, %743 : vector<2x32xf32>
    %745 = arith.negf %744 : vector<2x32xf32>
    %746 = math.exp %745 : vector<2x32xf32>
    %cst_197 = arith.constant 1.000000e+00 : f32
    %747 = vector.broadcast %cst_197 : f32 to vector<2x32xf32>
    %748 = arith.addf %747, %746 : vector<2x32xf32>
    %749 = arith.divf %747, %748 : vector<2x32xf32>
    %750 = vector.extract_strided_slice %738 {offsets = [0, 32], sizes = [2, 32], strides = [1, 1]} : vector<2x96xf32> to vector<2x32xf32>
    %751 = vector.extract_strided_slice %741 {offsets = [0, 32], sizes = [2, 32], strides = [1, 1]} : vector<2x96xf32> to vector<2x32xf32>
    %752 = arith.addf %750, %751 : vector<2x32xf32>
    %753 = arith.negf %752 : vector<2x32xf32>
    %754 = math.exp %753 : vector<2x32xf32>
    %cst_198 = arith.constant 1.000000e+00 : f32
    %755 = vector.broadcast %cst_198 : f32 to vector<2x32xf32>
    %756 = arith.addf %755, %754 : vector<2x32xf32>
    %757 = arith.divf %755, %756 : vector<2x32xf32>
    %758 = vector.extract_strided_slice %738 {offsets = [0, 64], sizes = [2, 32], strides = [1, 1]} : vector<2x96xf32> to vector<2x32xf32>
    %759 = vector.extract_strided_slice %741 {offsets = [0, 64], sizes = [2, 32], strides = [1, 1]} : vector<2x96xf32> to vector<2x32xf32>
    %760 = arith.mulf %749, %759 : vector<2x32xf32>
    %761 = arith.addf %758, %760 : vector<2x32xf32>
    %762 = math.tanh %761 : vector<2x32xf32>
    %cst_199 = arith.constant 1.000000e+00 : f32
    %763 = vector.broadcast %cst_199 : f32 to vector<2x32xf32>
    %764 = arith.subf %763, %757 : vector<2x32xf32>
    %765 = arith.mulf %764, %762 : vector<2x32xf32>
    %766 = arith.mulf %757, %705 : vector<2x32xf32>
    %767 = arith.addf %765, %766 : vector<2x32xf32>
    %c22_200 = arith.constant 22 : index
    %c0_201 = arith.constant 0 : index
    %768 = vector.load %arg26[%c22_200, %c0_201] : memref<32x32xf32, #tpu.memory_space<vmem>>, vector<2x32xf32>
    tpu.vector_store %arg26[%c22_200, %c0_201], %737 {strides = array<i32>} : memref<32x32xf32, #tpu.memory_space<vmem>>, vector<2x32xf32>,
    %c8_202 = arith.constant 8 : index
    %c0_203 = arith.constant 0 : index
    %769 = vector.load %arg27[%c8_202, %c0_203] : memref<32x32xf32, #tpu.memory_space<vmem>>, vector<2x32xf32>
    tpu.vector_store %arg27[%c8_202, %c0_203], %767 {strides = array<i32>} : memref<32x32xf32, #tpu.memory_space<vmem>>, vector<2x32xf32>,
    %c24_204 = arith.constant 24 : index
    %c0_205 = arith.constant 0 : index
    %770 = vector.load %arg22[%c24_204, %c0_205] : memref<32x96xf32, #tpu.memory_space<vmem>>, vector<2x96xf32>
    %cst_206 = arith.constant dense<0.000000e+00> : vector<2x96xf32>
    %771 = tpu.matmul %737, %20, %cst_206 {dimension_numbers = #tpu.dot_dimension_numbers<[1], [0], [0], [1], [0, 0, 1, 1], [], []>} : vector<2x32xf32>, vector<32x96xf32>, vector<2x96xf32> -> vector<2x96xf32>
    %772 = vector.broadcast %21 : vector<1x96xf32> to vector<2x96xf32>
    %773 = arith.addf %771, %772 : vector<2x96xf32>
    %774 = vector.extract_strided_slice %770 {offsets = [0, 0], sizes = [2, 32], strides = [1, 1]} : vector<2x96xf32> to vector<2x32xf32>
    %775 = vector.extract_strided_slice %773 {offsets = [0, 0], sizes = [2, 32], strides = [1, 1]} : vector<2x96xf32> to vector<2x32xf32>
    %776 = arith.addf %774, %775 : vector<2x32xf32>
    %777 = arith.negf %776 : vector<2x32xf32>
    %778 = math.exp %777 : vector<2x32xf32>
    %cst_207 = arith.constant 1.000000e+00 : f32
    %779 = vector.broadcast %cst_207 : f32 to vector<2x32xf32>
    %780 = arith.addf %779, %778 : vector<2x32xf32>
    %781 = arith.divf %779, %780 : vector<2x32xf32>
    %782 = vector.extract_strided_slice %770 {offsets = [0, 32], sizes = [2, 32], strides = [1, 1]} : vector<2x96xf32> to vector<2x32xf32>
    %783 = vector.extract_strided_slice %773 {offsets = [0, 32], sizes = [2, 32], strides = [1, 1]} : vector<2x96xf32> to vector<2x32xf32>
    %784 = arith.addf %782, %783 : vector<2x32xf32>
    %785 = arith.negf %784 : vector<2x32xf32>
    %786 = math.exp %785 : vector<2x32xf32>
    %cst_208 = arith.constant 1.000000e+00 : f32
    %787 = vector.broadcast %cst_208 : f32 to vector<2x32xf32>
    %788 = arith.addf %787, %786 : vector<2x32xf32>
    %789 = arith.divf %787, %788 : vector<2x32xf32>
    %790 = vector.extract_strided_slice %770 {offsets = [0, 64], sizes = [2, 32], strides = [1, 1]} : vector<2x96xf32> to vector<2x32xf32>
    %791 = vector.extract_strided_slice %773 {offsets = [0, 64], sizes = [2, 32], strides = [1, 1]} : vector<2x96xf32> to vector<2x32xf32>
    %792 = arith.mulf %781, %791 : vector<2x32xf32>
    %793 = arith.addf %790, %792 : vector<2x32xf32>
    %794 = math.tanh %793 : vector<2x32xf32>
    %cst_209 = arith.constant 1.000000e+00 : f32
    %795 = vector.broadcast %cst_209 : f32 to vector<2x32xf32>
    %796 = arith.subf %795, %789 : vector<2x32xf32>
    %797 = arith.mulf %796, %794 : vector<2x32xf32>
    %798 = arith.mulf %789, %737 : vector<2x32xf32>
    %799 = arith.addf %797, %798 : vector<2x32xf32>
    %c6_210 = arith.constant 6 : index
    %c0_211 = arith.constant 0 : index
    %800 = vector.load %arg23[%c6_210, %c0_211] : memref<32x96xf32, #tpu.memory_space<vmem>>, vector<2x96xf32>
    %cst_212 = arith.constant dense<0.000000e+00> : vector<2x96xf32>
    %801 = tpu.matmul %767, %22, %cst_212 {dimension_numbers = #tpu.dot_dimension_numbers<[1], [0], [0], [1], [0, 0, 1, 1], [], []>} : vector<2x32xf32>, vector<32x96xf32>, vector<2x96xf32> -> vector<2x96xf32>
    %802 = vector.broadcast %23 : vector<1x96xf32> to vector<2x96xf32>
    %803 = arith.addf %801, %802 : vector<2x96xf32>
    %804 = vector.extract_strided_slice %800 {offsets = [0, 0], sizes = [2, 32], strides = [1, 1]} : vector<2x96xf32> to vector<2x32xf32>
    %805 = vector.extract_strided_slice %803 {offsets = [0, 0], sizes = [2, 32], strides = [1, 1]} : vector<2x96xf32> to vector<2x32xf32>
    %806 = arith.addf %804, %805 : vector<2x32xf32>
    %807 = arith.negf %806 : vector<2x32xf32>
    %808 = math.exp %807 : vector<2x32xf32>
    %cst_213 = arith.constant 1.000000e+00 : f32
    %809 = vector.broadcast %cst_213 : f32 to vector<2x32xf32>
    %810 = arith.addf %809, %808 : vector<2x32xf32>
    %811 = arith.divf %809, %810 : vector<2x32xf32>
    %812 = vector.extract_strided_slice %800 {offsets = [0, 32], sizes = [2, 32], strides = [1, 1]} : vector<2x96xf32> to vector<2x32xf32>
    %813 = vector.extract_strided_slice %803 {offsets = [0, 32], sizes = [2, 32], strides = [1, 1]} : vector<2x96xf32> to vector<2x32xf32>
    %814 = arith.addf %812, %813 : vector<2x32xf32>
    %815 = arith.negf %814 : vector<2x32xf32>
    %816 = math.exp %815 : vector<2x32xf32>
    %cst_214 = arith.constant 1.000000e+00 : f32
    %817 = vector.broadcast %cst_214 : f32 to vector<2x32xf32>
    %818 = arith.addf %817, %816 : vector<2x32xf32>
    %819 = arith.divf %817, %818 : vector<2x32xf32>
    %820 = vector.extract_strided_slice %800 {offsets = [0, 64], sizes = [2, 32], strides = [1, 1]} : vector<2x96xf32> to vector<2x32xf32>
    %821 = vector.extract_strided_slice %803 {offsets = [0, 64], sizes = [2, 32], strides = [1, 1]} : vector<2x96xf32> to vector<2x32xf32>
    %822 = arith.mulf %811, %821 : vector<2x32xf32>
    %823 = arith.addf %820, %822 : vector<2x32xf32>
    %824 = math.tanh %823 : vector<2x32xf32>
    %cst_215 = arith.constant 1.000000e+00 : f32
    %825 = vector.broadcast %cst_215 : f32 to vector<2x32xf32>
    %826 = arith.subf %825, %819 : vector<2x32xf32>
    %827 = arith.mulf %826, %824 : vector<2x32xf32>
    %828 = arith.mulf %819, %767 : vector<2x32xf32>
    %829 = arith.addf %827, %828 : vector<2x32xf32>
    %c24_216 = arith.constant 24 : index
    %c0_217 = arith.constant 0 : index
    %830 = vector.load %arg26[%c24_216, %c0_217] : memref<32x32xf32, #tpu.memory_space<vmem>>, vector<2x32xf32>
    tpu.vector_store %arg26[%c24_216, %c0_217], %799 {strides = array<i32>} : memref<32x32xf32, #tpu.memory_space<vmem>>, vector<2x32xf32>,
    %c6_218 = arith.constant 6 : index
    %c0_219 = arith.constant 0 : index
    %831 = vector.load %arg27[%c6_218, %c0_219] : memref<32x32xf32, #tpu.memory_space<vmem>>, vector<2x32xf32>
    tpu.vector_store %arg27[%c6_218, %c0_219], %829 {strides = array<i32>} : memref<32x32xf32, #tpu.memory_space<vmem>>, vector<2x32xf32>,
    %c26_220 = arith.constant 26 : index
    %c0_221 = arith.constant 0 : index
    %832 = vector.load %arg22[%c26_220, %c0_221] : memref<32x96xf32, #tpu.memory_space<vmem>>, vector<2x96xf32>
    %cst_222 = arith.constant dense<0.000000e+00> : vector<2x96xf32>
    %833 = tpu.matmul %799, %20, %cst_222 {dimension_numbers = #tpu.dot_dimension_numbers<[1], [0], [0], [1], [0, 0, 1, 1], [], []>} : vector<2x32xf32>, vector<32x96xf32>, vector<2x96xf32> -> vector<2x96xf32>
    %834 = vector.broadcast %21 : vector<1x96xf32> to vector<2x96xf32>
    %835 = arith.addf %833, %834 : vector<2x96xf32>
    %836 = vector.extract_strided_slice %832 {offsets = [0, 0], sizes = [2, 32], strides = [1, 1]} : vector<2x96xf32> to vector<2x32xf32>
    %837 = vector.extract_strided_slice %835 {offsets = [0, 0], sizes = [2, 32], strides = [1, 1]} : vector<2x96xf32> to vector<2x32xf32>
    %838 = arith.addf %836, %837 : vector<2x32xf32>
    %839 = arith.negf %838 : vector<2x32xf32>
    %840 = math.exp %839 : vector<2x32xf32>
    %cst_223 = arith.constant 1.000000e+00 : f32
    %841 = vector.broadcast %cst_223 : f32 to vector<2x32xf32>
    %842 = arith.addf %841, %840 : vector<2x32xf32>
    %843 = arith.divf %841, %842 : vector<2x32xf32>
    %844 = vector.extract_strided_slice %832 {offsets = [0, 32], sizes = [2, 32], strides = [1, 1]} : vector<2x96xf32> to vector<2x32xf32>
    %845 = vector.extract_strided_slice %835 {offsets = [0, 32], sizes = [2, 32], strides = [1, 1]} : vector<2x96xf32> to vector<2x32xf32>
    %846 = arith.addf %844, %845 : vector<2x32xf32>
    %847 = arith.negf %846 : vector<2x32xf32>
    %848 = math.exp %847 : vector<2x32xf32>
    %cst_224 = arith.constant 1.000000e+00 : f32
    %849 = vector.broadcast %cst_224 : f32 to vector<2x32xf32>
    %850 = arith.addf %849, %848 : vector<2x32xf32>
    %851 = arith.divf %849, %850 : vector<2x32xf32>
    %852 = vector.extract_strided_slice %832 {offsets = [0, 64], sizes = [2, 32], strides = [1, 1]} : vector<2x96xf32> to vector<2x32xf32>
    %853 = vector.extract_strided_slice %835 {offsets = [0, 64], sizes = [2, 32], strides = [1, 1]} : vector<2x96xf32> to vector<2x32xf32>
    %854 = arith.mulf %843, %853 : vector<2x32xf32>
    %855 = arith.addf %852, %854 : vector<2x32xf32>
    %856 = math.tanh %855 : vector<2x32xf32>
    %cst_225 = arith.constant 1.000000e+00 : f32
    %857 = vector.broadcast %cst_225 : f32 to vector<2x32xf32>
    %858 = arith.subf %857, %851 : vector<2x32xf32>
    %859 = arith.mulf %858, %856 : vector<2x32xf32>
    %860 = arith.mulf %851, %799 : vector<2x32xf32>
    %861 = arith.addf %859, %860 : vector<2x32xf32>
    %c4_226 = arith.constant 4 : index
    %c0_227 = arith.constant 0 : index
    %862 = vector.load %arg23[%c4_226, %c0_227] : memref<32x96xf32, #tpu.memory_space<vmem>>, vector<2x96xf32>
    %cst_228 = arith.constant dense<0.000000e+00> : vector<2x96xf32>
    %863 = tpu.matmul %829, %22, %cst_228 {dimension_numbers = #tpu.dot_dimension_numbers<[1], [0], [0], [1], [0, 0, 1, 1], [], []>} : vector<2x32xf32>, vector<32x96xf32>, vector<2x96xf32> -> vector<2x96xf32>
    %864 = vector.broadcast %23 : vector<1x96xf32> to vector<2x96xf32>
    %865 = arith.addf %863, %864 : vector<2x96xf32>
    %866 = vector.extract_strided_slice %862 {offsets = [0, 0], sizes = [2, 32], strides = [1, 1]} : vector<2x96xf32> to vector<2x32xf32>
    %867 = vector.extract_strided_slice %865 {offsets = [0, 0], sizes = [2, 32], strides = [1, 1]} : vector<2x96xf32> to vector<2x32xf32>
    %868 = arith.addf %866, %867 : vector<2x32xf32>
    %869 = arith.negf %868 : vector<2x32xf32>
    %870 = math.exp %869 : vector<2x32xf32>
    %cst_229 = arith.constant 1.000000e+00 : f32
    %871 = vector.broadcast %cst_229 : f32 to vector<2x32xf32>
    %872 = arith.addf %871, %870 : vector<2x32xf32>
    %873 = arith.divf %871, %872 : vector<2x32xf32>
    %874 = vector.extract_strided_slice %862 {offsets = [0, 32], sizes = [2, 32], strides = [1, 1]} : vector<2x96xf32> to vector<2x32xf32>
    %875 = vector.extract_strided_slice %865 {offsets = [0, 32], sizes = [2, 32], strides = [1, 1]} : vector<2x96xf32> to vector<2x32xf32>
    %876 = arith.addf %874, %875 : vector<2x32xf32>
    %877 = arith.negf %876 : vector<2x32xf32>
    %878 = math.exp %877 : vector<2x32xf32>
    %cst_230 = arith.constant 1.000000e+00 : f32
    %879 = vector.broadcast %cst_230 : f32 to vector<2x32xf32>
    %880 = arith.addf %879, %878 : vector<2x32xf32>
    %881 = arith.divf %879, %880 : vector<2x32xf32>
    %882 = vector.extract_strided_slice %862 {offsets = [0, 64], sizes = [2, 32], strides = [1, 1]} : vector<2x96xf32> to vector<2x32xf32>
    %883 = vector.extract_strided_slice %865 {offsets = [0, 64], sizes = [2, 32], strides = [1, 1]} : vector<2x96xf32> to vector<2x32xf32>
    %884 = arith.mulf %873, %883 : vector<2x32xf32>
    %885 = arith.addf %882, %884 : vector<2x32xf32>
    %886 = math.tanh %885 : vector<2x32xf32>
    %cst_231 = arith.constant 1.000000e+00 : f32
    %887 = vector.broadcast %cst_231 : f32 to vector<2x32xf32>
    %888 = arith.subf %887, %881 : vector<2x32xf32>
    %889 = arith.mulf %888, %886 : vector<2x32xf32>
    %890 = arith.mulf %881, %829 : vector<2x32xf32>
    %891 = arith.addf %889, %890 : vector<2x32xf32>
    %c26_232 = arith.constant 26 : index
    %c0_233 = arith.constant 0 : index
    %892 = vector.load %arg26[%c26_232, %c0_233] : memref<32x32xf32, #tpu.memory_space<vmem>>, vector<2x32xf32>
    tpu.vector_store %arg26[%c26_232, %c0_233], %861 {strides = array<i32>} : memref<32x32xf32, #tpu.memory_space<vmem>>, vector<2x32xf32>,
    %c4_234 = arith.constant 4 : index
    %c0_235 = arith.constant 0 : index
    %893 = vector.load %arg27[%c4_234, %c0_235] : memref<32x32xf32, #tpu.memory_space<vmem>>, vector<2x32xf32>
    tpu.vector_store %arg27[%c4_234, %c0_235], %891 {strides = array<i32>} : memref<32x32xf32, #tpu.memory_space<vmem>>, vector<2x32xf32>,
    %c28_236 = arith.constant 28 : index
    %c0_237 = arith.constant 0 : index
    %894 = vector.load %arg22[%c28_236, %c0_237] : memref<32x96xf32, #tpu.memory_space<vmem>>, vector<2x96xf32>
    %cst_238 = arith.constant dense<0.000000e+00> : vector<2x96xf32>
    %895 = tpu.matmul %861, %20, %cst_238 {dimension_numbers = #tpu.dot_dimension_numbers<[1], [0], [0], [1], [0, 0, 1, 1], [], []>} : vector<2x32xf32>, vector<32x96xf32>, vector<2x96xf32> -> vector<2x96xf32>
    %896 = vector.broadcast %21 : vector<1x96xf32> to vector<2x96xf32>
    %897 = arith.addf %895, %896 : vector<2x96xf32>
    %898 = vector.extract_strided_slice %894 {offsets = [0, 0], sizes = [2, 32], strides = [1, 1]} : vector<2x96xf32> to vector<2x32xf32>
    %899 = vector.extract_strided_slice %897 {offsets = [0, 0], sizes = [2, 32], strides = [1, 1]} : vector<2x96xf32> to vector<2x32xf32>
    %900 = arith.addf %898, %899 : vector<2x32xf32>
    %901 = arith.negf %900 : vector<2x32xf32>
    %902 = math.exp %901 : vector<2x32xf32>
    %cst_239 = arith.constant 1.000000e+00 : f32
    %903 = vector.broadcast %cst_239 : f32 to vector<2x32xf32>
    %904 = arith.addf %903, %902 : vector<2x32xf32>
    %905 = arith.divf %903, %904 : vector<2x32xf32>
    %906 = vector.extract_strided_slice %894 {offsets = [0, 32], sizes = [2, 32], strides = [1, 1]} : vector<2x96xf32> to vector<2x32xf32>
    %907 = vector.extract_strided_slice %897 {offsets = [0, 32], sizes = [2, 32], strides = [1, 1]} : vector<2x96xf32> to vector<2x32xf32>
    %908 = arith.addf %906, %907 : vector<2x32xf32>
    %909 = arith.negf %908 : vector<2x32xf32>
    %910 = math.exp %909 : vector<2x32xf32>
    %cst_240 = arith.constant 1.000000e+00 : f32
    %911 = vector.broadcast %cst_240 : f32 to vector<2x32xf32>
    %912 = arith.addf %911, %910 : vector<2x32xf32>
    %913 = arith.divf %911, %912 : vector<2x32xf32>
    %914 = vector.extract_strided_slice %894 {offsets = [0, 64], sizes = [2, 32], strides = [1, 1]} : vector<2x96xf32> to vector<2x32xf32>
    %915 = vector.extract_strided_slice %897 {offsets = [0, 64], sizes = [2, 32], strides = [1, 1]} : vector<2x96xf32> to vector<2x32xf32>
    %916 = arith.mulf %905, %915 : vector<2x32xf32>
    %917 = arith.addf %914, %916 : vector<2x32xf32>
    %918 = math.tanh %917 : vector<2x32xf32>
    %cst_241 = arith.constant 1.000000e+00 : f32
    %919 = vector.broadcast %cst_241 : f32 to vector<2x32xf32>
    %920 = arith.subf %919, %913 : vector<2x32xf32>
    %921 = arith.mulf %920, %918 : vector<2x32xf32>
    %922 = arith.mulf %913, %861 : vector<2x32xf32>
    %923 = arith.addf %921, %922 : vector<2x32xf32>
    %c2_242 = arith.constant 2 : index
    %c0_243 = arith.constant 0 : index
    %924 = vector.load %arg23[%c2_242, %c0_243] : memref<32x96xf32, #tpu.memory_space<vmem>>, vector<2x96xf32>
    %cst_244 = arith.constant dense<0.000000e+00> : vector<2x96xf32>
    %925 = tpu.matmul %891, %22, %cst_244 {dimension_numbers = #tpu.dot_dimension_numbers<[1], [0], [0], [1], [0, 0, 1, 1], [], []>} : vector<2x32xf32>, vector<32x96xf32>, vector<2x96xf32> -> vector<2x96xf32>
    %926 = vector.broadcast %23 : vector<1x96xf32> to vector<2x96xf32>
    %927 = arith.addf %925, %926 : vector<2x96xf32>
    %928 = vector.extract_strided_slice %924 {offsets = [0, 0], sizes = [2, 32], strides = [1, 1]} : vector<2x96xf32> to vector<2x32xf32>
    %929 = vector.extract_strided_slice %927 {offsets = [0, 0], sizes = [2, 32], strides = [1, 1]} : vector<2x96xf32> to vector<2x32xf32>
    %930 = arith.addf %928, %929 : vector<2x32xf32>
    %931 = arith.negf %930 : vector<2x32xf32>
    %932 = math.exp %931 : vector<2x32xf32>
    %cst_245 = arith.constant 1.000000e+00 : f32
    %933 = vector.broadcast %cst_245 : f32 to vector<2x32xf32>
    %934 = arith.addf %933, %932 : vector<2x32xf32>
    %935 = arith.divf %933, %934 : vector<2x32xf32>
    %936 = vector.extract_strided_slice %924 {offsets = [0, 32], sizes = [2, 32], strides = [1, 1]} : vector<2x96xf32> to vector<2x32xf32>
    %937 = vector.extract_strided_slice %927 {offsets = [0, 32], sizes = [2, 32], strides = [1, 1]} : vector<2x96xf32> to vector<2x32xf32>
    %938 = arith.addf %936, %937 : vector<2x32xf32>
    %939 = arith.negf %938 : vector<2x32xf32>
    %940 = math.exp %939 : vector<2x32xf32>
    %cst_246 = arith.constant 1.000000e+00 : f32
    %941 = vector.broadcast %cst_246 : f32 to vector<2x32xf32>
    %942 = arith.addf %941, %940 : vector<2x32xf32>
    %943 = arith.divf %941, %942 : vector<2x32xf32>
    %944 = vector.extract_strided_slice %924 {offsets = [0, 64], sizes = [2, 32], strides = [1, 1]} : vector<2x96xf32> to vector<2x32xf32>
    %945 = vector.extract_strided_slice %927 {offsets = [0, 64], sizes = [2, 32], strides = [1, 1]} : vector<2x96xf32> to vector<2x32xf32>
    %946 = arith.mulf %935, %945 : vector<2x32xf32>
    %947 = arith.addf %944, %946 : vector<2x32xf32>
    %948 = math.tanh %947 : vector<2x32xf32>
    %cst_247 = arith.constant 1.000000e+00 : f32
    %949 = vector.broadcast %cst_247 : f32 to vector<2x32xf32>
    %950 = arith.subf %949, %943 : vector<2x32xf32>
    %951 = arith.mulf %950, %948 : vector<2x32xf32>
    %952 = arith.mulf %943, %891 : vector<2x32xf32>
    %953 = arith.addf %951, %952 : vector<2x32xf32>
    %c28_248 = arith.constant 28 : index
    %c0_249 = arith.constant 0 : index
    %954 = vector.load %arg26[%c28_248, %c0_249] : memref<32x32xf32, #tpu.memory_space<vmem>>, vector<2x32xf32>
    tpu.vector_store %arg26[%c28_248, %c0_249], %923 {strides = array<i32>} : memref<32x32xf32, #tpu.memory_space<vmem>>, vector<2x32xf32>,
    %c2_250 = arith.constant 2 : index
    %c0_251 = arith.constant 0 : index
    %955 = vector.load %arg27[%c2_250, %c0_251] : memref<32x32xf32, #tpu.memory_space<vmem>>, vector<2x32xf32>
    tpu.vector_store %arg27[%c2_250, %c0_251], %953 {strides = array<i32>} : memref<32x32xf32, #tpu.memory_space<vmem>>, vector<2x32xf32>,
    %c30_252 = arith.constant 30 : index
    %c0_253 = arith.constant 0 : index
    %956 = vector.load %arg22[%c30_252, %c0_253] : memref<32x96xf32, #tpu.memory_space<vmem>>, vector<2x96xf32>
    %cst_254 = arith.constant dense<0.000000e+00> : vector<2x96xf32>
    %957 = tpu.matmul %923, %20, %cst_254 {dimension_numbers = #tpu.dot_dimension_numbers<[1], [0], [0], [1], [0, 0, 1, 1], [], []>} : vector<2x32xf32>, vector<32x96xf32>, vector<2x96xf32> -> vector<2x96xf32>
    %958 = vector.broadcast %21 : vector<1x96xf32> to vector<2x96xf32>
    %959 = arith.addf %957, %958 : vector<2x96xf32>
    %960 = vector.extract_strided_slice %956 {offsets = [0, 0], sizes = [2, 32], strides = [1, 1]} : vector<2x96xf32> to vector<2x32xf32>
    %961 = vector.extract_strided_slice %959 {offsets = [0, 0], sizes = [2, 32], strides = [1, 1]} : vector<2x96xf32> to vector<2x32xf32>
    %962 = arith.addf %960, %961 : vector<2x32xf32>
    %963 = arith.negf %962 : vector<2x32xf32>
    %964 = math.exp %963 : vector<2x32xf32>
    %cst_255 = arith.constant 1.000000e+00 : f32
    %965 = vector.broadcast %cst_255 : f32 to vector<2x32xf32>
    %966 = arith.addf %965, %964 : vector<2x32xf32>
    %967 = arith.divf %965, %966 : vector<2x32xf32>
    %968 = vector.extract_strided_slice %956 {offsets = [0, 32], sizes = [2, 32], strides = [1, 1]} : vector<2x96xf32> to vector<2x32xf32>
    %969 = vector.extract_strided_slice %959 {offsets = [0, 32], sizes = [2, 32], strides = [1, 1]} : vector<2x96xf32> to vector<2x32xf32>
    %970 = arith.addf %968, %969 : vector<2x32xf32>
    %971 = arith.negf %970 : vector<2x32xf32>
    %972 = math.exp %971 : vector<2x32xf32>
    %cst_256 = arith.constant 1.000000e+00 : f32
    %973 = vector.broadcast %cst_256 : f32 to vector<2x32xf32>
    %974 = arith.addf %973, %972 : vector<2x32xf32>
    %975 = arith.divf %973, %974 : vector<2x32xf32>
    %976 = vector.extract_strided_slice %956 {offsets = [0, 64], sizes = [2, 32], strides = [1, 1]} : vector<2x96xf32> to vector<2x32xf32>
    %977 = vector.extract_strided_slice %959 {offsets = [0, 64], sizes = [2, 32], strides = [1, 1]} : vector<2x96xf32> to vector<2x32xf32>
    %978 = arith.mulf %967, %977 : vector<2x32xf32>
    %979 = arith.addf %976, %978 : vector<2x32xf32>
    %980 = math.tanh %979 : vector<2x32xf32>
    %cst_257 = arith.constant 1.000000e+00 : f32
    %981 = vector.broadcast %cst_257 : f32 to vector<2x32xf32>
    %982 = arith.subf %981, %975 : vector<2x32xf32>
    %983 = arith.mulf %982, %980 : vector<2x32xf32>
    %984 = arith.mulf %975, %923 : vector<2x32xf32>
    %985 = arith.addf %983, %984 : vector<2x32xf32>
    %c0_258 = arith.constant 0 : index
    %c0_259 = arith.constant 0 : index
    %986 = vector.load %arg23[%c0_258, %c0_259] : memref<32x96xf32, #tpu.memory_space<vmem>>, vector<2x96xf32>
    %cst_260 = arith.constant dense<0.000000e+00> : vector<2x96xf32>
    %987 = tpu.matmul %953, %22, %cst_260 {dimension_numbers = #tpu.dot_dimension_numbers<[1], [0], [0], [1], [0, 0, 1, 1], [], []>} : vector<2x32xf32>, vector<32x96xf32>, vector<2x96xf32> -> vector<2x96xf32>
    %988 = vector.broadcast %23 : vector<1x96xf32> to vector<2x96xf32>
    %989 = arith.addf %987, %988 : vector<2x96xf32>
    %990 = vector.extract_strided_slice %986 {offsets = [0, 0], sizes = [2, 32], strides = [1, 1]} : vector<2x96xf32> to vector<2x32xf32>
    %991 = vector.extract_strided_slice %989 {offsets = [0, 0], sizes = [2, 32], strides = [1, 1]} : vector<2x96xf32> to vector<2x32xf32>
    %992 = arith.addf %990, %991 : vector<2x32xf32>
    %993 = arith.negf %992 : vector<2x32xf32>
    %994 = math.exp %993 : vector<2x32xf32>
    %cst_261 = arith.constant 1.000000e+00 : f32
    %995 = vector.broadcast %cst_261 : f32 to vector<2x32xf32>
    %996 = arith.addf %995, %994 : vector<2x32xf32>
    %997 = arith.divf %995, %996 : vector<2x32xf32>
    %998 = vector.extract_strided_slice %986 {offsets = [0, 32], sizes = [2, 32], strides = [1, 1]} : vector<2x96xf32> to vector<2x32xf32>
    %999 = vector.extract_strided_slice %989 {offsets = [0, 32], sizes = [2, 32], strides = [1, 1]} : vector<2x96xf32> to vector<2x32xf32>
    %1000 = arith.addf %998, %999 : vector<2x32xf32>
    %1001 = arith.negf %1000 : vector<2x32xf32>
    %1002 = math.exp %1001 : vector<2x32xf32>
    %cst_262 = arith.constant 1.000000e+00 : f32
    %1003 = vector.broadcast %cst_262 : f32 to vector<2x32xf32>
    %1004 = arith.addf %1003, %1002 : vector<2x32xf32>
    %1005 = arith.divf %1003, %1004 : vector<2x32xf32>
    %1006 = vector.extract_strided_slice %986 {offsets = [0, 64], sizes = [2, 32], strides = [1, 1]} : vector<2x96xf32> to vector<2x32xf32>
    %1007 = vector.extract_strided_slice %989 {offsets = [0, 64], sizes = [2, 32], strides = [1, 1]} : vector<2x96xf32> to vector<2x32xf32>
    %1008 = arith.mulf %997, %1007 : vector<2x32xf32>
    %1009 = arith.addf %1006, %1008 : vector<2x32xf32>
    %1010 = math.tanh %1009 : vector<2x32xf32>
    %cst_263 = arith.constant 1.000000e+00 : f32
    %1011 = vector.broadcast %cst_263 : f32 to vector<2x32xf32>
    %1012 = arith.subf %1011, %1005 : vector<2x32xf32>
    %1013 = arith.mulf %1012, %1010 : vector<2x32xf32>
    %1014 = arith.mulf %1005, %953 : vector<2x32xf32>
    %1015 = arith.addf %1013, %1014 : vector<2x32xf32>
    %c30_264 = arith.constant 30 : index
    %c0_265 = arith.constant 0 : index
    %1016 = vector.load %arg26[%c30_264, %c0_265] : memref<32x32xf32, #tpu.memory_space<vmem>>, vector<2x32xf32>
    tpu.vector_store %arg26[%c30_264, %c0_265], %985 {strides = array<i32>} : memref<32x32xf32, #tpu.memory_space<vmem>>, vector<2x32xf32>,
    %c0_266 = arith.constant 0 : index
    %c0_267 = arith.constant 0 : index
    %1017 = vector.load %arg27[%c0_266, %c0_267] : memref<32x32xf32, #tpu.memory_space<vmem>>, vector<2x32xf32>
    tpu.vector_store %arg27[%c0_266, %c0_267], %1015 {strides = array<i32>} : memref<32x32xf32, #tpu.memory_space<vmem>>, vector<2x32xf32>,
    %c0_268 = arith.constant 0 : index
    %c0_269 = arith.constant 0 : index
    %1018 = vector.load %arg26[%c0_268, %c0_269] : memref<32x32xf32, #tpu.memory_space<vmem>>, vector<32x32xf32>
    %c0_270 = arith.constant 0 : index
    %c0_271 = arith.constant 0 : index
    %1019 = vector.load %arg27[%c0_270, %c0_271] : memref<32x32xf32, #tpu.memory_space<vmem>>, vector<32x32xf32>
    %c0_272 = arith.constant 0 : index
    %c0_273 = arith.constant 0 : index
    %1020 = vector.load %arg11[%c0_272, %c0_273] : memref<64x96xf32, #tpu.memory_space<vmem>>, vector<32x96xf32>
    %cst_274 = arith.constant dense<0.000000e+00> : vector<32x96xf32>
    %1021 = tpu.matmul %1018, %1020, %cst_274 {dimension_numbers = #tpu.dot_dimension_numbers<[1], [0], [0], [1], [0, 0, 1, 1], [], []>} : vector<32x32xf32>, vector<32x96xf32>, vector<32x96xf32> -> vector<32x96xf32>
    %c32 = arith.constant 32 : index
    %c0_275 = arith.constant 0 : index
    %1022 = vector.load %arg11[%c32, %c0_275] : memref<64x96xf32, #tpu.memory_space<vmem>>, vector<32x96xf32>
    %cst_276 = arith.constant dense<0.000000e+00> : vector<32x96xf32>
    %1023 = tpu.matmul %1019, %1022, %cst_276 {dimension_numbers = #tpu.dot_dimension_numbers<[1], [0], [0], [1], [0, 0, 1, 1], [], []>} : vector<32x32xf32>, vector<32x96xf32>, vector<32x96xf32> -> vector<32x96xf32>
    %1024 = arith.addf %1021, %1023 : vector<32x96xf32>
    %c0_277 = arith.constant 0 : index
    %c0_278 = arith.constant 0 : index
    %1025 = vector.load %arg13[%c0_277, %c0_278] : memref<1x96xf32, #tpu.memory_space<vmem>>, vector<1x96xf32>
    %1026 = vector.broadcast %1025 : vector<1x96xf32> to vector<32x96xf32>
    %1027 = arith.addf %1024, %1026 : vector<32x96xf32>
    %c0_279 = arith.constant 0 : index
    %c0_280 = arith.constant 0 : index
    %1028 = vector.load %arg24[%c0_279, %c0_280] : memref<32x96xf32, #tpu.memory_space<vmem>>, vector<32x96xf32>
    tpu.vector_store %arg24[%c0_279, %c0_280], %1027 {strides = array<i32>} : memref<32x96xf32, #tpu.memory_space<vmem>>, vector<32x96xf32>,
    %c0_281 = arith.constant 0 : index
    %c0_282 = arith.constant 0 : index
    %1029 = vector.load %arg15[%c0_281, %c0_282] : memref<64x96xf32, #tpu.memory_space<vmem>>, vector<32x96xf32>
    %cst_283 = arith.constant dense<0.000000e+00> : vector<32x96xf32>
    %1030 = tpu.matmul %1018, %1029, %cst_283 {dimension_numbers = #tpu.dot_dimension_numbers<[1], [0], [0], [1], [0, 0, 1, 1], [], []>} : vector<32x32xf32>, vector<32x96xf32>, vector<32x96xf32> -> vector<32x96xf32>
    %c32_284 = arith.constant 32 : index
    %c0_285 = arith.constant 0 : index
    %1031 = vector.load %arg15[%c32_284, %c0_285] : memref<64x96xf32, #tpu.memory_space<vmem>>, vector<32x96xf32>
    %cst_286 = arith.constant dense<0.000000e+00> : vector<32x96xf32>
    %1032 = tpu.matmul %1019, %1031, %cst_286 {dimension_numbers = #tpu.dot_dimension_numbers<[1], [0], [0], [1], [0, 0, 1, 1], [], []>} : vector<32x32xf32>, vector<32x96xf32>, vector<32x96xf32> -> vector<32x96xf32>
    %1033 = arith.addf %1030, %1032 : vector<32x96xf32>
    %c0_287 = arith.constant 0 : index
    %c0_288 = arith.constant 0 : index
    %1034 = vector.load %arg17[%c0_287, %c0_288] : memref<1x96xf32, #tpu.memory_space<vmem>>, vector<1x96xf32>
    %1035 = vector.broadcast %1034 : vector<1x96xf32> to vector<32x96xf32>
    %1036 = arith.addf %1033, %1035 : vector<32x96xf32>
    %c0_289 = arith.constant 0 : index
    %c0_290 = arith.constant 0 : index
    %1037 = vector.load %arg25[%c0_289, %c0_290] : memref<32x96xf32, #tpu.memory_space<vmem>>, vector<32x96xf32>
    tpu.vector_store %arg25[%c0_289, %c0_290], %1036 {strides = array<i32>} : memref<32x96xf32, #tpu.memory_space<vmem>>, vector<32x96xf32>,
    %c0_291 = arith.constant 0 : index
    %c0_292 = arith.constant 0 : index
    %1038 = vector.load %arg12[%c0_291, %c0_292] : memref<32x96xf32, #tpu.memory_space<vmem>>, vector<32x96xf32>
    %c0_293 = arith.constant 0 : index
    %c0_294 = arith.constant 0 : index
    %1039 = vector.load %arg14[%c0_293, %c0_294] : memref<1x96xf32, #tpu.memory_space<vmem>>, vector<1x96xf32>
    %c0_295 = arith.constant 0 : index
    %c0_296 = arith.constant 0 : index
    %1040 = vector.load %arg16[%c0_295, %c0_296] : memref<32x96xf32, #tpu.memory_space<vmem>>, vector<32x96xf32>
    %c0_297 = arith.constant 0 : index
    %c0_298 = arith.constant 0 : index
    %1041 = vector.load %arg18[%c0_297, %c0_298] : memref<1x96xf32, #tpu.memory_space<vmem>>, vector<1x96xf32>
    %cst_299 = arith.constant 0.000000e+00 : f32
    %1042 = vector.broadcast %cst_299 : f32 to vector<2x32xf32>
    %cst_300 = arith.constant 0.000000e+00 : f32
    %1043 = vector.broadcast %cst_300 : f32 to vector<2x32xf32>
    %c0_301 = arith.constant 0 : index
    %c0_302 = arith.constant 0 : index
    %1044 = vector.load %arg24[%c0_301, %c0_302] : memref<32x96xf32, #tpu.memory_space<vmem>>, vector<2x96xf32>
    %cst_303 = arith.constant dense<0.000000e+00> : vector<2x96xf32>
    %1045 = tpu.matmul %1042, %1038, %cst_303 {dimension_numbers = #tpu.dot_dimension_numbers<[1], [0], [0], [1], [0, 0, 1, 1], [], []>} : vector<2x32xf32>, vector<32x96xf32>, vector<2x96xf32> -> vector<2x96xf32>
    %1046 = vector.broadcast %1039 : vector<1x96xf32> to vector<2x96xf32>
    %1047 = arith.addf %1045, %1046 : vector<2x96xf32>
    %1048 = vector.extract_strided_slice %1044 {offsets = [0, 0], sizes = [2, 32], strides = [1, 1]} : vector<2x96xf32> to vector<2x32xf32>
    %1049 = vector.extract_strided_slice %1047 {offsets = [0, 0], sizes = [2, 32], strides = [1, 1]} : vector<2x96xf32> to vector<2x32xf32>
    %1050 = arith.addf %1048, %1049 : vector<2x32xf32>
    %1051 = arith.negf %1050 : vector<2x32xf32>
    %1052 = math.exp %1051 : vector<2x32xf32>
    %cst_304 = arith.constant 1.000000e+00 : f32
    %1053 = vector.broadcast %cst_304 : f32 to vector<2x32xf32>
    %1054 = arith.addf %1053, %1052 : vector<2x32xf32>
    %1055 = arith.divf %1053, %1054 : vector<2x32xf32>
    %1056 = vector.extract_strided_slice %1044 {offsets = [0, 32], sizes = [2, 32], strides = [1, 1]} : vector<2x96xf32> to vector<2x32xf32>
    %1057 = vector.extract_strided_slice %1047 {offsets = [0, 32], sizes = [2, 32], strides = [1, 1]} : vector<2x96xf32> to vector<2x32xf32>
    %1058 = arith.addf %1056, %1057 : vector<2x32xf32>
    %1059 = arith.negf %1058 : vector<2x32xf32>
    %1060 = math.exp %1059 : vector<2x32xf32>
    %cst_305 = arith.constant 1.000000e+00 : f32
    %1061 = vector.broadcast %cst_305 : f32 to vector<2x32xf32>
    %1062 = arith.addf %1061, %1060 : vector<2x32xf32>
    %1063 = arith.divf %1061, %1062 : vector<2x32xf32>
    %1064 = vector.extract_strided_slice %1044 {offsets = [0, 64], sizes = [2, 32], strides = [1, 1]} : vector<2x96xf32> to vector<2x32xf32>
    %1065 = vector.extract_strided_slice %1047 {offsets = [0, 64], sizes = [2, 32], strides = [1, 1]} : vector<2x96xf32> to vector<2x32xf32>
    %1066 = arith.mulf %1055, %1065 : vector<2x32xf32>
    %1067 = arith.addf %1064, %1066 : vector<2x32xf32>
    %1068 = math.tanh %1067 : vector<2x32xf32>
    %cst_306 = arith.constant 1.000000e+00 : f32
    %1069 = vector.broadcast %cst_306 : f32 to vector<2x32xf32>
    %1070 = arith.subf %1069, %1063 : vector<2x32xf32>
    %1071 = arith.mulf %1070, %1068 : vector<2x32xf32>
    %1072 = arith.mulf %1063, %1042 : vector<2x32xf32>
    %1073 = arith.addf %1071, %1072 : vector<2x32xf32>
    %c30_307 = arith.constant 30 : index
    %c0_308 = arith.constant 0 : index
    %1074 = vector.load %arg25[%c30_307, %c0_308] : memref<32x96xf32, #tpu.memory_space<vmem>>, vector<2x96xf32>
    %cst_309 = arith.constant dense<0.000000e+00> : vector<2x96xf32>
    %1075 = tpu.matmul %1043, %1040, %cst_309 {dimension_numbers = #tpu.dot_dimension_numbers<[1], [0], [0], [1], [0, 0, 1, 1], [], []>} : vector<2x32xf32>, vector<32x96xf32>, vector<2x96xf32> -> vector<2x96xf32>
    %1076 = vector.broadcast %1041 : vector<1x96xf32> to vector<2x96xf32>
    %1077 = arith.addf %1075, %1076 : vector<2x96xf32>
    %1078 = vector.extract_strided_slice %1074 {offsets = [0, 0], sizes = [2, 32], strides = [1, 1]} : vector<2x96xf32> to vector<2x32xf32>
    %1079 = vector.extract_strided_slice %1077 {offsets = [0, 0], sizes = [2, 32], strides = [1, 1]} : vector<2x96xf32> to vector<2x32xf32>
    %1080 = arith.addf %1078, %1079 : vector<2x32xf32>
    %1081 = arith.negf %1080 : vector<2x32xf32>
    %1082 = math.exp %1081 : vector<2x32xf32>
    %cst_310 = arith.constant 1.000000e+00 : f32
    %1083 = vector.broadcast %cst_310 : f32 to vector<2x32xf32>
    %1084 = arith.addf %1083, %1082 : vector<2x32xf32>
    %1085 = arith.divf %1083, %1084 : vector<2x32xf32>
    %1086 = vector.extract_strided_slice %1074 {offsets = [0, 32], sizes = [2, 32], strides = [1, 1]} : vector<2x96xf32> to vector<2x32xf32>
    %1087 = vector.extract_strided_slice %1077 {offsets = [0, 32], sizes = [2, 32], strides = [1, 1]} : vector<2x96xf32> to vector<2x32xf32>
    %1088 = arith.addf %1086, %1087 : vector<2x32xf32>
    %1089 = arith.negf %1088 : vector<2x32xf32>
    %1090 = math.exp %1089 : vector<2x32xf32>
    %cst_311 = arith.constant 1.000000e+00 : f32
    %1091 = vector.broadcast %cst_311 : f32 to vector<2x32xf32>
    %1092 = arith.addf %1091, %1090 : vector<2x32xf32>
    %1093 = arith.divf %1091, %1092 : vector<2x32xf32>
    %1094 = vector.extract_strided_slice %1074 {offsets = [0, 64], sizes = [2, 32], strides = [1, 1]} : vector<2x96xf32> to vector<2x32xf32>
    %1095 = vector.extract_strided_slice %1077 {offsets = [0, 64], sizes = [2, 32], strides = [1, 1]} : vector<2x96xf32> to vector<2x32xf32>
    %1096 = arith.mulf %1085, %1095 : vector<2x32xf32>
    %1097 = arith.addf %1094, %1096 : vector<2x32xf32>
    %1098 = math.tanh %1097 : vector<2x32xf32>
    %cst_312 = arith.constant 1.000000e+00 : f32
    %1099 = vector.broadcast %cst_312 : f32 to vector<2x32xf32>
    %1100 = arith.subf %1099, %1093 : vector<2x32xf32>
    %1101 = arith.mulf %1100, %1098 : vector<2x32xf32>
    %1102 = arith.mulf %1093, %1043 : vector<2x32xf32>
    %1103 = arith.addf %1101, %1102 : vector<2x32xf32>
    %c2_313 = arith.constant 2 : index
    %c0_314 = arith.constant 0 : index
    %1104 = vector.load %arg24[%c2_313, %c0_314] : memref<32x96xf32, #tpu.memory_space<vmem>>, vector<2x96xf32>
    %cst_315 = arith.constant dense<0.000000e+00> : vector<2x96xf32>
    %1105 = tpu.matmul %1073, %1038, %cst_315 {dimension_numbers = #tpu.dot_dimension_numbers<[1], [0], [0], [1], [0, 0, 1, 1], [], []>} : vector<2x32xf32>, vector<32x96xf32>, vector<2x96xf32> -> vector<2x96xf32>
    %1106 = vector.broadcast %1039 : vector<1x96xf32> to vector<2x96xf32>
    %1107 = arith.addf %1105, %1106 : vector<2x96xf32>
    %1108 = vector.extract_strided_slice %1104 {offsets = [0, 0], sizes = [2, 32], strides = [1, 1]} : vector<2x96xf32> to vector<2x32xf32>
    %1109 = vector.extract_strided_slice %1107 {offsets = [0, 0], sizes = [2, 32], strides = [1, 1]} : vector<2x96xf32> to vector<2x32xf32>
    %1110 = arith.addf %1108, %1109 : vector<2x32xf32>
    %1111 = arith.negf %1110 : vector<2x32xf32>
    %1112 = math.exp %1111 : vector<2x32xf32>
    %cst_316 = arith.constant 1.000000e+00 : f32
    %1113 = vector.broadcast %cst_316 : f32 to vector<2x32xf32>
    %1114 = arith.addf %1113, %1112 : vector<2x32xf32>
    %1115 = arith.divf %1113, %1114 : vector<2x32xf32>
    %1116 = vector.extract_strided_slice %1104 {offsets = [0, 32], sizes = [2, 32], strides = [1, 1]} : vector<2x96xf32> to vector<2x32xf32>
    %1117 = vector.extract_strided_slice %1107 {offsets = [0, 32], sizes = [2, 32], strides = [1, 1]} : vector<2x96xf32> to vector<2x32xf32>
    %1118 = arith.addf %1116, %1117 : vector<2x32xf32>
    %1119 = arith.negf %1118 : vector<2x32xf32>
    %1120 = math.exp %1119 : vector<2x32xf32>
    %cst_317 = arith.constant 1.000000e+00 : f32
    %1121 = vector.broadcast %cst_317 : f32 to vector<2x32xf32>
    %1122 = arith.addf %1121, %1120 : vector<2x32xf32>
    %1123 = arith.divf %1121, %1122 : vector<2x32xf32>
    %1124 = vector.extract_strided_slice %1104 {offsets = [0, 64], sizes = [2, 32], strides = [1, 1]} : vector<2x96xf32> to vector<2x32xf32>
    %1125 = vector.extract_strided_slice %1107 {offsets = [0, 64], sizes = [2, 32], strides = [1, 1]} : vector<2x96xf32> to vector<2x32xf32>
    %1126 = arith.mulf %1115, %1125 : vector<2x32xf32>
    %1127 = arith.addf %1124, %1126 : vector<2x32xf32>
    %1128 = math.tanh %1127 : vector<2x32xf32>
    %cst_318 = arith.constant 1.000000e+00 : f32
    %1129 = vector.broadcast %cst_318 : f32 to vector<2x32xf32>
    %1130 = arith.subf %1129, %1123 : vector<2x32xf32>
    %1131 = arith.mulf %1130, %1128 : vector<2x32xf32>
    %1132 = arith.mulf %1123, %1073 : vector<2x32xf32>
    %1133 = arith.addf %1131, %1132 : vector<2x32xf32>
    %c28_319 = arith.constant 28 : index
    %c0_320 = arith.constant 0 : index
    %1134 = vector.load %arg25[%c28_319, %c0_320] : memref<32x96xf32, #tpu.memory_space<vmem>>, vector<2x96xf32>
    %cst_321 = arith.constant dense<0.000000e+00> : vector<2x96xf32>
    %1135 = tpu.matmul %1103, %1040, %cst_321 {dimension_numbers = #tpu.dot_dimension_numbers<[1], [0], [0], [1], [0, 0, 1, 1], [], []>} : vector<2x32xf32>, vector<32x96xf32>, vector<2x96xf32> -> vector<2x96xf32>
    %1136 = vector.broadcast %1041 : vector<1x96xf32> to vector<2x96xf32>
    %1137 = arith.addf %1135, %1136 : vector<2x96xf32>
    %1138 = vector.extract_strided_slice %1134 {offsets = [0, 0], sizes = [2, 32], strides = [1, 1]} : vector<2x96xf32> to vector<2x32xf32>
    %1139 = vector.extract_strided_slice %1137 {offsets = [0, 0], sizes = [2, 32], strides = [1, 1]} : vector<2x96xf32> to vector<2x32xf32>
    %1140 = arith.addf %1138, %1139 : vector<2x32xf32>
    %1141 = arith.negf %1140 : vector<2x32xf32>
    %1142 = math.exp %1141 : vector<2x32xf32>
    %cst_322 = arith.constant 1.000000e+00 : f32
    %1143 = vector.broadcast %cst_322 : f32 to vector<2x32xf32>
    %1144 = arith.addf %1143, %1142 : vector<2x32xf32>
    %1145 = arith.divf %1143, %1144 : vector<2x32xf32>
    %1146 = vector.extract_strided_slice %1134 {offsets = [0, 32], sizes = [2, 32], strides = [1, 1]} : vector<2x96xf32> to vector<2x32xf32>
    %1147 = vector.extract_strided_slice %1137 {offsets = [0, 32], sizes = [2, 32], strides = [1, 1]} : vector<2x96xf32> to vector<2x32xf32>
    %1148 = arith.addf %1146, %1147 : vector<2x32xf32>
    %1149 = arith.negf %1148 : vector<2x32xf32>
    %1150 = math.exp %1149 : vector<2x32xf32>
    %cst_323 = arith.constant 1.000000e+00 : f32
    %1151 = vector.broadcast %cst_323 : f32 to vector<2x32xf32>
    %1152 = arith.addf %1151, %1150 : vector<2x32xf32>
    %1153 = arith.divf %1151, %1152 : vector<2x32xf32>
    %1154 = vector.extract_strided_slice %1134 {offsets = [0, 64], sizes = [2, 32], strides = [1, 1]} : vector<2x96xf32> to vector<2x32xf32>
    %1155 = vector.extract_strided_slice %1137 {offsets = [0, 64], sizes = [2, 32], strides = [1, 1]} : vector<2x96xf32> to vector<2x32xf32>
    %1156 = arith.mulf %1145, %1155 : vector<2x32xf32>
    %1157 = arith.addf %1154, %1156 : vector<2x32xf32>
    %1158 = math.tanh %1157 : vector<2x32xf32>
    %cst_324 = arith.constant 1.000000e+00 : f32
    %1159 = vector.broadcast %cst_324 : f32 to vector<2x32xf32>
    %1160 = arith.subf %1159, %1153 : vector<2x32xf32>
    %1161 = arith.mulf %1160, %1158 : vector<2x32xf32>
    %1162 = arith.mulf %1153, %1103 : vector<2x32xf32>
    %1163 = arith.addf %1161, %1162 : vector<2x32xf32>
    %c4_325 = arith.constant 4 : index
    %c0_326 = arith.constant 0 : index
    %1164 = vector.load %arg24[%c4_325, %c0_326] : memref<32x96xf32, #tpu.memory_space<vmem>>, vector<2x96xf32>
    %cst_327 = arith.constant dense<0.000000e+00> : vector<2x96xf32>
    %1165 = tpu.matmul %1133, %1038, %cst_327 {dimension_numbers = #tpu.dot_dimension_numbers<[1], [0], [0], [1], [0, 0, 1, 1], [], []>} : vector<2x32xf32>, vector<32x96xf32>, vector<2x96xf32> -> vector<2x96xf32>
    %1166 = vector.broadcast %1039 : vector<1x96xf32> to vector<2x96xf32>
    %1167 = arith.addf %1165, %1166 : vector<2x96xf32>
    %1168 = vector.extract_strided_slice %1164 {offsets = [0, 0], sizes = [2, 32], strides = [1, 1]} : vector<2x96xf32> to vector<2x32xf32>
    %1169 = vector.extract_strided_slice %1167 {offsets = [0, 0], sizes = [2, 32], strides = [1, 1]} : vector<2x96xf32> to vector<2x32xf32>
    %1170 = arith.addf %1168, %1169 : vector<2x32xf32>
    %1171 = arith.negf %1170 : vector<2x32xf32>
    %1172 = math.exp %1171 : vector<2x32xf32>
    %cst_328 = arith.constant 1.000000e+00 : f32
    %1173 = vector.broadcast %cst_328 : f32 to vector<2x32xf32>
    %1174 = arith.addf %1173, %1172 : vector<2x32xf32>
    %1175 = arith.divf %1173, %1174 : vector<2x32xf32>
    %1176 = vector.extract_strided_slice %1164 {offsets = [0, 32], sizes = [2, 32], strides = [1, 1]} : vector<2x96xf32> to vector<2x32xf32>
    %1177 = vector.extract_strided_slice %1167 {offsets = [0, 32], sizes = [2, 32], strides = [1, 1]} : vector<2x96xf32> to vector<2x32xf32>
    %1178 = arith.addf %1176, %1177 : vector<2x32xf32>
    %1179 = arith.negf %1178 : vector<2x32xf32>
    %1180 = math.exp %1179 : vector<2x32xf32>
    %cst_329 = arith.constant 1.000000e+00 : f32
    %1181 = vector.broadcast %cst_329 : f32 to vector<2x32xf32>
    %1182 = arith.addf %1181, %1180 : vector<2x32xf32>
    %1183 = arith.divf %1181, %1182 : vector<2x32xf32>
    %1184 = vector.extract_strided_slice %1164 {offsets = [0, 64], sizes = [2, 32], strides = [1, 1]} : vector<2x96xf32> to vector<2x32xf32>
    %1185 = vector.extract_strided_slice %1167 {offsets = [0, 64], sizes = [2, 32], strides = [1, 1]} : vector<2x96xf32> to vector<2x32xf32>
    %1186 = arith.mulf %1175, %1185 : vector<2x32xf32>
    %1187 = arith.addf %1184, %1186 : vector<2x32xf32>
    %1188 = math.tanh %1187 : vector<2x32xf32>
    %cst_330 = arith.constant 1.000000e+00 : f32
    %1189 = vector.broadcast %cst_330 : f32 to vector<2x32xf32>
    %1190 = arith.subf %1189, %1183 : vector<2x32xf32>
    %1191 = arith.mulf %1190, %1188 : vector<2x32xf32>
    %1192 = arith.mulf %1183, %1133 : vector<2x32xf32>
    %1193 = arith.addf %1191, %1192 : vector<2x32xf32>
    %c26_331 = arith.constant 26 : index
    %c0_332 = arith.constant 0 : index
    %1194 = vector.load %arg25[%c26_331, %c0_332] : memref<32x96xf32, #tpu.memory_space<vmem>>, vector<2x96xf32>
    %cst_333 = arith.constant dense<0.000000e+00> : vector<2x96xf32>
    %1195 = tpu.matmul %1163, %1040, %cst_333 {dimension_numbers = #tpu.dot_dimension_numbers<[1], [0], [0], [1], [0, 0, 1, 1], [], []>} : vector<2x32xf32>, vector<32x96xf32>, vector<2x96xf32> -> vector<2x96xf32>
    %1196 = vector.broadcast %1041 : vector<1x96xf32> to vector<2x96xf32>
    %1197 = arith.addf %1195, %1196 : vector<2x96xf32>
    %1198 = vector.extract_strided_slice %1194 {offsets = [0, 0], sizes = [2, 32], strides = [1, 1]} : vector<2x96xf32> to vector<2x32xf32>
    %1199 = vector.extract_strided_slice %1197 {offsets = [0, 0], sizes = [2, 32], strides = [1, 1]} : vector<2x96xf32> to vector<2x32xf32>
    %1200 = arith.addf %1198, %1199 : vector<2x32xf32>
    %1201 = arith.negf %1200 : vector<2x32xf32>
    %1202 = math.exp %1201 : vector<2x32xf32>
    %cst_334 = arith.constant 1.000000e+00 : f32
    %1203 = vector.broadcast %cst_334 : f32 to vector<2x32xf32>
    %1204 = arith.addf %1203, %1202 : vector<2x32xf32>
    %1205 = arith.divf %1203, %1204 : vector<2x32xf32>
    %1206 = vector.extract_strided_slice %1194 {offsets = [0, 32], sizes = [2, 32], strides = [1, 1]} : vector<2x96xf32> to vector<2x32xf32>
    %1207 = vector.extract_strided_slice %1197 {offsets = [0, 32], sizes = [2, 32], strides = [1, 1]} : vector<2x96xf32> to vector<2x32xf32>
    %1208 = arith.addf %1206, %1207 : vector<2x32xf32>
    %1209 = arith.negf %1208 : vector<2x32xf32>
    %1210 = math.exp %1209 : vector<2x32xf32>
    %cst_335 = arith.constant 1.000000e+00 : f32
    %1211 = vector.broadcast %cst_335 : f32 to vector<2x32xf32>
    %1212 = arith.addf %1211, %1210 : vector<2x32xf32>
    %1213 = arith.divf %1211, %1212 : vector<2x32xf32>
    %1214 = vector.extract_strided_slice %1194 {offsets = [0, 64], sizes = [2, 32], strides = [1, 1]} : vector<2x96xf32> to vector<2x32xf32>
    %1215 = vector.extract_strided_slice %1197 {offsets = [0, 64], sizes = [2, 32], strides = [1, 1]} : vector<2x96xf32> to vector<2x32xf32>
    %1216 = arith.mulf %1205, %1215 : vector<2x32xf32>
    %1217 = arith.addf %1214, %1216 : vector<2x32xf32>
    %1218 = math.tanh %1217 : vector<2x32xf32>
    %cst_336 = arith.constant 1.000000e+00 : f32
    %1219 = vector.broadcast %cst_336 : f32 to vector<2x32xf32>
    %1220 = arith.subf %1219, %1213 : vector<2x32xf32>
    %1221 = arith.mulf %1220, %1218 : vector<2x32xf32>
    %1222 = arith.mulf %1213, %1163 : vector<2x32xf32>
    %1223 = arith.addf %1221, %1222 : vector<2x32xf32>
    %c6_337 = arith.constant 6 : index
    %c0_338 = arith.constant 0 : index
    %1224 = vector.load %arg24[%c6_337, %c0_338] : memref<32x96xf32, #tpu.memory_space<vmem>>, vector<2x96xf32>
    %cst_339 = arith.constant dense<0.000000e+00> : vector<2x96xf32>
    %1225 = tpu.matmul %1193, %1038, %cst_339 {dimension_numbers = #tpu.dot_dimension_numbers<[1], [0], [0], [1], [0, 0, 1, 1], [], []>} : vector<2x32xf32>, vector<32x96xf32>, vector<2x96xf32> -> vector<2x96xf32>
    %1226 = vector.broadcast %1039 : vector<1x96xf32> to vector<2x96xf32>
    %1227 = arith.addf %1225, %1226 : vector<2x96xf32>
    %1228 = vector.extract_strided_slice %1224 {offsets = [0, 0], sizes = [2, 32], strides = [1, 1]} : vector<2x96xf32> to vector<2x32xf32>
    %1229 = vector.extract_strided_slice %1227 {offsets = [0, 0], sizes = [2, 32], strides = [1, 1]} : vector<2x96xf32> to vector<2x32xf32>
    %1230 = arith.addf %1228, %1229 : vector<2x32xf32>
    %1231 = arith.negf %1230 : vector<2x32xf32>
    %1232 = math.exp %1231 : vector<2x32xf32>
    %cst_340 = arith.constant 1.000000e+00 : f32
    %1233 = vector.broadcast %cst_340 : f32 to vector<2x32xf32>
    %1234 = arith.addf %1233, %1232 : vector<2x32xf32>
    %1235 = arith.divf %1233, %1234 : vector<2x32xf32>
    %1236 = vector.extract_strided_slice %1224 {offsets = [0, 32], sizes = [2, 32], strides = [1, 1]} : vector<2x96xf32> to vector<2x32xf32>
    %1237 = vector.extract_strided_slice %1227 {offsets = [0, 32], sizes = [2, 32], strides = [1, 1]} : vector<2x96xf32> to vector<2x32xf32>
    %1238 = arith.addf %1236, %1237 : vector<2x32xf32>
    %1239 = arith.negf %1238 : vector<2x32xf32>
    %1240 = math.exp %1239 : vector<2x32xf32>
    %cst_341 = arith.constant 1.000000e+00 : f32
    %1241 = vector.broadcast %cst_341 : f32 to vector<2x32xf32>
    %1242 = arith.addf %1241, %1240 : vector<2x32xf32>
    %1243 = arith.divf %1241, %1242 : vector<2x32xf32>
    %1244 = vector.extract_strided_slice %1224 {offsets = [0, 64], sizes = [2, 32], strides = [1, 1]} : vector<2x96xf32> to vector<2x32xf32>
    %1245 = vector.extract_strided_slice %1227 {offsets = [0, 64], sizes = [2, 32], strides = [1, 1]} : vector<2x96xf32> to vector<2x32xf32>
    %1246 = arith.mulf %1235, %1245 : vector<2x32xf32>
    %1247 = arith.addf %1244, %1246 : vector<2x32xf32>
    %1248 = math.tanh %1247 : vector<2x32xf32>
    %cst_342 = arith.constant 1.000000e+00 : f32
    %1249 = vector.broadcast %cst_342 : f32 to vector<2x32xf32>
    %1250 = arith.subf %1249, %1243 : vector<2x32xf32>
    %1251 = arith.mulf %1250, %1248 : vector<2x32xf32>
    %1252 = arith.mulf %1243, %1193 : vector<2x32xf32>
    %1253 = arith.addf %1251, %1252 : vector<2x32xf32>
    %c24_343 = arith.constant 24 : index
    %c0_344 = arith.constant 0 : index
    %1254 = vector.load %arg25[%c24_343, %c0_344] : memref<32x96xf32, #tpu.memory_space<vmem>>, vector<2x96xf32>
    %cst_345 = arith.constant dense<0.000000e+00> : vector<2x96xf32>
    %1255 = tpu.matmul %1223, %1040, %cst_345 {dimension_numbers = #tpu.dot_dimension_numbers<[1], [0], [0], [1], [0, 0, 1, 1], [], []>} : vector<2x32xf32>, vector<32x96xf32>, vector<2x96xf32> -> vector<2x96xf32>
    %1256 = vector.broadcast %1041 : vector<1x96xf32> to vector<2x96xf32>
    %1257 = arith.addf %1255, %1256 : vector<2x96xf32>
    %1258 = vector.extract_strided_slice %1254 {offsets = [0, 0], sizes = [2, 32], strides = [1, 1]} : vector<2x96xf32> to vector<2x32xf32>
    %1259 = vector.extract_strided_slice %1257 {offsets = [0, 0], sizes = [2, 32], strides = [1, 1]} : vector<2x96xf32> to vector<2x32xf32>
    %1260 = arith.addf %1258, %1259 : vector<2x32xf32>
    %1261 = arith.negf %1260 : vector<2x32xf32>
    %1262 = math.exp %1261 : vector<2x32xf32>
    %cst_346 = arith.constant 1.000000e+00 : f32
    %1263 = vector.broadcast %cst_346 : f32 to vector<2x32xf32>
    %1264 = arith.addf %1263, %1262 : vector<2x32xf32>
    %1265 = arith.divf %1263, %1264 : vector<2x32xf32>
    %1266 = vector.extract_strided_slice %1254 {offsets = [0, 32], sizes = [2, 32], strides = [1, 1]} : vector<2x96xf32> to vector<2x32xf32>
    %1267 = vector.extract_strided_slice %1257 {offsets = [0, 32], sizes = [2, 32], strides = [1, 1]} : vector<2x96xf32> to vector<2x32xf32>
    %1268 = arith.addf %1266, %1267 : vector<2x32xf32>
    %1269 = arith.negf %1268 : vector<2x32xf32>
    %1270 = math.exp %1269 : vector<2x32xf32>
    %cst_347 = arith.constant 1.000000e+00 : f32
    %1271 = vector.broadcast %cst_347 : f32 to vector<2x32xf32>
    %1272 = arith.addf %1271, %1270 : vector<2x32xf32>
    %1273 = arith.divf %1271, %1272 : vector<2x32xf32>
    %1274 = vector.extract_strided_slice %1254 {offsets = [0, 64], sizes = [2, 32], strides = [1, 1]} : vector<2x96xf32> to vector<2x32xf32>
    %1275 = vector.extract_strided_slice %1257 {offsets = [0, 64], sizes = [2, 32], strides = [1, 1]} : vector<2x96xf32> to vector<2x32xf32>
    %1276 = arith.mulf %1265, %1275 : vector<2x32xf32>
    %1277 = arith.addf %1274, %1276 : vector<2x32xf32>
    %1278 = math.tanh %1277 : vector<2x32xf32>
    %cst_348 = arith.constant 1.000000e+00 : f32
    %1279 = vector.broadcast %cst_348 : f32 to vector<2x32xf32>
    %1280 = arith.subf %1279, %1273 : vector<2x32xf32>
    %1281 = arith.mulf %1280, %1278 : vector<2x32xf32>
    %1282 = arith.mulf %1273, %1223 : vector<2x32xf32>
    %1283 = arith.addf %1281, %1282 : vector<2x32xf32>
    %c8_349 = arith.constant 8 : index
    %c0_350 = arith.constant 0 : index
    %1284 = vector.load %arg24[%c8_349, %c0_350] : memref<32x96xf32, #tpu.memory_space<vmem>>, vector<2x96xf32>
    %cst_351 = arith.constant dense<0.000000e+00> : vector<2x96xf32>
    %1285 = tpu.matmul %1253, %1038, %cst_351 {dimension_numbers = #tpu.dot_dimension_numbers<[1], [0], [0], [1], [0, 0, 1, 1], [], []>} : vector<2x32xf32>, vector<32x96xf32>, vector<2x96xf32> -> vector<2x96xf32>
    %1286 = vector.broadcast %1039 : vector<1x96xf32> to vector<2x96xf32>
    %1287 = arith.addf %1285, %1286 : vector<2x96xf32>
    %1288 = vector.extract_strided_slice %1284 {offsets = [0, 0], sizes = [2, 32], strides = [1, 1]} : vector<2x96xf32> to vector<2x32xf32>
    %1289 = vector.extract_strided_slice %1287 {offsets = [0, 0], sizes = [2, 32], strides = [1, 1]} : vector<2x96xf32> to vector<2x32xf32>
    %1290 = arith.addf %1288, %1289 : vector<2x32xf32>
    %1291 = arith.negf %1290 : vector<2x32xf32>
    %1292 = math.exp %1291 : vector<2x32xf32>
    %cst_352 = arith.constant 1.000000e+00 : f32
    %1293 = vector.broadcast %cst_352 : f32 to vector<2x32xf32>
    %1294 = arith.addf %1293, %1292 : vector<2x32xf32>
    %1295 = arith.divf %1293, %1294 : vector<2x32xf32>
    %1296 = vector.extract_strided_slice %1284 {offsets = [0, 32], sizes = [2, 32], strides = [1, 1]} : vector<2x96xf32> to vector<2x32xf32>
    %1297 = vector.extract_strided_slice %1287 {offsets = [0, 32], sizes = [2, 32], strides = [1, 1]} : vector<2x96xf32> to vector<2x32xf32>
    %1298 = arith.addf %1296, %1297 : vector<2x32xf32>
    %1299 = arith.negf %1298 : vector<2x32xf32>
    %1300 = math.exp %1299 : vector<2x32xf32>
    %cst_353 = arith.constant 1.000000e+00 : f32
    %1301 = vector.broadcast %cst_353 : f32 to vector<2x32xf32>
    %1302 = arith.addf %1301, %1300 : vector<2x32xf32>
    %1303 = arith.divf %1301, %1302 : vector<2x32xf32>
    %1304 = vector.extract_strided_slice %1284 {offsets = [0, 64], sizes = [2, 32], strides = [1, 1]} : vector<2x96xf32> to vector<2x32xf32>
    %1305 = vector.extract_strided_slice %1287 {offsets = [0, 64], sizes = [2, 32], strides = [1, 1]} : vector<2x96xf32> to vector<2x32xf32>
    %1306 = arith.mulf %1295, %1305 : vector<2x32xf32>
    %1307 = arith.addf %1304, %1306 : vector<2x32xf32>
    %1308 = math.tanh %1307 : vector<2x32xf32>
    %cst_354 = arith.constant 1.000000e+00 : f32
    %1309 = vector.broadcast %cst_354 : f32 to vector<2x32xf32>
    %1310 = arith.subf %1309, %1303 : vector<2x32xf32>
    %1311 = arith.mulf %1310, %1308 : vector<2x32xf32>
    %1312 = arith.mulf %1303, %1253 : vector<2x32xf32>
    %1313 = arith.addf %1311, %1312 : vector<2x32xf32>
    %c22_355 = arith.constant 22 : index
    %c0_356 = arith.constant 0 : index
    %1314 = vector.load %arg25[%c22_355, %c0_356] : memref<32x96xf32, #tpu.memory_space<vmem>>, vector<2x96xf32>
    %cst_357 = arith.constant dense<0.000000e+00> : vector<2x96xf32>
    %1315 = tpu.matmul %1283, %1040, %cst_357 {dimension_numbers = #tpu.dot_dimension_numbers<[1], [0], [0], [1], [0, 0, 1, 1], [], []>} : vector<2x32xf32>, vector<32x96xf32>, vector<2x96xf32> -> vector<2x96xf32>
    %1316 = vector.broadcast %1041 : vector<1x96xf32> to vector<2x96xf32>
    %1317 = arith.addf %1315, %1316 : vector<2x96xf32>
    %1318 = vector.extract_strided_slice %1314 {offsets = [0, 0], sizes = [2, 32], strides = [1, 1]} : vector<2x96xf32> to vector<2x32xf32>
    %1319 = vector.extract_strided_slice %1317 {offsets = [0, 0], sizes = [2, 32], strides = [1, 1]} : vector<2x96xf32> to vector<2x32xf32>
    %1320 = arith.addf %1318, %1319 : vector<2x32xf32>
    %1321 = arith.negf %1320 : vector<2x32xf32>
    %1322 = math.exp %1321 : vector<2x32xf32>
    %cst_358 = arith.constant 1.000000e+00 : f32
    %1323 = vector.broadcast %cst_358 : f32 to vector<2x32xf32>
    %1324 = arith.addf %1323, %1322 : vector<2x32xf32>
    %1325 = arith.divf %1323, %1324 : vector<2x32xf32>
    %1326 = vector.extract_strided_slice %1314 {offsets = [0, 32], sizes = [2, 32], strides = [1, 1]} : vector<2x96xf32> to vector<2x32xf32>
    %1327 = vector.extract_strided_slice %1317 {offsets = [0, 32], sizes = [2, 32], strides = [1, 1]} : vector<2x96xf32> to vector<2x32xf32>
    %1328 = arith.addf %1326, %1327 : vector<2x32xf32>
    %1329 = arith.negf %1328 : vector<2x32xf32>
    %1330 = math.exp %1329 : vector<2x32xf32>
    %cst_359 = arith.constant 1.000000e+00 : f32
    %1331 = vector.broadcast %cst_359 : f32 to vector<2x32xf32>
    %1332 = arith.addf %1331, %1330 : vector<2x32xf32>
    %1333 = arith.divf %1331, %1332 : vector<2x32xf32>
    %1334 = vector.extract_strided_slice %1314 {offsets = [0, 64], sizes = [2, 32], strides = [1, 1]} : vector<2x96xf32> to vector<2x32xf32>
    %1335 = vector.extract_strided_slice %1317 {offsets = [0, 64], sizes = [2, 32], strides = [1, 1]} : vector<2x96xf32> to vector<2x32xf32>
    %1336 = arith.mulf %1325, %1335 : vector<2x32xf32>
    %1337 = arith.addf %1334, %1336 : vector<2x32xf32>
    %1338 = math.tanh %1337 : vector<2x32xf32>
    %cst_360 = arith.constant 1.000000e+00 : f32
    %1339 = vector.broadcast %cst_360 : f32 to vector<2x32xf32>
    %1340 = arith.subf %1339, %1333 : vector<2x32xf32>
    %1341 = arith.mulf %1340, %1338 : vector<2x32xf32>
    %1342 = arith.mulf %1333, %1283 : vector<2x32xf32>
    %1343 = arith.addf %1341, %1342 : vector<2x32xf32>
    %c10_361 = arith.constant 10 : index
    %c0_362 = arith.constant 0 : index
    %1344 = vector.load %arg24[%c10_361, %c0_362] : memref<32x96xf32, #tpu.memory_space<vmem>>, vector<2x96xf32>
    %cst_363 = arith.constant dense<0.000000e+00> : vector<2x96xf32>
    %1345 = tpu.matmul %1313, %1038, %cst_363 {dimension_numbers = #tpu.dot_dimension_numbers<[1], [0], [0], [1], [0, 0, 1, 1], [], []>} : vector<2x32xf32>, vector<32x96xf32>, vector<2x96xf32> -> vector<2x96xf32>
    %1346 = vector.broadcast %1039 : vector<1x96xf32> to vector<2x96xf32>
    %1347 = arith.addf %1345, %1346 : vector<2x96xf32>
    %1348 = vector.extract_strided_slice %1344 {offsets = [0, 0], sizes = [2, 32], strides = [1, 1]} : vector<2x96xf32> to vector<2x32xf32>
    %1349 = vector.extract_strided_slice %1347 {offsets = [0, 0], sizes = [2, 32], strides = [1, 1]} : vector<2x96xf32> to vector<2x32xf32>
    %1350 = arith.addf %1348, %1349 : vector<2x32xf32>
    %1351 = arith.negf %1350 : vector<2x32xf32>
    %1352 = math.exp %1351 : vector<2x32xf32>
    %cst_364 = arith.constant 1.000000e+00 : f32
    %1353 = vector.broadcast %cst_364 : f32 to vector<2x32xf32>
    %1354 = arith.addf %1353, %1352 : vector<2x32xf32>
    %1355 = arith.divf %1353, %1354 : vector<2x32xf32>
    %1356 = vector.extract_strided_slice %1344 {offsets = [0, 32], sizes = [2, 32], strides = [1, 1]} : vector<2x96xf32> to vector<2x32xf32>
    %1357 = vector.extract_strided_slice %1347 {offsets = [0, 32], sizes = [2, 32], strides = [1, 1]} : vector<2x96xf32> to vector<2x32xf32>
    %1358 = arith.addf %1356, %1357 : vector<2x32xf32>
    %1359 = arith.negf %1358 : vector<2x32xf32>
    %1360 = math.exp %1359 : vector<2x32xf32>
    %cst_365 = arith.constant 1.000000e+00 : f32
    %1361 = vector.broadcast %cst_365 : f32 to vector<2x32xf32>
    %1362 = arith.addf %1361, %1360 : vector<2x32xf32>
    %1363 = arith.divf %1361, %1362 : vector<2x32xf32>
    %1364 = vector.extract_strided_slice %1344 {offsets = [0, 64], sizes = [2, 32], strides = [1, 1]} : vector<2x96xf32> to vector<2x32xf32>
    %1365 = vector.extract_strided_slice %1347 {offsets = [0, 64], sizes = [2, 32], strides = [1, 1]} : vector<2x96xf32> to vector<2x32xf32>
    %1366 = arith.mulf %1355, %1365 : vector<2x32xf32>
    %1367 = arith.addf %1364, %1366 : vector<2x32xf32>
    %1368 = math.tanh %1367 : vector<2x32xf32>
    %cst_366 = arith.constant 1.000000e+00 : f32
    %1369 = vector.broadcast %cst_366 : f32 to vector<2x32xf32>
    %1370 = arith.subf %1369, %1363 : vector<2x32xf32>
    %1371 = arith.mulf %1370, %1368 : vector<2x32xf32>
    %1372 = arith.mulf %1363, %1313 : vector<2x32xf32>
    %1373 = arith.addf %1371, %1372 : vector<2x32xf32>
    %c20_367 = arith.constant 20 : index
    %c0_368 = arith.constant 0 : index
    %1374 = vector.load %arg25[%c20_367, %c0_368] : memref<32x96xf32, #tpu.memory_space<vmem>>, vector<2x96xf32>
    %cst_369 = arith.constant dense<0.000000e+00> : vector<2x96xf32>
    %1375 = tpu.matmul %1343, %1040, %cst_369 {dimension_numbers = #tpu.dot_dimension_numbers<[1], [0], [0], [1], [0, 0, 1, 1], [], []>} : vector<2x32xf32>, vector<32x96xf32>, vector<2x96xf32> -> vector<2x96xf32>
    %1376 = vector.broadcast %1041 : vector<1x96xf32> to vector<2x96xf32>
    %1377 = arith.addf %1375, %1376 : vector<2x96xf32>
    %1378 = vector.extract_strided_slice %1374 {offsets = [0, 0], sizes = [2, 32], strides = [1, 1]} : vector<2x96xf32> to vector<2x32xf32>
    %1379 = vector.extract_strided_slice %1377 {offsets = [0, 0], sizes = [2, 32], strides = [1, 1]} : vector<2x96xf32> to vector<2x32xf32>
    %1380 = arith.addf %1378, %1379 : vector<2x32xf32>
    %1381 = arith.negf %1380 : vector<2x32xf32>
    %1382 = math.exp %1381 : vector<2x32xf32>
    %cst_370 = arith.constant 1.000000e+00 : f32
    %1383 = vector.broadcast %cst_370 : f32 to vector<2x32xf32>
    %1384 = arith.addf %1383, %1382 : vector<2x32xf32>
    %1385 = arith.divf %1383, %1384 : vector<2x32xf32>
    %1386 = vector.extract_strided_slice %1374 {offsets = [0, 32], sizes = [2, 32], strides = [1, 1]} : vector<2x96xf32> to vector<2x32xf32>
    %1387 = vector.extract_strided_slice %1377 {offsets = [0, 32], sizes = [2, 32], strides = [1, 1]} : vector<2x96xf32> to vector<2x32xf32>
    %1388 = arith.addf %1386, %1387 : vector<2x32xf32>
    %1389 = arith.negf %1388 : vector<2x32xf32>
    %1390 = math.exp %1389 : vector<2x32xf32>
    %cst_371 = arith.constant 1.000000e+00 : f32
    %1391 = vector.broadcast %cst_371 : f32 to vector<2x32xf32>
    %1392 = arith.addf %1391, %1390 : vector<2x32xf32>
    %1393 = arith.divf %1391, %1392 : vector<2x32xf32>
    %1394 = vector.extract_strided_slice %1374 {offsets = [0, 64], sizes = [2, 32], strides = [1, 1]} : vector<2x96xf32> to vector<2x32xf32>
    %1395 = vector.extract_strided_slice %1377 {offsets = [0, 64], sizes = [2, 32], strides = [1, 1]} : vector<2x96xf32> to vector<2x32xf32>
    %1396 = arith.mulf %1385, %1395 : vector<2x32xf32>
    %1397 = arith.addf %1394, %1396 : vector<2x32xf32>
    %1398 = math.tanh %1397 : vector<2x32xf32>
    %cst_372 = arith.constant 1.000000e+00 : f32
    %1399 = vector.broadcast %cst_372 : f32 to vector<2x32xf32>
    %1400 = arith.subf %1399, %1393 : vector<2x32xf32>
    %1401 = arith.mulf %1400, %1398 : vector<2x32xf32>
    %1402 = arith.mulf %1393, %1343 : vector<2x32xf32>
    %1403 = arith.addf %1401, %1402 : vector<2x32xf32>
    %c12_373 = arith.constant 12 : index
    %c0_374 = arith.constant 0 : index
    %1404 = vector.load %arg24[%c12_373, %c0_374] : memref<32x96xf32, #tpu.memory_space<vmem>>, vector<2x96xf32>
    %cst_375 = arith.constant dense<0.000000e+00> : vector<2x96xf32>
    %1405 = tpu.matmul %1373, %1038, %cst_375 {dimension_numbers = #tpu.dot_dimension_numbers<[1], [0], [0], [1], [0, 0, 1, 1], [], []>} : vector<2x32xf32>, vector<32x96xf32>, vector<2x96xf32> -> vector<2x96xf32>
    %1406 = vector.broadcast %1039 : vector<1x96xf32> to vector<2x96xf32>
    %1407 = arith.addf %1405, %1406 : vector<2x96xf32>
    %1408 = vector.extract_strided_slice %1404 {offsets = [0, 0], sizes = [2, 32], strides = [1, 1]} : vector<2x96xf32> to vector<2x32xf32>
    %1409 = vector.extract_strided_slice %1407 {offsets = [0, 0], sizes = [2, 32], strides = [1, 1]} : vector<2x96xf32> to vector<2x32xf32>
    %1410 = arith.addf %1408, %1409 : vector<2x32xf32>
    %1411 = arith.negf %1410 : vector<2x32xf32>
    %1412 = math.exp %1411 : vector<2x32xf32>
    %cst_376 = arith.constant 1.000000e+00 : f32
    %1413 = vector.broadcast %cst_376 : f32 to vector<2x32xf32>
    %1414 = arith.addf %1413, %1412 : vector<2x32xf32>
    %1415 = arith.divf %1413, %1414 : vector<2x32xf32>
    %1416 = vector.extract_strided_slice %1404 {offsets = [0, 32], sizes = [2, 32], strides = [1, 1]} : vector<2x96xf32> to vector<2x32xf32>
    %1417 = vector.extract_strided_slice %1407 {offsets = [0, 32], sizes = [2, 32], strides = [1, 1]} : vector<2x96xf32> to vector<2x32xf32>
    %1418 = arith.addf %1416, %1417 : vector<2x32xf32>
    %1419 = arith.negf %1418 : vector<2x32xf32>
    %1420 = math.exp %1419 : vector<2x32xf32>
    %cst_377 = arith.constant 1.000000e+00 : f32
    %1421 = vector.broadcast %cst_377 : f32 to vector<2x32xf32>
    %1422 = arith.addf %1421, %1420 : vector<2x32xf32>
    %1423 = arith.divf %1421, %1422 : vector<2x32xf32>
    %1424 = vector.extract_strided_slice %1404 {offsets = [0, 64], sizes = [2, 32], strides = [1, 1]} : vector<2x96xf32> to vector<2x32xf32>
    %1425 = vector.extract_strided_slice %1407 {offsets = [0, 64], sizes = [2, 32], strides = [1, 1]} : vector<2x96xf32> to vector<2x32xf32>
    %1426 = arith.mulf %1415, %1425 : vector<2x32xf32>
    %1427 = arith.addf %1424, %1426 : vector<2x32xf32>
    %1428 = math.tanh %1427 : vector<2x32xf32>
    %cst_378 = arith.constant 1.000000e+00 : f32
    %1429 = vector.broadcast %cst_378 : f32 to vector<2x32xf32>
    %1430 = arith.subf %1429, %1423 : vector<2x32xf32>
    %1431 = arith.mulf %1430, %1428 : vector<2x32xf32>
    %1432 = arith.mulf %1423, %1373 : vector<2x32xf32>
    %1433 = arith.addf %1431, %1432 : vector<2x32xf32>
    %c18_379 = arith.constant 18 : index
    %c0_380 = arith.constant 0 : index
    %1434 = vector.load %arg25[%c18_379, %c0_380] : memref<32x96xf32, #tpu.memory_space<vmem>>, vector<2x96xf32>
    %cst_381 = arith.constant dense<0.000000e+00> : vector<2x96xf32>
    %1435 = tpu.matmul %1403, %1040, %cst_381 {dimension_numbers = #tpu.dot_dimension_numbers<[1], [0], [0], [1], [0, 0, 1, 1], [], []>} : vector<2x32xf32>, vector<32x96xf32>, vector<2x96xf32> -> vector<2x96xf32>
    %1436 = vector.broadcast %1041 : vector<1x96xf32> to vector<2x96xf32>
    %1437 = arith.addf %1435, %1436 : vector<2x96xf32>
    %1438 = vector.extract_strided_slice %1434 {offsets = [0, 0], sizes = [2, 32], strides = [1, 1]} : vector<2x96xf32> to vector<2x32xf32>
    %1439 = vector.extract_strided_slice %1437 {offsets = [0, 0], sizes = [2, 32], strides = [1, 1]} : vector<2x96xf32> to vector<2x32xf32>
    %1440 = arith.addf %1438, %1439 : vector<2x32xf32>
    %1441 = arith.negf %1440 : vector<2x32xf32>
    %1442 = math.exp %1441 : vector<2x32xf32>
    %cst_382 = arith.constant 1.000000e+00 : f32
    %1443 = vector.broadcast %cst_382 : f32 to vector<2x32xf32>
    %1444 = arith.addf %1443, %1442 : vector<2x32xf32>
    %1445 = arith.divf %1443, %1444 : vector<2x32xf32>
    %1446 = vector.extract_strided_slice %1434 {offsets = [0, 32], sizes = [2, 32], strides = [1, 1]} : vector<2x96xf32> to vector<2x32xf32>
    %1447 = vector.extract_strided_slice %1437 {offsets = [0, 32], sizes = [2, 32], strides = [1, 1]} : vector<2x96xf32> to vector<2x32xf32>
    %1448 = arith.addf %1446, %1447 : vector<2x32xf32>
    %1449 = arith.negf %1448 : vector<2x32xf32>
    %1450 = math.exp %1449 : vector<2x32xf32>
    %cst_383 = arith.constant 1.000000e+00 : f32
    %1451 = vector.broadcast %cst_383 : f32 to vector<2x32xf32>
    %1452 = arith.addf %1451, %1450 : vector<2x32xf32>
    %1453 = arith.divf %1451, %1452 : vector<2x32xf32>
    %1454 = vector.extract_strided_slice %1434 {offsets = [0, 64], sizes = [2, 32], strides = [1, 1]} : vector<2x96xf32> to vector<2x32xf32>
    %1455 = vector.extract_strided_slice %1437 {offsets = [0, 64], sizes = [2, 32], strides = [1, 1]} : vector<2x96xf32> to vector<2x32xf32>
    %1456 = arith.mulf %1445, %1455 : vector<2x32xf32>
    %1457 = arith.addf %1454, %1456 : vector<2x32xf32>
    %1458 = math.tanh %1457 : vector<2x32xf32>
    %cst_384 = arith.constant 1.000000e+00 : f32
    %1459 = vector.broadcast %cst_384 : f32 to vector<2x32xf32>
    %1460 = arith.subf %1459, %1453 : vector<2x32xf32>
    %1461 = arith.mulf %1460, %1458 : vector<2x32xf32>
    %1462 = arith.mulf %1453, %1403 : vector<2x32xf32>
    %1463 = arith.addf %1461, %1462 : vector<2x32xf32>
    %c14_385 = arith.constant 14 : index
    %c0_386 = arith.constant 0 : index
    %1464 = vector.load %arg24[%c14_385, %c0_386] : memref<32x96xf32, #tpu.memory_space<vmem>>, vector<2x96xf32>
    %cst_387 = arith.constant dense<0.000000e+00> : vector<2x96xf32>
    %1465 = tpu.matmul %1433, %1038, %cst_387 {dimension_numbers = #tpu.dot_dimension_numbers<[1], [0], [0], [1], [0, 0, 1, 1], [], []>} : vector<2x32xf32>, vector<32x96xf32>, vector<2x96xf32> -> vector<2x96xf32>
    %1466 = vector.broadcast %1039 : vector<1x96xf32> to vector<2x96xf32>
    %1467 = arith.addf %1465, %1466 : vector<2x96xf32>
    %1468 = vector.extract_strided_slice %1464 {offsets = [0, 0], sizes = [2, 32], strides = [1, 1]} : vector<2x96xf32> to vector<2x32xf32>
    %1469 = vector.extract_strided_slice %1467 {offsets = [0, 0], sizes = [2, 32], strides = [1, 1]} : vector<2x96xf32> to vector<2x32xf32>
    %1470 = arith.addf %1468, %1469 : vector<2x32xf32>
    %1471 = arith.negf %1470 : vector<2x32xf32>
    %1472 = math.exp %1471 : vector<2x32xf32>
    %cst_388 = arith.constant 1.000000e+00 : f32
    %1473 = vector.broadcast %cst_388 : f32 to vector<2x32xf32>
    %1474 = arith.addf %1473, %1472 : vector<2x32xf32>
    %1475 = arith.divf %1473, %1474 : vector<2x32xf32>
    %1476 = vector.extract_strided_slice %1464 {offsets = [0, 32], sizes = [2, 32], strides = [1, 1]} : vector<2x96xf32> to vector<2x32xf32>
    %1477 = vector.extract_strided_slice %1467 {offsets = [0, 32], sizes = [2, 32], strides = [1, 1]} : vector<2x96xf32> to vector<2x32xf32>
    %1478 = arith.addf %1476, %1477 : vector<2x32xf32>
    %1479 = arith.negf %1478 : vector<2x32xf32>
    %1480 = math.exp %1479 : vector<2x32xf32>
    %cst_389 = arith.constant 1.000000e+00 : f32
    %1481 = vector.broadcast %cst_389 : f32 to vector<2x32xf32>
    %1482 = arith.addf %1481, %1480 : vector<2x32xf32>
    %1483 = arith.divf %1481, %1482 : vector<2x32xf32>
    %1484 = vector.extract_strided_slice %1464 {offsets = [0, 64], sizes = [2, 32], strides = [1, 1]} : vector<2x96xf32> to vector<2x32xf32>
    %1485 = vector.extract_strided_slice %1467 {offsets = [0, 64], sizes = [2, 32], strides = [1, 1]} : vector<2x96xf32> to vector<2x32xf32>
    %1486 = arith.mulf %1475, %1485 : vector<2x32xf32>
    %1487 = arith.addf %1484, %1486 : vector<2x32xf32>
    %1488 = math.tanh %1487 : vector<2x32xf32>
    %cst_390 = arith.constant 1.000000e+00 : f32
    %1489 = vector.broadcast %cst_390 : f32 to vector<2x32xf32>
    %1490 = arith.subf %1489, %1483 : vector<2x32xf32>
    %1491 = arith.mulf %1490, %1488 : vector<2x32xf32>
    %1492 = arith.mulf %1483, %1433 : vector<2x32xf32>
    %1493 = arith.addf %1491, %1492 : vector<2x32xf32>
    %c16_391 = arith.constant 16 : index
    %c0_392 = arith.constant 0 : index
    %1494 = vector.load %arg25[%c16_391, %c0_392] : memref<32x96xf32, #tpu.memory_space<vmem>>, vector<2x96xf32>
    %cst_393 = arith.constant dense<0.000000e+00> : vector<2x96xf32>
    %1495 = tpu.matmul %1463, %1040, %cst_393 {dimension_numbers = #tpu.dot_dimension_numbers<[1], [0], [0], [1], [0, 0, 1, 1], [], []>} : vector<2x32xf32>, vector<32x96xf32>, vector<2x96xf32> -> vector<2x96xf32>
    %1496 = vector.broadcast %1041 : vector<1x96xf32> to vector<2x96xf32>
    %1497 = arith.addf %1495, %1496 : vector<2x96xf32>
    %1498 = vector.extract_strided_slice %1494 {offsets = [0, 0], sizes = [2, 32], strides = [1, 1]} : vector<2x96xf32> to vector<2x32xf32>
    %1499 = vector.extract_strided_slice %1497 {offsets = [0, 0], sizes = [2, 32], strides = [1, 1]} : vector<2x96xf32> to vector<2x32xf32>
    %1500 = arith.addf %1498, %1499 : vector<2x32xf32>
    %1501 = arith.negf %1500 : vector<2x32xf32>
    %1502 = math.exp %1501 : vector<2x32xf32>
    %cst_394 = arith.constant 1.000000e+00 : f32
    %1503 = vector.broadcast %cst_394 : f32 to vector<2x32xf32>
    %1504 = arith.addf %1503, %1502 : vector<2x32xf32>
    %1505 = arith.divf %1503, %1504 : vector<2x32xf32>
    %1506 = vector.extract_strided_slice %1494 {offsets = [0, 32], sizes = [2, 32], strides = [1, 1]} : vector<2x96xf32> to vector<2x32xf32>
    %1507 = vector.extract_strided_slice %1497 {offsets = [0, 32], sizes = [2, 32], strides = [1, 1]} : vector<2x96xf32> to vector<2x32xf32>
    %1508 = arith.addf %1506, %1507 : vector<2x32xf32>
    %1509 = arith.negf %1508 : vector<2x32xf32>
    %1510 = math.exp %1509 : vector<2x32xf32>
    %cst_395 = arith.constant 1.000000e+00 : f32
    %1511 = vector.broadcast %cst_395 : f32 to vector<2x32xf32>
    %1512 = arith.addf %1511, %1510 : vector<2x32xf32>
    %1513 = arith.divf %1511, %1512 : vector<2x32xf32>
    %1514 = vector.extract_strided_slice %1494 {offsets = [0, 64], sizes = [2, 32], strides = [1, 1]} : vector<2x96xf32> to vector<2x32xf32>
    %1515 = vector.extract_strided_slice %1497 {offsets = [0, 64], sizes = [2, 32], strides = [1, 1]} : vector<2x96xf32> to vector<2x32xf32>
    %1516 = arith.mulf %1505, %1515 : vector<2x32xf32>
    %1517 = arith.addf %1514, %1516 : vector<2x32xf32>
    %1518 = math.tanh %1517 : vector<2x32xf32>
    %cst_396 = arith.constant 1.000000e+00 : f32
    %1519 = vector.broadcast %cst_396 : f32 to vector<2x32xf32>
    %1520 = arith.subf %1519, %1513 : vector<2x32xf32>
    %1521 = arith.mulf %1520, %1518 : vector<2x32xf32>
    %1522 = arith.mulf %1513, %1463 : vector<2x32xf32>
    %1523 = arith.addf %1521, %1522 : vector<2x32xf32>
    %c16_397 = arith.constant 16 : index
    %c0_398 = arith.constant 0 : index
    %1524 = vector.load %arg24[%c16_397, %c0_398] : memref<32x96xf32, #tpu.memory_space<vmem>>, vector<2x96xf32>
    %cst_399 = arith.constant dense<0.000000e+00> : vector<2x96xf32>
    %1525 = tpu.matmul %1493, %1038, %cst_399 {dimension_numbers = #tpu.dot_dimension_numbers<[1], [0], [0], [1], [0, 0, 1, 1], [], []>} : vector<2x32xf32>, vector<32x96xf32>, vector<2x96xf32> -> vector<2x96xf32>
    %1526 = vector.broadcast %1039 : vector<1x96xf32> to vector<2x96xf32>
    %1527 = arith.addf %1525, %1526 : vector<2x96xf32>
    %1528 = vector.extract_strided_slice %1524 {offsets = [0, 0], sizes = [2, 32], strides = [1, 1]} : vector<2x96xf32> to vector<2x32xf32>
    %1529 = vector.extract_strided_slice %1527 {offsets = [0, 0], sizes = [2, 32], strides = [1, 1]} : vector<2x96xf32> to vector<2x32xf32>
    %1530 = arith.addf %1528, %1529 : vector<2x32xf32>
    %1531 = arith.negf %1530 : vector<2x32xf32>
    %1532 = math.exp %1531 : vector<2x32xf32>
    %cst_400 = arith.constant 1.000000e+00 : f32
    %1533 = vector.broadcast %cst_400 : f32 to vector<2x32xf32>
    %1534 = arith.addf %1533, %1532 : vector<2x32xf32>
    %1535 = arith.divf %1533, %1534 : vector<2x32xf32>
    %1536 = vector.extract_strided_slice %1524 {offsets = [0, 32], sizes = [2, 32], strides = [1, 1]} : vector<2x96xf32> to vector<2x32xf32>
    %1537 = vector.extract_strided_slice %1527 {offsets = [0, 32], sizes = [2, 32], strides = [1, 1]} : vector<2x96xf32> to vector<2x32xf32>
    %1538 = arith.addf %1536, %1537 : vector<2x32xf32>
    %1539 = arith.negf %1538 : vector<2x32xf32>
    %1540 = math.exp %1539 : vector<2x32xf32>
    %cst_401 = arith.constant 1.000000e+00 : f32
    %1541 = vector.broadcast %cst_401 : f32 to vector<2x32xf32>
    %1542 = arith.addf %1541, %1540 : vector<2x32xf32>
    %1543 = arith.divf %1541, %1542 : vector<2x32xf32>
    %1544 = vector.extract_strided_slice %1524 {offsets = [0, 64], sizes = [2, 32], strides = [1, 1]} : vector<2x96xf32> to vector<2x32xf32>
    %1545 = vector.extract_strided_slice %1527 {offsets = [0, 64], sizes = [2, 32], strides = [1, 1]} : vector<2x96xf32> to vector<2x32xf32>
    %1546 = arith.mulf %1535, %1545 : vector<2x32xf32>
    %1547 = arith.addf %1544, %1546 : vector<2x32xf32>
    %1548 = math.tanh %1547 : vector<2x32xf32>
    %cst_402 = arith.constant 1.000000e+00 : f32
    %1549 = vector.broadcast %cst_402 : f32 to vector<2x32xf32>
    %1550 = arith.subf %1549, %1543 : vector<2x32xf32>
    %1551 = arith.mulf %1550, %1548 : vector<2x32xf32>
    %1552 = arith.mulf %1543, %1493 : vector<2x32xf32>
    %1553 = arith.addf %1551, %1552 : vector<2x32xf32>
    %c14_403 = arith.constant 14 : index
    %c0_404 = arith.constant 0 : index
    %1554 = vector.load %arg25[%c14_403, %c0_404] : memref<32x96xf32, #tpu.memory_space<vmem>>, vector<2x96xf32>
    %cst_405 = arith.constant dense<0.000000e+00> : vector<2x96xf32>
    %1555 = tpu.matmul %1523, %1040, %cst_405 {dimension_numbers = #tpu.dot_dimension_numbers<[1], [0], [0], [1], [0, 0, 1, 1], [], []>} : vector<2x32xf32>, vector<32x96xf32>, vector<2x96xf32> -> vector<2x96xf32>
    %1556 = vector.broadcast %1041 : vector<1x96xf32> to vector<2x96xf32>
    %1557 = arith.addf %1555, %1556 : vector<2x96xf32>
    %1558 = vector.extract_strided_slice %1554 {offsets = [0, 0], sizes = [2, 32], strides = [1, 1]} : vector<2x96xf32> to vector<2x32xf32>
    %1559 = vector.extract_strided_slice %1557 {offsets = [0, 0], sizes = [2, 32], strides = [1, 1]} : vector<2x96xf32> to vector<2x32xf32>
    %1560 = arith.addf %1558, %1559 : vector<2x32xf32>
    %1561 = arith.negf %1560 : vector<2x32xf32>
    %1562 = math.exp %1561 : vector<2x32xf32>
    %cst_406 = arith.constant 1.000000e+00 : f32
    %1563 = vector.broadcast %cst_406 : f32 to vector<2x32xf32>
    %1564 = arith.addf %1563, %1562 : vector<2x32xf32>
    %1565 = arith.divf %1563, %1564 : vector<2x32xf32>
    %1566 = vector.extract_strided_slice %1554 {offsets = [0, 32], sizes = [2, 32], strides = [1, 1]} : vector<2x96xf32> to vector<2x32xf32>
    %1567 = vector.extract_strided_slice %1557 {offsets = [0, 32], sizes = [2, 32], strides = [1, 1]} : vector<2x96xf32> to vector<2x32xf32>
    %1568 = arith.addf %1566, %1567 : vector<2x32xf32>
    %1569 = arith.negf %1568 : vector<2x32xf32>
    %1570 = math.exp %1569 : vector<2x32xf32>
    %cst_407 = arith.constant 1.000000e+00 : f32
    %1571 = vector.broadcast %cst_407 : f32 to vector<2x32xf32>
    %1572 = arith.addf %1571, %1570 : vector<2x32xf32>
    %1573 = arith.divf %1571, %1572 : vector<2x32xf32>
    %1574 = vector.extract_strided_slice %1554 {offsets = [0, 64], sizes = [2, 32], strides = [1, 1]} : vector<2x96xf32> to vector<2x32xf32>
    %1575 = vector.extract_strided_slice %1557 {offsets = [0, 64], sizes = [2, 32], strides = [1, 1]} : vector<2x96xf32> to vector<2x32xf32>
    %1576 = arith.mulf %1565, %1575 : vector<2x32xf32>
    %1577 = arith.addf %1574, %1576 : vector<2x32xf32>
    %1578 = math.tanh %1577 : vector<2x32xf32>
    %cst_408 = arith.constant 1.000000e+00 : f32
    %1579 = vector.broadcast %cst_408 : f32 to vector<2x32xf32>
    %1580 = arith.subf %1579, %1573 : vector<2x32xf32>
    %1581 = arith.mulf %1580, %1578 : vector<2x32xf32>
    %1582 = arith.mulf %1573, %1523 : vector<2x32xf32>
    %1583 = arith.addf %1581, %1582 : vector<2x32xf32>
    %c18_409 = arith.constant 18 : index
    %c0_410 = arith.constant 0 : index
    %1584 = vector.load %arg24[%c18_409, %c0_410] : memref<32x96xf32, #tpu.memory_space<vmem>>, vector<2x96xf32>
    %cst_411 = arith.constant dense<0.000000e+00> : vector<2x96xf32>
    %1585 = tpu.matmul %1553, %1038, %cst_411 {dimension_numbers = #tpu.dot_dimension_numbers<[1], [0], [0], [1], [0, 0, 1, 1], [], []>} : vector<2x32xf32>, vector<32x96xf32>, vector<2x96xf32> -> vector<2x96xf32>
    %1586 = vector.broadcast %1039 : vector<1x96xf32> to vector<2x96xf32>
    %1587 = arith.addf %1585, %1586 : vector<2x96xf32>
    %1588 = vector.extract_strided_slice %1584 {offsets = [0, 0], sizes = [2, 32], strides = [1, 1]} : vector<2x96xf32> to vector<2x32xf32>
    %1589 = vector.extract_strided_slice %1587 {offsets = [0, 0], sizes = [2, 32], strides = [1, 1]} : vector<2x96xf32> to vector<2x32xf32>
    %1590 = arith.addf %1588, %1589 : vector<2x32xf32>
    %1591 = arith.negf %1590 : vector<2x32xf32>
    %1592 = math.exp %1591 : vector<2x32xf32>
    %cst_412 = arith.constant 1.000000e+00 : f32
    %1593 = vector.broadcast %cst_412 : f32 to vector<2x32xf32>
    %1594 = arith.addf %1593, %1592 : vector<2x32xf32>
    %1595 = arith.divf %1593, %1594 : vector<2x32xf32>
    %1596 = vector.extract_strided_slice %1584 {offsets = [0, 32], sizes = [2, 32], strides = [1, 1]} : vector<2x96xf32> to vector<2x32xf32>
    %1597 = vector.extract_strided_slice %1587 {offsets = [0, 32], sizes = [2, 32], strides = [1, 1]} : vector<2x96xf32> to vector<2x32xf32>
    %1598 = arith.addf %1596, %1597 : vector<2x32xf32>
    %1599 = arith.negf %1598 : vector<2x32xf32>
    %1600 = math.exp %1599 : vector<2x32xf32>
    %cst_413 = arith.constant 1.000000e+00 : f32
    %1601 = vector.broadcast %cst_413 : f32 to vector<2x32xf32>
    %1602 = arith.addf %1601, %1600 : vector<2x32xf32>
    %1603 = arith.divf %1601, %1602 : vector<2x32xf32>
    %1604 = vector.extract_strided_slice %1584 {offsets = [0, 64], sizes = [2, 32], strides = [1, 1]} : vector<2x96xf32> to vector<2x32xf32>
    %1605 = vector.extract_strided_slice %1587 {offsets = [0, 64], sizes = [2, 32], strides = [1, 1]} : vector<2x96xf32> to vector<2x32xf32>
    %1606 = arith.mulf %1595, %1605 : vector<2x32xf32>
    %1607 = arith.addf %1604, %1606 : vector<2x32xf32>
    %1608 = math.tanh %1607 : vector<2x32xf32>
    %cst_414 = arith.constant 1.000000e+00 : f32
    %1609 = vector.broadcast %cst_414 : f32 to vector<2x32xf32>
    %1610 = arith.subf %1609, %1603 : vector<2x32xf32>
    %1611 = arith.mulf %1610, %1608 : vector<2x32xf32>
    %1612 = arith.mulf %1603, %1553 : vector<2x32xf32>
    %1613 = arith.addf %1611, %1612 : vector<2x32xf32>
    %c12_415 = arith.constant 12 : index
    %c0_416 = arith.constant 0 : index
    %1614 = vector.load %arg25[%c12_415, %c0_416] : memref<32x96xf32, #tpu.memory_space<vmem>>, vector<2x96xf32>
    %cst_417 = arith.constant dense<0.000000e+00> : vector<2x96xf32>
    %1615 = tpu.matmul %1583, %1040, %cst_417 {dimension_numbers = #tpu.dot_dimension_numbers<[1], [0], [0], [1], [0, 0, 1, 1], [], []>} : vector<2x32xf32>, vector<32x96xf32>, vector<2x96xf32> -> vector<2x96xf32>
    %1616 = vector.broadcast %1041 : vector<1x96xf32> to vector<2x96xf32>
    %1617 = arith.addf %1615, %1616 : vector<2x96xf32>
    %1618 = vector.extract_strided_slice %1614 {offsets = [0, 0], sizes = [2, 32], strides = [1, 1]} : vector<2x96xf32> to vector<2x32xf32>
    %1619 = vector.extract_strided_slice %1617 {offsets = [0, 0], sizes = [2, 32], strides = [1, 1]} : vector<2x96xf32> to vector<2x32xf32>
    %1620 = arith.addf %1618, %1619 : vector<2x32xf32>
    %1621 = arith.negf %1620 : vector<2x32xf32>
    %1622 = math.exp %1621 : vector<2x32xf32>
    %cst_418 = arith.constant 1.000000e+00 : f32
    %1623 = vector.broadcast %cst_418 : f32 to vector<2x32xf32>
    %1624 = arith.addf %1623, %1622 : vector<2x32xf32>
    %1625 = arith.divf %1623, %1624 : vector<2x32xf32>
    %1626 = vector.extract_strided_slice %1614 {offsets = [0, 32], sizes = [2, 32], strides = [1, 1]} : vector<2x96xf32> to vector<2x32xf32>
    %1627 = vector.extract_strided_slice %1617 {offsets = [0, 32], sizes = [2, 32], strides = [1, 1]} : vector<2x96xf32> to vector<2x32xf32>
    %1628 = arith.addf %1626, %1627 : vector<2x32xf32>
    %1629 = arith.negf %1628 : vector<2x32xf32>
    %1630 = math.exp %1629 : vector<2x32xf32>
    %cst_419 = arith.constant 1.000000e+00 : f32
    %1631 = vector.broadcast %cst_419 : f32 to vector<2x32xf32>
    %1632 = arith.addf %1631, %1630 : vector<2x32xf32>
    %1633 = arith.divf %1631, %1632 : vector<2x32xf32>
    %1634 = vector.extract_strided_slice %1614 {offsets = [0, 64], sizes = [2, 32], strides = [1, 1]} : vector<2x96xf32> to vector<2x32xf32>
    %1635 = vector.extract_strided_slice %1617 {offsets = [0, 64], sizes = [2, 32], strides = [1, 1]} : vector<2x96xf32> to vector<2x32xf32>
    %1636 = arith.mulf %1625, %1635 : vector<2x32xf32>
    %1637 = arith.addf %1634, %1636 : vector<2x32xf32>
    %1638 = math.tanh %1637 : vector<2x32xf32>
    %cst_420 = arith.constant 1.000000e+00 : f32
    %1639 = vector.broadcast %cst_420 : f32 to vector<2x32xf32>
    %1640 = arith.subf %1639, %1633 : vector<2x32xf32>
    %1641 = arith.mulf %1640, %1638 : vector<2x32xf32>
    %1642 = arith.mulf %1633, %1583 : vector<2x32xf32>
    %1643 = arith.addf %1641, %1642 : vector<2x32xf32>
    %c20_421 = arith.constant 20 : index
    %c0_422 = arith.constant 0 : index
    %1644 = vector.load %arg24[%c20_421, %c0_422] : memref<32x96xf32, #tpu.memory_space<vmem>>, vector<2x96xf32>
    %cst_423 = arith.constant dense<0.000000e+00> : vector<2x96xf32>
    %1645 = tpu.matmul %1613, %1038, %cst_423 {dimension_numbers = #tpu.dot_dimension_numbers<[1], [0], [0], [1], [0, 0, 1, 1], [], []>} : vector<2x32xf32>, vector<32x96xf32>, vector<2x96xf32> -> vector<2x96xf32>
    %1646 = vector.broadcast %1039 : vector<1x96xf32> to vector<2x96xf32>
    %1647 = arith.addf %1645, %1646 : vector<2x96xf32>
    %1648 = vector.extract_strided_slice %1644 {offsets = [0, 0], sizes = [2, 32], strides = [1, 1]} : vector<2x96xf32> to vector<2x32xf32>
    %1649 = vector.extract_strided_slice %1647 {offsets = [0, 0], sizes = [2, 32], strides = [1, 1]} : vector<2x96xf32> to vector<2x32xf32>
    %1650 = arith.addf %1648, %1649 : vector<2x32xf32>
    %1651 = arith.negf %1650 : vector<2x32xf32>
    %1652 = math.exp %1651 : vector<2x32xf32>
    %cst_424 = arith.constant 1.000000e+00 : f32
    %1653 = vector.broadcast %cst_424 : f32 to vector<2x32xf32>
    %1654 = arith.addf %1653, %1652 : vector<2x32xf32>
    %1655 = arith.divf %1653, %1654 : vector<2x32xf32>
    %1656 = vector.extract_strided_slice %1644 {offsets = [0, 32], sizes = [2, 32], strides = [1, 1]} : vector<2x96xf32> to vector<2x32xf32>
    %1657 = vector.extract_strided_slice %1647 {offsets = [0, 32], sizes = [2, 32], strides = [1, 1]} : vector<2x96xf32> to vector<2x32xf32>
    %1658 = arith.addf %1656, %1657 : vector<2x32xf32>
    %1659 = arith.negf %1658 : vector<2x32xf32>
    %1660 = math.exp %1659 : vector<2x32xf32>
    %cst_425 = arith.constant 1.000000e+00 : f32
    %1661 = vector.broadcast %cst_425 : f32 to vector<2x32xf32>
    %1662 = arith.addf %1661, %1660 : vector<2x32xf32>
    %1663 = arith.divf %1661, %1662 : vector<2x32xf32>
    %1664 = vector.extract_strided_slice %1644 {offsets = [0, 64], sizes = [2, 32], strides = [1, 1]} : vector<2x96xf32> to vector<2x32xf32>
    %1665 = vector.extract_strided_slice %1647 {offsets = [0, 64], sizes = [2, 32], strides = [1, 1]} : vector<2x96xf32> to vector<2x32xf32>
    %1666 = arith.mulf %1655, %1665 : vector<2x32xf32>
    %1667 = arith.addf %1664, %1666 : vector<2x32xf32>
    %1668 = math.tanh %1667 : vector<2x32xf32>
    %cst_426 = arith.constant 1.000000e+00 : f32
    %1669 = vector.broadcast %cst_426 : f32 to vector<2x32xf32>
    %1670 = arith.subf %1669, %1663 : vector<2x32xf32>
    %1671 = arith.mulf %1670, %1668 : vector<2x32xf32>
    %1672 = arith.mulf %1663, %1613 : vector<2x32xf32>
    %1673 = arith.addf %1671, %1672 : vector<2x32xf32>
    %c10_427 = arith.constant 10 : index
    %c0_428 = arith.constant 0 : index
    %1674 = vector.load %arg25[%c10_427, %c0_428] : memref<32x96xf32, #tpu.memory_space<vmem>>, vector<2x96xf32>
    %cst_429 = arith.constant dense<0.000000e+00> : vector<2x96xf32>
    %1675 = tpu.matmul %1643, %1040, %cst_429 {dimension_numbers = #tpu.dot_dimension_numbers<[1], [0], [0], [1], [0, 0, 1, 1], [], []>} : vector<2x32xf32>, vector<32x96xf32>, vector<2x96xf32> -> vector<2x96xf32>
    %1676 = vector.broadcast %1041 : vector<1x96xf32> to vector<2x96xf32>
    %1677 = arith.addf %1675, %1676 : vector<2x96xf32>
    %1678 = vector.extract_strided_slice %1674 {offsets = [0, 0], sizes = [2, 32], strides = [1, 1]} : vector<2x96xf32> to vector<2x32xf32>
    %1679 = vector.extract_strided_slice %1677 {offsets = [0, 0], sizes = [2, 32], strides = [1, 1]} : vector<2x96xf32> to vector<2x32xf32>
    %1680 = arith.addf %1678, %1679 : vector<2x32xf32>
    %1681 = arith.negf %1680 : vector<2x32xf32>
    %1682 = math.exp %1681 : vector<2x32xf32>
    %cst_430 = arith.constant 1.000000e+00 : f32
    %1683 = vector.broadcast %cst_430 : f32 to vector<2x32xf32>
    %1684 = arith.addf %1683, %1682 : vector<2x32xf32>
    %1685 = arith.divf %1683, %1684 : vector<2x32xf32>
    %1686 = vector.extract_strided_slice %1674 {offsets = [0, 32], sizes = [2, 32], strides = [1, 1]} : vector<2x96xf32> to vector<2x32xf32>
    %1687 = vector.extract_strided_slice %1677 {offsets = [0, 32], sizes = [2, 32], strides = [1, 1]} : vector<2x96xf32> to vector<2x32xf32>
    %1688 = arith.addf %1686, %1687 : vector<2x32xf32>
    %1689 = arith.negf %1688 : vector<2x32xf32>
    %1690 = math.exp %1689 : vector<2x32xf32>
    %cst_431 = arith.constant 1.000000e+00 : f32
    %1691 = vector.broadcast %cst_431 : f32 to vector<2x32xf32>
    %1692 = arith.addf %1691, %1690 : vector<2x32xf32>
    %1693 = arith.divf %1691, %1692 : vector<2x32xf32>
    %1694 = vector.extract_strided_slice %1674 {offsets = [0, 64], sizes = [2, 32], strides = [1, 1]} : vector<2x96xf32> to vector<2x32xf32>
    %1695 = vector.extract_strided_slice %1677 {offsets = [0, 64], sizes = [2, 32], strides = [1, 1]} : vector<2x96xf32> to vector<2x32xf32>
    %1696 = arith.mulf %1685, %1695 : vector<2x32xf32>
    %1697 = arith.addf %1694, %1696 : vector<2x32xf32>
    %1698 = math.tanh %1697 : vector<2x32xf32>
    %cst_432 = arith.constant 1.000000e+00 : f32
    %1699 = vector.broadcast %cst_432 : f32 to vector<2x32xf32>
    %1700 = arith.subf %1699, %1693 : vector<2x32xf32>
    %1701 = arith.mulf %1700, %1698 : vector<2x32xf32>
    %1702 = arith.mulf %1693, %1643 : vector<2x32xf32>
    %1703 = arith.addf %1701, %1702 : vector<2x32xf32>
    %c22_433 = arith.constant 22 : index
    %c0_434 = arith.constant 0 : index
    %1704 = vector.load %arg24[%c22_433, %c0_434] : memref<32x96xf32, #tpu.memory_space<vmem>>, vector<2x96xf32>
    %cst_435 = arith.constant dense<0.000000e+00> : vector<2x96xf32>
    %1705 = tpu.matmul %1673, %1038, %cst_435 {dimension_numbers = #tpu.dot_dimension_numbers<[1], [0], [0], [1], [0, 0, 1, 1], [], []>} : vector<2x32xf32>, vector<32x96xf32>, vector<2x96xf32> -> vector<2x96xf32>
    %1706 = vector.broadcast %1039 : vector<1x96xf32> to vector<2x96xf32>
    %1707 = arith.addf %1705, %1706 : vector<2x96xf32>
    %1708 = vector.extract_strided_slice %1704 {offsets = [0, 0], sizes = [2, 32], strides = [1, 1]} : vector<2x96xf32> to vector<2x32xf32>
    %1709 = vector.extract_strided_slice %1707 {offsets = [0, 0], sizes = [2, 32], strides = [1, 1]} : vector<2x96xf32> to vector<2x32xf32>
    %1710 = arith.addf %1708, %1709 : vector<2x32xf32>
    %1711 = arith.negf %1710 : vector<2x32xf32>
    %1712 = math.exp %1711 : vector<2x32xf32>
    %cst_436 = arith.constant 1.000000e+00 : f32
    %1713 = vector.broadcast %cst_436 : f32 to vector<2x32xf32>
    %1714 = arith.addf %1713, %1712 : vector<2x32xf32>
    %1715 = arith.divf %1713, %1714 : vector<2x32xf32>
    %1716 = vector.extract_strided_slice %1704 {offsets = [0, 32], sizes = [2, 32], strides = [1, 1]} : vector<2x96xf32> to vector<2x32xf32>
    %1717 = vector.extract_strided_slice %1707 {offsets = [0, 32], sizes = [2, 32], strides = [1, 1]} : vector<2x96xf32> to vector<2x32xf32>
    %1718 = arith.addf %1716, %1717 : vector<2x32xf32>
    %1719 = arith.negf %1718 : vector<2x32xf32>
    %1720 = math.exp %1719 : vector<2x32xf32>
    %cst_437 = arith.constant 1.000000e+00 : f32
    %1721 = vector.broadcast %cst_437 : f32 to vector<2x32xf32>
    %1722 = arith.addf %1721, %1720 : vector<2x32xf32>
    %1723 = arith.divf %1721, %1722 : vector<2x32xf32>
    %1724 = vector.extract_strided_slice %1704 {offsets = [0, 64], sizes = [2, 32], strides = [1, 1]} : vector<2x96xf32> to vector<2x32xf32>
    %1725 = vector.extract_strided_slice %1707 {offsets = [0, 64], sizes = [2, 32], strides = [1, 1]} : vector<2x96xf32> to vector<2x32xf32>
    %1726 = arith.mulf %1715, %1725 : vector<2x32xf32>
    %1727 = arith.addf %1724, %1726 : vector<2x32xf32>
    %1728 = math.tanh %1727 : vector<2x32xf32>
    %cst_438 = arith.constant 1.000000e+00 : f32
    %1729 = vector.broadcast %cst_438 : f32 to vector<2x32xf32>
    %1730 = arith.subf %1729, %1723 : vector<2x32xf32>
    %1731 = arith.mulf %1730, %1728 : vector<2x32xf32>
    %1732 = arith.mulf %1723, %1673 : vector<2x32xf32>
    %1733 = arith.addf %1731, %1732 : vector<2x32xf32>
    %c8_439 = arith.constant 8 : index
    %c0_440 = arith.constant 0 : index
    %1734 = vector.load %arg25[%c8_439, %c0_440] : memref<32x96xf32, #tpu.memory_space<vmem>>, vector<2x96xf32>
    %cst_441 = arith.constant dense<0.000000e+00> : vector<2x96xf32>
    %1735 = tpu.matmul %1703, %1040, %cst_441 {dimension_numbers = #tpu.dot_dimension_numbers<[1], [0], [0], [1], [0, 0, 1, 1], [], []>} : vector<2x32xf32>, vector<32x96xf32>, vector<2x96xf32> -> vector<2x96xf32>
    %1736 = vector.broadcast %1041 : vector<1x96xf32> to vector<2x96xf32>
    %1737 = arith.addf %1735, %1736 : vector<2x96xf32>
    %1738 = vector.extract_strided_slice %1734 {offsets = [0, 0], sizes = [2, 32], strides = [1, 1]} : vector<2x96xf32> to vector<2x32xf32>
    %1739 = vector.extract_strided_slice %1737 {offsets = [0, 0], sizes = [2, 32], strides = [1, 1]} : vector<2x96xf32> to vector<2x32xf32>
    %1740 = arith.addf %1738, %1739 : vector<2x32xf32>
    %1741 = arith.negf %1740 : vector<2x32xf32>
    %1742 = math.exp %1741 : vector<2x32xf32>
    %cst_442 = arith.constant 1.000000e+00 : f32
    %1743 = vector.broadcast %cst_442 : f32 to vector<2x32xf32>
    %1744 = arith.addf %1743, %1742 : vector<2x32xf32>
    %1745 = arith.divf %1743, %1744 : vector<2x32xf32>
    %1746 = vector.extract_strided_slice %1734 {offsets = [0, 32], sizes = [2, 32], strides = [1, 1]} : vector<2x96xf32> to vector<2x32xf32>
    %1747 = vector.extract_strided_slice %1737 {offsets = [0, 32], sizes = [2, 32], strides = [1, 1]} : vector<2x96xf32> to vector<2x32xf32>
    %1748 = arith.addf %1746, %1747 : vector<2x32xf32>
    %1749 = arith.negf %1748 : vector<2x32xf32>
    %1750 = math.exp %1749 : vector<2x32xf32>
    %cst_443 = arith.constant 1.000000e+00 : f32
    %1751 = vector.broadcast %cst_443 : f32 to vector<2x32xf32>
    %1752 = arith.addf %1751, %1750 : vector<2x32xf32>
    %1753 = arith.divf %1751, %1752 : vector<2x32xf32>
    %1754 = vector.extract_strided_slice %1734 {offsets = [0, 64], sizes = [2, 32], strides = [1, 1]} : vector<2x96xf32> to vector<2x32xf32>
    %1755 = vector.extract_strided_slice %1737 {offsets = [0, 64], sizes = [2, 32], strides = [1, 1]} : vector<2x96xf32> to vector<2x32xf32>
    %1756 = arith.mulf %1745, %1755 : vector<2x32xf32>
    %1757 = arith.addf %1754, %1756 : vector<2x32xf32>
    %1758 = math.tanh %1757 : vector<2x32xf32>
    %cst_444 = arith.constant 1.000000e+00 : f32
    %1759 = vector.broadcast %cst_444 : f32 to vector<2x32xf32>
    %1760 = arith.subf %1759, %1753 : vector<2x32xf32>
    %1761 = arith.mulf %1760, %1758 : vector<2x32xf32>
    %1762 = arith.mulf %1753, %1703 : vector<2x32xf32>
    %1763 = arith.addf %1761, %1762 : vector<2x32xf32>
    %c24_445 = arith.constant 24 : index
    %c0_446 = arith.constant 0 : index
    %1764 = vector.load %arg24[%c24_445, %c0_446] : memref<32x96xf32, #tpu.memory_space<vmem>>, vector<2x96xf32>
    %cst_447 = arith.constant dense<0.000000e+00> : vector<2x96xf32>
    %1765 = tpu.matmul %1733, %1038, %cst_447 {dimension_numbers = #tpu.dot_dimension_numbers<[1], [0], [0], [1], [0, 0, 1, 1], [], []>} : vector<2x32xf32>, vector<32x96xf32>, vector<2x96xf32> -> vector<2x96xf32>
    %1766 = vector.broadcast %1039 : vector<1x96xf32> to vector<2x96xf32>
    %1767 = arith.addf %1765, %1766 : vector<2x96xf32>
    %1768 = vector.extract_strided_slice %1764 {offsets = [0, 0], sizes = [2, 32], strides = [1, 1]} : vector<2x96xf32> to vector<2x32xf32>
    %1769 = vector.extract_strided_slice %1767 {offsets = [0, 0], sizes = [2, 32], strides = [1, 1]} : vector<2x96xf32> to vector<2x32xf32>
    %1770 = arith.addf %1768, %1769 : vector<2x32xf32>
    %1771 = arith.negf %1770 : vector<2x32xf32>
    %1772 = math.exp %1771 : vector<2x32xf32>
    %cst_448 = arith.constant 1.000000e+00 : f32
    %1773 = vector.broadcast %cst_448 : f32 to vector<2x32xf32>
    %1774 = arith.addf %1773, %1772 : vector<2x32xf32>
    %1775 = arith.divf %1773, %1774 : vector<2x32xf32>
    %1776 = vector.extract_strided_slice %1764 {offsets = [0, 32], sizes = [2, 32], strides = [1, 1]} : vector<2x96xf32> to vector<2x32xf32>
    %1777 = vector.extract_strided_slice %1767 {offsets = [0, 32], sizes = [2, 32], strides = [1, 1]} : vector<2x96xf32> to vector<2x32xf32>
    %1778 = arith.addf %1776, %1777 : vector<2x32xf32>
    %1779 = arith.negf %1778 : vector<2x32xf32>
    %1780 = math.exp %1779 : vector<2x32xf32>
    %cst_449 = arith.constant 1.000000e+00 : f32
    %1781 = vector.broadcast %cst_449 : f32 to vector<2x32xf32>
    %1782 = arith.addf %1781, %1780 : vector<2x32xf32>
    %1783 = arith.divf %1781, %1782 : vector<2x32xf32>
    %1784 = vector.extract_strided_slice %1764 {offsets = [0, 64], sizes = [2, 32], strides = [1, 1]} : vector<2x96xf32> to vector<2x32xf32>
    %1785 = vector.extract_strided_slice %1767 {offsets = [0, 64], sizes = [2, 32], strides = [1, 1]} : vector<2x96xf32> to vector<2x32xf32>
    %1786 = arith.mulf %1775, %1785 : vector<2x32xf32>
    %1787 = arith.addf %1784, %1786 : vector<2x32xf32>
    %1788 = math.tanh %1787 : vector<2x32xf32>
    %cst_450 = arith.constant 1.000000e+00 : f32
    %1789 = vector.broadcast %cst_450 : f32 to vector<2x32xf32>
    %1790 = arith.subf %1789, %1783 : vector<2x32xf32>
    %1791 = arith.mulf %1790, %1788 : vector<2x32xf32>
    %1792 = arith.mulf %1783, %1733 : vector<2x32xf32>
    %1793 = arith.addf %1791, %1792 : vector<2x32xf32>
    %c6_451 = arith.constant 6 : index
    %c0_452 = arith.constant 0 : index
    %1794 = vector.load %arg25[%c6_451, %c0_452] : memref<32x96xf32, #tpu.memory_space<vmem>>, vector<2x96xf32>
    %cst_453 = arith.constant dense<0.000000e+00> : vector<2x96xf32>
    %1795 = tpu.matmul %1763, %1040, %cst_453 {dimension_numbers = #tpu.dot_dimension_numbers<[1], [0], [0], [1], [0, 0, 1, 1], [], []>} : vector<2x32xf32>, vector<32x96xf32>, vector<2x96xf32> -> vector<2x96xf32>
    %1796 = vector.broadcast %1041 : vector<1x96xf32> to vector<2x96xf32>
    %1797 = arith.addf %1795, %1796 : vector<2x96xf32>
    %1798 = vector.extract_strided_slice %1794 {offsets = [0, 0], sizes = [2, 32], strides = [1, 1]} : vector<2x96xf32> to vector<2x32xf32>
    %1799 = vector.extract_strided_slice %1797 {offsets = [0, 0], sizes = [2, 32], strides = [1, 1]} : vector<2x96xf32> to vector<2x32xf32>
    %1800 = arith.addf %1798, %1799 : vector<2x32xf32>
    %1801 = arith.negf %1800 : vector<2x32xf32>
    %1802 = math.exp %1801 : vector<2x32xf32>
    %cst_454 = arith.constant 1.000000e+00 : f32
    %1803 = vector.broadcast %cst_454 : f32 to vector<2x32xf32>
    %1804 = arith.addf %1803, %1802 : vector<2x32xf32>
    %1805 = arith.divf %1803, %1804 : vector<2x32xf32>
    %1806 = vector.extract_strided_slice %1794 {offsets = [0, 32], sizes = [2, 32], strides = [1, 1]} : vector<2x96xf32> to vector<2x32xf32>
    %1807 = vector.extract_strided_slice %1797 {offsets = [0, 32], sizes = [2, 32], strides = [1, 1]} : vector<2x96xf32> to vector<2x32xf32>
    %1808 = arith.addf %1806, %1807 : vector<2x32xf32>
    %1809 = arith.negf %1808 : vector<2x32xf32>
    %1810 = math.exp %1809 : vector<2x32xf32>
    %cst_455 = arith.constant 1.000000e+00 : f32
    %1811 = vector.broadcast %cst_455 : f32 to vector<2x32xf32>
    %1812 = arith.addf %1811, %1810 : vector<2x32xf32>
    %1813 = arith.divf %1811, %1812 : vector<2x32xf32>
    %1814 = vector.extract_strided_slice %1794 {offsets = [0, 64], sizes = [2, 32], strides = [1, 1]} : vector<2x96xf32> to vector<2x32xf32>
    %1815 = vector.extract_strided_slice %1797 {offsets = [0, 64], sizes = [2, 32], strides = [1, 1]} : vector<2x96xf32> to vector<2x32xf32>
    %1816 = arith.mulf %1805, %1815 : vector<2x32xf32>
    %1817 = arith.addf %1814, %1816 : vector<2x32xf32>
    %1818 = math.tanh %1817 : vector<2x32xf32>
    %cst_456 = arith.constant 1.000000e+00 : f32
    %1819 = vector.broadcast %cst_456 : f32 to vector<2x32xf32>
    %1820 = arith.subf %1819, %1813 : vector<2x32xf32>
    %1821 = arith.mulf %1820, %1818 : vector<2x32xf32>
    %1822 = arith.mulf %1813, %1763 : vector<2x32xf32>
    %1823 = arith.addf %1821, %1822 : vector<2x32xf32>
    %c26_457 = arith.constant 26 : index
    %c0_458 = arith.constant 0 : index
    %1824 = vector.load %arg24[%c26_457, %c0_458] : memref<32x96xf32, #tpu.memory_space<vmem>>, vector<2x96xf32>
    %cst_459 = arith.constant dense<0.000000e+00> : vector<2x96xf32>
    %1825 = tpu.matmul %1793, %1038, %cst_459 {dimension_numbers = #tpu.dot_dimension_numbers<[1], [0], [0], [1], [0, 0, 1, 1], [], []>} : vector<2x32xf32>, vector<32x96xf32>, vector<2x96xf32> -> vector<2x96xf32>
    %1826 = vector.broadcast %1039 : vector<1x96xf32> to vector<2x96xf32>
    %1827 = arith.addf %1825, %1826 : vector<2x96xf32>
    %1828 = vector.extract_strided_slice %1824 {offsets = [0, 0], sizes = [2, 32], strides = [1, 1]} : vector<2x96xf32> to vector<2x32xf32>
    %1829 = vector.extract_strided_slice %1827 {offsets = [0, 0], sizes = [2, 32], strides = [1, 1]} : vector<2x96xf32> to vector<2x32xf32>
    %1830 = arith.addf %1828, %1829 : vector<2x32xf32>
    %1831 = arith.negf %1830 : vector<2x32xf32>
    %1832 = math.exp %1831 : vector<2x32xf32>
    %cst_460 = arith.constant 1.000000e+00 : f32
    %1833 = vector.broadcast %cst_460 : f32 to vector<2x32xf32>
    %1834 = arith.addf %1833, %1832 : vector<2x32xf32>
    %1835 = arith.divf %1833, %1834 : vector<2x32xf32>
    %1836 = vector.extract_strided_slice %1824 {offsets = [0, 32], sizes = [2, 32], strides = [1, 1]} : vector<2x96xf32> to vector<2x32xf32>
    %1837 = vector.extract_strided_slice %1827 {offsets = [0, 32], sizes = [2, 32], strides = [1, 1]} : vector<2x96xf32> to vector<2x32xf32>
    %1838 = arith.addf %1836, %1837 : vector<2x32xf32>
    %1839 = arith.negf %1838 : vector<2x32xf32>
    %1840 = math.exp %1839 : vector<2x32xf32>
    %cst_461 = arith.constant 1.000000e+00 : f32
    %1841 = vector.broadcast %cst_461 : f32 to vector<2x32xf32>
    %1842 = arith.addf %1841, %1840 : vector<2x32xf32>
    %1843 = arith.divf %1841, %1842 : vector<2x32xf32>
    %1844 = vector.extract_strided_slice %1824 {offsets = [0, 64], sizes = [2, 32], strides = [1, 1]} : vector<2x96xf32> to vector<2x32xf32>
    %1845 = vector.extract_strided_slice %1827 {offsets = [0, 64], sizes = [2, 32], strides = [1, 1]} : vector<2x96xf32> to vector<2x32xf32>
    %1846 = arith.mulf %1835, %1845 : vector<2x32xf32>
    %1847 = arith.addf %1844, %1846 : vector<2x32xf32>
    %1848 = math.tanh %1847 : vector<2x32xf32>
    %cst_462 = arith.constant 1.000000e+00 : f32
    %1849 = vector.broadcast %cst_462 : f32 to vector<2x32xf32>
    %1850 = arith.subf %1849, %1843 : vector<2x32xf32>
    %1851 = arith.mulf %1850, %1848 : vector<2x32xf32>
    %1852 = arith.mulf %1843, %1793 : vector<2x32xf32>
    %1853 = arith.addf %1851, %1852 : vector<2x32xf32>
    %c4_463 = arith.constant 4 : index
    %c0_464 = arith.constant 0 : index
    %1854 = vector.load %arg25[%c4_463, %c0_464] : memref<32x96xf32, #tpu.memory_space<vmem>>, vector<2x96xf32>
    %cst_465 = arith.constant dense<0.000000e+00> : vector<2x96xf32>
    %1855 = tpu.matmul %1823, %1040, %cst_465 {dimension_numbers = #tpu.dot_dimension_numbers<[1], [0], [0], [1], [0, 0, 1, 1], [], []>} : vector<2x32xf32>, vector<32x96xf32>, vector<2x96xf32> -> vector<2x96xf32>
    %1856 = vector.broadcast %1041 : vector<1x96xf32> to vector<2x96xf32>
    %1857 = arith.addf %1855, %1856 : vector<2x96xf32>
    %1858 = vector.extract_strided_slice %1854 {offsets = [0, 0], sizes = [2, 32], strides = [1, 1]} : vector<2x96xf32> to vector<2x32xf32>
    %1859 = vector.extract_strided_slice %1857 {offsets = [0, 0], sizes = [2, 32], strides = [1, 1]} : vector<2x96xf32> to vector<2x32xf32>
    %1860 = arith.addf %1858, %1859 : vector<2x32xf32>
    %1861 = arith.negf %1860 : vector<2x32xf32>
    %1862 = math.exp %1861 : vector<2x32xf32>
    %cst_466 = arith.constant 1.000000e+00 : f32
    %1863 = vector.broadcast %cst_466 : f32 to vector<2x32xf32>
    %1864 = arith.addf %1863, %1862 : vector<2x32xf32>
    %1865 = arith.divf %1863, %1864 : vector<2x32xf32>
    %1866 = vector.extract_strided_slice %1854 {offsets = [0, 32], sizes = [2, 32], strides = [1, 1]} : vector<2x96xf32> to vector<2x32xf32>
    %1867 = vector.extract_strided_slice %1857 {offsets = [0, 32], sizes = [2, 32], strides = [1, 1]} : vector<2x96xf32> to vector<2x32xf32>
    %1868 = arith.addf %1866, %1867 : vector<2x32xf32>
    %1869 = arith.negf %1868 : vector<2x32xf32>
    %1870 = math.exp %1869 : vector<2x32xf32>
    %cst_467 = arith.constant 1.000000e+00 : f32
    %1871 = vector.broadcast %cst_467 : f32 to vector<2x32xf32>
    %1872 = arith.addf %1871, %1870 : vector<2x32xf32>
    %1873 = arith.divf %1871, %1872 : vector<2x32xf32>
    %1874 = vector.extract_strided_slice %1854 {offsets = [0, 64], sizes = [2, 32], strides = [1, 1]} : vector<2x96xf32> to vector<2x32xf32>
    %1875 = vector.extract_strided_slice %1857 {offsets = [0, 64], sizes = [2, 32], strides = [1, 1]} : vector<2x96xf32> to vector<2x32xf32>
    %1876 = arith.mulf %1865, %1875 : vector<2x32xf32>
    %1877 = arith.addf %1874, %1876 : vector<2x32xf32>
    %1878 = math.tanh %1877 : vector<2x32xf32>
    %cst_468 = arith.constant 1.000000e+00 : f32
    %1879 = vector.broadcast %cst_468 : f32 to vector<2x32xf32>
    %1880 = arith.subf %1879, %1873 : vector<2x32xf32>
    %1881 = arith.mulf %1880, %1878 : vector<2x32xf32>
    %1882 = arith.mulf %1873, %1823 : vector<2x32xf32>
    %1883 = arith.addf %1881, %1882 : vector<2x32xf32>
    %c28_469 = arith.constant 28 : index
    %c0_470 = arith.constant 0 : index
    %1884 = vector.load %arg24[%c28_469, %c0_470] : memref<32x96xf32, #tpu.memory_space<vmem>>, vector<2x96xf32>
    %cst_471 = arith.constant dense<0.000000e+00> : vector<2x96xf32>
    %1885 = tpu.matmul %1853, %1038, %cst_471 {dimension_numbers = #tpu.dot_dimension_numbers<[1], [0], [0], [1], [0, 0, 1, 1], [], []>} : vector<2x32xf32>, vector<32x96xf32>, vector<2x96xf32> -> vector<2x96xf32>
    %1886 = vector.broadcast %1039 : vector<1x96xf32> to vector<2x96xf32>
    %1887 = arith.addf %1885, %1886 : vector<2x96xf32>
    %1888 = vector.extract_strided_slice %1884 {offsets = [0, 0], sizes = [2, 32], strides = [1, 1]} : vector<2x96xf32> to vector<2x32xf32>
    %1889 = vector.extract_strided_slice %1887 {offsets = [0, 0], sizes = [2, 32], strides = [1, 1]} : vector<2x96xf32> to vector<2x32xf32>
    %1890 = arith.addf %1888, %1889 : vector<2x32xf32>
    %1891 = arith.negf %1890 : vector<2x32xf32>
    %1892 = math.exp %1891 : vector<2x32xf32>
    %cst_472 = arith.constant 1.000000e+00 : f32
    %1893 = vector.broadcast %cst_472 : f32 to vector<2x32xf32>
    %1894 = arith.addf %1893, %1892 : vector<2x32xf32>
    %1895 = arith.divf %1893, %1894 : vector<2x32xf32>
    %1896 = vector.extract_strided_slice %1884 {offsets = [0, 32], sizes = [2, 32], strides = [1, 1]} : vector<2x96xf32> to vector<2x32xf32>
    %1897 = vector.extract_strided_slice %1887 {offsets = [0, 32], sizes = [2, 32], strides = [1, 1]} : vector<2x96xf32> to vector<2x32xf32>
    %1898 = arith.addf %1896, %1897 : vector<2x32xf32>
    %1899 = arith.negf %1898 : vector<2x32xf32>
    %1900 = math.exp %1899 : vector<2x32xf32>
    %cst_473 = arith.constant 1.000000e+00 : f32
    %1901 = vector.broadcast %cst_473 : f32 to vector<2x32xf32>
    %1902 = arith.addf %1901, %1900 : vector<2x32xf32>
    %1903 = arith.divf %1901, %1902 : vector<2x32xf32>
    %1904 = vector.extract_strided_slice %1884 {offsets = [0, 64], sizes = [2, 32], strides = [1, 1]} : vector<2x96xf32> to vector<2x32xf32>
    %1905 = vector.extract_strided_slice %1887 {offsets = [0, 64], sizes = [2, 32], strides = [1, 1]} : vector<2x96xf32> to vector<2x32xf32>
    %1906 = arith.mulf %1895, %1905 : vector<2x32xf32>
    %1907 = arith.addf %1904, %1906 : vector<2x32xf32>
    %1908 = math.tanh %1907 : vector<2x32xf32>
    %cst_474 = arith.constant 1.000000e+00 : f32
    %1909 = vector.broadcast %cst_474 : f32 to vector<2x32xf32>
    %1910 = arith.subf %1909, %1903 : vector<2x32xf32>
    %1911 = arith.mulf %1910, %1908 : vector<2x32xf32>
    %1912 = arith.mulf %1903, %1853 : vector<2x32xf32>
    %1913 = arith.addf %1911, %1912 : vector<2x32xf32>
    %c2_475 = arith.constant 2 : index
    %c0_476 = arith.constant 0 : index
    %1914 = vector.load %arg25[%c2_475, %c0_476] : memref<32x96xf32, #tpu.memory_space<vmem>>, vector<2x96xf32>
    %cst_477 = arith.constant dense<0.000000e+00> : vector<2x96xf32>
    %1915 = tpu.matmul %1883, %1040, %cst_477 {dimension_numbers = #tpu.dot_dimension_numbers<[1], [0], [0], [1], [0, 0, 1, 1], [], []>} : vector<2x32xf32>, vector<32x96xf32>, vector<2x96xf32> -> vector<2x96xf32>
    %1916 = vector.broadcast %1041 : vector<1x96xf32> to vector<2x96xf32>
    %1917 = arith.addf %1915, %1916 : vector<2x96xf32>
    %1918 = vector.extract_strided_slice %1914 {offsets = [0, 0], sizes = [2, 32], strides = [1, 1]} : vector<2x96xf32> to vector<2x32xf32>
    %1919 = vector.extract_strided_slice %1917 {offsets = [0, 0], sizes = [2, 32], strides = [1, 1]} : vector<2x96xf32> to vector<2x32xf32>
    %1920 = arith.addf %1918, %1919 : vector<2x32xf32>
    %1921 = arith.negf %1920 : vector<2x32xf32>
    %1922 = math.exp %1921 : vector<2x32xf32>
    %cst_478 = arith.constant 1.000000e+00 : f32
    %1923 = vector.broadcast %cst_478 : f32 to vector<2x32xf32>
    %1924 = arith.addf %1923, %1922 : vector<2x32xf32>
    %1925 = arith.divf %1923, %1924 : vector<2x32xf32>
    %1926 = vector.extract_strided_slice %1914 {offsets = [0, 32], sizes = [2, 32], strides = [1, 1]} : vector<2x96xf32> to vector<2x32xf32>
    %1927 = vector.extract_strided_slice %1917 {offsets = [0, 32], sizes = [2, 32], strides = [1, 1]} : vector<2x96xf32> to vector<2x32xf32>
    %1928 = arith.addf %1926, %1927 : vector<2x32xf32>
    %1929 = arith.negf %1928 : vector<2x32xf32>
    %1930 = math.exp %1929 : vector<2x32xf32>
    %cst_479 = arith.constant 1.000000e+00 : f32
    %1931 = vector.broadcast %cst_479 : f32 to vector<2x32xf32>
    %1932 = arith.addf %1931, %1930 : vector<2x32xf32>
    %1933 = arith.divf %1931, %1932 : vector<2x32xf32>
    %1934 = vector.extract_strided_slice %1914 {offsets = [0, 64], sizes = [2, 32], strides = [1, 1]} : vector<2x96xf32> to vector<2x32xf32>
    %1935 = vector.extract_strided_slice %1917 {offsets = [0, 64], sizes = [2, 32], strides = [1, 1]} : vector<2x96xf32> to vector<2x32xf32>
    %1936 = arith.mulf %1925, %1935 : vector<2x32xf32>
    %1937 = arith.addf %1934, %1936 : vector<2x32xf32>
    %1938 = math.tanh %1937 : vector<2x32xf32>
    %cst_480 = arith.constant 1.000000e+00 : f32
    %1939 = vector.broadcast %cst_480 : f32 to vector<2x32xf32>
    %1940 = arith.subf %1939, %1933 : vector<2x32xf32>
    %1941 = arith.mulf %1940, %1938 : vector<2x32xf32>
    %1942 = arith.mulf %1933, %1883 : vector<2x32xf32>
    %1943 = arith.addf %1941, %1942 : vector<2x32xf32>
    %c30_481 = arith.constant 30 : index
    %c0_482 = arith.constant 0 : index
    %1944 = vector.load %arg24[%c30_481, %c0_482] : memref<32x96xf32, #tpu.memory_space<vmem>>, vector<2x96xf32>
    %cst_483 = arith.constant dense<0.000000e+00> : vector<2x96xf32>
    %1945 = tpu.matmul %1913, %1038, %cst_483 {dimension_numbers = #tpu.dot_dimension_numbers<[1], [0], [0], [1], [0, 0, 1, 1], [], []>} : vector<2x32xf32>, vector<32x96xf32>, vector<2x96xf32> -> vector<2x96xf32>
    %1946 = vector.broadcast %1039 : vector<1x96xf32> to vector<2x96xf32>
    %1947 = arith.addf %1945, %1946 : vector<2x96xf32>
    %1948 = vector.extract_strided_slice %1944 {offsets = [0, 0], sizes = [2, 32], strides = [1, 1]} : vector<2x96xf32> to vector<2x32xf32>
    %1949 = vector.extract_strided_slice %1947 {offsets = [0, 0], sizes = [2, 32], strides = [1, 1]} : vector<2x96xf32> to vector<2x32xf32>
    %1950 = arith.addf %1948, %1949 : vector<2x32xf32>
    %1951 = arith.negf %1950 : vector<2x32xf32>
    %1952 = math.exp %1951 : vector<2x32xf32>
    %cst_484 = arith.constant 1.000000e+00 : f32
    %1953 = vector.broadcast %cst_484 : f32 to vector<2x32xf32>
    %1954 = arith.addf %1953, %1952 : vector<2x32xf32>
    %1955 = arith.divf %1953, %1954 : vector<2x32xf32>
    %1956 = vector.extract_strided_slice %1944 {offsets = [0, 32], sizes = [2, 32], strides = [1, 1]} : vector<2x96xf32> to vector<2x32xf32>
    %1957 = vector.extract_strided_slice %1947 {offsets = [0, 32], sizes = [2, 32], strides = [1, 1]} : vector<2x96xf32> to vector<2x32xf32>
    %1958 = arith.addf %1956, %1957 : vector<2x32xf32>
    %1959 = arith.negf %1958 : vector<2x32xf32>
    %1960 = math.exp %1959 : vector<2x32xf32>
    %cst_485 = arith.constant 1.000000e+00 : f32
    %1961 = vector.broadcast %cst_485 : f32 to vector<2x32xf32>
    %1962 = arith.addf %1961, %1960 : vector<2x32xf32>
    %1963 = arith.divf %1961, %1962 : vector<2x32xf32>
    %1964 = vector.extract_strided_slice %1944 {offsets = [0, 64], sizes = [2, 32], strides = [1, 1]} : vector<2x96xf32> to vector<2x32xf32>
    %1965 = vector.extract_strided_slice %1947 {offsets = [0, 64], sizes = [2, 32], strides = [1, 1]} : vector<2x96xf32> to vector<2x32xf32>
    %1966 = arith.mulf %1955, %1965 : vector<2x32xf32>
    %1967 = arith.addf %1964, %1966 : vector<2x32xf32>
    %1968 = math.tanh %1967 : vector<2x32xf32>
    %cst_486 = arith.constant 1.000000e+00 : f32
    %1969 = vector.broadcast %cst_486 : f32 to vector<2x32xf32>
    %1970 = arith.subf %1969, %1963 : vector<2x32xf32>
    %1971 = arith.mulf %1970, %1968 : vector<2x32xf32>
    %1972 = arith.mulf %1963, %1913 : vector<2x32xf32>
    %1973 = arith.addf %1971, %1972 : vector<2x32xf32>
    %c0_487 = arith.constant 0 : index
    %c0_488 = arith.constant 0 : index
    %1974 = vector.load %arg25[%c0_487, %c0_488] : memref<32x96xf32, #tpu.memory_space<vmem>>, vector<2x96xf32>
    %cst_489 = arith.constant dense<0.000000e+00> : vector<2x96xf32>
    %1975 = tpu.matmul %1943, %1040, %cst_489 {dimension_numbers = #tpu.dot_dimension_numbers<[1], [0], [0], [1], [0, 0, 1, 1], [], []>} : vector<2x32xf32>, vector<32x96xf32>, vector<2x96xf32> -> vector<2x96xf32>
    %1976 = vector.broadcast %1041 : vector<1x96xf32> to vector<2x96xf32>
    %1977 = arith.addf %1975, %1976 : vector<2x96xf32>
    %1978 = vector.extract_strided_slice %1974 {offsets = [0, 0], sizes = [2, 32], strides = [1, 1]} : vector<2x96xf32> to vector<2x32xf32>
    %1979 = vector.extract_strided_slice %1977 {offsets = [0, 0], sizes = [2, 32], strides = [1, 1]} : vector<2x96xf32> to vector<2x32xf32>
    %1980 = arith.addf %1978, %1979 : vector<2x32xf32>
    %1981 = arith.negf %1980 : vector<2x32xf32>
    %1982 = math.exp %1981 : vector<2x32xf32>
    %cst_490 = arith.constant 1.000000e+00 : f32
    %1983 = vector.broadcast %cst_490 : f32 to vector<2x32xf32>
    %1984 = arith.addf %1983, %1982 : vector<2x32xf32>
    %1985 = arith.divf %1983, %1984 : vector<2x32xf32>
    %1986 = vector.extract_strided_slice %1974 {offsets = [0, 32], sizes = [2, 32], strides = [1, 1]} : vector<2x96xf32> to vector<2x32xf32>
    %1987 = vector.extract_strided_slice %1977 {offsets = [0, 32], sizes = [2, 32], strides = [1, 1]} : vector<2x96xf32> to vector<2x32xf32>
    %1988 = arith.addf %1986, %1987 : vector<2x32xf32>
    %1989 = arith.negf %1988 : vector<2x32xf32>
    %1990 = math.exp %1989 : vector<2x32xf32>
    %cst_491 = arith.constant 1.000000e+00 : f32
    %1991 = vector.broadcast %cst_491 : f32 to vector<2x32xf32>
    %1992 = arith.addf %1991, %1990 : vector<2x32xf32>
    %1993 = arith.divf %1991, %1992 : vector<2x32xf32>
    %1994 = vector.extract_strided_slice %1974 {offsets = [0, 64], sizes = [2, 32], strides = [1, 1]} : vector<2x96xf32> to vector<2x32xf32>
    %1995 = vector.extract_strided_slice %1977 {offsets = [0, 64], sizes = [2, 32], strides = [1, 1]} : vector<2x96xf32> to vector<2x32xf32>
    %1996 = arith.mulf %1985, %1995 : vector<2x32xf32>
    %1997 = arith.addf %1994, %1996 : vector<2x32xf32>
    %1998 = math.tanh %1997 : vector<2x32xf32>
    %cst_492 = arith.constant 1.000000e+00 : f32
    %1999 = vector.broadcast %cst_492 : f32 to vector<2x32xf32>
    %2000 = arith.subf %1999, %1993 : vector<2x32xf32>
    %2001 = arith.mulf %2000, %1998 : vector<2x32xf32>
    %2002 = arith.mulf %1993, %1943 : vector<2x32xf32>
    %2003 = arith.addf %2001, %2002 : vector<2x32xf32>
    %c0_493 = arith.constant 0 : index
    %c0_494 = arith.constant 0 : index
    %2004 = vector.load %arg19[%c0_493, %c0_494] : memref<64x128xf32, #tpu.memory_space<vmem>>, vector<32x128xf32>
    %cst_495 = arith.constant dense<0.000000e+00> : vector<2x128xf32>
    %2005 = tpu.matmul %1973, %2004, %cst_495 {dimension_numbers = #tpu.dot_dimension_numbers<[1], [0], [0], [1], [0, 0, 1, 1], [], []>} : vector<2x32xf32>, vector<32x128xf32>, vector<2x128xf32> -> vector<2x128xf32>
    %c32_496 = arith.constant 32 : index
    %c0_497 = arith.constant 0 : index
    %2006 = vector.load %arg19[%c32_496, %c0_497] : memref<64x128xf32, #tpu.memory_space<vmem>>, vector<32x128xf32>
    %cst_498 = arith.constant dense<0.000000e+00> : vector<2x128xf32>
    %2007 = tpu.matmul %2003, %2006, %cst_498 {dimension_numbers = #tpu.dot_dimension_numbers<[1], [0], [0], [1], [0, 0, 1, 1], [], []>} : vector<2x32xf32>, vector<32x128xf32>, vector<2x128xf32> -> vector<2x128xf32>
    %2008 = arith.addf %2005, %2007 : vector<2x128xf32>
    %c0_499 = arith.constant 0 : index
    %c0_500 = arith.constant 0 : index
    %2009 = vector.load %arg20[%c0_499, %c0_500] : memref<1x128xf32, #tpu.memory_space<vmem>>, vector<1x128xf32>
    %2010 = vector.broadcast %2009 : vector<1x128xf32> to vector<2x128xf32>
    %2011 = arith.addf %2008, %2010 : vector<2x128xf32>
    %c0_501 = arith.constant 0 : index
    %c0_502 = arith.constant 0 : index
    %2012 = vector.load %arg21[%c0_501, %c0_502] : memref<2x128xf32, #tpu.memory_space<vmem>>, vector<2x128xf32>
    tpu.vector_store %arg21[%c0_501, %c0_502], %2011 {strides = array<i32>} : memref<2x128xf32, #tpu.memory_space<vmem>>, vector<2x128xf32>,
    return
  }
  func.func @transform_0(%arg0: i32) -> (i32, i32) {
    %c0_i32 = arith.constant 0 : i32
    %c0_i32_0 = arith.constant 0 : i32
    %c0_i32_1 = arith.constant 0 : i32
    return %c0_i32, %c0_i32_0 : i32, i32
  }
  func.func @transform_1(%arg0: i32) -> (i32, i32) {
    %c0_i32 = arith.constant 0 : i32
    %c0_i32_0 = arith.constant 0 : i32
    %c0_i32_1 = arith.constant 0 : i32
    return %c0_i32, %c0_i32_0 : i32, i32
  }
  func.func @transform_2(%arg0: i32) -> (i32, i32) {
    %c0_i32 = arith.constant 0 : i32
    %c0_i32_0 = arith.constant 0 : i32
    %c0_i32_1 = arith.constant 0 : i32
    return %c0_i32, %c0_i32_0 : i32, i32
  }
  func.func @transform_3(%arg0: i32) -> (i32, i32) {
    %c0_i32 = arith.constant 0 : i32
    %c0_i32_0 = arith.constant 0 : i32
    %c0_i32_1 = arith.constant 0 : i32
    return %c0_i32, %c0_i32_0 : i32, i32
  }
  func.func @transform_4(%arg0: i32) -> (i32, i32) {
    %c0_i32 = arith.constant 0 : i32
    %c0_i32_0 = arith.constant 0 : i32
    %c0_i32_1 = arith.constant 0 : i32
    return %c0_i32, %c0_i32_0 : i32, i32
  }
  func.func @transform_5(%arg0: i32) -> (i32, i32) {
    %c0_i32 = arith.constant 0 : i32
    %c0_i32_0 = arith.constant 0 : i32
    %c0_i32_1 = arith.constant 0 : i32
    return %c0_i32, %c0_i32_0 : i32, i32
  }
  func.func @transform_6(%arg0: i32) -> (i32, i32) {
    %c0_i32 = arith.constant 0 : i32
    %c0_i32_0 = arith.constant 0 : i32
    %c0_i32_1 = arith.constant 0 : i32
    return %c0_i32, %c0_i32_0 : i32, i32
  }
  func.func @transform_7(%arg0: i32) -> (i32, i32) {
    %c0_i32 = arith.constant 0 : i32
    %c0_i32_0 = arith.constant 0 : i32
    %c0_i32_1 = arith.constant 0 : i32
    return %c0_i32, %c0_i32_0 : i32, i32
  }
  func.func @transform_8(%arg0: i32) -> (i32, i32) {
    %c0_i32 = arith.constant 0 : i32
    %c0_i32_0 = arith.constant 0 : i32
    %c0_i32_1 = arith.constant 0 : i32
    return %c0_i32, %c0_i32_0 : i32, i32
  }
  func.func @transform_9(%arg0: i32) -> (i32, i32) {
    %c0_i32 = arith.constant 0 : i32
    %c0_i32_0 = arith.constant 0 : i32
    %c0_i32_1 = arith.constant 0 : i32
    return %c0_i32, %c0_i32_0 : i32, i32
  }
  func.func @transform_10(%arg0: i32) -> (i32, i32) {
    %c0_i32 = arith.constant 0 : i32
    %c0_i32_0 = arith.constant 0 : i32
    %c0_i32_1 = arith.constant 0 : i32
    return %c0_i32, %c0_i32_0 : i32, i32
  }
  func.func @transform_11(%arg0: i32) -> (i32, i32) {
    %c0_i32 = arith.constant 0 : i32
    %c0_i32_0 = arith.constant 0 : i32
    %c0_i32_1 = arith.constant 0 : i32
    return %c0_i32, %c0_i32_0 : i32, i32
  }
  func.func @transform_12(%arg0: i32) -> (i32, i32) {
    %c0_i32 = arith.constant 0 : i32
    %c0_i32_0 = arith.constant 0 : i32
    %c0_i32_1 = arith.constant 0 : i32
    return %c0_i32, %c0_i32_0 : i32, i32
  }
  func.func @transform_13(%arg0: i32) -> (i32, i32) {
    %c0_i32 = arith.constant 0 : i32
    %c0_i32_0 = arith.constant 0 : i32
    %c0_i32_1 = arith.constant 0 : i32
    return %c0_i32, %c0_i32_0 : i32, i32
  }
  func.func @transform_14(%arg0: i32) -> (i32, i32) {
    %c0_i32 = arith.constant 0 : i32
    %c0_i32_0 = arith.constant 0 : i32
    %c0_i32_1 = arith.constant 0 : i32
    return %c0_i32, %c0_i32_0 : i32, i32
  }
  func.func @transform_15(%arg0: i32) -> (i32, i32) {
    %c0_i32 = arith.constant 0 : i32
    %c0_i32_0 = arith.constant 0 : i32
    %c0_i32_1 = arith.constant 0 : i32
    return %c0_i32, %c0_i32_0 : i32, i32
  }
  func.func @transform_16(%arg0: i32) -> (i32, i32) {
    %c0_i32 = arith.constant 0 : i32
    %c0_i32_0 = arith.constant 0 : i32
    %c0_i32_1 = arith.constant 0 : i32
    return %c0_i32, %c0_i32_0 : i32, i32
  }
  func.func @transform_17(%arg0: i32) -> (i32, i32) {
    %c0_i32 = arith.constant 0 : i32
    %c0_i32_0 = arith.constant 0 : i32
    %c0_i32_1 = arith.constant 0 : i32
    return %c0_i32, %c0_i32_0 : i32, i32
  }
  func.func @transform_18(%arg0: i32) -> (i32, i32) {
    %c0_i32 = arith.constant 0 : i32
    %c0_i32_0 = arith.constant 0 : i32
    %c0_i32_1 = arith.constant 0 : i32
    return %c0_i32, %c0_i32_0 : i32, i32
  }
  func.func @transform_19(%arg0: i32) -> (i32, i32) {
    %c0_i32 = arith.constant 0 : i32
    %c0_i32_0 = arith.constant 0 : i32
    %c0_i32_1 = arith.constant 0 : i32
    return %c0_i32, %c0_i32_0 : i32, i32
  }
  func.func @transform_20(%arg0: i32) -> (i32, i32) {
    %c0_i32 = arith.constant 0 : i32
    %c0_i32_0 = arith.constant 0 : i32
    %c0_i32_1 = arith.constant 0 : i32
    return %c0_i32, %c0_i32_0 : i32, i32
  }
}

</mosaic_0001>

<bundles_post_ra>
// kernel: tpu_custom_call.1
= control target key start
LH: loop header
LB: loop body
LE: loop exit
PB: predicated region body
PF: predicated region fallthrough
CT: control target
= control target key end

     0   :  { %s7055_s0 = inlined_call_operand.vmem [shape: s32[32,1], index: 0, kind: input, shape index: {}]   ;;  %s7056_s1 = inlined_call_operand.vmem [shape: f32[50,32], index: 1, kind: input, shape index: {}]   ;;  %s7057_s2 = inlined_call_operand.hbm [shape: f32[32,96], index: 2, kind: input, shape index: {}]   ;;  %s7058_s3 = inlined_call_operand.hbm [shape: f32[32,96], index: 3, kind: input, shape index: {}]   ;;  %s7059_s4 = inlined_call_operand.vmem [shape: f32[1,96], index: 4, kind: input, shape index: {}]   ;;  %s7060_s5 = inlined_call_operand.vmem [shape: f32[1,96], index: 5, kind: input, shape index: {}]   ;;  %s7061_s6 = inlined_call_operand.hbm [shape: f32[32,96], index: 6, kind: input, shape index: {}]   ;;  %s7062_s7 = inlined_call_operand.hbm [shape: f32[32,96], index: 7, kind: input, shape index: {}]   ;;  %s7063_s8 = inlined_call_operand.vmem [shape: f32[1,96], index: 8, kind: input, shape index: {}]   ;;  %s7064_s9 = inlined_call_operand.vmem [shape: f32[1,96], index: 9, kind: input, shape index: {}]   ;;  %s7065_s10 = inlined_call_operand.vmem [shape: f32[64,96], index: 10, kind: input, shape index: {}]   ;;  %s7066_s11 = inlined_call_operand.hbm [shape: f32[32,96], index: 11, kind: input, shape index: {}]   ;;  %s7067_s12 = inlined_call_operand.vmem [shape: f32[1,96], index: 12, kind: input, shape index: {}]   ;;  %s7068_s13 = inlined_call_operand.vmem [shape: f32[1,96], index: 13, kind: input, shape index: {}]   ;;  %s7069_s14 = inlined_call_operand.hbm [shape: f32[64,96], index: 14, kind: input, shape index: {}]   ;;  %s7070_s15 = inlined_call_operand.hbm [shape: f32[32,96], index: 15, kind: input, shape index: {}]   ;;  %s7071_s16 = inlined_call_operand.vmem [shape: f32[1,96], index: 16, kind: input, shape index: {}]   ;;  %s7072_s17 = inlined_call_operand.vmem [shape: f32[1,96], index: 17, kind: input, shape index: {}]   ;;  %s7073_s18 = inlined_call_operand.hbm [shape: f32[64,128], index: 18, kind: input, shape index: {}]   ;;  %s7074_s19 = inlined_call_operand.vmem [shape: f32[1,128], index: 19, kind: input, shape index: {}]   ;;  %s7075_s20 = inlined_call_operand.hbm [shape: f32[2,128], index: 20, kind: output, shape index: {}]  }
   0x1   :  { %7078 = sst [smem:[#allocation29_spill]] %s7055_s0 }
   0x2   :  { %7079 = sst [smem:[#allocation30_spill]] %s7056_s1 }
   0x3   :  { %7080 = sst [smem:[#allocation31_spill]] %s7057_s2 }
   0x4   :  { %7081 = sst [smem:[#allocation32_spill]] %s7058_s3 }
   0x5   :  { %7082 = sst [smem:[#allocation33_spill]] %s7059_s4 }
   0x6   :  { %25 = vsyncpa [#allocation9], 0 }
   0x7   :  { %26 = vsyncpa [#allocation12], 0 }
   0x8   :  { %27 = vsyncpa [#allocation15], 0 }
   0x9   :  { %28 = vsyncpa [#allocation18], 0 }
   0xa   :  { %29 = vsyncpa [#allocation21], 0 }
   0xb   :  { %30 = vsyncpa [#allocation10], 0  ;;  %s7083_s23 = sld [smem:[#allocation32_spill]]  ;;  %s5725_s2 = smov [#allocation11]  }
   0xc   :  { %s54_s25 = sshll.u32 %s5725_s2, 4  ;;  %s82_s27 = sshll.u32 %s7062_s7, 4  ;;  %s55_s25 = int_to_ptr.vmem [resolvable:$true] %s54_s25  ;;  %s83_s27 = int_to_ptr.hbm [resolvable:$true] %s82_s27 }
   0xd   :  { %s5726_s28 = smov 128   ;;  %s5727_s4 = smov 8  }
   0xe   :  { %s5728_s29 = smov [#allocation14]   ;;  %s118_s1 = sshll.u32 %s7069_s14, 4  ;;  %s119_s1 = int_to_ptr.hbm [resolvable:$true] %s118_s1 }
   0xf   :  { %s84_s30 = sshll.u32 %s5728_s29, 4  ;;  %s5729_s3 = smov [#allocation17]   ;;  %s85_s30 = int_to_ptr.vmem [resolvable:$true] %s84_s30 }
  0x10   :  { %90 = dma.hbm_to_vmem [thread:$0]  %s83_s27, 512, %s85_s30, [#allocation15], %s5726_s28, %s5726_s28, %s5727_s4  }
  0x11   :  { %s52_s24 = sshll.u32 %s7083_s23, 4  ;;  %s7084_s23 = sld [smem:[#allocation31_spill]]  ;;  %s53_s24 = int_to_ptr.hbm [resolvable:$true] %s52_s24 }
  0x12   :  { %60 = dma.hbm_to_vmem [thread:$0]  %s53_s24, 512, %s55_s25, [#allocation12], %s5726_s28, %s5726_s28, %s5727_s4  }
  0x13   :  { %s120_s26 = sshll.u32 %s5729_s3, 4  ;;  %s5730_s24 = smov [#allocation8]   ;;  %s121_s26 = int_to_ptr.vmem [resolvable:$true] %s120_s26 }
  0x14   :  { %126 = dma.hbm_to_vmem [thread:$0]  %s119_s1, 1024, %s121_s26, [#allocation18], %s5726_s28, %s5726_s28, %s5727_s4  }
  0x15   :  { %s41_s14 = sshll.u32 %s5730_s24, 4  ;;  %s69_s0 = sshll.u32 %s7061_s6, 4  ;;  %s42_s14 = int_to_ptr.vmem [resolvable:$true] %s41_s14  ;;  %s70_s0 = int_to_ptr.hbm [resolvable:$true] %s69_s0 }
  0x16   :  { %s101_s21 = sshll.u32 %s7066_s11, 4  ;;  %s5731_s7 = smov [#allocation13]   ;;  %s102_s21 = int_to_ptr.hbm [resolvable:$true] %s101_s21 }
  0x17   :  { %s39_s2 = sshll.u32 %s7084_s23, 4  ;;  %s71_s22 = sshll.u32 %s5731_s7, 4  ;;  %s40_s2 = int_to_ptr.hbm [resolvable:$true] %s39_s2  ;;  %s72_s22 = int_to_ptr.vmem [resolvable:$true] %s71_s22 }
  0x18   :  { %47 = dma.hbm_to_vmem [thread:$0]  %s40_s2, 512, %s42_s14, [#allocation9], %s5726_s28, %s5726_s28, %s5727_s4  }
  0x19   :  { %77 = dma.hbm_to_vmem [thread:$0]  %s70_s0, 512, %s72_s22, [#allocation12], %s5726_s28, %s5726_s28, %s5727_s4  }
  0x1a   :  { %s5732_s1 = smov [#allocation16]   ;;  %s131_s26 = sshll.u32 %s7070_s15, 4  ;;  %s132_s26 = int_to_ptr.hbm [resolvable:$true] %s131_s26 }
  0x1b   :  { %s103_s6 = sshll.u32 %s5732_s1, 4  ;;  %s148_s24 = sshll.u32 %s7073_s18, 4  ;;  %s104_s6 = int_to_ptr.vmem [resolvable:$true] %s103_s6  ;;  %s149_s24 = int_to_ptr.hbm [resolvable:$true] %s148_s24 }
  0x1c   :  { %109 = dma.hbm_to_vmem [thread:$0]  %s102_s21, 512, %s104_s6, [#allocation15], %s5726_s28, %s5726_s28, %s5727_s4  }
  0x1d   :  { %s5733_s14 = smov [#allocation19]   ;;  %s5734_s29 = smov [#allocation20]  }
  0x1e   :  { %s133_s25 = sshll.u32 %s5733_s14, 4  ;;  %s150_s15 = sshll.u32 %s5734_s29, 4  ;;  %s134_s25 = int_to_ptr.vmem [resolvable:$true] %s133_s25  ;;  %s151_s15 = int_to_ptr.vmem [resolvable:$true] %s150_s15 }
  0x1f   :  { %139 = dma.hbm_to_vmem [thread:$0]  %s132_s26, 512, %s134_s25, [#allocation18], %s5726_s28, %s5726_s28, %s5727_s4  }
  0x20   :  { %156 = dma.hbm_to_vmem [thread:$0]  %s149_s24, 1024, %s151_s15, [#allocation21], %s5726_s28, %s5726_s28, %s5727_s4  }
  0x21   :  { %5713 = dma.done.wait [#allocation9], 512  }
  0x22   :  { %5714 = vsyncadd [#allocation9], 4294966784 }
  0x23   :  { %5715 = dma.done.wait [#allocation12], 1024  }
  0x24   :  { %5716 = vsyncadd [#allocation12], 4294966272 }
  0x25   :  { %5717 = dma.done.wait [#allocation15], 1024  }
  0x26   :  { %5718 = vsyncadd [#allocation15], 4294966272 }
  0x27   :  { %5719 = dma.done.wait [#allocation18], 1536  }
  0x28   :  { %5720 = vsyncadd [#allocation18], 4294965760 }
  0x29   :  { %5721 = dma.done.wait [#allocation21], 1024  }
  0x2a   :  { %5722 = vsyncadd [#allocation21], 4294966272  ;;  %v5735_v0 = vmov 0   ;;  %vm241_vm0 = vcmask 1041408   ;;  %s7085_s27 = sld [smem:[#allocation29_spill]]  ;;  %v195_v12 = vlaneseq  ;;  %v5926_v13 = vld [vmem:[#allocation11 + $0x18] sm:$0xff] }
  0x2b   :  { %5063 = vset.pattern.permute.xlu0 %v5735_v0  ;;  %5064 = vset.pattern.permute.xlu1 %v5735_v0  ;;  %s7086_s7 = sld [smem:[#allocation30_spill]]  ;;  %v5928_v14 = vld [vmem:[#allocation11 + $0x10] sm:$0xff]  ;;  %v5931_v15 = vld [vmem:[#allocation14 + $0x18] sm:$0xff]  ;;  %v5933_v17 = vld [vmem:[#allocation11 + $0x8] sm:$0xff]  ;;  %vm228_vm1 = vcmask 408576   ;;  %v5736_v28 = vmov 0.0  }
  0x2c   :  { %399 = vmatpush.msra.mxu3 %v5926_v13  ;;  %v196_v16 = vand.u32 127, %v195_v12  ;;  %v5935_v18 = vld [vmem:[#allocation14 + $0x10] sm:$0xff]  ;;  %v277_v19 = vld [vmem:[#allocation8 + $0x18] sm:$0xff]  ;;  %v5939_v23 = vld [vmem:[#allocation11] sm:$0xff]  ;;  %vm282_vm6 = vcmask 261120   ;;  %s5737_s4 = smov 64  }
  0x2d   :  { %307 = vmatpush.msra.mxu1 %v277_v19  ;;  %v332_v20 = vld [vmem:[#allocation13 + $0x18] sm:$0xff]  ;;  %v276_v21 = vld [vmem:[#allocation8 + $0x10] sm:$0xff]  ;;  %v275_v24 = vld [vmem:[#allocation8 + $0x8] sm:$0xff]  ;;  %s7087_s6 = sld [smem:[#allocation33_spill]]  ;;  %vm324_vm7 = vcmask 785408   ;;  %s4875_s22 = sshll.u32 %s7075_s20, 4  ;;  %s4876_s22 = int_to_ptr.hbm [resolvable:$true] %s4875_s22 }
  0x2e   :  { %400 = vmatpush.msra.mxu3 %v5928_v14  ;;  %v331_v22 = vld [vmem:[#allocation13 + $0x10] sm:$0xff]  ;;  %349 = vmatpush.msra.mxu2 %v332_v20  ;;  %v5943_v26 = vld [vmem:[#allocation14 + $0x8] sm:$0xff]  ;;  %v5951_v30 = vld [vmem:[#allocation14] sm:$0xff] }
  0x2f   :  { %308 = vmatpush.msra.mxu1 %v276_v21  ;;  %v330_v27 = vld [vmem:[#allocation13 + $0x8] sm:$0xff]  ;;  %v274_v37 = vld [vmem:[#allocation8] sm:$0xff] }
  0x30   :  { %v191_v1 = vld [vmem:[%s7085_s27] sm:$0xff]  ;;  %v193_v2 = vld [vmem:[%s7085_s27 + $0x10] sm:$0xff]  ;;  %v192_v7 = vld [vmem:[%s7085_s27 + $0x8] sm:$0xff]  ;;  %401 = vmatpush.msra.mxu3 %v5933_v17  ;;  %350 = vmatpush.msra.mxu2 %v331_v22 }
  0x31   :  { %198 = vperm.xlu0 %5063, %v191_v1   ;;  %204 = vperm.xlu1 %5064, %v193_v2   ;;  %v227_v3 = vld [vmem:[%s7086_s7 + $0x30] sm:$0x3]  ;;  %v226_v4 = vld [vmem:[%s7086_s7 + $0x28] sm:$0xff]  ;;  %v225_v5 = vld [vmem:[%s7086_s7 + $0x20] sm:$0xff] }
  0x32   :  { %4893 = vmatpush.msk.msra.mxu0 %vm241_vm0, %v227_v3  ;;  %v224_v6 = vld [vmem:[%s7086_s7 + $0x18] sm:$0xff]  ;;  %v223_v9 = vld [vmem:[%s7086_s7 + $0x10] sm:$0xff]  ;;  %v222_v10 = vld [vmem:[%s7086_s7 + $0x8] sm:$0xff]  ;;  %402 = vmatpush.msra.mxu3 %v5939_v23  ;;  %vm513_vm0 = vcmask 254976  }
  0x33   :  { %v194_v8 = vld [vmem:[%s7085_s27 + $0x18] sm:$0xff]  ;;  %v221_v11 = vld [vmem:[%s7086_s7] sm:$0xff]  ;;  %309 = vmatpush.msra.mxu1 %v275_v24  ;;  %403 = vmatmul.f32.vlgmr.msra.gmra.mxu3 %v5736_v28 }
  0x34   :  { %255 = vmatpush.msra.mxu0 %v226_v4  ;;  %462 = vmatpush.msrb.mxu3 %v5931_v15  ;;  %v329_v38 = vld [vmem:[#allocation13] sm:$0xff] }
  0x35   :  { %351 = vmatpush.msra.mxu2 %v330_v27  ;;  %310 = vmatpush.msra.mxu1 %v274_v37  ;;  %v5991_v40 = vld [vmem:[%s7060_s5] ss:$0 sm:$0xff] }
  0x36   :  { %256 = vmatpush.msra.mxu0 %v225_v5  ;;  %463 = vmatpush.msrb.mxu3 %v5935_v18  ;;  %v6006_v44 = vld [vmem:[%s7064_s9] ss:$0 sm:$0xff] }
  0x37   :  { %352 = vmatpush.msra.mxu2 %v329_v38  ;;  %669 = vmatpush.msrb.mxu1 %v5926_v13  ;;  %v5067_v49 = vld [vmem:[%s7087_s6] ss:$0 sm:$0xff] }
  0x38   :  { %257 = vmatpush.msra.mxu0 %v224_v6  ;;  %464 = vmatpush.msrb.mxu3 %v5943_v26  ;;  %v5068_v52 = vld [vmem:[%s7063_s8] ss:$0 sm:$0xff]  ;;  %s5738_s8 = smov 96  }
  0x39   :  { %201 = vperm.xlu0 %5063, %v192_v7   ;;  %207 = vperm.xlu1 %5064, %v194_v8  }
  0x3a   :  { %258 = vmatpush.msra.mxu0 %v223_v9  ;;  %465 = vmatpush.msrb.mxu3 %v5951_v30 }
  0x3b   :  { %466 = vmatmul.f32.vlgmr.msrb.gmra.mxu3 %v5736_v28  ;;  %731 = vmatpush.msrb.mxu2 %v5931_v15 }
  0x3c   :  { %259 = vmatpush.msra.mxu0 %v222_v10  ;;  %535 = vmatpush.msra.mxu3 %v5926_v13 }
  0x3d   :  { %670 = vmatpush.msrb.mxu1 %v5928_v14  ;;  %732 = vmatpush.msrb.mxu2 %v5935_v18 }
  0x3e   :  { %260 = vmatpush.msra.mxu0 %v221_v11  ;;  %536 = vmatpush.msra.mxu3 %v5928_v14 }
  0x3f   :  { %671 = vmatpush.msrb.mxu1 %v5933_v17  ;;  %733 = vmatpush.msrb.mxu2 %v5943_v26 }
  0x40   :  { %865 = vmatpush.msrb.mxu0 %v5931_v15  ;;  %537 = vmatpush.msra.mxu3 %v5933_v17 }
  0x41   :  { %672 = vmatpush.msrb.mxu1 %v5939_v23  ;;  %734 = vmatpush.msrb.mxu2 %v5951_v30 }
  0x42   :  { %866 = vmatpush.msrb.mxu0 %v5935_v18  ;;  %538 = vmatpush.msra.mxu3 %v5939_v23 }
  0x44   :  { %867 = vmatpush.msrb.mxu0 %v5943_v26  ;;  %597 = vmatpush.msrb.mxu3 %v5931_v15 }
  0x46   :  { %868 = vmatpush.msrb.mxu0 %v5951_v30  ;;  %598 = vmatpush.msrb.mxu3 %v5935_v18 }
  0x48   :  { %599 = vmatpush.msrb.mxu3 %v5943_v26 }
  0x4a   :  { %600 = vmatpush.msrb.mxu3 %v5951_v30 }
  0xa3   :  { %v199_v25 = vpop.permute.xlu0 %198  ;;  %v205_v32 = vpop.permute.xlu1 %204 }
  0xa4   :  { %vm209_vm2 = vcmp.eq.s32.totalorder %v196_v16, %v199_v25  ;;  %vm211_vm4 = vcmp.eq.s32.totalorder %v196_v16, %v205_v32 }
  0xa5   :  { %v4889_v29 = vsel %vm209_vm2, 1.0, %v5736_v28  ;;  %v4891_v34 = vsel %vm211_vm4, 1.0, %v5736_v28 }
  0xa6   :  { %4894 = vmatmul.msk.f32.vlgmr.msra.gmra.mxu0 %vm228_vm1, %v4889_v29 }
  0xa7   :  { %1133 = vmatpush.msra.mxu0 %v5931_v15 }
  0xa9   :  { %1134 = vmatpush.msra.mxu0 %v5935_v18 }
  0xab   :  { %v202_v31 = vpop.permute.xlu0 %201  ;;  %1135 = vmatpush.msra.mxu0 %v5943_v26  ;;  %v208_v35 = vpop.permute.xlu1 %207 }
  0xac   :  { %vm210_vm3 = vcmp.eq.s32.totalorder %v196_v16, %v202_v31  ;;  %vm212_vm5 = vcmp.eq.s32.totalorder %v196_v16, %v208_v35 }
  0xad   :  { %v4890_v33 = vsel %vm210_vm3, 1.0, %v5736_v28  ;;  %1136 = vmatpush.msra.mxu0 %v5951_v30  ;;  %v4892_v36 = vsel %vm212_vm5, 1.0, %v5736_v28 }
  0xae   :  { %4895 = vmatmul.msk.f32.gmra.mxu0 %vm228_vm1, %v4890_v33 }
  0xb6   :  { %4896 = vmatmul.msk.f32.gmra.mxu0 %vm228_vm1, %v4891_v34  ;;  %v404_v41 = vpop.f32.mrf.mxu3 }
  0xb7   :  { %v405_v42 = vadd.f32 %v5991_v40, %v404_v41 }
  0xb9   :  { %428 = vrot.lane.b32.xlu2 %v405_v42, %s5737_s4 }
  0xbe   :  { %4897 = vmatmul.msk.f32.gmra.mxu0 %vm228_vm1, %v4892_v36  ;;  %v467_v45 = vpop.f32.mrf.mxu3 }
  0xbf   :  { %v468_v46 = vadd.f32 %v6006_v44, %v467_v45 }
  0xc1   :  { %491 = vrot.lane.b32.xlu2 %v468_v46, %s5737_s4 }
 0x113   :  { %v429_v20 = vpop.permute.xlu2 %428 }
 0x123   :  { %v262_v39 = vpop.f32.mrf.mxu0 }
 0x124   :  { %4898 = vmatmul.msk.f32.vlgmr.msra.gmra.mxu1 %vm282_vm6, %v262_v39  ;;  %4902 = vmatmul.msk.f32.vlgmr.msra.gmra.mxu2 %vm282_vm6, %v262_v39 }
 0x125   :  { %937 = vmatpush.msra.mxu1 %v5926_v13  ;;  %999 = vmatpush.msra.mxu2 %v5931_v15 }
 0x127   :  { %938 = vmatpush.msra.mxu1 %v5928_v14  ;;  %1000 = vmatpush.msra.mxu2 %v5935_v18 }
 0x129   :  { %939 = vmatpush.msra.mxu1 %v5933_v17  ;;  %1001 = vmatpush.msra.mxu2 %v5943_v26 }
 0x12b   :  { %v265_v43 = vpop.f32.mrf.mxu0  ;;  %940 = vmatpush.msra.mxu1 %v5939_v23  ;;  %1002 = vmatpush.msra.mxu2 %v5951_v30 }
 0x12c   :  { %4899 = vmatmul.msk.f32.gmra.mxu1 %vm282_vm6, %v265_v43  ;;  %4903 = vmatmul.msk.f32.gmra.mxu2 %vm282_vm6, %v265_v43 }
 0x133   :  { %v268_v47 = vpop.f32.mrf.mxu0 }
 0x134   :  { %4900 = vmatmul.msk.f32.gmra.mxu1 %vm282_vm6, %v268_v47  ;;  %4904 = vmatmul.msk.f32.gmra.mxu2 %vm282_vm6, %v268_v47 }
 0x13b   :  { %v271_v48 = vpop.f32.mrf.mxu0 }
 0x13c   :  { %4901 = vmatmul.msk.f32.gmra.mxu1 %vm282_vm6, %v271_v48  ;;  %4905 = vmatmul.msk.f32.gmra.mxu2 %vm282_vm6, %v271_v48 }
 0x1a1   :  { %v312_v50 = vpop.f32.mrf.mxu1 }
 0x1a2   :  { %v313_v51 = vadd.f32 %v5067_v49, %v312_v50 }
 0x1a4   :  { %325 = vst.msk [vmem:[#allocation2] sm:$0xff] %vm324_vm7, %v313_v51 }
 0x1a7   :  { %v354_v53 = vpop.f32.mrf.mxu2 }
 0x1a8   :  { %v355_v54 = vadd.f32 %v5068_v52, %v354_v53 }
 0x1a9   :  { %v315_v55 = vpop.f32.mrf.mxu1 }
 0x1aa   :  { %366 = vst.msk [vmem:[#allocation3] sm:$0xff] %vm324_vm7, %v355_v54  ;;  %v316_v56 = vadd.f32 %v5067_v49, %v315_v55 }
 0x1ab   :  { %v6022_v57 = vld [vmem:[#allocation2] sm:$0x3] }
 0x1ac   :  { %326 = vst.msk [vmem:[#allocation2 + $0x8] sm:$0xff] %vm324_vm7, %v316_v56  ;;  %v407_v58 = vadd.f32 %v405_v42, %v6022_v57  ;;  %v492_v42 = vpop.permute.xlu2 %491 }
 0x1ae   :  { %v4906_v59 = vmul.f32 -1.442695, %v407_v58 }
 0x1af   :  { %v357_v60 = vpop.f32.mrf.mxu2 }
 0x1b0   :  { %v358_v61 = vadd.f32 %v5068_v52, %v357_v60  ;;  %5074 = vpow2.f32 %v4906_v59 }
 0x1b1   :  { %v318_v62 = vpop.f32.mrf.mxu1 }
 0x1b2   :  { %367 = vst.msk [vmem:[#allocation3 + $0x8] sm:$0xff] %vm324_vm7, %v358_v61  ;;  %v319_v63 = vadd.f32 %v5067_v49, %v318_v62 }
 0x1b4   :  { %327 = vst.msk [vmem:[#allocation2 + $0x10] sm:$0xff] %vm324_vm7, %v319_v63 }
 0x1b6   :  { %v5075_v0 = vpop.eup %5074 }
 0x1b7   :  { %v360_v1 = vpop.f32.mrf.mxu2  ;;  %v411_v2 = vadd.f32 1.0, %v5075_v0 }
 0x1b8   :  { %v361_v3 = vadd.f32 %v5068_v52, %v360_v1 }
 0x1b9   :  { %v321_v4 = vpop.f32.mrf.mxu1  ;;  %5076 = vrcp.f32 %v411_v2  ;;  %v423_v11 = vand.u32 2147483648, %v411_v2  ;;  %v421_v16 = vand.u32 2147483647, %v411_v2  ;;  %vm417_vm9 = vweird.f32 %v411_v2 }
 0x1ba   :  { %368 = vst.msk [vmem:[#allocation3 + $0x10] sm:$0xff] %vm324_vm7, %v361_v3  ;;  %v322_v5 = vadd.f32 %v5067_v49, %v321_v4 }
 0x1bb   :  { %v424_v21 = vor.u32 1.1754944e-38, %v423_v11  ;;  %vm422_vm11 = vcmp.eq.f32.partialorder %v421_v16, 8.507059e+37 }
 0x1bc   :  { %328 = vst.msk [vmem:[#allocation2 + $0x18] sm:$0xff] %vm324_vm7, %v322_v5 }
 0x1bf   :  { %v5077_v6 = vpop.eup %5076  ;;  %v363_v7 = vpop.f32.mrf.mxu2 }
 0x1c0   :  { %v364_v8 = vadd.f32 %v5068_v52, %v363_v7  ;;  %v413_v9 = vmul.f32 %v5077_v6, %v411_v2  ;;  %vm418_vm8 = vweird.f32 %v5077_v6 }
 0x1c1   :  { %vm419_vm10 = vmor %vm417_vm9, %vm418_vm8 }
 0x1c2   :  { %369 = vst.msk [vmem:[#allocation3 + $0x18] sm:$0xff] %vm324_vm7, %v364_v8  ;;  %v414_v10 = vsub.f32 1.0, %v413_v9 }
 0x1c4   :  { %v415_v12 = vmul.f32 %v5077_v6, %v414_v10 }
 0x1c6   :  { %v416_v19 = vadd.f32 %v5077_v6, %v415_v12 }
 0x1c8   :  { %v420_v22 = vsel %vm419_vm10, %v5077_v6, %v416_v19  ;;  %v520_v6 = vld [vmem:[#allocation2 + $0x2] sm:$0x3] }
 0x1c9   :  { %v425_v24 = vsel %vm422_vm11, %v424_v21, %v420_v22  ;;  %v446_v25 = vld [vmem:[#allocation3 + $0x1e] sm:$0x3]  ;;  %v582_v12 = vld [vmem:[#allocation3 + $0x1c] sm:$0x3] }
 0x1ca   :  { %v431_v27 = vmul.f32 %v429_v20, %v425_v24  ;;  %v470_v29 = vadd.f32 %v468_v46, %v446_v25  ;;  %v438_v54 = vsub.f32 1.0, %v425_v24  ;;  %v444_v56 = vmul.f32 0.0, %v425_v24 }
 0x1cc   :  { %433 = vrot.lane.b32.xlu0 %v431_v27, %s5737_s4  ;;  %v4907_v31 = vmul.f32 -1.442695, %v470_v29 }
 0x1ce   :  { %5078 = vpow2.f32 %v4907_v31 }
 0x1d4   :  { %v5079_v32 = vpop.eup %5078 }
 0x1d5   :  { %v474_v33 = vadd.f32 1.0, %v5079_v32 }
 0x1d7   :  { %5080 = vrcp.f32 %v474_v33  ;;  %v486_v37 = vand.u32 2147483648, %v474_v33  ;;  %v484_v39 = vand.u32 2147483647, %v474_v33  ;;  %vm480_vm13 = vweird.f32 %v474_v33 }
 0x1d9   :  { %v487_v43 = vor.u32 1.1754944e-38, %v486_v37  ;;  %vm485_vm15 = vcmp.eq.f32.partialorder %v484_v39, 8.507059e+37 }
 0x1dd   :  { %v5081_v34 = vpop.eup %5080 }
 0x1de   :  { %v476_v35 = vmul.f32 %v5081_v34, %v474_v33  ;;  %vm481_vm12 = vweird.f32 %v5081_v34 }
 0x1df   :  { %vm482_vm14 = vmor %vm480_vm13, %vm481_vm12 }
 0x1e0   :  { %v477_v36 = vsub.f32 1.0, %v476_v35 }
 0x1e2   :  { %v478_v38 = vmul.f32 %v5081_v34, %v477_v36 }
 0x1e4   :  { %v479_v41 = vadd.f32 %v5081_v34, %v478_v38 }
 0x1e6   :  { %v483_v45 = vsel %vm482_vm14, %v5081_v34, %v479_v41 }
 0x1e7   :  { %v488_v46 = vsel %vm485_vm15, %v487_v43, %v483_v45 }
 0x1e8   :  { %v494_v47 = vmul.f32 %v492_v42, %v488_v46  ;;  %v507_v61 = vmul.f32 0.0, %v488_v46 }
 0x1ea   :  { %496 = vrot.lane.b32.xlu1 %v494_v47, %s5737_s4 }
 0x23e   :  { %v434_v48 = vpop.permute.xlu0 %433 }
 0x23f   :  { %v436_v49 = vadd.f32 %v434_v48, %v6022_v57  ;;  %v501_v57 = vsub.f32 1.0, %v488_v46 }
 0x241   :  { %5082 = vtanh.f32 %v436_v49 }
 0x247   :  { %v5083_v50 = vpop.eup %5082 }
 0x248   :  { %440 = vrot.lane.b32.xlu2 %v5083_v50, %s5738_s8 }
 0x25c   :  { %v497_v51 = vpop.permute.xlu1 %496 }
 0x25d   :  { %v499_v52 = vadd.f32 %v497_v51, %v446_v25 }
 0x25f   :  { %5084 = vtanh.f32 %v499_v52 }
 0x265   :  { %v5085_v53 = vpop.eup %5084 }
 0x266   :  { %503 = vrot.lane.b32.xlu0 %v5085_v53, %s5738_s8 }
 0x2a2   :  { %v441_v55 = vpop.permute.xlu2 %440 }
 0x2a3   :  { %v443_v58 = vmul.f32 %v441_v55, %v438_v54 }
 0x2a5   :  { %v6036_v59 = vadd.f32 %v444_v56, %v443_v58 }
 0x2a7   :  { %510 = vrot.lane.b32.xlu1 %v6036_v59, %s5738_s8 }
 0x2d8   :  { %v504_v60 = vpop.permute.xlu0 %503 }
 0x2d9   :  { %v506_v62 = vmul.f32 %v504_v60, %v501_v57 }
 0x2db   :  { %v6040_v63 = vadd.f32 %v507_v61, %v506_v62 }
 0x2dd   :  { %516 = vrot.lane.b32.xlu2 %v6040_v63, %s5738_s8 }
 0x319   :  { %v511_v0 = vpop.permute.xlu1 %510 }
 0x31a   :  { %514 = vst.msk [vmem:[#allocation6] sm:$0x3] %vm513_vm0, %v511_v0  ;;  %4908 = vmatmul.msk.f32.vlgmr.msra.gmra.mxu3 %vm282_vm6, %v511_v0 }
 0x31b   :  { %803 = vmatpush.msra.mxu3 %v5926_v13 }
 0x31d   :  { %804 = vmatpush.msra.mxu3 %v5928_v14 }
 0x31f   :  { %805 = vmatpush.msra.mxu3 %v5933_v17 }
 0x321   :  { %806 = vmatpush.msra.mxu3 %v5939_v23 }
 0x337   :  { %v517_v1 = vpop.permute.xlu2 %516 }
 0x338   :  { %519 = vst.msk [vmem:[#allocation7 + $0x1e] sm:$0x3] %vm513_vm0, %v517_v1  ;;  %4910 = vmatmul.msk.f32.vlgmr.msrb.gmra.mxu3 %vm282_vm6, %v517_v1 }
 0x339   :  { %1071 = vmatpush.msrb.mxu3 %v5926_v13 }
 0x33b   :  { %1072 = vmatpush.msrb.mxu3 %v5928_v14 }
 0x33d   :  { %1073 = vmatpush.msrb.mxu3 %v5933_v17 }
 0x33f   :  { %1074 = vmatpush.msrb.mxu3 %v5939_v23 }
 0x39d   :  { %v540_v2 = vpop.f32.mrf.mxu3 }
 0x39e   :  { %v541_v3 = vadd.f32 %v5991_v40, %v540_v2 }
 0x3a0   :  { %564 = vrot.lane.b32.xlu1 %v541_v3, %s5737_s4  ;;  %v543_v7 = vadd.f32 %v541_v3, %v520_v6 }
 0x3a2   :  { %v4909_v8 = vmul.f32 -1.442695, %v543_v7 }
 0x3a4   :  { %5086 = vpow2.f32 %v4909_v8 }
 0x3aa   :  { %v5087_v9 = vpop.eup %5086 }
 0x3ab   :  { %v547_v10 = vadd.f32 1.0, %v5087_v9  ;;  %v654_v9 = vld [vmem:[#allocation2 + $0x4] sm:$0x3] }
 0x3ad   :  { %5088 = vrcp.f32 %v547_v10  ;;  %v559_v25 = vand.u32 2147483648, %v547_v10  ;;  %vm553_vm2 = vweird.f32 %v547_v10  ;;  %v557_v29 = vand.u32 2147483647, %v547_v10 }
 0x3af   :  { %v560_v33 = vor.u32 1.1754944e-38, %v559_v25  ;;  %vm558_vm4 = vcmp.eq.f32.partialorder %v557_v29, 8.507059e+37 }
 0x3b3   :  { %v5089_v11 = vpop.eup %5088 }
 0x3b4   :  { %v549_v19 = vmul.f32 %v5089_v11, %v547_v10  ;;  %vm554_vm1 = vweird.f32 %v5089_v11 }
 0x3b5   :  { %vm555_vm3 = vmor %vm553_vm2, %vm554_vm1 }
 0x3b6   :  { %v550_v21 = vsub.f32 1.0, %v549_v19 }
 0x3b8   :  { %v551_v22 = vmul.f32 %v5089_v11, %v550_v21 }
 0x3ba   :  { %v552_v24 = vadd.f32 %v5089_v11, %v551_v22 }
 0x3bb   :  { %v602_v4 = vpop.f32.mrf.mxu3 }
 0x3bc   :  { %v603_v5 = vadd.f32 %v6006_v44, %v602_v4  ;;  %v556_v31 = vsel %vm555_vm3, %v5089_v11, %v552_v24 }
 0x3bd   :  { %v561_v35 = vsel %vm558_vm4, %v560_v33, %v556_v31 }
 0x3be   :  { %626 = vrot.lane.b32.xlu0 %v603_v5, %s5737_s4  ;;  %v605_v16 = vadd.f32 %v603_v5, %v582_v12  ;;  %v574_v58 = vsub.f32 1.0, %v561_v35  ;;  %v580_v60 = vmul.f32 %v561_v35, %v6036_v59 }
 0x3c0   :  { %v4911_v20 = vmul.f32 -1.442695, %v605_v16 }
 0x3c2   :  { %5090 = vpow2.f32 %v4911_v20 }
 0x3c8   :  { %v5091_v27 = vpop.eup %5090 }
 0x3c9   :  { %v609_v32 = vadd.f32 1.0, %v5091_v27 }
 0x3cb   :  { %5092 = vrcp.f32 %v609_v32  ;;  %v621_v43 = vand.u32 2147483648, %v609_v32  ;;  %vm615_vm8 = vweird.f32 %v609_v32  ;;  %v619_v45 = vand.u32 2147483647, %v609_v32 }
 0x3cd   :  { %v622_v47 = vor.u32 1.1754944e-38, %v621_v43  ;;  %vm620_vm10 = vcmp.eq.f32.partialorder %v619_v45, 8.507059e+37 }
 0x3d1   :  { %v5093_v37 = vpop.eup %5092 }
 0x3d2   :  { %v611_v38 = vmul.f32 %v5093_v37, %v609_v32  ;;  %vm616_vm5 = vweird.f32 %v5093_v37 }
 0x3d3   :  { %vm617_vm9 = vmor %vm615_vm8, %vm616_vm5 }
 0x3d4   :  { %v612_v39 = vsub.f32 1.0, %v611_v38 }
 0x3d6   :  { %v613_v41 = vmul.f32 %v5093_v37, %v612_v39 }
 0x3d8   :  { %v614_v42 = vadd.f32 %v5093_v37, %v613_v41 }
 0x3da   :  { %v618_v46 = vsel %vm617_vm9, %v5093_v37, %v614_v42 }
 0x3db   :  { %v623_v49 = vsel %vm620_vm10, %v622_v47, %v618_v46 }
 0x3dc   :  { %v636_v0 = vsub.f32 1.0, %v623_v49  ;;  %v642_v2 = vmul.f32 %v623_v49, %v6040_v63 }
 0x412   :  { %v565_v34 = vpop.permute.xlu1 %564 }
 0x413   :  { %v567_v36 = vmul.f32 %v565_v34, %v561_v35 }
 0x415   :  { %569 = vrot.lane.b32.xlu0 %v567_v36, %s5737_s4 }
 0x430   :  { %v627_v48 = vpop.permute.xlu0 %626 }
 0x431   :  { %v629_v50 = vmul.f32 %v627_v48, %v623_v49 }
 0x433   :  { %631 = vrot.lane.b32.xlu2 %v629_v50, %s5737_s4 }
 0x487   :  { %v570_v51 = vpop.permute.xlu0 %569 }
 0x488   :  { %v572_v52 = vadd.f32 %v570_v51, %v520_v6 }
 0x48a   :  { %5094 = vtanh.f32 %v572_v52 }
 0x48d   :  { %v632_v53 = vpop.permute.xlu2 %631 }
 0x48e   :  { %v634_v54 = vadd.f32 %v632_v53, %v582_v12  ;;  %v716_v12 = vld [vmem:[#allocation3 + $0x1a] sm:$0x3] }
 0x490   :  { %v5095_v55 = vpop.eup %5094  ;;  %5096 = vtanh.f32 %v634_v54 }
 0x491   :  { %576 = vrot.lane.b32.xlu2 %v5095_v55, %s5738_s8 }
 0x496   :  { %v5097_v56 = vpop.eup %5096 }
 0x497   :  { %638 = vrot.lane.b32.xlu1 %v5097_v56, %s5738_s8 }
 0x4eb   :  { %v577_v57 = vpop.permute.xlu2 %576 }
 0x4ec   :  { %v579_v61 = vmul.f32 %v577_v57, %v574_v58 }
 0x4ee   :  { %v6065_v62 = vadd.f32 %v580_v60, %v579_v61 }
 0x4f0   :  { %645 = vrot.lane.b32.xlu1 %v6065_v62, %s5738_s8 }
 0x509   :  { %v639_v1 = vpop.permute.xlu1 %638 }
 0x50a   :  { %v641_v3 = vmul.f32 %v639_v1, %v636_v0 }
 0x50c   :  { %v6070_v4 = vadd.f32 %v642_v2, %v641_v3 }
 0x50e   :  { %650 = vrot.lane.b32.xlu0 %v6070_v4, %s5738_s8 }
 0x562   :  { %v646_v5 = vpop.permute.xlu1 %645 }
 0x563   :  { %648 = vst.msk [vmem:[#allocation6 + $0x2] sm:$0x3] %vm513_vm0, %v646_v5  ;;  %4912 = vmatmul.msk.f32.vlgmr.msrb.gmra.mxu1 %vm282_vm6, %v646_v5 }
 0x564   :  { %1205 = vmatpush.msrb.mxu1 %v5926_v13 }
 0x566   :  { %1206 = vmatpush.msrb.mxu1 %v5928_v14 }
 0x568   :  { %1207 = vmatpush.msrb.mxu1 %v5933_v17 }
 0x56a   :  { %1208 = vmatpush.msrb.mxu1 %v5939_v23 }
 0x580   :  { %v651_v59 = vpop.permute.xlu0 %650 }
 0x581   :  { %653 = vst.msk [vmem:[#allocation7 + $0x1c] sm:$0x3] %vm513_vm0, %v651_v59  ;;  %4914 = vmatmul.msk.f32.vlgmr.msrb.gmra.mxu2 %vm282_vm6, %v651_v59 }
 0x582   :  { %1267 = vmatpush.msrb.mxu2 %v5931_v15 }
 0x584   :  { %1268 = vmatpush.msrb.mxu2 %v5935_v18 }
 0x586   :  { %1269 = vmatpush.msrb.mxu2 %v5943_v26 }
 0x588   :  { %1270 = vmatpush.msrb.mxu2 %v5951_v30 }
 0x5e0   :  { %v674_v63 = vpop.f32.mrf.mxu1 }
 0x5e1   :  { %v675_v6 = vadd.f32 %v5991_v40, %v674_v63 }
 0x5e3   :  { %698 = vrot.lane.b32.xlu0 %v675_v6, %s5737_s4  ;;  %v677_v10 = vadd.f32 %v675_v6, %v654_v9 }
 0x5e5   :  { %v4913_v11 = vmul.f32 -1.442695, %v677_v10 }
 0x5e7   :  { %5098 = vpow2.f32 %v4913_v11 }
 0x5ed   :  { %v5099_v19 = vpop.eup %5098 }
 0x5ee   :  { %v681_v21 = vadd.f32 1.0, %v5099_v19 }
 0x5f0   :  { %v693_v35 = vand.u32 2147483648, %v681_v21  ;;  %vm687_vm12 = vweird.f32 %v681_v21  ;;  %v691_v36 = vand.u32 2147483647, %v681_v21 }
 0x5f2   :  { %v694_v39 = vor.u32 1.1754944e-38, %v693_v35  ;;  %vm692_vm14 = vcmp.eq.f32.partialorder %v691_v36, 8.507059e+37 }
 0x604   :  { %v736_v7 = vpop.f32.mrf.mxu2 }
 0x605   :  { %v737_v8 = vadd.f32 %v6006_v44, %v736_v7 }
 0x607   :  { %760 = vrot.lane.b32.xlu2 %v737_v8, %s5737_s4  ;;  %v739_v16 = vadd.f32 %v737_v8, %v716_v12 }
 0x609   :  { %v4915_v20 = vmul.f32 -1.442695, %v739_v16 }
 0x60b   :  { %5100 = vpow2.f32 %v4915_v20 }
 0x60c   :  { %5102 = vrcp.f32 %v681_v21 }
 0x611   :  { %v5101_v22 = vpop.eup %5100 }
 0x612   :  { %v5103_v24 = vpop.eup %5102  ;;  %v743_v25 = vadd.f32 1.0, %v5101_v22 }
 0x613   :  { %v683_v27 = vmul.f32 %v5103_v24, %v681_v21  ;;  %vm688_vm11 = vweird.f32 %v5103_v24 }
 0x614   :  { %5104 = vrcp.f32 %v743_v25  ;;  %vm689_vm13 = vmor %vm687_vm12, %vm688_vm11  ;;  %v755_v47 = vand.u32 2147483648, %v743_v25  ;;  %vm749_vm1 = vweird.f32 %v743_v25  ;;  %v753_v48 = vand.u32 2147483647, %v743_v25 }
 0x615   :  { %v684_v29 = vsub.f32 1.0, %v683_v27 }
 0x616   :  { %v756_v50 = vor.u32 1.1754944e-38, %v755_v47  ;;  %vm754_vm3 = vcmp.eq.f32.partialorder %v753_v48, 8.507059e+37 }
 0x617   :  { %v685_v31 = vmul.f32 %v5103_v24, %v684_v29 }
 0x619   :  { %v686_v33 = vadd.f32 %v5103_v24, %v685_v31 }
 0x61a   :  { %v5105_v32 = vpop.eup %5104 }
 0x61b   :  { %v745_v34 = vmul.f32 %v5105_v32, %v743_v25  ;;  %v690_v37 = vsel %vm689_vm13, %v5103_v24, %v686_v33  ;;  %vm750_vm15 = vweird.f32 %v5105_v32  ;;  %v850_v24 = vld [vmem:[#allocation3 + $0x18] sm:$0x3] }
 0x61c   :  { %v695_v42 = vsel %vm692_vm14, %v694_v39, %v690_v37  ;;  %vm751_vm2 = vmor %vm749_vm1, %vm750_vm15 }
 0x61d   :  { %v746_v38 = vsub.f32 1.0, %v745_v34  ;;  %v708_v61 = vsub.f32 1.0, %v695_v42  ;;  %v714_v1 = vmul.f32 %v695_v42, %v6065_v62 }
 0x61f   :  { %v747_v45 = vmul.f32 %v5105_v32, %v746_v38 }
 0x621   :  { %v748_v46 = vadd.f32 %v5105_v32, %v747_v45 }
 0x623   :  { %v752_v49 = vsel %vm751_vm2, %v5105_v32, %v748_v46 }
 0x624   :  { %v757_v51 = vsel %vm754_vm3, %v756_v50, %v752_v49 }
 0x625   :  { %v770_v5 = vsub.f32 1.0, %v757_v51  ;;  %v776_v63 = vmul.f32 %v757_v51, %v6070_v4 }
 0x655   :  { %v699_v41 = vpop.permute.xlu0 %698 }
 0x656   :  { %v701_v43 = vmul.f32 %v699_v41, %v695_v42 }
 0x658   :  { %703 = vrot.lane.b32.xlu2 %v701_v43, %s5737_s4 }
 0x661   :  { %v761_v52 = vpop.permute.xlu2 %760 }
 0x662   :  { %v763_v53 = vmul.f32 %v761_v52, %v757_v51 }
 0x664   :  { %765 = vrot.lane.b32.xlu1 %v763_v53, %s5737_s4 }
 0x6b2   :  { %v704_v54 = vpop.permute.xlu2 %703 }
 0x6b3   :  { %v706_v55 = vadd.f32 %v704_v54, %v654_v9 }
 0x6b5   :  { %5106 = vtanh.f32 %v706_v55 }
 0x6bb   :  { %v5107_v56 = vpop.eup %5106 }
 0x6bc   :  { %710 = vrot.lane.b32.xlu1 %v5107_v56, %s5738_s8 }
 0x6d6   :  { %v766_v58 = vpop.permute.xlu1 %765 }
 0x6d7   :  { %v768_v57 = vadd.f32 %v766_v58, %v716_v12  ;;  %v788_v12 = vld [vmem:[#allocation2 + $0x6] sm:$0x3] }
 0x6d9   :  { %5108 = vtanh.f32 %v768_v57 }
 0x6df   :  { %v5109_v60 = vpop.eup %5108 }
 0x6e0   :  { %772 = vrot.lane.b32.xlu0 %v5109_v60, %s5738_s8 }
 0x72e   :  { %v711_v0 = vpop.permute.xlu1 %710 }
 0x72f   :  { %v713_v2 = vmul.f32 %v711_v0, %v708_v61 }
 0x731   :  { %v6095_v3 = vadd.f32 %v714_v1, %v713_v2 }
 0x733   :  { %779 = vrot.lane.b32.xlu0 %v6095_v3, %s5738_s8 }
 0x752   :  { %v773_v59 = vpop.permute.xlu0 %772 }
 0x753   :  { %v775_v6 = vmul.f32 %v773_v59, %v770_v5 }
 0x755   :  { %v6100_v7 = vadd.f32 %v776_v63, %v775_v6 }
 0x757   :  { %784 = vrot.lane.b32.xlu2 %v6100_v7, %s5738_s8 }
 0x7a5   :  { %v780_v8 = vpop.permute.xlu0 %779 }
 0x7a6   :  { %782 = vst.msk [vmem:[#allocation6 + $0x4] sm:$0x3] %vm513_vm0, %v780_v8  ;;  %4916 = vmatmul.msk.f32.vlgmr.msra.gmra.mxu3 %vm282_vm6, %v780_v8 }
 0x7a7   :  { %1339 = vmatpush.msra.mxu3 %v5926_v13 }
 0x7a9   :  { %1340 = vmatpush.msra.mxu3 %v5928_v14 }
 0x7ab   :  { %1341 = vmatpush.msra.mxu3 %v5933_v17 }
 0x7ad   :  { %1342 = vmatpush.msra.mxu3 %v5939_v23 }
 0x7b1   :  { %v785_v62 = vpop.permute.xlu2 %784 }
 0x7b2   :  { %787 = vst.msk [vmem:[#allocation7 + $0x1a] sm:$0x3] %vm513_vm0, %v785_v62  ;;  %4918 = vmatmul.msk.f32.vlgmr.msrb.gmra.mxu0 %vm282_vm6, %v785_v62 }
 0x7b3   :  { %1401 = vmatpush.msrb.mxu0 %v5931_v15 }
 0x7b5   :  { %1402 = vmatpush.msrb.mxu0 %v5935_v18 }
 0x7b7   :  { %1403 = vmatpush.msrb.mxu0 %v5943_v26 }
 0x7b9   :  { %1404 = vmatpush.msrb.mxu0 %v5951_v30 }
 0x829   :  { %v808_v4 = vpop.f32.mrf.mxu3 }
 0x82a   :  { %v809_v9 = vadd.f32 %v5991_v40, %v808_v4 }
 0x82c   :  { %832 = vrot.lane.b32.xlu2 %v809_v9, %s5737_s4  ;;  %v811_v16 = vadd.f32 %v809_v9, %v788_v12 }
 0x82e   :  { %v4917_v19 = vmul.f32 -1.442695, %v811_v16 }
 0x82f   :  { %v870_v10 = vpop.f32.mrf.mxu0 }
 0x830   :  { %v871_v11 = vadd.f32 %v6006_v44, %v870_v10  ;;  %5110 = vpow2.f32 %v4917_v19 }
 0x832   :  { %894 = vrot.lane.b32.xlu1 %v871_v11, %s5737_s4  ;;  %v873_v25 = vadd.f32 %v871_v11, %v850_v24 }
 0x834   :  { %v4919_v29 = vmul.f32 -1.442695, %v873_v25 }
 0x836   :  { %v5111_v20 = vpop.eup %5110 }
 0x837   :  { %v815_v21 = vadd.f32 1.0, %v5111_v20  ;;  %v984_v20 = vld [vmem:[#allocation3 + $0x16] sm:$0x3] }
 0x839   :  { %5112 = vrcp.f32 %v815_v21  ;;  %v827_v34 = vand.u32 2147483648, %v815_v21  ;;  %vm821_vm5 = vweird.f32 %v815_v21  ;;  %v825_v36 = vand.u32 2147483647, %v815_v21 }
 0x83a   :  { %5114 = vpow2.f32 %v4919_v29 }
 0x83b   :  { %v828_v39 = vor.u32 1.1754944e-38, %v827_v34  ;;  %vm826_vm9 = vcmp.eq.f32.partialorder %v825_v36, 8.507059e+37 }
 0x83f   :  { %v5113_v22 = vpop.eup %5112 }
 0x840   :  { %v817_v27 = vmul.f32 %v5113_v22, %v815_v21  ;;  %vm822_vm4 = vweird.f32 %v5113_v22  ;;  %v5115_v35 = vpop.eup %5114 }
 0x841   :  { %vm823_vm8 = vmor %vm821_vm5, %vm822_vm4  ;;  %v877_v38 = vadd.f32 1.0, %v5115_v35 }
 0x842   :  { %v818_v31 = vsub.f32 1.0, %v817_v27 }
 0x843   :  { %5116 = vrcp.f32 %v877_v38  ;;  %v889_v50 = vand.u32 2147483648, %v877_v38  ;;  %vm883_vm11 = vweird.f32 %v877_v38  ;;  %v887_v51 = vand.u32 2147483647, %v877_v38 }
 0x844   :  { %v819_v32 = vmul.f32 %v5113_v22, %v818_v31 }
 0x845   :  { %v890_v53 = vor.u32 1.1754944e-38, %v889_v50  ;;  %vm888_vm13 = vcmp.eq.f32.partialorder %v887_v51, 8.507059e+37 }
 0x846   :  { %v820_v33 = vadd.f32 %v5113_v22, %v819_v32 }
 0x848   :  { %v824_v37 = vsel %vm823_vm8, %v5113_v22, %v820_v33 }
 0x849   :  { %v829_v41 = vsel %vm826_vm9, %v828_v39, %v824_v37  ;;  %v5117_v45 = vpop.eup %5116 }
 0x84a   :  { %v879_v46 = vmul.f32 %v5117_v45, %v877_v38  ;;  %vm884_vm10 = vweird.f32 %v5117_v45  ;;  %v842_v2 = vsub.f32 1.0, %v829_v41  ;;  %v848_v59 = vmul.f32 %v829_v41, %v6095_v3 }
 0x84b   :  { %vm885_vm12 = vmor %vm883_vm11, %vm884_vm10 }
 0x84c   :  { %v880_v47 = vsub.f32 1.0, %v879_v46 }
 0x84e   :  { %v881_v48 = vmul.f32 %v5117_v45, %v880_v47 }
 0x850   :  { %v882_v49 = vadd.f32 %v5117_v45, %v881_v48 }
 0x852   :  { %v886_v52 = vsel %vm885_vm12, %v5117_v45, %v882_v49 }
 0x853   :  { %v891_v55 = vsel %vm888_vm13, %v890_v53, %v886_v52 }
 0x854   :  { %v904_v8 = vsub.f32 1.0, %v891_v55  ;;  %v910_v4 = vmul.f32 %v891_v55, %v6100_v7  ;;  %v922_v7 = vld [vmem:[#allocation2 + $0x8] sm:$0x3] }
 0x886   :  { %v833_v42 = vpop.permute.xlu2 %832 }
 0x887   :  { %v835_v43 = vmul.f32 %v833_v42, %v829_v41 }
 0x889   :  { %837 = vrot.lane.b32.xlu1 %v835_v43, %s5737_s4 }
 0x8a4   :  { %v895_v54 = vpop.permute.xlu1 %894 }
 0x8a5   :  { %v897_v56 = vmul.f32 %v895_v54, %v891_v55 }
 0x8a7   :  { %899 = vrot.lane.b32.xlu0 %v897_v56, %s5737_s4 }
 0x8fb   :  { %v838_v58 = vpop.permute.xlu1 %837 }
 0x8fc   :  { %v840_v57 = vadd.f32 %v838_v58, %v788_v12 }
 0x8fe   :  { %5118 = vtanh.f32 %v840_v57 }
 0x904   :  { %v5119_v60 = vpop.eup %5118 }
 0x905   :  { %844 = vrot.lane.b32.xlu0 %v5119_v60, %s5738_s8 }
 0x919   :  { %v900_v61 = vpop.permute.xlu0 %899 }
 0x91a   :  { %v902_v0 = vadd.f32 %v900_v61, %v850_v24 }
 0x91c   :  { %5120 = vtanh.f32 %v902_v0 }
 0x922   :  { %v5121_v1 = vpop.eup %5120 }
 0x923   :  { %906 = vrot.lane.b32.xlu2 %v5121_v1, %s5738_s8 }
 0x977   :  { %v845_v5 = vpop.permute.xlu0 %844 }
 0x978   :  { %v847_v63 = vmul.f32 %v845_v5, %v842_v2 }
 0x97a   :  { %v6125_v6 = vadd.f32 %v848_v59, %v847_v63 }
 0x97c   :  { %913 = vrot.lane.b32.xlu2 %v6125_v6, %s5738_s8 }
 0x97d   :  { %v907_v62 = vpop.permute.xlu2 %906 }
 0x97e   :  { %v909_v9 = vmul.f32 %v907_v62, %v904_v8 }
 0x980   :  { %v6130_v10 = vadd.f32 %v910_v4, %v909_v9  ;;  %v6169_v4 = vld [vmem:[#allocation11 + $0x10] sm:$0xff]  ;;  %v6172_v9 = vld [vmem:[#allocation11 + $0x8] sm:$0xff] }
 0x982   :  { %918 = vrot.lane.b32.xlu1 %v6130_v10, %s5738_s8 }
 0x9d6   :  { %v914_v11 = vpop.permute.xlu2 %913 }
 0x9d7   :  { %916 = vst.msk [vmem:[#allocation6 + $0x6] sm:$0x3] %vm513_vm0, %v914_v11  ;;  %4920 = vmatmul.msk.f32.vlgmr.msra.gmra.mxu1 %vm282_vm6, %v914_v11 }
 0x9d8   :  { %1473 = vmatpush.msra.mxu1 %v5926_v13 }
 0x9da   :  { %1474 = vmatpush.msra.mxu1 %v5928_v14 }
 0x9dc   :  { %1475 = vmatpush.msra.mxu1 %v5933_v17 }
 0x9de   :  { %1476 = vmatpush.msra.mxu1 %v5939_v23 }
 0x9f4   :  { %v919_v3 = vpop.permute.xlu1 %918 }
 0x9f5   :  { %921 = vst.msk [vmem:[#allocation7 + $0x18] sm:$0x3] %vm513_vm0, %v919_v3  ;;  %4922 = vmatmul.msk.f32.vlgmr.msra.gmra.mxu2 %vm282_vm6, %v919_v3  ;;  %v6180_v3 = vld [vmem:[#allocation14 + $0x18] sm:$0xff] }
 0x9f6   :  { %1535 = vmatpush.msra.mxu2 %v5931_v15 }
 0x9f8   :  { %1536 = vmatpush.msra.mxu2 %v5935_v18 }
 0x9fa   :  { %1537 = vmatpush.msra.mxu2 %v5943_v26 }
 0x9fc   :  { %1538 = vmatpush.msra.mxu2 %v5951_v30 }
 0xa54   :  { %v942_v13 = vpop.f32.mrf.mxu1 }
 0xa55   :  { %v943_v14 = vadd.f32 %v5991_v40, %v942_v13  ;;  %v6183_v13 = vld [vmem:[#allocation14 + $0x10] sm:$0xff] }
 0xa57   :  { %966 = vrot.lane.b32.xlu1 %v943_v14, %s5737_s4  ;;  %v945_v12 = vadd.f32 %v943_v14, %v922_v7  ;;  %v6186_v14 = vld [vmem:[#allocation14 + $0x8] sm:$0xff] }
 0xa59   :  { %v4921_v16 = vmul.f32 -1.442695, %v945_v12 }
 0xa5b   :  { %5122 = vpow2.f32 %v4921_v16 }
 0xa61   :  { %v5123_v15 = vpop.eup %5122 }
 0xa62   :  { %v949_v18 = vadd.f32 1.0, %v5123_v15  ;;  %v1056_v15 = vld [vmem:[#allocation2 + $0xa] sm:$0x3] }
 0xa64   :  { %5124 = vrcp.f32 %v949_v18  ;;  %v961_v27 = vand.u32 2147483648, %v949_v18  ;;  %vm955_vm15 = vweird.f32 %v949_v18  ;;  %v959_v29 = vand.u32 2147483647, %v949_v18 }
 0xa66   :  { %v962_v32 = vor.u32 1.1754944e-38, %v961_v27  ;;  %vm960_vm2 = vcmp.eq.f32.partialorder %v959_v29, 8.507059e+37 }
 0xa6a   :  { %v5125_v26 = vpop.eup %5124 }
 0xa6b   :  { %v951_v19 = vmul.f32 %v5125_v26, %v949_v18  ;;  %vm956_vm14 = vweird.f32 %v5125_v26 }
 0xa6c   :  { %vm957_vm1 = vmor %vm955_vm15, %vm956_vm14 }
 0xa6d   :  { %v952_v30 = vsub.f32 1.0, %v951_v19  ;;  %v1118_v19 = vld [vmem:[#allocation3 + $0x14] sm:$0x3] }
 0xa6f   :  { %v953_v22 = vmul.f32 %v5125_v26, %v952_v30 }
 0xa71   :  { %v954_v25 = vadd.f32 %v5125_v26, %v953_v22 }
 0xa73   :  { %v958_v31 = vsel %vm957_vm1, %v5125_v26, %v954_v25 }
 0xa74   :  { %v963_v34 = vsel %vm960_vm2, %v962_v32, %v958_v31 }
 0xa75   :  { %v976_v57 = vsub.f32 1.0, %v963_v34  ;;  %v982_v61 = vmul.f32 %v963_v34, %v6125_v6  ;;  %v6166_v6 = vld [vmem:[#allocation11 + $0x18] sm:$0xff] }
 0xa78   :  { %v1004_v17 = vpop.f32.mrf.mxu2 }
 0xa79   :  { %v1005_v23 = vadd.f32 %v6006_v44, %v1004_v17  ;;  %v6189_v17 = vld [vmem:[#allocation14] sm:$0xff] }
 0xa7b   :  { %1028 = vrot.lane.b32.xlu0 %v1005_v23, %s5737_s4  ;;  %v1007_v21 = vadd.f32 %v1005_v23, %v984_v20 }
 0xa7d   :  { %v4923_v24 = vmul.f32 -1.442695, %v1007_v21 }
 0xa7f   :  { %5126 = vpow2.f32 %v4923_v24 }
 0xa85   :  { %v5127_v35 = vpop.eup %5126 }
 0xa86   :  { %v1011_v37 = vadd.f32 1.0, %v5127_v35 }
 0xa88   :  { %5128 = vrcp.f32 %v1011_v37  ;;  %v1023_v45 = vand.u32 2147483648, %v1011_v37  ;;  %vm1017_vm4 = vweird.f32 %v1011_v37  ;;  %v1021_v46 = vand.u32 2147483647, %v1011_v37 }
 0xa8a   :  { %v1024_v48 = vor.u32 1.1754944e-38, %v1023_v45  ;;  %vm1022_vm8 = vcmp.eq.f32.partialorder %v1021_v46, 8.507059e+37 }
 0xa8e   :  { %v5129_v38 = vpop.eup %5128 }
 0xa8f   :  { %v1013_v39 = vmul.f32 %v5129_v38, %v1011_v37  ;;  %vm1018_vm3 = vweird.f32 %v5129_v38 }
 0xa90   :  { %vm1019_vm5 = vmor %vm1017_vm4, %vm1018_vm3 }
 0xa91   :  { %v1014_v41 = vsub.f32 1.0, %v1013_v39 }
 0xa93   :  { %v1015_v42 = vmul.f32 %v5129_v38, %v1014_v41 }
 0xa95   :  { %v1016_v43 = vadd.f32 %v5129_v38, %v1015_v42 }
 0xa97   :  { %v1020_v47 = vsel %vm1019_vm5, %v5129_v38, %v1016_v43 }
 0xa98   :  { %v1025_v50 = vsel %vm1022_vm8, %v1024_v48, %v1020_v47 }
 0xa99   :  { %v1038_v2 = vsub.f32 1.0, %v1025_v50  ;;  %v1044_v59 = vmul.f32 %v1025_v50, %v6130_v10  ;;  %v6175_v10 = vld [vmem:[#allocation11] sm:$0xff] }
 0xac9   :  { %v967_v33 = vpop.permute.xlu1 %966 }
 0xaca   :  { %v969_v36 = vmul.f32 %v967_v33, %v963_v34 }
 0xacc   :  { %971 = vrot.lane.b32.xlu0 %v969_v36, %s5737_s4 }
 0xaed   :  { %v1029_v49 = vpop.permute.xlu0 %1028 }
 0xaee   :  { %v1031_v51 = vmul.f32 %v1029_v49, %v1025_v50 }
 0xaf0   :  { %1033 = vrot.lane.b32.xlu2 %v1031_v51, %s5737_s4 }
 0xb3e   :  { %v972_v52 = vpop.permute.xlu0 %971 }
 0xb3f   :  { %v974_v53 = vadd.f32 %v972_v52, %v922_v7 }
 0xb41   :  { %5130 = vtanh.f32 %v974_v53 }
 0xb47   :  { %v5131_v54 = vpop.eup %5130 }
 0xb48   :  { %978 = vrot.lane.b32.xlu2 %v5131_v54, %s5738_s8 }
 0xb4a   :  { %v1034_v55 = vpop.permute.xlu2 %1033 }
 0xb4b   :  { %v1036_v56 = vadd.f32 %v1034_v55, %v984_v20 }
 0xb4d   :  { %5132 = vtanh.f32 %v1036_v56 }
 0xb53   :  { %v5133_v58 = vpop.eup %5132 }
 0xb54   :  { %1040 = vrot.lane.b32.xlu1 %v5133_v58, %s5738_s8 }
 0xba2   :  { %v979_v60 = vpop.permute.xlu2 %978 }
 0xba3   :  { %v981_v0 = vmul.f32 %v979_v60, %v976_v57 }
 0xba5   :  { %v6155_v1 = vadd.f32 %v982_v61, %v981_v0 }
 0xba7   :  { %1047 = vrot.lane.b32.xlu1 %v6155_v1, %s5738_s8 }
 0xbc6   :  { %v1041_v5 = vpop.permute.xlu1 %1040 }
 0xbc7   :  { %v1043_v63 = vmul.f32 %v1041_v5, %v1038_v2 }
 0xbc9   :  { %v6160_v8 = vadd.f32 %v1044_v59, %v1043_v63 }
 0xbcb   :  { %1052 = vrot.lane.b32.xlu0 %v6160_v8, %s5738_s8 }
 0xc19   :  { %v1048_v62 = vpop.permute.xlu1 %1047 }
 0xc1a   :  { %1050 = vst.msk [vmem:[#allocation6 + $0x8] sm:$0x3] %vm513_vm0, %v1048_v62  ;;  %4924 = vmatmul.msk.f32.vlgmr.msrb.gmra.mxu3 %vm282_vm6, %v1048_v62 }
 0xc1b   :  { %1607 = vmatpush.msrb.mxu3 %v6166_v6 }
 0xc1d   :  { %1608 = vmatpush.msrb.mxu3 %v6169_v4 }
 0xc1f   :  { %1609 = vmatpush.msrb.mxu3 %v6172_v9 }
 0xc21   :  { %1610 = vmatpush.msrb.mxu3 %v6175_v10 }
 0xc3d   :  { %v1053_v11 = vpop.permute.xlu0 %1052 }
 0xc3e   :  { %1055 = vst.msk [vmem:[#allocation7 + $0x16] sm:$0x3] %vm513_vm0, %v1053_v11  ;;  %4926 = vmatmul.msk.f32.vlgmr.msra.gmra.mxu0 %vm282_vm6, %v1053_v11 }
 0xc3f   :  { %1669 = vmatpush.msra.mxu0 %v6180_v3 }
 0xc41   :  { %1670 = vmatpush.msra.mxu0 %v6183_v13 }
 0xc43   :  { %1671 = vmatpush.msra.mxu0 %v6186_v14 }
 0xc45   :  { %1672 = vmatpush.msra.mxu0 %v6189_v17 }
 0xc9d   :  { %v1076_v23 = vpop.f32.mrf.mxu3 }
 0xc9e   :  { %v1077_v7 = vadd.f32 %v5991_v40, %v1076_v23 }
 0xca0   :  { %1100 = vrot.lane.b32.xlu0 %v1077_v7, %s5737_s4  ;;  %v1079_v18 = vadd.f32 %v1077_v7, %v1056_v15 }
 0xca2   :  { %v4925_v26 = vmul.f32 -1.442695, %v1079_v18  ;;  %v6232_v18 = vld [vmem:[%s7064_s9] ss:$0 sm:$0xff] }
 0xca4   :  { %5134 = vpow2.f32 %v4925_v26 }
 0xcaa   :  { %v5135_v21 = vpop.eup %5134 }
 0xcab   :  { %v1083_v22 = vadd.f32 1.0, %v5135_v21 }
 0xcad   :  { %v1095_v35 = vand.u32 2147483648, %v1083_v22  ;;  %vm1089_vm10 = vweird.f32 %v1083_v22  ;;  %v1093_v36 = vand.u32 2147483647, %v1083_v22 }
 0xcaf   :  { %v1096_v39 = vor.u32 1.1754944e-38, %v1095_v35  ;;  %vm1094_vm12 = vcmp.eq.f32.partialorder %v1093_v36, 8.507059e+37 }
 0xcbb   :  { %v1138_v12 = vpop.f32.mrf.mxu0 }
 0xcbc   :  { %v1139_v16 = vadd.f32 %v6006_v44, %v1138_v12  ;;  %v6225_v12 = vld [vmem:[%s7060_s5] ss:$0 sm:$0xff] }
 0xcbe   :  { %1162 = vrot.lane.b32.xlu2 %v1139_v16, %s5737_s4  ;;  %v1141_v30 = vadd.f32 %v1139_v16, %v1118_v19 }
 0xcc0   :  { %v4927_v20 = vmul.f32 -1.442695, %v1141_v30 }
 0xcc2   :  { %5136 = vpow2.f32 %v4927_v20 }
 0xcc3   :  { %5138 = vrcp.f32 %v1083_v22 }
 0xcc8   :  { %v5137_v24 = vpop.eup %5136 }
 0xcc9   :  { %v1145_v40 = vadd.f32 1.0, %v5137_v24  ;;  %v5139_v25 = vpop.eup %5138 }
 0xcca   :  { %v1085_v27 = vmul.f32 %v5139_v25, %v1083_v22  ;;  %vm1090_vm9 = vweird.f32 %v5139_v25 }
 0xccb   :  { %5140 = vrcp.f32 %v1145_v40  ;;  %vm1091_vm11 = vmor %vm1089_vm10, %vm1090_vm9  ;;  %v1157_v45 = vand.u32 2147483648, %v1145_v40  ;;  %vm1151_vm14 = vweird.f32 %v1145_v40  ;;  %v1155_v47 = vand.u32 2147483647, %v1145_v40 }
 0xccc   :  { %v1086_v44 = vsub.f32 1.0, %v1085_v27  ;;  %v1252_v27 = vld [vmem:[#allocation3 + $0x12] sm:$0x3] }
 0xccd   :  { %v1158_v49 = vor.u32 1.1754944e-38, %v1157_v45  ;;  %vm1156_vm1 = vcmp.eq.f32.partialorder %v1155_v47, 8.507059e+37 }
 0xcce   :  { %v1087_v32 = vmul.f32 %v5139_v25, %v1086_v44 }
 0xcd0   :  { %v1088_v34 = vadd.f32 %v5139_v25, %v1087_v32 }
 0xcd1   :  { %v5141_v29 = vpop.eup %5140 }
 0xcd2   :  { %v1147_v31 = vmul.f32 %v5141_v29, %v1145_v40  ;;  %v1092_v38 = vsel %vm1091_vm11, %v5139_v25, %v1088_v34  ;;  %vm1152_vm13 = vweird.f32 %v5141_v29 }
 0xcd3   :  { %v1097_v43 = vsel %vm1094_vm12, %v1096_v39, %v1092_v38  ;;  %vm1153_vm15 = vmor %vm1151_vm14, %vm1152_vm13 }
 0xcd4   :  { %v1148_v33 = vsub.f32 1.0, %v1147_v31  ;;  %v1110_v60 = vsub.f32 1.0, %v1097_v43  ;;  %v1116_v0 = vmul.f32 %v1097_v43, %v6155_v1 }
 0xcd6   :  { %v1149_v37 = vmul.f32 %v5141_v29, %v1148_v33 }
 0xcd8   :  { %v1150_v41 = vadd.f32 %v5141_v29, %v1149_v37 }
 0xcda   :  { %v1154_v48 = vsel %vm1153_vm15, %v5141_v29, %v1150_v41 }
 0xcdb   :  { %v1159_v50 = vsel %vm1156_vm1, %v1158_v49, %v1154_v48 }
 0xcdc   :  { %v1172_v59 = vsub.f32 1.0, %v1159_v50  ;;  %v1178_v62 = vmul.f32 %v1159_v50, %v6160_v8 }
 0xd12   :  { %v1101_v42 = vpop.permute.xlu0 %1100 }
 0xd13   :  { %v1103_v46 = vmul.f32 %v1101_v42, %v1097_v43 }
 0xd15   :  { %1105 = vrot.lane.b32.xlu2 %v1103_v46, %s5737_s4 }
 0xd18   :  { %v1163_v51 = vpop.permute.xlu2 %1162 }
 0xd19   :  { %v1165_v52 = vmul.f32 %v1163_v51, %v1159_v50 }
 0xd1b   :  { %1167 = vrot.lane.b32.xlu1 %v1165_v52, %s5737_s4 }
 0xd6f   :  { %v1106_v53 = vpop.permute.xlu2 %1105 }
 0xd70   :  { %v1108_v54 = vadd.f32 %v1106_v53, %v1056_v15 }
 0xd72   :  { %5142 = vtanh.f32 %v1108_v54 }
 0xd78   :  { %v5143_v55 = vpop.eup %5142 }
 0xd79   :  { %1112 = vrot.lane.b32.xlu1 %v5143_v55, %s5738_s8 }
 0xd8d   :  { %v1168_v56 = vpop.permute.xlu1 %1167 }
 0xd8e   :  { %v1170_v58 = vadd.f32 %v1168_v56, %v1118_v19  ;;  %v1190_v19 = vld [vmem:[#allocation2 + $0xc] sm:$0x3] }
 0xd90   :  { %5144 = vtanh.f32 %v1170_v58 }
 0xd96   :  { %v5145_v57 = vpop.eup %5144 }
 0xd97   :  { %1174 = vrot.lane.b32.xlu0 %v5145_v57, %s5738_s8 }
 0xdeb   :  { %v1113_v61 = vpop.permute.xlu1 %1112 }
 0xdec   :  { %v1115_v2 = vmul.f32 %v1113_v61, %v1110_v60 }
 0xdee   :  { %v6201_v5 = vadd.f32 %v1116_v0, %v1115_v2 }
 0xdf0   :  { %1181 = vrot.lane.b32.xlu0 %v6201_v5, %s5738_s8 }
 0xe09   :  { %v1175_v63 = vpop.permute.xlu0 %1174 }
 0xe0a   :  { %v1177_v11 = vmul.f32 %v1175_v63, %v1172_v59 }
 0xe0c   :  { %v6206_v23 = vadd.f32 %v1178_v62, %v1177_v11 }
 0xe0e   :  { %1186 = vrot.lane.b32.xlu2 %v6206_v23, %s5738_s8 }
 0xe62   :  { %v1182_v7 = vpop.permute.xlu0 %1181 }
 0xe63   :  { %1184 = vst.msk [vmem:[#allocation6 + $0xa] sm:$0x3] %vm513_vm0, %v1182_v7  ;;  %4928 = vmatmul.msk.f32.vlgmr.msrb.gmra.mxu1 %vm282_vm6, %v1182_v7 }
 0xe64   :  { %1741 = vmatpush.msrb.mxu1 %v6166_v6 }
 0xe66   :  { %1742 = vmatpush.msrb.mxu1 %v6169_v4 }
 0xe68   :  { %v1187_v1 = vpop.permute.xlu2 %1186  ;;  %1743 = vmatpush.msrb.mxu1 %v6172_v9 }
 0xe69   :  { %1189 = vst.msk [vmem:[#allocation7 + $0x14] sm:$0x3] %vm513_vm0, %v1187_v1  ;;  %4930 = vmatmul.msk.f32.vlgmr.msrb.gmra.mxu2 %vm282_vm6, %v1187_v1 }
 0xe6a   :  { %1744 = vmatpush.msrb.mxu1 %v6175_v10  ;;  %1803 = vmatpush.msrb.mxu2 %v6180_v3 }
 0xe6c   :  { %1804 = vmatpush.msrb.mxu2 %v6183_v13 }
 0xe6e   :  { %1805 = vmatpush.msrb.mxu2 %v6186_v14 }
 0xe70   :  { %1806 = vmatpush.msrb.mxu2 %v6189_v17 }
 0xee0   :  { %v1210_v8 = vpop.f32.mrf.mxu1 }
 0xee1   :  { %v1211_v16 = vadd.f32 %v6225_v12, %v1210_v8 }
 0xee3   :  { %1234 = vrot.lane.b32.xlu2 %v1211_v16, %s5737_s4  ;;  %v1213_v30 = vadd.f32 %v1211_v16, %v1190_v19 }
 0xee5   :  { %v4929_v20 = vmul.f32 -1.442695, %v1213_v30 }
 0xee7   :  { %5146 = vpow2.f32 %v4929_v20 }
 0xeec   :  { %v1272_v15 = vpop.f32.mrf.mxu2 }
 0xeed   :  { %v1273_v26 = vadd.f32 %v6232_v18, %v1272_v15  ;;  %v5147_v21 = vpop.eup %5146 }
 0xeee   :  { %v1217_v22 = vadd.f32 1.0, %v5147_v21  ;;  %v1324_v21 = vld [vmem:[#allocation2 + $0xe] sm:$0x3] }
 0xeef   :  { %1296 = vrot.lane.b32.xlu1 %v1273_v26, %s5737_s4  ;;  %v1275_v29 = vadd.f32 %v1273_v26, %v1252_v27 }
 0xef0   :  { %5148 = vrcp.f32 %v1217_v22  ;;  %v1229_v33 = vand.u32 2147483648, %v1217_v22  ;;  %vm1223_vm3 = vweird.f32 %v1217_v22  ;;  %v1227_v34 = vand.u32 2147483647, %v1217_v22 }
 0xef1   :  { %v4931_v31 = vmul.f32 -1.442695, %v1275_v29  ;;  %v1386_v29 = vld [vmem:[#allocation3 + $0x10] sm:$0x3] }
 0xef2   :  { %v1230_v36 = vor.u32 1.1754944e-38, %v1229_v33  ;;  %vm1228_vm5 = vcmp.eq.f32.partialorder %v1227_v34, 8.507059e+37 }
 0xef3   :  { %5150 = vpow2.f32 %v4931_v31 }
 0xef6   :  { %v5149_v24 = vpop.eup %5148 }
 0xef7   :  { %v1219_v40 = vmul.f32 %v5149_v24, %v1217_v22  ;;  %vm1224_vm2 = vweird.f32 %v5149_v24 }
 0xef8   :  { %vm1225_vm4 = vmor %vm1223_vm3, %vm1224_vm2 }
 0xef9   :  { %v1220_v25 = vsub.f32 1.0, %v1219_v40  ;;  %v5151_v39 = vpop.eup %5150 }
 0xefa   :  { %v1279_v42 = vadd.f32 1.0, %v5151_v39 }
 0xefb   :  { %v1221_v44 = vmul.f32 %v5149_v24, %v1220_v25 }
 0xefc   :  { %5152 = vrcp.f32 %v1279_v42  ;;  %v1291_v49 = vand.u32 2147483648, %v1279_v42  ;;  %vm1285_vm9 = vweird.f32 %v1279_v42  ;;  %v1289_v50 = vand.u32 2147483647, %v1279_v42 }
 0xefd   :  { %v1222_v32 = vadd.f32 %v5149_v24, %v1221_v44 }
 0xefe   :  { %v1292_v52 = vor.u32 1.1754944e-38, %v1291_v49  ;;  %vm1290_vm11 = vcmp.eq.f32.partialorder %v1289_v50, 8.507059e+37 }
 0xeff   :  { %v1226_v35 = vsel %vm1225_vm4, %v5149_v24, %v1222_v32 }
 0xf00   :  { %v1231_v37 = vsel %vm1228_vm5, %v1230_v36, %v1226_v35 }
 0xf01   :  { %v1244_v2 = vsub.f32 1.0, %v1231_v37  ;;  %v1250_v63 = vmul.f32 %v1231_v37, %v6201_v5 }
 0xf02   :  { %v5153_v43 = vpop.eup %5152 }
 0xf03   :  { %v1281_v45 = vmul.f32 %v5153_v43, %v1279_v42  ;;  %vm1286_vm8 = vweird.f32 %v5153_v43 }
 0xf04   :  { %vm1287_vm10 = vmor %vm1285_vm9, %vm1286_vm8 }
 0xf05   :  { %v1282_v46 = vsub.f32 1.0, %v1281_v45 }
 0xf07   :  { %v1283_v47 = vmul.f32 %v5153_v43, %v1282_v46 }
 0xf09   :  { %v1284_v48 = vadd.f32 %v5153_v43, %v1283_v47 }
 0xf0b   :  { %v1288_v51 = vsel %vm1287_vm10, %v5153_v43, %v1284_v48 }
 0xf0c   :  { %v1293_v54 = vsel %vm1290_vm11, %v1292_v52, %v1288_v51 }
 0xf0d   :  { %v1306_v7 = vsub.f32 1.0, %v1293_v54  ;;  %v1312_v8 = vmul.f32 %v1293_v54, %v6206_v23 }
 0xf3d   :  { %v1235_v38 = vpop.permute.xlu2 %1234 }
 0xf3e   :  { %v1237_v41 = vmul.f32 %v1235_v38, %v1231_v37 }
 0xf40   :  { %1239 = vrot.lane.b32.xlu1 %v1237_v41, %s5737_s4 }
 0xf61   :  { %v1297_v53 = vpop.permute.xlu1 %1296 }
 0xf62   :  { %v1299_v55 = vmul.f32 %v1297_v53, %v1293_v54 }
 0xf64   :  { %1301 = vrot.lane.b32.xlu0 %v1299_v55, %s5737_s4 }
 0xfb2   :  { %v1240_v56 = vpop.permute.xlu1 %1239 }
 0xfb3   :  { %v1242_v58 = vadd.f32 %v1240_v56, %v1190_v19 }
 0xfb5   :  { %5154 = vtanh.f32 %v1242_v58 }
 0xfbb   :  { %v5155_v57 = vpop.eup %5154 }
 0xfbc   :  { %1246 = vrot.lane.b32.xlu0 %v5155_v57, %s5738_s8 }
 0xfd6   :  { %v1302_v60 = vpop.permute.xlu0 %1301 }
 0xfd7   :  { %v1304_v61 = vadd.f32 %v1302_v60, %v1252_v27 }
 0xfd9   :  { %5156 = vtanh.f32 %v1304_v61 }
 0xfdf   :  { %v5157_v0 = vpop.eup %5156 }
 0xfe0   :  { %1308 = vrot.lane.b32.xlu2 %v5157_v0, %s5738_s8 }
0x102e   :  { %v1247_v59 = vpop.permute.xlu0 %1246 }
0x102f   :  { %v1249_v62 = vmul.f32 %v1247_v59, %v1244_v2 }
0x1031   :  { %v6241_v11 = vadd.f32 %v1250_v63, %v1249_v62 }
0x1033   :  { %1315 = vrot.lane.b32.xlu2 %v6241_v11, %s5738_s8 }
0x103a   :  { %v1309_v1 = vpop.permute.xlu2 %1308 }
0x103b   :  { %v1311_v16 = vmul.f32 %v1309_v1, %v1306_v7 }
0x103d   :  { %v6246_v15 = vadd.f32 %v1312_v8, %v1311_v16 }
0x103f   :  { %1320 = vrot.lane.b32.xlu1 %v6246_v15, %s5738_s8 }
0x108d   :  { %v1316_v26 = vpop.permute.xlu2 %1315 }
0x108e   :  { %1318 = vst.msk [vmem:[#allocation6 + $0xc] sm:$0x3] %vm513_vm0, %v1316_v26  ;;  %4932 = vmatmul.msk.f32.vlgmr.msra.gmra.mxu3 %vm282_vm6, %v1316_v26 }
0x108f   :  { %1875 = vmatpush.msra.mxu3 %v6166_v6 }
0x1091   :  { %1876 = vmatpush.msra.mxu3 %v6169_v4 }
0x1093   :  { %1877 = vmatpush.msra.mxu3 %v6172_v9 }
0x1095   :  { %1878 = vmatpush.msra.mxu3 %v6175_v10 }
0x10b1   :  { %v1321_v5 = vpop.permute.xlu1 %1320 }
0x10b2   :  { %1323 = vst.msk [vmem:[#allocation7 + $0x12] sm:$0x3] %vm513_vm0, %v1321_v5  ;;  %4934 = vmatmul.msk.f32.vlgmr.msrb.gmra.mxu0 %vm282_vm6, %v1321_v5 }
0x10b3   :  { %1937 = vmatpush.msrb.mxu0 %v6180_v3 }
0x10b5   :  { %1938 = vmatpush.msrb.mxu0 %v6183_v13 }
0x10b7   :  { %1939 = vmatpush.msrb.mxu0 %v6186_v14 }
0x10b9   :  { %1940 = vmatpush.msrb.mxu0 %v6189_v17 }
0x1111   :  { %v1344_v23 = vpop.f32.mrf.mxu3 }
0x1112   :  { %v1345_v19 = vadd.f32 %v6225_v12, %v1344_v23 }
0x1114   :  { %1368 = vrot.lane.b32.xlu1 %v1345_v19, %s5737_s4  ;;  %v1347_v22 = vadd.f32 %v1345_v19, %v1324_v21 }
0x1116   :  { %v4933_v24 = vmul.f32 -1.442695, %v1347_v22 }
0x1118   :  { %5158 = vpow2.f32 %v4933_v24 }
0x111e   :  { %v5159_v40 = vpop.eup %5158 }
0x111f   :  { %v1351_v25 = vadd.f32 1.0, %v5159_v40  ;;  %v1458_v40 = vld [vmem:[#allocation2 + $0x10] sm:$0x3] }
0x1121   :  { %5160 = vrcp.f32 %v1351_v25  ;;  %v1363_v36 = vand.u32 2147483648, %v1351_v25  ;;  %vm1357_vm13 = vweird.f32 %v1351_v25  ;;  %v1361_v38 = vand.u32 2147483647, %v1351_v25 }
0x1123   :  { %v1364_v42 = vor.u32 1.1754944e-38, %v1363_v36  ;;  %vm1362_vm15 = vcmp.eq.f32.partialorder %v1361_v38, 8.507059e+37 }
0x1127   :  { %v5161_v27 = vpop.eup %5160 }
0x1128   :  { %v1353_v31 = vmul.f32 %v5161_v27, %v1351_v25  ;;  %vm1358_vm12 = vweird.f32 %v5161_v27 }
0x1129   :  { %vm1359_vm14 = vmor %vm1357_vm13, %vm1358_vm12 }
0x112a   :  { %v1354_v33 = vsub.f32 1.0, %v1353_v31 }
0x112c   :  { %v1355_v34 = vmul.f32 %v5161_v27, %v1354_v33 }
0x112e   :  { %v1356_v35 = vadd.f32 %v5161_v27, %v1355_v34 }
0x112f   :  { %v1406_v30 = vpop.f32.mrf.mxu0 }
0x1130   :  { %v1407_v20 = vadd.f32 %v6232_v18, %v1406_v30  ;;  %v1360_v39 = vsel %vm1359_vm14, %v5161_v27, %v1356_v35 }
0x1131   :  { %v1365_v45 = vsel %vm1362_vm15, %v1364_v42, %v1360_v39 }
0x1132   :  { %1430 = vrot.lane.b32.xlu0 %v1407_v20, %s5737_s4  ;;  %v1409_v44 = vadd.f32 %v1407_v20, %v1386_v29  ;;  %v1378_v62 = vsub.f32 1.0, %v1365_v45  ;;  %v1384_v1 = vmul.f32 %v1365_v45, %v6241_v11 }
0x1134   :  { %v4935_v32 = vmul.f32 -1.442695, %v1409_v44 }
0x1136   :  { %5162 = vpow2.f32 %v4935_v32 }
0x113c   :  { %v5163_v37 = vpop.eup %5162 }
0x113d   :  { %v1413_v41 = vadd.f32 1.0, %v5163_v37 }
0x113f   :  { %5164 = vrcp.f32 %v1413_v41  ;;  %v1425_v52 = vand.u32 2147483648, %v1413_v41  ;;  %vm1419_vm2 = vweird.f32 %v1413_v41  ;;  %v1423_v53 = vand.u32 2147483647, %v1413_v41 }
0x1141   :  { %v1426_v55 = vor.u32 1.1754944e-38, %v1425_v52  ;;  %vm1424_vm4 = vcmp.eq.f32.partialorder %v1423_v53, 8.507059e+37 }
0x1145   :  { %v5165_v47 = vpop.eup %5164 }
0x1146   :  { %v1415_v48 = vmul.f32 %v5165_v47, %v1413_v41  ;;  %vm1420_vm1 = vweird.f32 %v5165_v47 }
0x1147   :  { %vm1421_vm3 = vmor %vm1419_vm2, %vm1420_vm1 }
0x1148   :  { %v1416_v49 = vsub.f32 1.0, %v1415_v48 }
0x114a   :  { %v1417_v50 = vmul.f32 %v5165_v47, %v1416_v49 }
0x114c   :  { %v1418_v51 = vadd.f32 %v5165_v47, %v1417_v50 }
0x114e   :  { %v1422_v54 = vsel %vm1421_vm3, %v5165_v47, %v1418_v51 }
0x114f   :  { %v1427_v58 = vsel %vm1424_vm4, %v1426_v55, %v1422_v54 }
0x1150   :  { %v1440_v26 = vsub.f32 1.0, %v1427_v58  ;;  %v1446_v23 = vmul.f32 %v1427_v58, %v6246_v15 }
0x1186   :  { %v1369_v43 = vpop.permute.xlu1 %1368 }
0x1187   :  { %v1371_v46 = vmul.f32 %v1369_v43, %v1365_v45 }
0x1189   :  { %1373 = vrot.lane.b32.xlu0 %v1371_v46, %s5737_s4 }
0x11a4   :  { %v1431_v56 = vpop.permute.xlu0 %1430 }
0x11a5   :  { %v1433_v57 = vmul.f32 %v1431_v56, %v1427_v58 }
0x11a7   :  { %1435 = vrot.lane.b32.xlu2 %v1433_v57, %s5737_s4 }
0x11fb   :  { %v1374_v60 = vpop.permute.xlu0 %1373 }
0x11fc   :  { %v1376_v61 = vadd.f32 %v1374_v60, %v1324_v21 }
0x11fe   :  { %5166 = vtanh.f32 %v1376_v61 }
0x1201   :  { %v1436_v0 = vpop.permute.xlu2 %1435 }
0x1202   :  { %v1438_v2 = vadd.f32 %v1436_v0, %v1386_v29  ;;  %v1520_v29 = vld [vmem:[#allocation3 + $0xe] sm:$0x3] }
0x1204   :  { %v5167_v59 = vpop.eup %5166  ;;  %5168 = vtanh.f32 %v1438_v2 }
0x1205   :  { %1380 = vrot.lane.b32.xlu2 %v5167_v59, %s5738_s8 }
0x120a   :  { %v5169_v63 = vpop.eup %5168 }
0x120b   :  { %1442 = vrot.lane.b32.xlu1 %v5169_v63, %s5738_s8 }
0x125f   :  { %v1381_v7 = vpop.permute.xlu2 %1380 }
0x1260   :  { %v1383_v8 = vmul.f32 %v1381_v7, %v1378_v62 }
0x1262   :  { %v6271_v16 = vadd.f32 %v1384_v1, %v1383_v8 }
0x1264   :  { %1449 = vrot.lane.b32.xlu1 %v6271_v16, %s5738_s8 }
0x127d   :  { %v1443_v5 = vpop.permute.xlu1 %1442 }
0x127e   :  { %v1445_v19 = vmul.f32 %v1443_v5, %v1440_v26 }
0x1280   :  { %v6276_v30 = vadd.f32 %v1446_v23, %v1445_v19 }
0x1282   :  { %1454 = vrot.lane.b32.xlu0 %v6276_v30, %s5738_s8 }
0x12d6   :  { %v1450_v20 = vpop.permute.xlu1 %1449 }
0x12d7   :  { %1452 = vst.msk [vmem:[#allocation6 + $0xe] sm:$0x3] %vm513_vm0, %v1450_v20  ;;  %4936 = vmatmul.msk.f32.vlgmr.msra.gmra.mxu1 %vm282_vm6, %v1450_v20 }
0x12d8   :  { %2009 = vmatpush.msra.mxu1 %v6166_v6 }
0x12da   :  { %2010 = vmatpush.msra.mxu1 %v6169_v4 }
0x12dc   :  { %2011 = vmatpush.msra.mxu1 %v6172_v9 }
0x12de   :  { %2012 = vmatpush.msra.mxu1 %v6175_v10 }
0x12f4   :  { %v1455_v11 = vpop.permute.xlu0 %1454 }
0x12f5   :  { %1457 = vst.msk [vmem:[#allocation7 + $0x10] sm:$0x3] %vm513_vm0, %v1455_v11  ;;  %4938 = vmatmul.msk.f32.vlgmr.msra.gmra.mxu2 %vm282_vm6, %v1455_v11 }
0x12f6   :  { %2071 = vmatpush.msra.mxu2 %v6180_v3 }
0x12f8   :  { %2072 = vmatpush.msra.mxu2 %v6183_v13 }
0x12fa   :  { %2073 = vmatpush.msra.mxu2 %v6186_v14 }
0x12fc   :  { %2074 = vmatpush.msra.mxu2 %v6189_v17 }
0x1354   :  { %v1478_v15 = vpop.f32.mrf.mxu1 }
0x1355   :  { %v1479_v21 = vadd.f32 %v6225_v12, %v1478_v15 }
0x1357   :  { %1502 = vrot.lane.b32.xlu0 %v1479_v21, %s5737_s4  ;;  %v1481_v25 = vadd.f32 %v1479_v21, %v1458_v40 }
0x1359   :  { %v4937_v27 = vmul.f32 -1.442695, %v1481_v25 }
0x135b   :  { %5170 = vpow2.f32 %v4937_v27 }
0x1361   :  { %v5171_v31 = vpop.eup %5170 }
0x1362   :  { %v1485_v33 = vadd.f32 1.0, %v5171_v31 }
0x1364   :  { %v1497_v45 = vand.u32 2147483648, %v1485_v33  ;;  %vm1491_vm8 = vweird.f32 %v1485_v33  ;;  %v1495_v46 = vand.u32 2147483647, %v1485_v33 }
0x1366   :  { %v1498_v49 = vor.u32 1.1754944e-38, %v1497_v45  ;;  %vm1496_vm10 = vcmp.eq.f32.partialorder %v1495_v46, 8.507059e+37 }
0x1378   :  { %v1540_v22 = vpop.f32.mrf.mxu2 }
0x1379   :  { %v1541_v24 = vadd.f32 %v6232_v18, %v1540_v22 }
0x137b   :  { %1564 = vrot.lane.b32.xlu2 %v1541_v24, %s5737_s4  ;;  %v1543_v44 = vadd.f32 %v1541_v24, %v1520_v29 }
0x137d   :  { %v4939_v32 = vmul.f32 -1.442695, %v1543_v44 }
0x137f   :  { %5172 = vpow2.f32 %v4939_v32 }
0x1380   :  { %5174 = vrcp.f32 %v1485_v33 }
0x1385   :  { %v5173_v34 = vpop.eup %5172 }
0x1386   :  { %v5175_v35 = vpop.eup %5174  ;;  %v1547_v36 = vadd.f32 1.0, %v5173_v34 }
0x1387   :  { %v1487_v37 = vmul.f32 %v5175_v35, %v1485_v33  ;;  %vm1492_vm5 = vweird.f32 %v5175_v35 }
0x1388   :  { %5176 = vrcp.f32 %v1547_v36  ;;  %vm1493_vm9 = vmor %vm1491_vm8, %vm1492_vm5  ;;  %v1559_v55 = vand.u32 2147483648, %v1547_v36  ;;  %vm1553_vm12 = vweird.f32 %v1547_v36  ;;  %v1557_v56 = vand.u32 2147483647, %v1547_v36 }
0x1389   :  { %v1488_v38 = vsub.f32 1.0, %v1487_v37 }
0x138a   :  { %v1560_v57 = vor.u32 1.1754944e-38, %v1559_v55  ;;  %vm1558_vm14 = vcmp.eq.f32.partialorder %v1557_v56, 8.507059e+37 }
0x138b   :  { %v1489_v39 = vmul.f32 %v5175_v35, %v1488_v38 }
0x138d   :  { %v1490_v42 = vadd.f32 %v5175_v35, %v1489_v39 }
0x138e   :  { %v5177_v41 = vpop.eup %5176 }
0x138f   :  { %v1549_v43 = vmul.f32 %v5177_v41, %v1547_v36  ;;  %v1494_v47 = vsel %vm1493_vm9, %v5175_v35, %v1490_v42  ;;  %vm1554_vm11 = vweird.f32 %v5177_v41  ;;  %v1654_v35 = vld [vmem:[#allocation3 + $0xc] sm:$0x3] }
0x1390   :  { %v1499_v51 = vsel %vm1496_vm10, %v1498_v49, %v1494_v47  ;;  %vm1555_vm13 = vmor %vm1553_vm12, %vm1554_vm11 }
0x1391   :  { %v1550_v48 = vsub.f32 1.0, %v1549_v43  ;;  %v1512_v8 = vsub.f32 1.0, %v1499_v51  ;;  %v1518_v5 = vmul.f32 %v1499_v51, %v6271_v16 }
0x1393   :  { %v1551_v53 = vmul.f32 %v5177_v41, %v1550_v48 }
0x1395   :  { %v1552_v54 = vadd.f32 %v5177_v41, %v1551_v53 }
0x1397   :  { %v1556_v58 = vsel %vm1555_vm13, %v5177_v41, %v1552_v54 }
0x1398   :  { %v1561_v60 = vsel %vm1558_vm14, %v1560_v57, %v1556_v58 }
0x1399   :  { %v1574_v20 = vsub.f32 1.0, %v1561_v60  ;;  %v1580_v15 = vmul.f32 %v1561_v60, %v6276_v30 }
0x13c9   :  { %v1503_v50 = vpop.permute.xlu0 %1502 }
0x13ca   :  { %v1505_v52 = vmul.f32 %v1503_v50, %v1499_v51 }
0x13cc   :  { %1507 = vrot.lane.b32.xlu2 %v1505_v52, %s5737_s4 }
0x13d5   :  { %v1565_v61 = vpop.permute.xlu2 %1564 }
0x13d6   :  { %v1567_v0 = vmul.f32 %v1565_v61, %v1561_v60 }
0x13d8   :  { %1569 = vrot.lane.b32.xlu1 %v1567_v0, %s5737_s4 }
0x1426   :  { %v1508_v2 = vpop.permute.xlu2 %1507 }
0x1427   :  { %v1510_v59 = vadd.f32 %v1508_v2, %v1458_v40 }
0x1429   :  { %5178 = vtanh.f32 %v1510_v59 }
0x142f   :  { %v5179_v63 = vpop.eup %5178 }
0x1430   :  { %1514 = vrot.lane.b32.xlu1 %v5179_v63, %s5738_s8 }
0x144a   :  { %v1570_v62 = vpop.permute.xlu1 %1569 }
0x144b   :  { %v1572_v7 = vadd.f32 %v1570_v62, %v1520_v29  ;;  %v1592_v29 = vld [vmem:[#allocation2 + $0x12] sm:$0x3] }
0x144d   :  { %5180 = vtanh.f32 %v1572_v7 }
0x1453   :  { %v5181_v1 = vpop.eup %5180 }
0x1454   :  { %1576 = vrot.lane.b32.xlu0 %v5181_v1, %s5738_s8 }
0x14a2   :  { %v1515_v26 = vpop.permute.xlu1 %1514 }
0x14a3   :  { %v1517_v23 = vmul.f32 %v1515_v26, %v1512_v8 }
0x14a5   :  { %v6301_v19 = vadd.f32 %v1518_v5, %v1517_v23 }
0x14a7   :  { %1583 = vrot.lane.b32.xlu0 %v6301_v19, %s5738_s8 }
0x14c6   :  { %v1577_v11 = vpop.permute.xlu0 %1576 }
0x14c7   :  { %v1579_v21 = vmul.f32 %v1577_v11, %v1574_v20 }
0x14c9   :  { %v6306_v22 = vadd.f32 %v1580_v15, %v1579_v21 }
0x14cb   :  { %1588 = vrot.lane.b32.xlu2 %v6306_v22, %s5738_s8 }
0x1519   :  { %v1584_v24 = vpop.permute.xlu0 %1583 }
0x151a   :  { %1586 = vst.msk [vmem:[#allocation6 + $0x10] sm:$0x3] %vm513_vm0, %v1584_v24  ;;  %4940 = vmatmul.msk.f32.vlgmr.msrb.gmra.mxu3 %vm282_vm6, %v1584_v24 }
0x151b   :  { %2143 = vmatpush.msrb.mxu3 %v6166_v6 }
0x151d   :  { %2144 = vmatpush.msrb.mxu3 %v6169_v4 }
0x151f   :  { %2145 = vmatpush.msrb.mxu3 %v6172_v9 }
0x1521   :  { %2146 = vmatpush.msrb.mxu3 %v6175_v10 }
0x1525   :  { %v1589_v16 = vpop.permute.xlu2 %1588 }
0x1526   :  { %1591 = vst.msk [vmem:[#allocation7 + $0xe] sm:$0x3] %vm513_vm0, %v1589_v16  ;;  %4942 = vmatmul.msk.f32.vlgmr.msra.gmra.mxu0 %vm282_vm6, %v1589_v16 }
0x1527   :  { %2205 = vmatpush.msra.mxu0 %v6180_v3 }
0x1529   :  { %2206 = vmatpush.msra.mxu0 %v6183_v13 }
0x152b   :  { %2207 = vmatpush.msra.mxu0 %v6186_v14 }
0x152d   :  { %2208 = vmatpush.msra.mxu0 %v6189_v17 }
0x159d   :  { %v1612_v30 = vpop.f32.mrf.mxu3 }
0x159e   :  { %v1613_v40 = vadd.f32 %v6225_v12, %v1612_v30 }
0x15a0   :  { %1636 = vrot.lane.b32.xlu2 %v1613_v40, %s5737_s4  ;;  %v1615_v44 = vadd.f32 %v1613_v40, %v1592_v29 }
0x15a2   :  { %v4941_v31 = vmul.f32 -1.442695, %v1615_v44 }
0x15a3   :  { %v1674_v25 = vpop.f32.mrf.mxu0 }
0x15a4   :  { %v1675_v27 = vadd.f32 %v6232_v18, %v1674_v25  ;;  %5182 = vpow2.f32 %v4941_v31 }
0x15a6   :  { %1698 = vrot.lane.b32.xlu1 %v1675_v27, %s5737_s4  ;;  %v1677_v36 = vadd.f32 %v1675_v27, %v1654_v35 }
0x15a8   :  { %v4943_v38 = vmul.f32 -1.442695, %v1677_v36 }
0x15aa   :  { %v5183_v32 = vpop.eup %5182 }
0x15ab   :  { %v1619_v33 = vadd.f32 1.0, %v5183_v32  ;;  %v1788_v32 = vld [vmem:[#allocation3 + $0xa] sm:$0x3] }
0x15ad   :  { %5184 = vrcp.f32 %v1619_v33  ;;  %v1631_v43 = vand.u32 2147483648, %v1619_v33  ;;  %vm1625_vm1 = vweird.f32 %v1619_v33  ;;  %v1629_v46 = vand.u32 2147483647, %v1619_v33 }
0x15ae   :  { %5186 = vpow2.f32 %v4943_v38 }
0x15af   :  { %v1632_v49 = vor.u32 1.1754944e-38, %v1631_v43  ;;  %vm1630_vm3 = vcmp.eq.f32.partialorder %v1629_v46, 8.507059e+37 }
0x15b3   :  { %v5185_v34 = vpop.eup %5184 }
0x15b4   :  { %v1621_v37 = vmul.f32 %v5185_v34, %v1619_v33  ;;  %vm1626_vm15 = vweird.f32 %v5185_v34  ;;  %v5187_v45 = vpop.eup %5186 }
0x15b5   :  { %vm1627_vm2 = vmor %vm1625_vm1, %vm1626_vm15  ;;  %v1681_v48 = vadd.f32 1.0, %v5187_v45 }
0x15b6   :  { %v1622_v39 = vsub.f32 1.0, %v1621_v37 }
0x15b7   :  { %5188 = vrcp.f32 %v1681_v48  ;;  %v1693_v57 = vand.u32 2147483648, %v1681_v48  ;;  %vm1687_vm5 = vweird.f32 %v1681_v48  ;;  %v1691_v60 = vand.u32 2147483647, %v1681_v48 }
0x15b8   :  { %v1623_v41 = vmul.f32 %v5185_v34, %v1622_v39 }
0x15b9   :  { %v1694_v0 = vor.u32 1.1754944e-38, %v1693_v57  ;;  %vm1692_vm9 = vcmp.eq.f32.partialorder %v1691_v60, 8.507059e+37 }
0x15ba   :  { %v1624_v42 = vadd.f32 %v5185_v34, %v1623_v41 }
0x15bc   :  { %v1628_v47 = vsel %vm1627_vm2, %v5185_v34, %v1624_v42 }
0x15bd   :  { %v1633_v50 = vsel %vm1630_vm3, %v1632_v49, %v1628_v47  ;;  %v5189_v53 = vpop.eup %5188 }
0x15be   :  { %v1683_v54 = vmul.f32 %v5189_v53, %v1681_v48  ;;  %vm1688_vm4 = vweird.f32 %v5189_v53  ;;  %v1646_v23 = vsub.f32 1.0, %v1633_v50  ;;  %v1652_v11 = vmul.f32 %v1633_v50, %v6301_v19 }
0x15bf   :  { %vm1689_vm8 = vmor %vm1687_vm5, %vm1688_vm4 }
0x15c0   :  { %v1684_v55 = vsub.f32 1.0, %v1683_v54 }
0x15c2   :  { %v1685_v56 = vmul.f32 %v5189_v53, %v1684_v55 }
0x15c4   :  { %v1686_v58 = vadd.f32 %v5189_v53, %v1685_v56 }
0x15c6   :  { %v1690_v61 = vsel %vm1689_vm8, %v5189_v53, %v1686_v58 }
0x15c7   :  { %v1695_v59 = vsel %vm1692_vm9, %v1694_v0, %v1690_v61 }
0x15c8   :  { %v1708_v24 = vsub.f32 1.0, %v1695_v59  ;;  %v1714_v30 = vmul.f32 %v1695_v59, %v6306_v22  ;;  %v1726_v22 = vld [vmem:[#allocation2 + $0x14] sm:$0x3] }
0x15fa   :  { %v1637_v51 = vpop.permute.xlu2 %1636 }
0x15fb   :  { %v1639_v52 = vmul.f32 %v1637_v51, %v1633_v50 }
0x15fd   :  { %1641 = vrot.lane.b32.xlu1 %v1639_v52, %s5737_s4 }
0x1618   :  { %v1699_v2 = vpop.permute.xlu1 %1698 }
0x1619   :  { %v1701_v63 = vmul.f32 %v1699_v2, %v1695_v59 }
0x161b   :  { %1703 = vrot.lane.b32.xlu0 %v1701_v63, %s5737_s4 }
0x166f   :  { %v1642_v62 = vpop.permute.xlu1 %1641 }
0x1670   :  { %v1644_v7 = vadd.f32 %v1642_v62, %v1592_v29 }
0x1672   :  { %5190 = vtanh.f32 %v1644_v7 }
0x1678   :  { %v5191_v1 = vpop.eup %5190 }
0x1679   :  { %1648 = vrot.lane.b32.xlu0 %v5191_v1, %s5738_s8 }
0x168d   :  { %v1704_v8 = vpop.permute.xlu0 %1703 }
0x168e   :  { %v1706_v26 = vadd.f32 %v1704_v8, %v1654_v35 }
0x1690   :  { %5192 = vtanh.f32 %v1706_v26 }
0x1696   :  { %v5193_v5 = vpop.eup %5192 }
0x1697   :  { %1710 = vrot.lane.b32.xlu2 %v5193_v5, %s5738_s8 }
0x16eb   :  { %v1649_v20 = vpop.permute.xlu0 %1648 }
0x16ec   :  { %v1651_v15 = vmul.f32 %v1649_v20, %v1646_v23 }
0x16ee   :  { %v6331_v21 = vadd.f32 %v1652_v11, %v1651_v15 }
0x16f0   :  { %1717 = vrot.lane.b32.xlu2 %v6331_v21, %s5738_s8 }
0x16f1   :  { %v1711_v16 = vpop.permute.xlu2 %1710 }
0x16f2   :  { %v1713_v40 = vmul.f32 %v1711_v16, %v1708_v24 }
0x16f4   :  { %v6336_v25 = vadd.f32 %v1714_v30, %v1713_v40  ;;  %v5469_v30 = vld [vmem:[#allocation11 + $0x10] sm:$0xff]  ;;  %v5470_v40 = vld [vmem:[#allocation11 + $0x8] sm:$0xff] }
0x16f6   :  { %1722 = vrot.lane.b32.xlu1 %v6336_v25, %s5738_s8 }
0x174a   :  { %v1718_v27 = vpop.permute.xlu2 %1717 }
0x174b   :  { %1720 = vst.msk [vmem:[#allocation6 + $0x12] sm:$0x3] %vm513_vm0, %v1718_v27  ;;  %4944 = vmatmul.msk.f32.vlgmr.msrb.gmra.mxu1 %vm282_vm6, %v1718_v27  ;;  %v5471_v27 = vld [vmem:[#allocation11] sm:$0xff] }
0x174c   :  { %2277 = vmatpush.msrb.mxu1 %v6166_v6 }
0x174e   :  { %2278 = vmatpush.msrb.mxu1 %v6169_v4 }
0x1750   :  { %2279 = vmatpush.msrb.mxu1 %v6172_v9 }
0x1752   :  { %2280 = vmatpush.msrb.mxu1 %v6175_v10 }
0x1768   :  { %v1723_v19 = vpop.permute.xlu1 %1722 }
0x1769   :  { %1725 = vst.msk [vmem:[#allocation7 + $0xc] sm:$0x3] %vm513_vm0, %v1723_v19  ;;  %4946 = vmatmul.msk.f32.vlgmr.msrb.gmra.mxu2 %vm282_vm6, %v1723_v19  ;;  %v5472_v19 = vld [vmem:[#allocation14 + $0x18] sm:$0xff] }
0x176a   :  { %2339 = vmatpush.msrb.mxu2 %v6180_v3 }
0x176c   :  { %2340 = vmatpush.msrb.mxu2 %v6183_v13 }
0x176e   :  { %2341 = vmatpush.msrb.mxu2 %v6186_v14 }
0x1770   :  { %2342 = vmatpush.msrb.mxu2 %v6189_v17 }
0x17c8   :  { %v1746_v6 = vpop.f32.mrf.mxu1 }
0x17c9   :  { %v1747_v4 = vadd.f32 %v6225_v12, %v1746_v6  ;;  %v5473_v6 = vld [vmem:[#allocation14 + $0x10] sm:$0xff] }
0x17cb   :  { %1770 = vrot.lane.b32.xlu1 %v1747_v4, %s5737_s4  ;;  %v1749_v29 = vadd.f32 %v1747_v4, %v1726_v22  ;;  %v5474_v4 = vld [vmem:[#allocation14 + $0x8] sm:$0xff] }
0x17cd   :  { %v4945_v44 = vmul.f32 -1.442695, %v1749_v29 }
0x17cf   :  { %5194 = vpow2.f32 %v4945_v44 }
0x17d5   :  { %v5195_v3 = vpop.eup %5194 }
0x17d6   :  { %v1753_v13 = vadd.f32 1.0, %v5195_v3  ;;  %v1860_v3 = vld [vmem:[#allocation2 + $0x16] sm:$0x3] }
0x17d8   :  { %5196 = vrcp.f32 %v1753_v13  ;;  %v1765_v37 = vand.u32 2147483648, %v1753_v13  ;;  %vm1759_vm11 = vweird.f32 %v1753_v13  ;;  %v1763_v38 = vand.u32 2147483647, %v1753_v13 }
0x17da   :  { %v1766_v41 = vor.u32 1.1754944e-38, %v1765_v37  ;;  %vm1764_vm13 = vcmp.eq.f32.partialorder %v1763_v38, 8.507059e+37 }
0x17de   :  { %v5197_v14 = vpop.eup %5196 }
0x17df   :  { %v1755_v31 = vmul.f32 %v5197_v14, %v1753_v13  ;;  %vm1760_vm10 = vweird.f32 %v5197_v14 }
0x17e0   :  { %vm1761_vm12 = vmor %vm1759_vm11, %vm1760_vm10 }
0x17e1   :  { %v1756_v17 = vsub.f32 1.0, %v1755_v31  ;;  %v1922_v31 = vld [vmem:[#allocation3 + $0x8] sm:$0x3] }
0x17e3   :  { %v1757_v34 = vmul.f32 %v5197_v14, %v1756_v17 }
0x17e5   :  { %v1758_v36 = vadd.f32 %v5197_v14, %v1757_v34 }
0x17e7   :  { %v1762_v39 = vsel %vm1761_vm12, %v5197_v14, %v1758_v36 }
0x17e8   :  { %v1767_v43 = vsel %vm1764_vm13, %v1766_v41, %v1762_v39 }
0x17e9   :  { %v1780_v7 = vsub.f32 1.0, %v1767_v43  ;;  %v1786_v8 = vmul.f32 %v1767_v43, %v6331_v21  ;;  %v5468_v21 = vld [vmem:[#allocation11 + $0x18] sm:$0xff] }
0x17ec   :  { %v1808_v9 = vpop.f32.mrf.mxu2 }
0x17ed   :  { %v1809_v10 = vadd.f32 %v6232_v18, %v1808_v9  ;;  %v5475_v9 = vld [vmem:[#allocation14] sm:$0xff] }
0x17ef   :  { %1832 = vrot.lane.b32.xlu0 %v1809_v10, %s5737_s4  ;;  %v1811_v33 = vadd.f32 %v1809_v10, %v1788_v32 }
0x17f1   :  { %v4947_v35 = vmul.f32 -1.442695, %v1811_v33 }
0x17f3   :  { %5198 = vpow2.f32 %v4947_v35 }
0x17f9   :  { %v5199_v45 = vpop.eup %5198 }
0x17fa   :  { %v1815_v47 = vadd.f32 1.0, %v5199_v45 }
0x17fc   :  { %5200 = vrcp.f32 %v1815_v47  ;;  %v1827_v53 = vand.u32 2147483648, %v1815_v47  ;;  %vm1821_vm15 = vweird.f32 %v1815_v47  ;;  %v1825_v54 = vand.u32 2147483647, %v1815_v47 }
0x17fe   :  { %v1828_v56 = vor.u32 1.1754944e-38, %v1827_v53  ;;  %vm1826_vm2 = vcmp.eq.f32.partialorder %v1825_v54, 8.507059e+37 }
0x1802   :  { %v5201_v48 = vpop.eup %5200 }
0x1803   :  { %v1817_v49 = vmul.f32 %v5201_v48, %v1815_v47  ;;  %vm1822_vm14 = vweird.f32 %v5201_v48 }
0x1804   :  { %vm1823_vm1 = vmor %vm1821_vm15, %vm1822_vm14 }
0x1805   :  { %v1818_v50 = vsub.f32 1.0, %v1817_v49 }
0x1807   :  { %v1819_v51 = vmul.f32 %v5201_v48, %v1818_v50 }
0x1809   :  { %v1820_v52 = vadd.f32 %v5201_v48, %v1819_v51 }
0x180b   :  { %v1824_v55 = vsel %vm1823_vm1, %v5201_v48, %v1820_v52 }
0x180c   :  { %v1829_v57 = vsel %vm1826_vm2, %v1828_v56, %v1824_v55 }
0x180d   :  { %v1842_v23 = vsub.f32 1.0, %v1829_v57  ;;  %v1848_v11 = vmul.f32 %v1829_v57, %v6336_v25 }
0x183d   :  { %v1771_v42 = vpop.permute.xlu1 %1770 }
0x183e   :  { %v1773_v46 = vmul.f32 %v1771_v42, %v1767_v43 }
0x1840   :  { %1775 = vrot.lane.b32.xlu0 %v1773_v46, %s5737_s4 }
0x1861   :  { %v1833_v58 = vpop.permute.xlu0 %1832 }
0x1862   :  { %v1835_v60 = vmul.f32 %v1833_v58, %v1829_v57 }
0x1864   :  { %1837 = vrot.lane.b32.xlu2 %v1835_v60, %s5737_s4 }
0x18b2   :  { %v1776_v61 = vpop.permute.xlu0 %1775 }
0x18b3   :  { %v1778_v0 = vadd.f32 %v1776_v61, %v1726_v22 }
0x18b5   :  { %5202 = vtanh.f32 %v1778_v0 }
0x18bb   :  { %v5203_v2 = vpop.eup %5202 }
0x18bc   :  { %1782 = vrot.lane.b32.xlu2 %v5203_v2, %s5738_s8 }
0x18be   :  { %v1838_v59 = vpop.permute.xlu2 %1837 }
0x18bf   :  { %v1840_v63 = vadd.f32 %v1838_v59, %v1788_v32 }
0x18c1   :  { %5204 = vtanh.f32 %v1840_v63 }
0x18c7   :  { %v5205_v62 = vpop.eup %5204 }
0x18c8   :  { %1844 = vrot.lane.b32.xlu1 %v5205_v62, %s5738_s8 }
0x1916   :  { %v1783_v1 = vpop.permute.xlu2 %1782 }
0x1917   :  { %v1785_v26 = vmul.f32 %v1783_v1, %v1780_v7 }
0x1919   :  { %v6361_v5 = vadd.f32 %v1786_v8, %v1785_v26 }
0x191b   :  { %1851 = vrot.lane.b32.xlu1 %v6361_v5, %s5738_s8 }
0x193a   :  { %v1845_v20 = vpop.permute.xlu1 %1844 }
0x193b   :  { %v1847_v15 = vmul.f32 %v1845_v20, %v1842_v23 }
0x193d   :  { %v6366_v24 = vadd.f32 %v1848_v11, %v1847_v15 }
0x193f   :  { %1856 = vrot.lane.b32.xlu0 %v6366_v24, %s5738_s8 }
0x198d   :  { %v1852_v16 = vpop.permute.xlu1 %1851 }
0x198e   :  { %1854 = vst.msk [vmem:[#allocation6 + $0x14] sm:$0x3] %vm513_vm0, %v1852_v16  ;;  %4948 = vmatmul.msk.f32.vlgmr.msra.gmra.mxu3 %vm282_vm6, %v1852_v16 }
0x198f   :  { %2411 = vmatpush.msra.mxu3 %v5468_v21 }
0x1991   :  { %2412 = vmatpush.msra.mxu3 %v5469_v30 }
0x1993   :  { %2413 = vmatpush.msra.mxu3 %v5470_v40 }
0x1995   :  { %2414 = vmatpush.msra.mxu3 %v5471_v27 }
0x19b1   :  { %v1857_v25 = vpop.permute.xlu0 %1856 }
0x19b2   :  { %1859 = vst.msk [vmem:[#allocation7 + $0xa] sm:$0x3] %vm513_vm0, %v1857_v25  ;;  %4950 = vmatmul.msk.f32.vlgmr.msrb.gmra.mxu0 %vm282_vm6, %v1857_v25 }
0x19b3   :  { %2473 = vmatpush.msrb.mxu0 %v5472_v19 }
0x19b5   :  { %2474 = vmatpush.msrb.mxu0 %v5473_v6  ;;  %v6406_v6 = vld [vmem:[%s7064_s9] ss:$0 sm:$0xff] }
0x19b7   :  { %2475 = vmatpush.msrb.mxu0 %v5474_v4 }
0x19b9   :  { %2476 = vmatpush.msrb.mxu0 %v5475_v9  ;;  %v1994_v9 = vld [vmem:[#allocation2 + $0x18] sm:$0x3] }
0x1a11   :  { %v1880_v10 = vpop.f32.mrf.mxu3 }
0x1a12   :  { %v1881_v22 = vadd.f32 %v6225_v12, %v1880_v10 }
0x1a14   :  { %1904 = vrot.lane.b32.xlu0 %v1881_v22, %s5737_s4  ;;  %v1883_v13 = vadd.f32 %v1881_v22, %v1860_v3 }
0x1a16   :  { %v4949_v14 = vmul.f32 -1.442695, %v1883_v13 }
0x1a18   :  { %5206 = vpow2.f32 %v4949_v14 }
0x1a1e   :  { %v5207_v33 = vpop.eup %5206 }
0x1a1f   :  { %v1887_v34 = vadd.f32 1.0, %v5207_v33 }
0x1a21   :  { %v1899_v45 = vand.u32 2147483648, %v1887_v34  ;;  %vm1893_vm4 = vweird.f32 %v1887_v34  ;;  %v1897_v46 = vand.u32 2147483647, %v1887_v34 }
0x1a23   :  { %v1900_v49 = vor.u32 1.1754944e-38, %v1899_v45  ;;  %vm1898_vm8 = vcmp.eq.f32.partialorder %v1897_v46, 8.507059e+37 }
0x1a2f   :  { %v1942_v29 = vpop.f32.mrf.mxu0 }
0x1a30   :  { %v1943_v44 = vadd.f32 %v6232_v18, %v1942_v29 }
0x1a32   :  { %1966 = vrot.lane.b32.xlu2 %v1943_v44, %s5737_s4  ;;  %v1945_v17 = vadd.f32 %v1943_v44, %v1922_v31 }
0x1a34   :  { %v4951_v32 = vmul.f32 -1.442695, %v1945_v17 }
0x1a36   :  { %5208 = vpow2.f32 %v4951_v32 }
0x1a37   :  { %5210 = vrcp.f32 %v1887_v34 }
0x1a3c   :  { %v5209_v35 = vpop.eup %5208 }
0x1a3d   :  { %v1949_v12 = vadd.f32 1.0, %v5209_v35  ;;  %v5211_v36 = vpop.eup %5210 }
0x1a3e   :  { %v1889_v37 = vmul.f32 %v5211_v36, %v1887_v34  ;;  %vm1894_vm3 = vweird.f32 %v5211_v36 }
0x1a3f   :  { %5212 = vrcp.f32 %v1949_v12  ;;  %vm1895_vm5 = vmor %vm1893_vm4, %vm1894_vm3  ;;  %v1961_v53 = vand.u32 2147483648, %v1949_v12  ;;  %vm1955_vm10 = vweird.f32 %v1949_v12  ;;  %v1959_v55 = vand.u32 2147483647, %v1949_v12 }
0x1a40   :  { %v1890_v18 = vsub.f32 1.0, %v1889_v37 }
0x1a41   :  { %v1962_v58 = vor.u32 1.1754944e-38, %v1961_v53  ;;  %vm1960_vm12 = vcmp.eq.f32.partialorder %v1959_v55, 8.507059e+37 }
0x1a42   :  { %v1891_v41 = vmul.f32 %v5211_v36, %v1890_v18 }
0x1a44   :  { %v1892_v43 = vadd.f32 %v5211_v36, %v1891_v41 }
0x1a45   :  { %v5213_v38 = vpop.eup %5212 }
0x1a46   :  { %v1951_v39 = vmul.f32 %v5213_v38, %v1949_v12  ;;  %v1896_v48 = vsel %vm1895_vm5, %v5211_v36, %v1892_v43  ;;  %vm1956_vm9 = vweird.f32 %v5213_v38 }
0x1a47   :  { %v1901_v52 = vsel %vm1898_vm8, %v1900_v49, %v1896_v48  ;;  %vm1957_vm11 = vmor %vm1955_vm10, %vm1956_vm9 }
0x1a48   :  { %v1952_v42 = vsub.f32 1.0, %v1951_v39  ;;  %v1914_v1 = vsub.f32 1.0, %v1901_v52  ;;  %v1920_v26 = vmul.f32 %v1901_v52, %v6361_v5 }
0x1a4a   :  { %v1953_v47 = vmul.f32 %v5213_v38, %v1952_v42 }
0x1a4c   :  { %v1954_v50 = vadd.f32 %v5213_v38, %v1953_v47 }
0x1a4e   :  { %v1958_v56 = vsel %vm1957_vm11, %v5213_v38, %v1954_v50 }
0x1a4f   :  { %v1963_v57 = vsel %vm1960_vm12, %v1962_v58, %v1958_v56 }
0x1a50   :  { %v1976_v11 = vsub.f32 1.0, %v1963_v57  ;;  %v1982_v16 = vmul.f32 %v1963_v57, %v6366_v24  ;;  %v6399_v24 = vld [vmem:[%s7060_s5] ss:$0 sm:$0xff] }
0x1a86   :  { %v1905_v51 = vpop.permute.xlu0 %1904 }
0x1a87   :  { %v1907_v54 = vmul.f32 %v1905_v51, %v1901_v52 }
0x1a89   :  { %1909 = vrot.lane.b32.xlu2 %v1907_v54, %s5737_s4 }
0x1a8c   :  { %v1967_v60 = vpop.permute.xlu2 %1966 }
0x1a8d   :  { %v1969_v61 = vmul.f32 %v1967_v60, %v1963_v57 }
0x1a8f   :  { %1971 = vrot.lane.b32.xlu1 %v1969_v61, %s5737_s4 }
0x1ae3   :  { %v1910_v0 = vpop.permute.xlu2 %1909 }
0x1ae4   :  { %v1912_v2 = vadd.f32 %v1910_v0, %v1860_v3 }
0x1ae6   :  { %5214 = vtanh.f32 %v1912_v2 }
0x1aec   :  { %v5215_v59 = vpop.eup %5214 }
0x1aed   :  { %1916 = vrot.lane.b32.xlu1 %v5215_v59, %s5738_s8 }
0x1b01   :  { %v1972_v63 = vpop.permute.xlu1 %1971 }
0x1b02   :  { %v1974_v62 = vadd.f32 %v1972_v63, %v1922_v31  ;;  %v2056_v31 = vld [vmem:[#allocation3 + $0x6] sm:$0x3] }
0x1b04   :  { %5216 = vtanh.f32 %v1974_v62 }
0x1b0a   :  { %v5217_v7 = vpop.eup %5216 }
0x1b0b   :  { %1978 = vrot.lane.b32.xlu0 %v5217_v7, %s5738_s8 }
0x1b5f   :  { %v1917_v8 = vpop.permute.xlu1 %1916 }
0x1b60   :  { %v1919_v23 = vmul.f32 %v1917_v8, %v1914_v1 }
0x1b62   :  { %v6383_v20 = vadd.f32 %v1920_v26, %v1919_v23 }
0x1b64   :  { %1985 = vrot.lane.b32.xlu0 %v6383_v20, %s5738_s8 }
0x1b7d   :  { %v1979_v15 = vpop.permute.xlu0 %1978 }
0x1b7e   :  { %v1981_v21 = vmul.f32 %v1979_v15, %v1976_v11 }
0x1b80   :  { %v6388_v30 = vadd.f32 %v1982_v16, %v1981_v21 }
0x1b82   :  { %1990 = vrot.lane.b32.xlu2 %v6388_v30, %s5738_s8 }
0x1bd6   :  { %v1986_v40 = vpop.permute.xlu0 %1985 }
0x1bd7   :  { %1988 = vst.msk [vmem:[#allocation6 + $0x16] sm:$0x3] %vm513_vm0, %v1986_v40  ;;  %4952 = vmatmul.msk.f32.vlgmr.msra.gmra.mxu1 %vm282_vm6, %v1986_v40 }
0x1bdc   :  { %v1991_v5 = vpop.permute.xlu2 %1990 }
0x1bdd   :  { %1993 = vst.msk [vmem:[#allocation7 + $0x8] sm:$0x3] %vm513_vm0, %v1991_v5  ;;  %4954 = vmatmul.msk.f32.vlgmr.msra.gmra.mxu2 %vm282_vm6, %v1991_v5  ;;  %v2128_v5 = vld [vmem:[#allocation2 + $0x1a] sm:$0x3] }
0x1c54   :  { %v2014_v27 = vpop.f32.mrf.mxu1 }
0x1c55   :  { %v2015_v25 = vadd.f32 %v6399_v24, %v2014_v27 }
0x1c57   :  { %2038 = vrot.lane.b32.xlu2 %v2015_v25, %s5737_s4  ;;  %v2017_v10 = vadd.f32 %v2015_v25, %v1994_v9 }
0x1c59   :  { %v4953_v22 = vmul.f32 -1.442695, %v2017_v10  ;;  %v2190_v10 = vld [vmem:[#allocation3 + $0x4] sm:$0x3] }
0x1c5b   :  { %5218 = vpow2.f32 %v4953_v22 }
0x1c60   :  { %v2076_v19 = vpop.f32.mrf.mxu2 }
0x1c61   :  { %v2077_v4 = vadd.f32 %v6406_v6, %v2076_v19  ;;  %v5219_v29 = vpop.eup %5218 }
0x1c62   :  { %v2021_v44 = vadd.f32 1.0, %v5219_v29 }
0x1c63   :  { %2100 = vrot.lane.b32.xlu1 %v2077_v4, %s5737_s4  ;;  %v2079_v17 = vadd.f32 %v2077_v4, %v2056_v31 }
0x1c64   :  { %5220 = vrcp.f32 %v2021_v44  ;;  %v2033_v35 = vand.u32 2147483648, %v2021_v44  ;;  %vm2027_vm14 = vweird.f32 %v2021_v44  ;;  %v2031_v12 = vand.u32 2147483647, %v2021_v44 }
0x1c65   :  { %v4955_v33 = vmul.f32 -1.442695, %v2079_v17 }
0x1c66   :  { %v2034_v37 = vor.u32 1.1754944e-38, %v2033_v35  ;;  %vm2032_vm1 = vcmp.eq.f32.partialorder %v2031_v12, 8.507059e+37 }
0x1c67   :  { %5222 = vpow2.f32 %v4955_v33 }
0x1c6a   :  { %v5221_v3 = vpop.eup %5220 }
0x1c6b   :  { %v2023_v13 = vmul.f32 %v5221_v3, %v2021_v44  ;;  %vm2028_vm13 = vweird.f32 %v5221_v3 }
0x1c6c   :  { %vm2029_vm15 = vmor %vm2027_vm14, %vm2028_vm13 }
0x1c6d   :  { %v2024_v14 = vsub.f32 1.0, %v2023_v13  ;;  %v5223_v39 = vpop.eup %5222 }
0x1c6e   :  { %v2083_v42 = vadd.f32 1.0, %v5223_v39 }
0x1c6f   :  { %v2025_v32 = vmul.f32 %v5221_v3, %v2024_v14 }
0x1c70   :  { %5224 = vrcp.f32 %v2083_v42  ;;  %v2095_v49 = vand.u32 2147483648, %v2083_v42  ;;  %vm2089_vm3 = vweird.f32 %v2083_v42  ;;  %v2093_v50 = vand.u32 2147483647, %v2083_v42 }
0x1c71   :  { %v2026_v34 = vadd.f32 %v5221_v3, %v2025_v32 }
0x1c72   :  { %v2096_v52 = vor.u32 1.1754944e-38, %v2095_v49  ;;  %vm2094_vm5 = vcmp.eq.f32.partialorder %v2093_v50, 8.507059e+37 }
0x1c73   :  { %v2030_v36 = vsel %vm2029_vm15, %v5221_v3, %v2026_v34 }
0x1c74   :  { %v2035_v38 = vsel %vm2032_vm1, %v2034_v37, %v2030_v36 }
0x1c75   :  { %v2048_v2 = vsub.f32 1.0, %v2035_v38  ;;  %v2054_v63 = vmul.f32 %v2035_v38, %v6383_v20 }
0x1c76   :  { %v5225_v43 = vpop.eup %5224 }
0x1c77   :  { %v2085_v45 = vmul.f32 %v5225_v43, %v2083_v42  ;;  %vm2090_vm2 = vweird.f32 %v5225_v43 }
0x1c78   :  { %vm2091_vm4 = vmor %vm2089_vm3, %vm2090_vm2 }
0x1c79   :  { %v2086_v46 = vsub.f32 1.0, %v2085_v45 }
0x1c7b   :  { %v2087_v47 = vmul.f32 %v5225_v43, %v2086_v46 }
0x1c7d   :  { %v2088_v48 = vadd.f32 %v5225_v43, %v2087_v47 }
0x1c7f   :  { %v2092_v51 = vsel %vm2091_vm4, %v5225_v43, %v2088_v48 }
0x1c80   :  { %v2097_v54 = vsel %vm2094_vm5, %v2096_v52, %v2092_v51 }
0x1c81   :  { %v2110_v1 = vsub.f32 1.0, %v2097_v54  ;;  %v2116_v26 = vmul.f32 %v2097_v54, %v6388_v30 }
0x1cb1   :  { %v2039_v18 = vpop.permute.xlu2 %2038 }
0x1cb2   :  { %v2041_v41 = vmul.f32 %v2039_v18, %v2035_v38 }
0x1cb4   :  { %2043 = vrot.lane.b32.xlu1 %v2041_v41, %s5737_s4 }
0x1cd5   :  { %v2101_v53 = vpop.permute.xlu1 %2100 }
0x1cd6   :  { %v2103_v55 = vmul.f32 %v2101_v53, %v2097_v54 }
0x1cd8   :  { %2105 = vrot.lane.b32.xlu0 %v2103_v55, %s5737_s4 }
0x1d26   :  { %v2044_v56 = vpop.permute.xlu1 %2043 }
0x1d27   :  { %v2046_v58 = vadd.f32 %v2044_v56, %v1994_v9 }
0x1d29   :  { %5226 = vtanh.f32 %v2046_v58 }
0x1d2f   :  { %v5227_v57 = vpop.eup %5226 }
0x1d30   :  { %2050 = vrot.lane.b32.xlu0 %v5227_v57, %s5738_s8 }
0x1d4a   :  { %v2106_v60 = vpop.permute.xlu0 %2105 }
0x1d4b   :  { %v2108_v61 = vadd.f32 %v2106_v60, %v2056_v31 }
0x1d4d   :  { %5228 = vtanh.f32 %v2108_v61 }
0x1d53   :  { %v5229_v0 = vpop.eup %5228 }
0x1d54   :  { %2112 = vrot.lane.b32.xlu2 %v5229_v0, %s5738_s8 }
0x1da2   :  { %v2051_v59 = vpop.permute.xlu0 %2050 }
0x1da3   :  { %v2053_v62 = vmul.f32 %v2051_v59, %v2048_v2 }
0x1da5   :  { %v6415_v7 = vadd.f32 %v2054_v63, %v2053_v62 }
0x1da7   :  { %2119 = vrot.lane.b32.xlu2 %v6415_v7, %s5738_s8 }
0x1dae   :  { %v2113_v8 = vpop.permute.xlu2 %2112 }
0x1daf   :  { %v2115_v23 = vmul.f32 %v2113_v8, %v2110_v1  ;;  %v2540_v8 = vld [vmem:[%s7065_s10 + $0x10] sm:$0xff] }
0x1db1   :  { %v6420_v11 = vadd.f32 %v2116_v26, %v2115_v23  ;;  %v2539_v23 = vld [vmem:[%s7065_s10 + $0x8] sm:$0xff] }
0x1db3   :  { %2124 = vrot.lane.b32.xlu1 %v6420_v11, %s5738_s8 }
0x1e01   :  { %v2120_v15 = vpop.permute.xlu2 %2119 }
0x1e02   :  { %2122 = vst.msk [vmem:[#allocation6 + $0x18] sm:$0x3] %vm513_vm0, %v2120_v15  ;;  %4956 = vmatmul.msk.f32.vlgmr.msrb.gmra.mxu3 %vm282_vm6, %v2120_v15 }
0x1e25   :  { %v2125_v20 = vpop.permute.xlu1 %2124 }
0x1e26   :  { %2127 = vst.msk [vmem:[#allocation7 + $0x6] sm:$0x3] %vm513_vm0, %v2125_v20  ;;  %4958 = vmatmul.msk.f32.vlgmr.msra.gmra.mxu0 %vm282_vm6, %v2125_v20  ;;  %v6462_v20 = vld [vmem:[#allocation6] sm:$0xff] }
0x1e85   :  { %v2148_v16 = vpop.f32.mrf.mxu3 }
0x1e86   :  { %v2149_v21 = vadd.f32 %v6399_v24, %v2148_v16  ;;  %v6466_v16 = vld [vmem:[#allocation6 + $0x8] sm:$0xff] }
0x1e88   :  { %2172 = vrot.lane.b32.xlu1 %v2149_v21, %s5737_s4  ;;  %v2151_v27 = vadd.f32 %v2149_v21, %v2128_v5  ;;  %v6470_v21 = vld [vmem:[#allocation6 + $0x10] sm:$0xff] }
0x1e8a   :  { %v4957_v25 = vmul.f32 -1.442695, %v2151_v27 }
0x1e8c   :  { %5230 = vpow2.f32 %v4957_v25  ;;  %v2262_v25 = vld [vmem:[#allocation2 + $0x1c] sm:$0x3] }
0x1e92   :  { %v5231_v19 = vpop.eup %5230 }
0x1e93   :  { %v2155_v4 = vadd.f32 1.0, %v5231_v19 }
0x1e95   :  { %5232 = vrcp.f32 %v2155_v4  ;;  %v2167_v31 = vand.u32 2147483648, %v2155_v4  ;;  %vm2161_vm9 = vweird.f32 %v2155_v4  ;;  %v2165_v32 = vand.u32 2147483647, %v2155_v4 }
0x1e97   :  { %v2168_v35 = vor.u32 1.1754944e-38, %v2167_v31  ;;  %vm2166_vm11 = vcmp.eq.f32.partialorder %v2165_v32, 8.507059e+37 }
0x1e9b   :  { %v5233_v9 = vpop.eup %5232 }
0x1e9c   :  { %v2157_v29 = vmul.f32 %v5233_v9, %v2155_v4  ;;  %vm2162_vm8 = vweird.f32 %v5233_v9 }
0x1e9d   :  { %vm2163_vm10 = vmor %vm2161_vm9, %vm2162_vm8 }
0x1e9e   :  { %v2158_v3 = vsub.f32 1.0, %v2157_v29 }
0x1ea0   :  { %v2159_v13 = vmul.f32 %v5233_v9, %v2158_v3 }
0x1ea2   :  { %v2160_v14 = vadd.f32 %v5233_v9, %v2159_v13 }
0x1ea3   :  { %v2210_v30 = vpop.f32.mrf.mxu0 }
0x1ea4   :  { %v2211_v40 = vadd.f32 %v6406_v6, %v2210_v30  ;;  %v2164_v33 = vsel %vm2163_vm10, %v5233_v9, %v2160_v14  ;;  %v2324_v9 = vld [vmem:[#allocation3 + $0x2] sm:$0x3] }
0x1ea5   :  { %v2169_v36 = vsel %vm2166_vm11, %v2168_v35, %v2164_v33 }
0x1ea6   :  { %2234 = vrot.lane.b32.xlu0 %v2211_v40, %s5737_s4  ;;  %v2213_v22 = vadd.f32 %v2211_v40, %v2190_v10  ;;  %v2182_v58 = vsub.f32 1.0, %v2169_v36  ;;  %v2188_v60 = vmul.f32 %v2169_v36, %v6415_v7  ;;  %v2541_v7 = vld [vmem:[%s7065_s10 + $0x18] sm:$0xff] }
0x1ea7   :  { %2611 = vmatpush.msra.mxu2 %v2541_v7 }
0x1ea8   :  { %v4959_v44 = vmul.f32 -1.442695, %v2213_v22 }
0x1ea9   :  { %2612 = vmatpush.msra.mxu2 %v2540_v8 }
0x1eaa   :  { %5234 = vpow2.f32 %v4959_v44 }
0x1eab   :  { %2613 = vmatpush.msra.mxu2 %v2539_v23 }
0x1eb0   :  { %v5235_v17 = vpop.eup %5234 }
0x1eb1   :  { %v2217_v34 = vadd.f32 1.0, %v5235_v17 }
0x1eb3   :  { %5236 = vrcp.f32 %v2217_v34  ;;  %v2229_v43 = vand.u32 2147483648, %v2217_v34  ;;  %vm2223_vm13 = vweird.f32 %v2217_v34  ;;  %v2227_v45 = vand.u32 2147483647, %v2217_v34 }
0x1eb5   :  { %v2230_v47 = vor.u32 1.1754944e-38, %v2229_v43  ;;  %vm2228_vm15 = vcmp.eq.f32.partialorder %v2227_v45, 8.507059e+37 }
0x1eb9   :  { %v5237_v38 = vpop.eup %5236 }
0x1eba   :  { %v2219_v18 = vmul.f32 %v5237_v38, %v2217_v34  ;;  %vm2224_vm12 = vweird.f32 %v5237_v38 }
0x1ebb   :  { %vm2225_vm14 = vmor %vm2223_vm13, %vm2224_vm12 }
0x1ebc   :  { %v2220_v39 = vsub.f32 1.0, %v2219_v18 }
0x1ebe   :  { %v2221_v41 = vmul.f32 %v5237_v38, %v2220_v39 }
0x1ec0   :  { %v2222_v42 = vadd.f32 %v5237_v38, %v2221_v41 }
0x1ec2   :  { %v2226_v46 = vsel %vm2225_vm14, %v5237_v38, %v2222_v42 }
0x1ec3   :  { %v2231_v49 = vsel %vm2228_vm15, %v2230_v47, %v2226_v46 }
0x1ec4   :  { %v2244_v2 = vsub.f32 1.0, %v2231_v49  ;;  %v2250_v63 = vmul.f32 %v2231_v49, %v6420_v11  ;;  %v2538_v11 = vld [vmem:[%s7065_s10] sm:$0xff] }
0x1ec5   :  { %2614 = vmatpush.msra.mxu2 %v2538_v11  ;;  %v2643_v11 = vld [vmem:[#allocation17 + $0x18] sm:$0xff] }
0x1ec6   :  { %2689 = vmatpush.msra.mxu0 %v2643_v11  ;;  %v6516_v11 = vld [vmem:[#allocation19 + $0x10] sm:$0xff] }
0x1efa   :  { %v2173_v12 = vpop.permute.xlu1 %2172 }
0x1efb   :  { %v2175_v37 = vmul.f32 %v2173_v12, %v2169_v36 }
0x1efd   :  { %2177 = vrot.lane.b32.xlu0 %v2175_v37, %s5737_s4 }
0x1f18   :  { %v2235_v48 = vpop.permute.xlu0 %2234 }
0x1f19   :  { %v2237_v50 = vmul.f32 %v2235_v48, %v2231_v49 }
0x1f1b   :  { %2239 = vrot.lane.b32.xlu2 %v2237_v50, %s5737_s4 }
0x1f6f   :  { %v2178_v51 = vpop.permute.xlu0 %2177 }
0x1f70   :  { %v2180_v52 = vadd.f32 %v2178_v51, %v2128_v5 }
0x1f72   :  { %5238 = vtanh.f32 %v2180_v52 }
0x1f75   :  { %v2240_v53 = vpop.permute.xlu2 %2239 }
0x1f76   :  { %v2242_v54 = vadd.f32 %v2240_v53, %v2190_v10 }
0x1f78   :  { %v5239_v55 = vpop.eup %5238  ;;  %5240 = vtanh.f32 %v2242_v54 }
0x1f79   :  { %2184 = vrot.lane.b32.xlu2 %v5239_v55, %s5738_s8 }
0x1f7e   :  { %v5241_v56 = vpop.eup %5240 }
0x1f7f   :  { %2246 = vrot.lane.b32.xlu1 %v5241_v56, %s5738_s8 }
0x1fd3   :  { %v2185_v57 = vpop.permute.xlu2 %2184 }
0x1fd4   :  { %v2187_v61 = vmul.f32 %v2185_v57, %v2182_v58 }
0x1fd6   :  { %v6437_v0 = vadd.f32 %v2188_v60, %v2187_v61 }
0x1fd8   :  { %2253 = vrot.lane.b32.xlu1 %v6437_v0, %s5738_s8 }
0x1ff1   :  { %v2247_v59 = vpop.permute.xlu1 %2246 }
0x1ff2   :  { %v2249_v62 = vmul.f32 %v2247_v59, %v2244_v2 }
0x1ff4   :  { %v6442_v1 = vadd.f32 %v2250_v63, %v2249_v62 }
0x1ff6   :  { %2258 = vrot.lane.b32.xlu0 %v6442_v1, %s5738_s8 }
0x204a   :  { %v2254_v26 = vpop.permute.xlu1 %2253 }
0x204b   :  { %2256 = vst.msk [vmem:[#allocation6 + $0x1a] sm:$0x3] %vm513_vm0, %v2254_v26  ;;  %4960 = vmatmul.msk.f32.vlgmr.msrb.gmra.mxu1 %vm282_vm6, %v2254_v26 }
0x2068   :  { %v2259_v15 = vpop.permute.xlu0 %2258 }
0x2069   :  { %2261 = vst.msk [vmem:[#allocation7 + $0x4] sm:$0x3] %vm513_vm0, %v2259_v15  ;;  %4962 = vmatmul.msk.f32.vlgmr.msrb.gmra.mxu2 %vm282_vm6, %v2259_v15  ;;  %v2642_v15 = vld [vmem:[#allocation17 + $0x10] sm:$0xff] }
0x206a   :  { %2690 = vmatpush.msra.mxu0 %v2642_v15  ;;  %v6524_v15 = vld [vmem:[#allocation19] sm:$0xff] }
0x2071   :  { %4972 = vmatmul.msk.f32.vlgmr.msra.gmra.mxu2 %vm282_vm6, %v6462_v20 }
0x2079   :  { %4973 = vmatmul.msk.f32.gmra.mxu2 %vm282_vm6, %v6466_v16 }
0x2081   :  { %4974 = vmatmul.msk.f32.gmra.mxu2 %vm282_vm6, %v6470_v21 }
0x20c8   :  { %v2282_v30 = vpop.f32.mrf.mxu1 }
0x20c9   :  { %v2283_v40 = vadd.f32 %v6399_v24, %v2282_v30  ;;  %v2640_v30 = vld [vmem:[#allocation17] sm:$0xff] }
0x20cb   :  { %2306 = vrot.lane.b32.xlu0 %v2283_v40, %s5737_s4  ;;  %v2285_v19 = vadd.f32 %v2283_v40, %v2262_v25 }
0x20cd   :  { %v4961_v4 = vmul.f32 -1.442695, %v2285_v19 }
0x20cf   :  { %5242 = vpow2.f32 %v4961_v4  ;;  %v2396_v4 = vld [vmem:[#allocation2 + $0x1e] sm:$0x3] }
0x20d5   :  { %v5243_v22 = vpop.eup %5242 }
0x20d6   :  { %v2289_v44 = vadd.f32 1.0, %v5243_v22 }
0x20d8   :  { %v2301_v12 = vand.u32 2147483648, %v2289_v44  ;;  %vm2295_vm2 = vweird.f32 %v2289_v44  ;;  %v2299_v36 = vand.u32 2147483647, %v2289_v44 }
0x20da   :  { %v2302_v18 = vor.u32 1.1754944e-38, %v2301_v12  ;;  %vm2300_vm4 = vcmp.eq.f32.partialorder %v2299_v36, 8.507059e+37 }
0x20ec   :  { %v2344_v5 = vpop.f32.mrf.mxu2 }
0x20ed   :  { %v2345_v27 = vadd.f32 %v6406_v6, %v2344_v5 }
0x20ef   :  { %2368 = vrot.lane.b32.xlu2 %v2345_v27, %s5737_s4  ;;  %v2347_v10 = vadd.f32 %v2345_v27, %v2324_v9 }
0x20f1   :  { %v4963_v29 = vmul.f32 -1.442695, %v2347_v10 }
0x20f3   :  { %5244 = vpow2.f32 %v4963_v29  ;;  %v2458_v29 = vld [vmem:[#allocation3] sm:$0x3] }
0x20f4   :  { %5246 = vrcp.f32 %v2289_v44 }
0x20f9   :  { %v5245_v3 = vpop.eup %5244 }
0x20fa   :  { %v5247_v13 = vpop.eup %5246  ;;  %v2351_v14 = vadd.f32 1.0, %v5245_v3 }
0x20fb   :  { %v2291_v31 = vmul.f32 %v5247_v13, %v2289_v44  ;;  %vm2296_vm1 = vweird.f32 %v5247_v13 }
0x20fc   :  { %5248 = vrcp.f32 %v2351_v14  ;;  %vm2297_vm3 = vmor %vm2295_vm2, %vm2296_vm1  ;;  %v2363_v46 = vand.u32 2147483648, %v2351_v14  ;;  %vm2357_vm8 = vweird.f32 %v2351_v14  ;;  %v2361_v47 = vand.u32 2147483647, %v2351_v14 }
0x20fd   :  { %v2292_v17 = vsub.f32 1.0, %v2291_v31 }
0x20fe   :  { %v2364_v49 = vor.u32 1.1754944e-38, %v2363_v46  ;;  %vm2362_vm10 = vcmp.eq.f32.partialorder %v2361_v47, 8.507059e+37 }
0x20ff   :  { %v2293_v32 = vmul.f32 %v5247_v13, %v2292_v17 }
0x2101   :  { %v2294_v34 = vadd.f32 %v5247_v13, %v2293_v32 }
0x2102   :  { %v5249_v33 = vpop.eup %5248 }
0x2103   :  { %v2353_v35 = vmul.f32 %v5249_v33, %v2351_v14  ;;  %v2298_v37 = vsel %vm2297_vm3, %v5247_v13, %v2294_v34  ;;  %vm2358_vm5 = vweird.f32 %v5249_v33 }
0x2104   :  { %v2303_v41 = vsel %vm2300_vm4, %v2302_v18, %v2298_v37  ;;  %vm2359_vm9 = vmor %vm2357_vm8, %vm2358_vm5 }
0x2105   :  { %v2354_v38 = vsub.f32 1.0, %v2353_v35  ;;  %v2316_v60 = vsub.f32 1.0, %v2303_v41  ;;  %v2322_v2 = vmul.f32 %v2303_v41, %v6437_v0  ;;  %v2641_v0 = vld [vmem:[#allocation17 + $0x8] sm:$0xff] }
0x2106   :  { %2691 = vmatpush.msra.mxu0 %v2641_v0  ;;  %v2647_v0 = vld [vmem:[#allocation17 + $0x38] sm:$0xff] }
0x2107   :  { %v2355_v43 = vmul.f32 %v5249_v33, %v2354_v38  ;;  %2660 = vmatpush.msrb.mxu3 %v2647_v0 }
0x2108   :  { %2692 = vmatpush.msra.mxu0 %v2640_v30  ;;  %v2544_v30 = vld [vmem:[%s7065_s10 + $0x30] sm:$0xff] }
0x2109   :  { %v2356_v45 = vadd.f32 %v5249_v33, %v2355_v43 }
0x210b   :  { %v2360_v48 = vsel %vm2359_vm9, %v5249_v33, %v2356_v45 }
0x210c   :  { %v2365_v50 = vsel %vm2362_vm10, %v2364_v49, %v2360_v48 }
0x210d   :  { %v2378_v62 = vsub.f32 1.0, %v2365_v50  ;;  %v2384_v8 = vmul.f32 %v2365_v50, %v6442_v1 }
0x213d   :  { %v2307_v39 = vpop.permute.xlu0 %2306 }
0x213e   :  { %v2309_v42 = vmul.f32 %v2307_v39, %v2303_v41 }
0x2140   :  { %2311 = vrot.lane.b32.xlu2 %v2309_v42, %s5737_s4 }
0x2149   :  { %v2369_v51 = vpop.permute.xlu2 %2368 }
0x214a   :  { %v2371_v52 = vmul.f32 %v2369_v51, %v2365_v50 }
0x214c   :  { %2373 = vrot.lane.b32.xlu1 %v2371_v52, %s5737_s4 }
0x219a   :  { %v2312_v53 = vpop.permute.xlu2 %2311 }
0x219b   :  { %v2314_v54 = vadd.f32 %v2312_v53, %v2262_v25 }
0x219d   :  { %5250 = vtanh.f32 %v2314_v54 }
0x21a3   :  { %v5251_v55 = vpop.eup %5250 }
0x21a4   :  { %2318 = vrot.lane.b32.xlu1 %v5251_v55, %s5738_s8 }
0x21be   :  { %v2374_v56 = vpop.permute.xlu1 %2373 }
0x21bf   :  { %v2376_v58 = vadd.f32 %v2374_v56, %v2324_v9 }
0x21c1   :  { %5252 = vtanh.f32 %v2376_v58 }
0x21c7   :  { %v5253_v57 = vpop.eup %5252 }
0x21c8   :  { %2380 = vrot.lane.b32.xlu0 %v5253_v57, %s5738_s8 }
0x2216   :  { %v2319_v61 = vpop.permute.xlu1 %2318 }
0x2217   :  { %v2321_v59 = vmul.f32 %v2319_v61, %v2316_v60 }
0x2219   :  { %v6483_v63 = vadd.f32 %v2322_v2, %v2321_v59 }
0x221b   :  { %2387 = vrot.lane.b32.xlu0 %v6483_v63, %s5738_s8 }
0x223a   :  { %v2381_v7 = vpop.permute.xlu0 %2380 }
0x223b   :  { %v2383_v26 = vmul.f32 %v2381_v7, %v2378_v62 }
0x223d   :  { %v6488_v23 = vadd.f32 %v2384_v8, %v2383_v26  ;;  %v6514_v26 = vld [vmem:[#allocation19 + $0x18] sm:$0xff] }
0x223e   :  { %2807 = vmatpush.msrb.mxu2 %v6514_v26 }
0x223f   :  { %2392 = vrot.lane.b32.xlu2 %v6488_v23, %s5738_s8 }
0x2240   :  { %2808 = vmatpush.msrb.mxu2 %v6516_v11 }
0x228d   :  { %v2388_v40 = vpop.permute.xlu0 %2387 }
0x228e   :  { %2390 = vst.msk [vmem:[#allocation6 + $0x1c] sm:$0x3] %vm513_vm0, %v2388_v40  ;;  %4964 = vmatmul.msk.f32.vlgmr.msra.gmra.mxu3 %vm282_vm6, %v2388_v40 }
0x2299   :  { %v2393_v1 = vpop.permute.xlu2 %2392 }
0x229a   :  { %2395 = vst.msk [vmem:[#allocation7 + $0x2] sm:$0x3] %vm513_vm0, %v2393_v1  ;;  %4966 = vmatmul.msk.f32.vlgmr.msrb.gmra.mxu0 %vm282_vm6, %v2393_v1  ;;  %v2646_v1 = vld [vmem:[#allocation17 + $0x30] sm:$0xff] }
0x229b   :  { %2937 = vmatpush.msrb.mxu0 %v6514_v26  ;;  %2661 = vmatpush.msrb.mxu3 %v2646_v1 }
0x229d   :  { %2938 = vmatpush.msrb.mxu0 %v6516_v11 }
0x22a2   :  { %4980 = vmatmul.msk.f32.vlgmr.msra.gmra.mxu0 %vm282_vm6, %v6462_v20 }
0x22aa   :  { %4981 = vmatmul.msk.f32.gmra.mxu0 %vm282_vm6, %v6466_v16 }
0x22b2   :  { %4982 = vmatmul.msk.f32.gmra.mxu0 %vm282_vm6, %v6470_v21 }
0x2311   :  { %v2416_v5 = vpop.f32.mrf.mxu3 }
0x2312   :  { %v2417_v27 = vadd.f32 %v6399_v24, %v2416_v5  ;;  %v2543_v5 = vld [vmem:[%s7065_s10 + $0x28] sm:$0xff] }
0x2314   :  { %2440 = vrot.lane.b32.xlu2 %v2417_v27, %s5737_s4  ;;  %v2419_v9 = vadd.f32 %v2417_v27, %v2396_v4  ;;  %v2645_v27 = vld [vmem:[#allocation17 + $0x28] sm:$0xff] }
0x2315   :  { %2662 = vmatpush.msrb.mxu3 %v2645_v27 }
0x2316   :  { %v4965_v10 = vmul.f32 -1.442695, %v2419_v9 }
0x2317   :  { %v2478_v25 = vpop.f32.mrf.mxu0 }
0x2318   :  { %v2479_v19 = vadd.f32 %v6406_v6, %v2478_v25  ;;  %5254 = vpow2.f32 %v4965_v10  ;;  %v2542_v25 = vld [vmem:[%s7065_s10 + $0x20] sm:$0xff]  ;;  %v6557_v10 = vld [vmem:[#allocation16 + $0x10] sm:$0xff] }
0x231a   :  { %2502 = vrot.lane.b32.xlu1 %v2479_v19, %s5737_s4  ;;  %v2481_v21 = vadd.f32 %v2479_v19, %v2458_v29  ;;  %v2644_v19 = vld [vmem:[#allocation17 + $0x20] sm:$0xff] }
0x231b   :  { %2663 = vmatpush.msrb.mxu3 %v2644_v19 }
0x231c   :  { %v4967_v3 = vmul.f32 -1.442695, %v2481_v21  ;;  %v2535_v21 = vld [vmem:[#allocation7 + $0x8] sm:$0xff] }
0x231e   :  { %v5255_v20 = vpop.eup %5254 }
0x231f   :  { %v2423_v22 = vadd.f32 1.0, %v5255_v20  ;;  %v6565_v20 = vld [vmem:[#allocation16 + $0x8] sm:$0xff] }
0x2321   :  { %5256 = vrcp.f32 %v2423_v22  ;;  %v2435_v6 = vand.u32 2147483648, %v2423_v22  ;;  %vm2429_vm12 = vweird.f32 %v2423_v22  ;;  %v2433_v17 = vand.u32 2147483647, %v2423_v22 }
0x2322   :  { %5258 = vpow2.f32 %v4967_v3  ;;  %v2537_v3 = vld [vmem:[#allocation7 + $0x18] sm:$0xff] }
0x2323   :  { %v2436_v34 = vor.u32 1.1754944e-38, %v2435_v6  ;;  %vm2434_vm14 = vcmp.eq.f32.partialorder %v2433_v17, 8.507059e+37 }
0x2327   :  { %v5257_v16 = vpop.eup %5256 }
0x2328   :  { %v2425_v44 = vmul.f32 %v5257_v16, %v2423_v22  ;;  %vm2430_vm11 = vweird.f32 %v5257_v16  ;;  %v5259_v31 = vpop.eup %5258 }
0x2329   :  { %vm2431_vm13 = vmor %vm2429_vm12, %vm2430_vm11  ;;  %v2485_v33 = vadd.f32 1.0, %v5259_v31  ;;  %v6599_v31 = vld [vmem:[%s7072_s17] ss:$0 sm:$0xff] }
0x232a   :  { %v2426_v24 = vsub.f32 1.0, %v2425_v44  ;;  %v2536_v44 = vld [vmem:[#allocation7 + $0x10] sm:$0xff] }
0x232b   :  { %5260 = vrcp.f32 %v2485_v33  ;;  %v2497_v42 = vand.u32 2147483648, %v2485_v33  ;;  %vm2491_vm1 = vweird.f32 %v2485_v33  ;;  %v2495_v43 = vand.u32 2147483647, %v2485_v33 }
0x232c   :  { %v2427_v13 = vmul.f32 %v5257_v16, %v2426_v24  ;;  %v2616_v24 = vpop.f32.mrf.mxu2 }
0x232d   :  { %v2498_v46 = vor.u32 1.1754944e-38, %v2497_v42  ;;  %vm2496_vm3 = vcmp.eq.f32.partialorder %v2495_v43, 8.507059e+37 }
0x232e   :  { %v2428_v14 = vadd.f32 %v5257_v16, %v2427_v13 }
0x2330   :  { %v2432_v32 = vsel %vm2431_vm13, %v5257_v16, %v2428_v14  ;;  %v6571_v16 = vld [vmem:[#allocation16] sm:$0xff] }
0x2331   :  { %v2437_v35 = vsel %vm2434_vm14, %v2436_v34, %v2432_v32  ;;  %v5261_v37 = vpop.eup %5260  ;;  %v5070_v32 = vld [vmem:[%s7067_s12] ss:$0 sm:$0xff] }
0x2332   :  { %v2487_v38 = vmul.f32 %v5261_v37, %v2485_v33  ;;  %vm2492_vm15 = vweird.f32 %v5261_v37  ;;  %v2450_v56 = vsub.f32 1.0, %v2437_v35  ;;  %v2456_v57 = vmul.f32 %v2437_v35, %v6483_v63  ;;  %v6520_v63 = vld [vmem:[#allocation19 + $0x8] sm:$0xff] }
0x2333   :  { %vm2493_vm2 = vmor %vm2491_vm1, %vm2492_vm15  ;;  %2809 = vmatpush.msrb.mxu2 %v6520_v63  ;;  %2939 = vmatpush.msrb.mxu0 %v6520_v63 }
0x2334   :  { %v2488_v18 = vsub.f32 1.0, %v2487_v38  ;;  %v2619_v13 = vpop.f32.mrf.mxu2 }
0x2335   :  { %2810 = vmatpush.msrb.mxu2 %v6524_v15  ;;  %2940 = vmatpush.msrb.mxu0 %v6524_v15 }
0x2336   :  { %v2489_v39 = vmul.f32 %v5261_v37, %v2488_v18 }
0x2337   :  { %3067 = vmatpush.msra.mxu2 %v6514_v26  ;;  %3197 = vmatpush.msra.mxu0 %v6514_v26 }
0x2338   :  { %v2490_v41 = vadd.f32 %v5261_v37, %v2489_v39 }
0x2339   :  { %3068 = vmatpush.msra.mxu2 %v6516_v11  ;;  %3198 = vmatpush.msra.mxu0 %v6516_v11 }
0x233a   :  { %v2494_v45 = vsel %vm2493_vm2, %v5261_v37, %v2490_v41 }
0x233b   :  { %v2499_v48 = vsel %vm2496_vm3, %v2498_v46, %v2494_v45  ;;  %3069 = vmatpush.msra.mxu2 %v6520_v63  ;;  %3199 = vmatpush.msra.mxu0 %v6520_v63 }
0x233c   :  { %v2512_v2 = vsub.f32 1.0, %v2499_v48  ;;  %v2518_v62 = vmul.f32 %v2499_v48, %v6488_v23  ;;  %v2545_v23 = vld [vmem:[%s7065_s10 + $0x38] sm:$0xff]  ;;  %v2622_v14 = vpop.f32.mrf.mxu2 }
0x233d   :  { %3070 = vmatpush.msra.mxu2 %v6524_v15  ;;  %3200 = vmatpush.msra.mxu0 %v6524_v15 }
0x233e   :  { %2570 = vmatpush.msra.mxu1 %v2545_v23 }
0x2340   :  { %2571 = vmatpush.msra.mxu1 %v2544_v30 }
0x2342   :  { %2572 = vmatpush.msra.mxu1 %v2543_v5 }
0x2344   :  { %2573 = vmatpush.msra.mxu1 %v2542_v25 }
0x236e   :  { %v2441_v12 = vpop.permute.xlu2 %2440 }
0x236f   :  { %v2443_v36 = vmul.f32 %v2441_v12, %v2437_v35  ;;  %v2694_v35 = vpop.f32.mrf.mxu0 }
0x2371   :  { %2445 = vrot.lane.b32.xlu1 %v2443_v36, %s5737_s4  ;;  %v5071_v36 = vld [vmem:[%s7071_s16] ss:$0 sm:$0xff] }
0x2377   :  { %v2697_v43 = vpop.f32.mrf.mxu0 }
0x238c   :  { %v2503_v47 = vpop.permute.xlu1 %2502 }
0x238d   :  { %v2505_v49 = vmul.f32 %v2503_v47, %v2499_v48 }
0x238f   :  { %2507 = vrot.lane.b32.xlu0 %v2505_v49, %s5737_s4 }
0x23e3   :  { %v2446_v50 = vpop.permute.xlu1 %2445 }
0x23e4   :  { %v2448_v51 = vadd.f32 %v2446_v50, %v2396_v4  ;;  %v6551_v4 = vld [vmem:[#allocation16 + $0x18] sm:$0xff] }
0x23e5   :  { %2744 = vmatpush.msrb.mxu1 %v6551_v4  ;;  %2872 = vmatpush.msra.mxu3 %v6551_v4 }
0x23e6   :  { %5262 = vtanh.f32 %v2448_v51  ;;  %v2700_v51 = vpop.f32.mrf.mxu0 }
0x23e7   :  { %2745 = vmatpush.msrb.mxu1 %v6557_v10  ;;  %2873 = vmatpush.msra.mxu3 %v6557_v10 }
0x23e9   :  { %2746 = vmatpush.msrb.mxu1 %v6565_v20  ;;  %2874 = vmatpush.msra.mxu3 %v6565_v20 }
0x23eb   :  { %2747 = vmatpush.msrb.mxu1 %v6571_v16  ;;  %2875 = vmatpush.msra.mxu3 %v6571_v16 }
0x23ec   :  { %v5263_v52 = vpop.eup %5262 }
0x23ed   :  { %2452 = vrot.lane.b32.xlu0 %v5263_v52, %s5738_s8 }
0x2401   :  { %v2508_v53 = vpop.permute.xlu0 %2507 }
0x2402   :  { %v2510_v54 = vadd.f32 %v2508_v53, %v2458_v29 }
0x2404   :  { %5264 = vtanh.f32 %v2510_v54 }
0x240a   :  { %v5265_v55 = vpop.eup %5264 }
0x240b   :  { %2514 = vrot.lane.b32.xlu2 %v5265_v55, %s5738_s8 }
0x245f   :  { %v2453_v58 = vpop.permute.xlu0 %2452 }
0x2460   :  { %v2455_v60 = vmul.f32 %v2453_v58, %v2450_v56 }
0x2462   :  { %v2457_v61 = vadd.f32 %v2456_v57, %v2455_v60  ;;  %v6619_v57 = vld [vmem:[%s7068_s13] ss:$0 sm:$0xff] }
0x2464   :  { %2521 = vrot.lane.b32.xlu2 %v2457_v61, %s5738_s8 }
0x2465   :  { %v2515_v59 = vpop.permute.xlu2 %2514 }
0x2466   :  { %v2517_v7 = vmul.f32 %v2515_v59, %v2512_v2 }
0x2468   :  { %v2519_v8 = vadd.f32 %v2518_v62, %v2517_v7 }
0x246a   :  { %2526 = vrot.lane.b32.xlu1 %v2519_v8, %s5738_s8 }
0x24be   :  { %v2522_v40 = vpop.permute.xlu2 %2521 }
0x24bf   :  { %2524 = vst.msk [vmem:[#allocation6 + $0x1e] sm:$0x3] %vm513_vm0, %v2522_v40 }
0x24c6   :  { %v2533_v9 = vld [vmem:[#allocation6 + $0x18] sm:$0xff] }
0x24c7   :  { %4975 = vmatmul.msk.f32.gmra.mxu2 %vm282_vm6, %v2533_v9  ;;  %4983 = vmatmul.msk.f32.gmra.mxu0 %vm282_vm6, %v2533_v9 }
0x24cf   :  { %2811 = vmatmul.f32.vlgmr.msrb.gmra.mxu2 %v5736_v28 }
0x24d0   :  { %3327 = vmatpush.msrb.mxu2 %v6514_v26 }
0x24d2   :  { %3328 = vmatpush.msrb.mxu2 %v6516_v11 }
0x24d4   :  { %3329 = vmatpush.msrb.mxu2 %v6520_v63 }
0x24d6   :  { %3330 = vmatpush.msrb.mxu2 %v6524_v15 }
0x24dc   :  { %v2527_v22 = vpop.permute.xlu1 %2526 }
0x24dd   :  { %2529 = vst.msk [vmem:[#allocation7] sm:$0x3] %vm513_vm0, %v2527_v22 }
0x24e4   :  { %v2534_v29 = vld [vmem:[#allocation7] sm:$0xff] }
0x24e5   :  { %4968 = vmatmul.msk.f32.vlgmr.msra.gmra.mxu1 %vm282_vm6, %v2534_v29  ;;  %4976 = vmatmul.msk.f32.vlgmr.msrb.gmra.mxu3 %vm282_vm6, %v2534_v29 }
0x24e6   :  { %3002 = vmatpush.msra.mxu1 %v6551_v4  ;;  %3132 = vmatpush.msrb.mxu3 %v6551_v4 }
0x24e8   :  { %3003 = vmatpush.msra.mxu1 %v6557_v10  ;;  %3133 = vmatpush.msrb.mxu3 %v6557_v10 }
0x24ea   :  { %3004 = vmatpush.msra.mxu1 %v6565_v20  ;;  %3134 = vmatpush.msrb.mxu3 %v6565_v20 }
0x24ec   :  { %3005 = vmatpush.msra.mxu1 %v6571_v16  ;;  %3135 = vmatpush.msrb.mxu3 %v6571_v16 }
0x24ed   :  { %4969 = vmatmul.msk.f32.gmra.mxu1 %vm282_vm6, %v2535_v21  ;;  %4977 = vmatmul.msk.f32.gmra.mxu3 %vm282_vm6, %v2535_v21 }
0x24f5   :  { %4970 = vmatmul.msk.f32.gmra.mxu1 %vm282_vm6, %v2536_v44  ;;  %4978 = vmatmul.msk.f32.gmra.mxu3 %vm282_vm6, %v2536_v44 }
0x24fd   :  { %4971 = vmatmul.msk.f32.gmra.mxu1 %vm282_vm6, %v2537_v3  ;;  %4979 = vmatmul.msk.f32.gmra.mxu3 %vm282_vm6, %v2537_v3 }
0x2505   :  { %2748 = vmatmul.f32.vlgmr.msrb.gmra.mxu1 %v5736_v28 }
0x2506   :  { %3262 = vmatpush.msrb.mxu1 %v6551_v4 }
0x2508   :  { %3263 = vmatpush.msrb.mxu1 %v6557_v10 }
0x250a   :  { %3264 = vmatpush.msrb.mxu1 %v6565_v20 }
0x250c   :  { %3265 = vmatpush.msrb.mxu1 %v6571_v16 }
0x2544   :  { %v2703_v60 = vpop.f32.mrf.mxu0 }
0x254a   :  { %v2625_v6 = vpop.f32.mrf.mxu2 }
0x2552   :  { %v2812_v17 = vpop.f32.mrf.mxu2 }
0x2553   :  { %v2813_v28 = vadd.f32 %v6599_v31, %v2812_v17 }
0x2555   :  { %2836 = vrot.lane.b32.xlu1 %v2813_v28, %s5737_s4 }
0x2562   :  { %v2575_v33 = vpop.f32.mrf.mxu1 }
0x2563   :  { %v2617_v34 = vadd.f32 %v2616_v24, %v2575_v33 }
0x2565   :  { %v2632_v12 = vadd.f32 %v5070_v32, %v2617_v34 }
0x2567   :  { %2636 = vst.msk [vmem:[#allocation4] sm:$0xff] %vm324_vm7, %v2632_v12 }
0x2568   :  { %v2665_v37 = vpop.f32.mrf.mxu3 }
0x2569   :  { %v2695_v38 = vadd.f32 %v2694_v35, %v2665_v37 }
0x256a   :  { %v2578_v18 = vpop.f32.mrf.mxu1 }
0x256b   :  { %v2710_v39 = vadd.f32 %v5071_v36, %v2695_v38  ;;  %v2620_v41 = vadd.f32 %v2619_v13, %v2578_v18 }
0x256d   :  { %2714 = vst.msk [vmem:[#allocation5] sm:$0xff] %vm324_vm7, %v2710_v39  ;;  %v2633_v42 = vadd.f32 %v5070_v32, %v2620_v41 }
0x256e   :  { %v2728_v21 = vld [vmem:[#allocation4] sm:$0x3] }
0x256f   :  { %2637 = vst.msk [vmem:[#allocation4 + $0x8] sm:$0xff] %vm324_vm7, %v2633_v42 }
0x2570   :  { %v2668_v45 = vpop.f32.mrf.mxu3 }
0x2571   :  { %v2698_v46 = vadd.f32 %v2697_v43, %v2668_v45 }
0x2572   :  { %v2581_v47 = vpop.f32.mrf.mxu1 }
0x2573   :  { %v2711_v48 = vadd.f32 %v5071_v36, %v2698_v46  ;;  %v2623_v49 = vadd.f32 %v2622_v14, %v2581_v47 }
0x2575   :  { %2715 = vst.msk [vmem:[#allocation5 + $0x8] sm:$0xff] %vm324_vm7, %v2711_v48  ;;  %v2634_v50 = vadd.f32 %v5070_v32, %v2623_v49 }
0x2577   :  { %2638 = vst.msk [vmem:[#allocation4 + $0x10] sm:$0xff] %vm324_vm7, %v2634_v50 }
0x2578   :  { %v2671_v52 = vpop.f32.mrf.mxu3 }
0x2579   :  { %v2701_v53 = vadd.f32 %v2700_v51, %v2671_v52 }
0x257a   :  { %v2584_v54 = vpop.f32.mrf.mxu1 }
0x257b   :  { %v2712_v55 = vadd.f32 %v5071_v36, %v2701_v53  ;;  %v2626_v56 = vadd.f32 %v2625_v6, %v2584_v54 }
0x257d   :  { %2716 = vst.msk [vmem:[#allocation5 + $0x10] sm:$0xff] %vm324_vm7, %v2712_v55  ;;  %v2635_v58 = vadd.f32 %v5070_v32, %v2626_v56 }
0x257f   :  { %2639 = vst.msk [vmem:[#allocation4 + $0x18] sm:$0xff] %vm324_vm7, %v2635_v58 }
0x2580   :  { %v2674_v61 = vpop.f32.mrf.mxu3 }
0x2581   :  { %v2704_v2 = vadd.f32 %v2703_v60, %v2674_v61 }
0x2582   :  { %v2749_v59 = vpop.f32.mrf.mxu1 }
0x2583   :  { %v2713_v62 = vadd.f32 %v5071_v36, %v2704_v2  ;;  %v2750_v7 = vadd.f32 %v6619_v57, %v2749_v59 }
0x2585   :  { %2717 = vst.msk [vmem:[#allocation5 + $0x18] sm:$0xff] %vm324_vm7, %v2713_v62  ;;  %2773 = vrot.lane.b32.xlu0 %v2750_v7, %s5737_s4  ;;  %v2752_v3 = vadd.f32 %v2750_v7, %v2728_v21 }
0x2587   :  { %v4984_v6 = vmul.f32 -1.442695, %v2752_v3 }
0x258c   :  { %v2791_v8 = vld [vmem:[#allocation5 + $0x1e] sm:$0x3] }
0x258d   :  { %v2815_v23 = vadd.f32 %v2813_v28, %v2791_v8 }
0x258f   :  { %v4985_v0 = vmul.f32 -1.442695, %v2815_v23 }
0x2591   :  { %5266 = vpow2.f32 %v4985_v0  ;;  %v2919_v0 = vld [vmem:[#allocation5 + $0x1c] sm:$0x3] }
0x2597   :  { %v5267_v30 = vpop.eup %5266 }
0x2598   :  { %v2819_v40 = vadd.f32 1.0, %v5267_v30 }
0x259a   :  { %5268 = vrcp.f32 %v2819_v40  ;;  %v2831_v9 = vand.u32 2147483648, %v2819_v40  ;;  %vm2825_vm4 = vweird.f32 %v2819_v40  ;;  %v2829_v22 = vand.u32 2147483647, %v2819_v40 }
0x259b   :  { %5270 = vpow2.f32 %v4984_v6 }
0x259c   :  { %v2832_v44 = vor.u32 1.1754944e-38, %v2831_v9  ;;  %vm2830_vm7 = vcmp.eq.f32.partialorder %v2829_v22, 8.507059e+37 }
0x25a0   :  { %v5269_v1 = vpop.eup %5268 }
0x25a1   :  { %v2821_v5 = vmul.f32 %v5269_v1, %v2819_v40  ;;  %vm2826_vm0 = vweird.f32 %v5269_v1  ;;  %v5271_v17 = vpop.eup %5270 }
0x25a2   :  { %vm2827_vm5 = vmor %vm2825_vm4, %vm2826_vm0  ;;  %v2756_v28 = vadd.f32 1.0, %v5271_v17 }
0x25a3   :  { %v2822_v27 = vsub.f32 1.0, %v2821_v5 }
0x25a4   :  { %5272 = vrcp.f32 %v2756_v28  ;;  %v2768_v36 = vand.u32 2147483648, %v2756_v28  ;;  %vm2762_vm9 = vweird.f32 %v2756_v28  ;;  %v2766_v37 = vand.u32 2147483647, %v2756_v28 }
0x25a5   :  { %v2823_v25 = vmul.f32 %v5269_v1, %v2822_v27 }
0x25a6   :  { %v2769_v18 = vor.u32 1.1754944e-38, %v2768_v36  ;;  %vm2767_vm11 = vcmp.eq.f32.partialorder %v2766_v37, 8.507059e+37 }
0x25a7   :  { %v2824_v19 = vadd.f32 %v5269_v1, %v2823_v25  ;;  %v2854_v25 = vld [vmem:[#allocation4 + $0x2] sm:$0x3] }
0x25a9   :  { %v2828_v29 = vsel %vm2827_vm5, %v5269_v1, %v2824_v19 }
0x25aa   :  { %v2833_v13 = vsel %vm2830_vm7, %v2832_v44, %v2828_v29  ;;  %v5273_v32 = vpop.eup %5272 }
0x25ab   :  { %v2758_v33 = vmul.f32 %v5273_v32, %v2756_v28  ;;  %vm2763_vm8 = vweird.f32 %v5273_v32  ;;  %v2846_v50 = vsub.f32 1.0, %v2833_v13  ;;  %v2852_v52 = vmul.f32 0.0, %v2833_v13 }
0x25ac   :  { %vm2764_vm10 = vmor %vm2762_vm9, %vm2763_vm8 }
0x25ad   :  { %v2759_v34 = vsub.f32 1.0, %v2758_v33 }
0x25af   :  { %v2760_v35 = vmul.f32 %v5273_v32, %v2759_v34 }
0x25b1   :  { %v2761_v12 = vadd.f32 %v5273_v32, %v2760_v35 }
0x25b3   :  { %v2765_v38 = vsel %vm2764_vm10, %v5273_v32, %v2761_v12 }
0x25b4   :  { %v2770_v41 = vsel %vm2767_vm11, %v2769_v18, %v2765_v38 }
0x25b5   :  { %v2783_v55 = vsub.f32 1.0, %v2770_v41  ;;  %v2789_v58 = vmul.f32 0.0, %v2770_v41 }
0x25c7   :  { %v2837_v24 = vpop.permute.xlu1 %2836 }
0x25c8   :  { %v2839_v14 = vmul.f32 %v2837_v24, %v2833_v13 }
0x25ca   :  { %2841 = vrot.lane.b32.xlu0 %v2839_v14, %s5737_s4 }
0x25f7   :  { %v2774_v39 = vpop.permute.xlu0 %2773 }
0x25f8   :  { %v2776_v42 = vmul.f32 %v2774_v39, %v2770_v41 }
0x25fa   :  { %2778 = vrot.lane.b32.xlu2 %v2776_v42, %s5737_s4 }
0x263c   :  { %v2842_v43 = vpop.permute.xlu0 %2841 }
0x263d   :  { %v2844_v45 = vadd.f32 %v2842_v43, %v2791_v8 }
0x263f   :  { %5274 = vtanh.f32 %v2844_v45 }
0x2645   :  { %v5275_v46 = vpop.eup %5274 }
0x2646   :  { %2848 = vrot.lane.b32.xlu2 %v5275_v46, %s5738_s8 }
0x2654   :  { %v2779_v47 = vpop.permute.xlu2 %2778 }
0x2655   :  { %v2781_v48 = vadd.f32 %v2779_v47, %v2728_v21 }
0x2657   :  { %5276 = vtanh.f32 %v2781_v48 }
0x265d   :  { %v5277_v49 = vpop.eup %5276 }
0x265e   :  { %2785 = vrot.lane.b32.xlu1 %v5277_v49, %s5738_s8 }
0x26a0   :  { %v2849_v51 = vpop.permute.xlu2 %2848 }
0x26a1   :  { %v2851_v53 = vmul.f32 %v2849_v51, %v2846_v50 }
0x26a3   :  { %v6628_v54 = vadd.f32 %v2852_v52, %v2851_v53 }
0x26a5   :  { %2921 = vrot.lane.b32.xlu1 %v6628_v54, %s5738_s8 }
0x26d0   :  { %v2786_v56 = vpop.permute.xlu1 %2785 }
0x26d1   :  { %v2788_v60 = vmul.f32 %v2786_v56, %v2783_v55 }
0x26d3   :  { %v6632_v61 = vadd.f32 %v2789_v58, %v2788_v60 }
0x26d5   :  { %2856 = vrot.lane.b32.xlu0 %v6632_v61, %s5738_s8 }
0x2717   :  { %v2922_v2 = vpop.permute.xlu1 %2921 }
0x2718   :  { %4988 = vmatmul.msk.f32.vlgmr.msrb.gmra.mxu0 %vm282_vm6, %v2922_v2 }
0x2719   :  { %3457 = vmatpush.msrb.mxu0 %v6514_v26 }
0x271b   :  { %3458 = vmatpush.msrb.mxu0 %v6516_v11 }
0x271d   :  { %3459 = vmatpush.msrb.mxu0 %v6520_v63 }
0x271f   :  { %3460 = vmatpush.msrb.mxu0 %v6524_v15 }
0x2747   :  { %v2857_v59 = vpop.permute.xlu0 %2856 }
0x2748   :  { %4986 = vmatmul.msk.f32.vlgmr.msra.gmra.mxu3 %vm282_vm6, %v2857_v59 }
0x2749   :  { %3392 = vmatpush.msra.mxu3 %v6551_v4 }
0x274b   :  { %3393 = vmatpush.msra.mxu3 %v6557_v10 }
0x274d   :  { %3394 = vmatpush.msra.mxu3 %v6565_v20 }
0x274f   :  { %3395 = vmatpush.msra.mxu3 %v6571_v16 }
0x2795   :  { %v2942_v62 = vpop.f32.mrf.mxu0 }
0x2796   :  { %v2943_v7 = vadd.f32 %v6599_v31, %v2942_v62 }
0x2798   :  { %2966 = vrot.lane.b32.xlu0 %v2943_v7, %s5737_s4  ;;  %v2945_v30 = vadd.f32 %v2943_v7, %v2919_v0 }
0x279a   :  { %v4989_v40 = vmul.f32 -1.442695, %v2945_v30 }
0x279c   :  { %5278 = vpow2.f32 %v4989_v40  ;;  %v3049_v40 = vld [vmem:[#allocation5 + $0x1a] sm:$0x3] }
0x27a2   :  { %v5279_v1 = vpop.eup %5278 }
0x27a3   :  { %v2949_v5 = vadd.f32 1.0, %v5279_v1 }
0x27a5   :  { %5280 = vrcp.f32 %v2949_v5  ;;  %v2961_v3 = vand.u32 2147483648, %v2949_v5  ;;  %vm2955_vm13 = vweird.f32 %v2949_v5  ;;  %v2959_v13 = vand.u32 2147483647, %v2949_v5 }
0x27a7   :  { %v2962_v17 = vor.u32 1.1754944e-38, %v2961_v3  ;;  %vm2960_vm15 = vcmp.eq.f32.partialorder %v2959_v13, 8.507059e+37  ;;  %v2984_v13 = vld [vmem:[#allocation4 + $0x4] sm:$0x3] }
0x27ab   :  { %v5281_v27 = vpop.eup %5280 }
0x27ac   :  { %v2951_v9 = vmul.f32 %v5281_v27, %v2949_v5  ;;  %vm2956_vm12 = vweird.f32 %v5281_v27 }
0x27ad   :  { %vm2957_vm14 = vmor %vm2955_vm13, %vm2956_vm12 }
0x27ae   :  { %v2952_v29 = vsub.f32 1.0, %v2951_v9 }
0x27b0   :  { %v2953_v21 = vmul.f32 %v5281_v27, %v2952_v29 }
0x27b2   :  { %v2954_v44 = vadd.f32 %v5281_v27, %v2953_v21 }
0x27b4   :  { %v2958_v14 = vsel %vm2957_vm14, %v5281_v27, %v2954_v44 }
0x27b5   :  { %v2963_v32 = vsel %vm2960_vm15, %v2962_v17, %v2958_v14 }
0x27b6   :  { %v2976_v52 = vsub.f32 1.0, %v2963_v32  ;;  %v2982_v55 = vmul.f32 %v2963_v32, %v6628_v54 }
0x27cb   :  { %v2877_v8 = vpop.f32.mrf.mxu3 }
0x27cc   :  { %v2878_v23 = vadd.f32 %v6619_v57, %v2877_v8 }
0x27ce   :  { %2901 = vrot.lane.b32.xlu2 %v2878_v23, %s5737_s4  ;;  %v2880_v19 = vadd.f32 %v2878_v23, %v2854_v25 }
0x27d0   :  { %v4987_v22 = vmul.f32 -1.442695, %v2880_v19 }
0x27d2   :  { %5282 = vpow2.f32 %v4987_v22 }
0x27d8   :  { %v5283_v24 = vpop.eup %5282 }
0x27d9   :  { %v2884_v6 = vadd.f32 1.0, %v5283_v24 }
0x27db   :  { %5284 = vrcp.f32 %v2884_v6  ;;  %v2896_v38 = vand.u32 2147483648, %v2884_v6  ;;  %vm2890_vm2 = vweird.f32 %v2884_v6  ;;  %v2894_v18 = vand.u32 2147483647, %v2884_v6 }
0x27dd   :  { %v2897_v41 = vor.u32 1.1754944e-38, %v2896_v38  ;;  %vm2895_vm0 = vcmp.eq.f32.partialorder %v2894_v18, 8.507059e+37 }
0x27e1   :  { %v5285_v34 = vpop.eup %5284 }
0x27e2   :  { %v2886_v35 = vmul.f32 %v5285_v34, %v2884_v6  ;;  %vm2891_vm1 = vweird.f32 %v5285_v34 }
0x27e3   :  { %vm2892_vm3 = vmor %vm2890_vm2, %vm2891_vm1 }
0x27e4   :  { %v2887_v12 = vsub.f32 1.0, %v2886_v35 }
0x27e6   :  { %v2888_v36 = vmul.f32 %v5285_v34, %v2887_v12 }
0x27e8   :  { %v2889_v37 = vadd.f32 %v5285_v34, %v2888_v36 }
0x27ea   :  { %v2893_v39 = vsel %vm2892_vm3, %v5285_v34, %v2889_v37 }
0x27eb   :  { %v2898_v42 = vsel %vm2895_vm0, %v2897_v41, %v2893_v39 }
0x27ec   :  { %v2911_v60 = vsub.f32 1.0, %v2898_v42  ;;  %v2917_v59 = vmul.f32 %v2898_v42, %v6632_v61 }
0x280a   :  { %v2967_v28 = vpop.permute.xlu0 %2966 }
0x280b   :  { %v2969_v33 = vmul.f32 %v2967_v28, %v2963_v32 }
0x280d   :  { %2971 = vrot.lane.b32.xlu2 %v2969_v33, %s5737_s4 }
0x2828   :  { %v2902_v43 = vpop.permute.xlu2 %2901 }
0x2829   :  { %v2904_v45 = vmul.f32 %v2902_v43, %v2898_v42 }
0x282b   :  { %2906 = vrot.lane.b32.xlu1 %v2904_v45, %s5737_s4 }
0x2867   :  { %v2972_v46 = vpop.permute.xlu2 %2971 }
0x2868   :  { %v2974_v47 = vadd.f32 %v2972_v46, %v2919_v0 }
0x286a   :  { %5286 = vtanh.f32 %v2974_v47 }
0x2870   :  { %v5287_v48 = vpop.eup %5286 }
0x2871   :  { %2978 = vrot.lane.b32.xlu1 %v5287_v48, %s5738_s8 }
0x289d   :  { %v2907_v49 = vpop.permute.xlu1 %2906 }
0x289e   :  { %v2909_v50 = vadd.f32 %v2907_v49, %v2854_v25 }
0x28a0   :  { %5288 = vtanh.f32 %v2909_v50 }
0x28a6   :  { %v5289_v51 = vpop.eup %5288 }
0x28a7   :  { %2913 = vrot.lane.b32.xlu0 %v5289_v51, %s5738_s8 }
0x28e3   :  { %v2979_v53 = vpop.permute.xlu1 %2978 }
0x28e4   :  { %v2981_v56 = vmul.f32 %v2979_v53, %v2976_v52 }
0x28e6   :  { %v6655_v58 = vadd.f32 %v2982_v55, %v2981_v56 }
0x28e8   :  { %3051 = vrot.lane.b32.xlu0 %v6655_v58, %s5738_s8 }
0x2919   :  { %v2914_v2 = vpop.permute.xlu0 %2913 }
0x291a   :  { %v2916_v62 = vmul.f32 %v2914_v2, %v2911_v60 }
0x291c   :  { %v6660_v7 = vadd.f32 %v2917_v59, %v2916_v62 }
0x291e   :  { %2986 = vrot.lane.b32.xlu2 %v6660_v7, %s5738_s8 }
0x295a   :  { %v3052_v8 = vpop.permute.xlu0 %3051 }
0x295b   :  { %4992 = vmatmul.msk.f32.vlgmr.msra.gmra.mxu2 %vm282_vm6, %v3052_v8 }
0x295c   :  { %3587 = vmatpush.msra.mxu2 %v6514_v26 }
0x295e   :  { %3588 = vmatpush.msra.mxu2 %v6516_v11 }
0x2960   :  { %3589 = vmatpush.msra.mxu2 %v6520_v63 }
0x2962   :  { %3590 = vmatpush.msra.mxu2 %v6524_v15 }
0x2978   :  { %v2987_v54 = vpop.permute.xlu2 %2986 }
0x2979   :  { %4990 = vmatmul.msk.f32.vlgmr.msra.gmra.mxu1 %vm282_vm6, %v2987_v54 }
0x297a   :  { %3522 = vmatpush.msra.mxu1 %v6551_v4 }
0x297c   :  { %3523 = vmatpush.msra.mxu1 %v6557_v10 }
0x297e   :  { %3524 = vmatpush.msra.mxu1 %v6565_v20 }
0x2980   :  { %3525 = vmatpush.msra.mxu1 %v6571_v16 }
0x29de   :  { %v3072_v61 = vpop.f32.mrf.mxu2 }
0x29df   :  { %v3073_v23 = vadd.f32 %v6599_v31, %v3072_v61 }
0x29e1   :  { %3096 = vrot.lane.b32.xlu2 %v3073_v23, %s5737_s4  ;;  %v3075_v1 = vadd.f32 %v3073_v23, %v3049_v40 }
0x29e3   :  { %v4993_v5 = vmul.f32 -1.442695, %v3075_v1 }
0x29e5   :  { %5290 = vpow2.f32 %v4993_v5  ;;  %v3179_v5 = vld [vmem:[#allocation5 + $0x18] sm:$0x3] }
0x29eb   :  { %v5291_v27 = vpop.eup %5290 }
0x29ec   :  { %v3079_v25 = vadd.f32 1.0, %v5291_v27 }
0x29ee   :  { %5292 = vrcp.f32 %v3079_v25  ;;  %v3091_v44 = vand.u32 2147483648, %v3079_v25  ;;  %vm3085_vm5 = vweird.f32 %v3079_v25  ;;  %v3089_v3 = vand.u32 2147483647, %v3079_v25 }
0x29f0   :  { %v3092_v14 = vor.u32 1.1754944e-38, %v3091_v44  ;;  %vm3090_vm8 = vcmp.eq.f32.partialorder %v3089_v3, 8.507059e+37 }
0x29f4   :  { %v5293_v19 = vpop.eup %5292 }
0x29f5   :  { %v3081_v9 = vmul.f32 %v5293_v19, %v3079_v25  ;;  %vm3086_vm4 = vweird.f32 %v5293_v19 }
0x29f6   :  { %v3007_v0 = vpop.f32.mrf.mxu1  ;;  %vm3087_vm7 = vmor %vm3085_vm5, %vm3086_vm4 }
0x29f7   :  { %v3008_v30 = vadd.f32 %v6619_v57, %v3007_v0  ;;  %v3082_v22 = vsub.f32 1.0, %v3081_v9 }
0x29f9   :  { %3031 = vrot.lane.b32.xlu1 %v3008_v30, %s5737_s4  ;;  %v3083_v29 = vmul.f32 %v5293_v19, %v3082_v22  ;;  %v3010_v6 = vadd.f32 %v3008_v30, %v2984_v13 }
0x29fb   :  { %v3084_v21 = vadd.f32 %v5293_v19, %v3083_v29  ;;  %v4991_v33 = vmul.f32 -1.442695, %v3010_v6 }
0x29fd   :  { %v3088_v24 = vsel %vm3087_vm7, %v5293_v19, %v3084_v21  ;;  %5294 = vpow2.f32 %v4991_v33  ;;  %v3114_v33 = vld [vmem:[#allocation4 + $0x6] sm:$0x3] }
0x29fe   :  { %v3093_v17 = vsel %vm3090_vm8, %v3092_v14, %v3088_v24 }
0x29ff   :  { %v3106_v55 = vsub.f32 1.0, %v3093_v17  ;;  %v3112_v60 = vmul.f32 %v3093_v17, %v6655_v58 }
0x2a03   :  { %v5295_v34 = vpop.eup %5294 }
0x2a04   :  { %v3014_v35 = vadd.f32 1.0, %v5295_v34 }
0x2a06   :  { %5296 = vrcp.f32 %v3014_v35  ;;  %v3026_v39 = vand.u32 2147483648, %v3014_v35  ;;  %vm3020_vm10 = vweird.f32 %v3014_v35  ;;  %v3024_v41 = vand.u32 2147483647, %v3014_v35 }
0x2a08   :  { %v3027_v43 = vor.u32 1.1754944e-38, %v3026_v39  ;;  %vm3025_vm12 = vcmp.eq.f32.partialorder %v3024_v41, 8.507059e+37 }
0x2a0c   :  { %v5297_v12 = vpop.eup %5296 }
0x2a0d   :  { %v3016_v36 = vmul.f32 %v5297_v12, %v3014_v35  ;;  %vm3021_vm9 = vweird.f32 %v5297_v12 }
0x2a0e   :  { %vm3022_vm11 = vmor %vm3020_vm10, %vm3021_vm9 }
0x2a0f   :  { %v3017_v37 = vsub.f32 1.0, %v3016_v36 }
0x2a11   :  { %v3018_v38 = vmul.f32 %v5297_v12, %v3017_v37 }
0x2a13   :  { %v3019_v18 = vadd.f32 %v5297_v12, %v3018_v38 }
0x2a15   :  { %v3023_v42 = vsel %vm3022_vm11, %v5297_v12, %v3019_v18 }
0x2a16   :  { %v3028_v46 = vsel %vm3025_vm12, %v3027_v43, %v3023_v42 }
0x2a17   :  { %v3041_v62 = vsub.f32 1.0, %v3028_v46  ;;  %v3047_v54 = vmul.f32 %v3028_v46, %v6660_v7 }
0x2a3b   :  { %v3097_v28 = vpop.permute.xlu2 %3096 }
0x2a3c   :  { %v3099_v32 = vmul.f32 %v3097_v28, %v3093_v17 }
0x2a3e   :  { %3101 = vrot.lane.b32.xlu1 %v3099_v32, %s5737_s4 }
0x2a6b   :  { %v3032_v45 = vpop.permute.xlu1 %3031 }
0x2a6c   :  { %v3034_v47 = vmul.f32 %v3032_v45, %v3028_v46 }
0x2a6e   :  { %3036 = vrot.lane.b32.xlu0 %v3034_v47, %s5737_s4 }
0x2ab0   :  { %v3102_v48 = vpop.permute.xlu1 %3101 }
0x2ab1   :  { %v3104_v49 = vadd.f32 %v3102_v48, %v3049_v40 }
0x2ab3   :  { %5298 = vtanh.f32 %v3104_v49 }
0x2ab9   :  { %v5299_v50 = vpop.eup %5298 }
0x2aba   :  { %3108 = vrot.lane.b32.xlu0 %v5299_v50, %s5738_s8 }
0x2ae0   :  { %v3037_v51 = vpop.permute.xlu0 %3036 }
0x2ae1   :  { %v3039_v52 = vadd.f32 %v3037_v51, %v2984_v13 }
0x2ae3   :  { %5300 = vtanh.f32 %v3039_v52 }
0x2ae9   :  { %v5301_v53 = vpop.eup %5300 }
0x2aea   :  { %3043 = vrot.lane.b32.xlu2 %v5301_v53, %s5738_s8 }
0x2b2c   :  { %v3109_v56 = vpop.permute.xlu0 %3108 }
0x2b2d   :  { %v3111_v2 = vmul.f32 %v3109_v56, %v3106_v55 }
0x2b2f   :  { %v6683_v59 = vadd.f32 %v3112_v60, %v3111_v2 }
0x2b31   :  { %3181 = vrot.lane.b32.xlu2 %v6683_v59, %s5738_s8 }
0x2b44   :  { %v3044_v8 = vpop.permute.xlu2 %3043 }
0x2b45   :  { %v3046_v61 = vmul.f32 %v3044_v8, %v3041_v62 }
0x2b47   :  { %v6688_v23 = vadd.f32 %v3047_v54, %v3046_v61 }
0x2b49   :  { %3116 = vrot.lane.b32.xlu1 %v6688_v23, %s5738_s8 }
0x2b8b   :  { %v3182_v0 = vpop.permute.xlu2 %3181 }
0x2b8c   :  { %4996 = vmatmul.msk.f32.vlgmr.msra.gmra.mxu0 %vm282_vm6, %v3182_v0 }
0x2b8d   :  { %3717 = vmatpush.msra.mxu0 %v6514_v26 }
0x2b8f   :  { %3718 = vmatpush.msra.mxu0 %v6516_v11 }
0x2b91   :  { %3719 = vmatpush.msra.mxu0 %v6520_v63 }
0x2b93   :  { %3720 = vmatpush.msra.mxu0 %v6524_v15 }
0x2bbb   :  { %v3117_v58 = vpop.permute.xlu1 %3116 }
0x2bbc   :  { %4994 = vmatmul.msk.f32.vlgmr.msrb.gmra.mxu3 %vm282_vm6, %v3117_v58 }
0x2bbd   :  { %3652 = vmatpush.msrb.mxu3 %v6551_v4 }
0x2bbf   :  { %3653 = vmatpush.msrb.mxu3 %v6557_v10 }
0x2bc1   :  { %3654 = vmatpush.msrb.mxu3 %v6565_v20 }
0x2bc3   :  { %3655 = vmatpush.msrb.mxu3 %v6571_v16 }
0x2c09   :  { %v3202_v7 = vpop.f32.mrf.mxu0 }
0x2c0a   :  { %v3203_v30 = vadd.f32 %v6599_v31, %v3202_v7 }
0x2c0c   :  { %3226 = vrot.lane.b32.xlu1 %v3203_v30, %s5737_s4  ;;  %v3205_v27 = vadd.f32 %v3203_v30, %v3179_v5 }
0x2c0e   :  { %v4997_v25 = vmul.f32 -1.442695, %v3205_v27 }
0x2c10   :  { %5302 = vpow2.f32 %v4997_v25 }
0x2c16   :  { %v5303_v19 = vpop.eup %5302 }
0x2c17   :  { %v3209_v9 = vadd.f32 1.0, %v5303_v19 }
0x2c19   :  { %5304 = vrcp.f32 %v3209_v9  ;;  %v3221_v24 = vand.u32 2147483648, %v3209_v9  ;;  %vm3215_vm14 = vweird.f32 %v3209_v9  ;;  %v3219_v13 = vand.u32 2147483647, %v3209_v9 }
0x2c1b   :  { %v3222_v6 = vor.u32 1.1754944e-38, %v3221_v24  ;;  %vm3220_vm1 = vcmp.eq.f32.partialorder %v3219_v13, 8.507059e+37 }
0x2c1f   :  { %v5305_v22 = vpop.eup %5304 }
0x2c20   :  { %v3211_v29 = vmul.f32 %v5305_v22, %v3209_v9  ;;  %vm3216_vm13 = vweird.f32 %v5305_v22 }
0x2c21   :  { %vm3217_vm15 = vmor %vm3215_vm14, %vm3216_vm13 }
0x2c22   :  { %v3212_v21 = vsub.f32 1.0, %v3211_v29 }
0x2c24   :  { %v3213_v44 = vmul.f32 %v5305_v22, %v3212_v21 }
0x2c26   :  { %v3214_v3 = vadd.f32 %v5305_v22, %v3213_v44 }
0x2c28   :  { %v3218_v14 = vsel %vm3217_vm15, %v5305_v22, %v3214_v3 }
0x2c29   :  { %v3223_v28 = vsel %vm3220_vm1, %v3222_v6, %v3218_v14 }
0x2c2a   :  { %v3236_v60 = vsub.f32 1.0, %v3223_v28  ;;  %v3242_v62 = vmul.f32 %v3223_v28, %v6683_v59 }
0x2c3f   :  { %v3137_v40 = vpop.f32.mrf.mxu3 }
0x2c40   :  { %v3138_v1 = vadd.f32 %v6619_v57, %v3137_v40 }
0x2c42   :  { %3161 = vrot.lane.b32.xlu0 %v3138_v1, %s5737_s4  ;;  %v3140_v34 = vadd.f32 %v3138_v1, %v3114_v33 }
0x2c44   :  { %v4995_v35 = vmul.f32 -1.442695, %v3140_v34 }
0x2c46   :  { %5306 = vpow2.f32 %v4995_v35 }
0x2c4c   :  { %v5307_v12 = vpop.eup %5306 }
0x2c4d   :  { %v3144_v36 = vadd.f32 1.0, %v5307_v12 }
0x2c4f   :  { %5308 = vrcp.f32 %v3144_v36  ;;  %v3156_v42 = vand.u32 2147483648, %v3144_v36  ;;  %vm3150_vm3 = vweird.f32 %v3144_v36  ;;  %v3154_v43 = vand.u32 2147483647, %v3144_v36 }
0x2c51   :  { %v3157_v46 = vor.u32 1.1754944e-38, %v3156_v42  ;;  %vm3155_vm4 = vcmp.eq.f32.partialorder %v3154_v43, 8.507059e+37 }
0x2c55   :  { %v5309_v37 = vpop.eup %5308 }
0x2c56   :  { %v3146_v38 = vmul.f32 %v5309_v37, %v3144_v36  ;;  %vm3151_vm2 = vweird.f32 %v5309_v37 }
0x2c57   :  { %vm3152_vm0 = vmor %vm3150_vm3, %vm3151_vm2 }
0x2c58   :  { %v3147_v18 = vsub.f32 1.0, %v3146_v38 }
0x2c5a   :  { %v3148_v39 = vmul.f32 %v5309_v37, %v3147_v18 }
0x2c5c   :  { %v3149_v41 = vadd.f32 %v5309_v37, %v3148_v39 }
0x2c5e   :  { %v3153_v45 = vsel %vm3152_vm0, %v5309_v37, %v3149_v41 }
0x2c5f   :  { %v3158_v48 = vsel %vm3155_vm4, %v3157_v46, %v3153_v45 }
0x2c60   :  { %v3171_v61 = vsub.f32 1.0, %v3158_v48  ;;  %v3177_v58 = vmul.f32 %v3158_v48, %v6688_v23 }
0x2c7e   :  { %v3227_v17 = vpop.permute.xlu1 %3226 }
0x2c7f   :  { %v3229_v32 = vmul.f32 %v3227_v17, %v3223_v28 }
0x2c81   :  { %3231 = vrot.lane.b32.xlu0 %v3229_v32, %s5737_s4 }
0x2cb4   :  { %v3162_v47 = vpop.permute.xlu0 %3161 }
0x2cb5   :  { %v3164_v49 = vmul.f32 %v3162_v47, %v3158_v48 }
0x2cb7   :  { %3166 = vrot.lane.b32.xlu2 %v3164_v49, %s5737_s4 }
0x2cf3   :  { %v3232_v50 = vpop.permute.xlu0 %3231 }
0x2cf4   :  { %v3234_v51 = vadd.f32 %v3232_v50, %v3179_v5 }
0x2cf6   :  { %5310 = vtanh.f32 %v3234_v51 }
0x2cfc   :  { %v5311_v52 = vpop.eup %5310 }
0x2cfd   :  { %3238 = vrot.lane.b32.xlu2 %v5311_v52, %s5738_s8 }
0x2d11   :  { %v3167_v53 = vpop.permute.xlu2 %3166 }
0x2d12   :  { %v3169_v55 = vadd.f32 %v3167_v53, %v3114_v33 }
0x2d14   :  { %5312 = vtanh.f32 %v3169_v55 }
0x2d1a   :  { %v5313_v56 = vpop.eup %5312 }
0x2d1b   :  { %3173 = vrot.lane.b32.xlu1 %v5313_v56, %s5738_s8 }
0x2d57   :  { %v3239_v2 = vpop.permute.xlu2 %3238 }
0x2d58   :  { %v3241_v8 = vmul.f32 %v3239_v2, %v3236_v60 }
0x2d5a   :  { %v6711_v54 = vadd.f32 %v3242_v62, %v3241_v8 }
0x2d5c   :  { %3311 = vrot.lane.b32.xlu1 %v6711_v54, %s5738_s8 }
0x2d8d   :  { %v3174_v0 = vpop.permute.xlu1 %3173 }
0x2d8e   :  { %v3176_v7 = vmul.f32 %v3174_v0, %v3171_v61 }
0x2d90   :  { %v6716_v30 = vadd.f32 %v3177_v58, %v3176_v7  ;;  %v6752_v58 = vld [vmem:[#allocation19 + $0x10] sm:$0xff]  ;;  %v6755_v7 = vld [vmem:[#allocation19 + $0x8] sm:$0xff] }
0x2d92   :  { %3246 = vrot.lane.b32.xlu0 %v6716_v30, %s5738_s8 }
0x2dce   :  { %v3312_v40 = vpop.permute.xlu1 %3311 }
0x2dcf   :  { %5000 = vmatmul.msk.f32.vlgmr.msrb.gmra.mxu2 %vm282_vm6, %v3312_v40 }
0x2dd0   :  { %3847 = vmatpush.msrb.mxu2 %v6514_v26 }
0x2dd2   :  { %3848 = vmatpush.msrb.mxu2 %v6516_v11 }
0x2dd4   :  { %3849 = vmatpush.msrb.mxu2 %v6520_v63 }
0x2dd6   :  { %3850 = vmatpush.msrb.mxu2 %v6524_v15  ;;  %v3309_v15 = vld [vmem:[#allocation5 + $0x16] sm:$0x3] }
0x2e04   :  { %v3247_v59 = vpop.permute.xlu0 %3246 }
0x2e05   :  { %4998 = vmatmul.msk.f32.vlgmr.msrb.gmra.mxu1 %vm282_vm6, %v3247_v59  ;;  %v6762_v59 = vld [vmem:[#allocation16 + $0x18] sm:$0xff] }
0x2e06   :  { %3782 = vmatpush.msrb.mxu1 %v6551_v4 }
0x2e08   :  { %3783 = vmatpush.msrb.mxu1 %v6557_v10 }
0x2e0a   :  { %3784 = vmatpush.msrb.mxu1 %v6565_v20  ;;  %v3244_v20 = vld [vmem:[#allocation4 + $0x8] sm:$0x3] }
0x2e0c   :  { %3785 = vmatpush.msrb.mxu1 %v6571_v16 }
0x2e52   :  { %v3332_v23 = vpop.f32.mrf.mxu2 }
0x2e53   :  { %v3333_v26 = vadd.f32 %v6599_v31, %v3332_v23  ;;  %v6765_v23 = vld [vmem:[#allocation16 + $0x10] sm:$0xff] }
0x2e55   :  { %3356 = vrot.lane.b32.xlu0 %v3333_v26, %s5737_s4  ;;  %v3335_v1 = vadd.f32 %v3333_v26, %v3309_v15  ;;  %v6768_v26 = vld [vmem:[#allocation16 + $0x8] sm:$0xff] }
0x2e57   :  { %v5001_v5 = vmul.f32 -1.442695, %v3335_v1 }
0x2e59   :  { %5314 = vpow2.f32 %v5001_v5  ;;  %v3439_v5 = vld [vmem:[#allocation5 + $0x14] sm:$0x3] }
0x2e5f   :  { %v5315_v4 = vpop.eup %5314 }
0x2e60   :  { %v3339_v10 = vadd.f32 1.0, %v5315_v4 }
0x2e62   :  { %5316 = vrcp.f32 %v3339_v10  ;;  %v3351_v24 = vand.u32 2147483648, %v3339_v10  ;;  %vm3345_vm7 = vweird.f32 %v3339_v10  ;;  %v3349_v13 = vand.u32 2147483647, %v3339_v10 }
0x2e64   :  { %v3352_v6 = vor.u32 1.1754944e-38, %v3351_v24  ;;  %vm3350_vm9 = vcmp.eq.f32.partialorder %v3349_v13, 8.507059e+37  ;;  %v3374_v13 = vld [vmem:[#allocation4 + $0xa] sm:$0x3] }
0x2e68   :  { %v5317_v25 = vpop.eup %5316 }
0x2e69   :  { %v3341_v9 = vmul.f32 %v5317_v25, %v3339_v10  ;;  %vm3346_vm5 = vweird.f32 %v5317_v25 }
0x2e6a   :  { %vm3347_vm8 = vmor %vm3345_vm7, %vm3346_vm5 }
0x2e6b   :  { %v3342_v22 = vsub.f32 1.0, %v3341_v9 }
0x2e6d   :  { %v3343_v21 = vmul.f32 %v5317_v25, %v3342_v22 }
0x2e6f   :  { %v3344_v3 = vadd.f32 %v5317_v25, %v3343_v21 }
0x2e71   :  { %v3348_v14 = vsel %vm3347_vm8, %v5317_v25, %v3344_v3 }
0x2e72   :  { %v3353_v28 = vsel %vm3350_vm9, %v3352_v6, %v3348_v14 }
0x2e73   :  { %v3366_v51 = vsub.f32 1.0, %v3353_v28  ;;  %v3372_v53 = vmul.f32 %v3353_v28, %v6711_v54  ;;  %v6749_v54 = vld [vmem:[#allocation19 + $0x18] sm:$0xff] }
0x2e82   :  { %v3267_v11 = vpop.f32.mrf.mxu1 }
0x2e83   :  { %v3268_v63 = vadd.f32 %v6619_v57, %v3267_v11 }
0x2e85   :  { %3291 = vrot.lane.b32.xlu2 %v3268_v63, %s5737_s4  ;;  %v3270_v27 = vadd.f32 %v3268_v63, %v3244_v20 }
0x2e87   :  { %v4999_v19 = vmul.f32 -1.442695, %v3270_v27 }
0x2e89   :  { %5318 = vpow2.f32 %v4999_v19 }
0x2e8f   :  { %v5319_v29 = vpop.eup %5318 }
0x2e90   :  { %v3274_v44 = vadd.f32 1.0, %v5319_v29 }
0x2e92   :  { %5320 = vrcp.f32 %v3274_v44  ;;  %v3286_v37 = vand.u32 2147483648, %v3274_v44  ;;  %vm3280_vm11 = vweird.f32 %v3274_v44  ;;  %v3284_v38 = vand.u32 2147483647, %v3274_v44 }
0x2e94   :  { %v3287_v39 = vor.u32 1.1754944e-38, %v3286_v37  ;;  %vm3285_vm13 = vcmp.eq.f32.partialorder %v3284_v38, 8.507059e+37 }
0x2e98   :  { %v5321_v33 = vpop.eup %5320 }
0x2e99   :  { %v3276_v34 = vmul.f32 %v5321_v33, %v3274_v44  ;;  %vm3281_vm10 = vweird.f32 %v5321_v33 }
0x2e9a   :  { %vm3282_vm12 = vmor %vm3280_vm11, %vm3281_vm10 }
0x2e9b   :  { %v3277_v35 = vsub.f32 1.0, %v3276_v34 }
0x2e9d   :  { %v3278_v12 = vmul.f32 %v5321_v33, %v3277_v35 }
0x2e9f   :  { %v3279_v36 = vadd.f32 %v5321_v33, %v3278_v12 }
0x2ea1   :  { %v3283_v18 = vsel %vm3282_vm12, %v5321_v33, %v3279_v36 }
0x2ea2   :  { %v3288_v41 = vsel %vm3285_vm13, %v3287_v39, %v3283_v18 }
0x2ea3   :  { %v3301_v60 = vsub.f32 1.0, %v3288_v41  ;;  %v3307_v62 = vmul.f32 %v3288_v41, %v6716_v30  ;;  %v6758_v30 = vld [vmem:[#allocation19] sm:$0xff] }
0x2ec7   :  { %v3357_v17 = vpop.permute.xlu0 %3356 }
0x2ec8   :  { %v3359_v32 = vmul.f32 %v3357_v17, %v3353_v28 }
0x2eca   :  { %3361 = vrot.lane.b32.xlu2 %v3359_v32, %s5737_s4 }
0x2edf   :  { %v3292_v42 = vpop.permute.xlu2 %3291 }
0x2ee0   :  { %v3294_v43 = vmul.f32 %v3292_v42, %v3288_v41 }
0x2ee2   :  { %3296 = vrot.lane.b32.xlu1 %v3294_v43, %s5737_s4 }
0x2f24   :  { %v3362_v45 = vpop.permute.xlu2 %3361 }
0x2f25   :  { %v3364_v46 = vadd.f32 %v3362_v45, %v3309_v15 }
0x2f27   :  { %5322 = vtanh.f32 %v3364_v46 }
0x2f2d   :  { %v5323_v47 = vpop.eup %5322 }
0x2f2e   :  { %3368 = vrot.lane.b32.xlu1 %v5323_v47, %s5738_s8 }
0x2f54   :  { %v3297_v48 = vpop.permute.xlu1 %3296 }
0x2f55   :  { %v3299_v49 = vadd.f32 %v3297_v48, %v3244_v20 }
0x2f57   :  { %5324 = vtanh.f32 %v3299_v49 }
0x2f5d   :  { %v5325_v50 = vpop.eup %5324 }
0x2f5e   :  { %3303 = vrot.lane.b32.xlu0 %v5325_v50, %s5738_s8 }
0x2fa0   :  { %v3369_v52 = vpop.permute.xlu1 %3368 }
0x2fa1   :  { %v3371_v55 = vmul.f32 %v3369_v52, %v3366_v51 }
0x2fa3   :  { %v6739_v56 = vadd.f32 %v3372_v53, %v3371_v55 }
0x2fa5   :  { %3441 = vrot.lane.b32.xlu0 %v6739_v56, %s5738_s8 }
0x2fd0   :  { %v3304_v2 = vpop.permute.xlu0 %3303 }
0x2fd1   :  { %v3306_v8 = vmul.f32 %v3304_v2, %v3301_v60 }
0x2fd3   :  { %v6744_v61 = vadd.f32 %v3307_v62, %v3306_v8 }
0x2fd5   :  { %3376 = vrot.lane.b32.xlu2 %v6744_v61, %s5738_s8 }
0x3017   :  { %v3442_v0 = vpop.permute.xlu0 %3441 }
0x3018   :  { %5004 = vmatmul.msk.f32.vlgmr.msrb.gmra.mxu0 %vm282_vm6, %v3442_v0 }
0x3019   :  { %3977 = vmatpush.msrb.mxu0 %v6749_v54 }
0x301b   :  { %3978 = vmatpush.msrb.mxu0 %v6752_v58 }
0x301d   :  { %3979 = vmatpush.msrb.mxu0 %v6755_v7 }
0x301f   :  { %3980 = vmatpush.msrb.mxu0 %v6758_v30 }
0x302f   :  { %v3377_v40 = vpop.permute.xlu2 %3376 }
0x3030   :  { %5002 = vmatmul.msk.f32.vlgmr.msra.gmra.mxu3 %vm282_vm6, %v3377_v40 }
0x3031   :  { %3912 = vmatpush.msra.mxu3 %v6762_v59 }
0x3033   :  { %3913 = vmatpush.msra.mxu3 %v6765_v23 }
0x3035   :  { %3914 = vmatpush.msra.mxu3 %v6768_v26 }
0x3037   :  { %3915 = vmatpush.msra.mxu3 %v6571_v16 }
0x3095   :  { %v3462_v11 = vpop.f32.mrf.mxu0 }
0x3096   :  { %v3463_v63 = vadd.f32 %v6599_v31, %v3462_v11 }
0x3098   :  { %3486 = vrot.lane.b32.xlu2 %v3463_v63, %s5737_s4  ;;  %v3465_v4 = vadd.f32 %v3463_v63, %v3439_v5  ;;  %v6805_v63 = vld [vmem:[%s7072_s17] ss:$0 sm:$0xff] }
0x309a   :  { %v5005_v10 = vmul.f32 -1.442695, %v3465_v4 }
0x309c   :  { %5326 = vpow2.f32 %v5005_v10  ;;  %v3569_v10 = vld [vmem:[#allocation5 + $0x12] sm:$0x3] }
0x30a2   :  { %v5327_v20 = vpop.eup %5326 }
0x30a3   :  { %v3469_v27 = vadd.f32 1.0, %v5327_v20 }
0x30a5   :  { %5328 = vrcp.f32 %v3469_v27  ;;  %v3481_v31 = vand.u32 2147483648, %v3469_v27  ;;  %vm3475_vm15 = vweird.f32 %v3469_v27  ;;  %v3479_v29 = vand.u32 2147483647, %v3469_v27 }
0x30a7   :  { %v3482_v21 = vor.u32 1.1754944e-38, %v3481_v31  ;;  %vm3480_vm2 = vcmp.eq.f32.partialorder %v3479_v29, 8.507059e+37 }
0x30ab   :  { %v5329_v25 = vpop.eup %5328 }
0x30ac   :  { %v3471_v19 = vmul.f32 %v5329_v25, %v3469_v27  ;;  %vm3476_vm14 = vweird.f32 %v5329_v25 }
0x30ad   :  { %vm3477_vm1 = vmor %vm3475_vm15, %vm3476_vm14 }
0x30ae   :  { %v3472_v16 = vsub.f32 1.0, %v3471_v19 }
0x30b0   :  { %v3473_v9 = vmul.f32 %v5329_v25, %v3472_v16 }
0x30b2   :  { %v3474_v22 = vadd.f32 %v5329_v25, %v3473_v9 }
0x30b3   :  { %v3397_v15 = vpop.f32.mrf.mxu3 }
0x30b4   :  { %v3398_v1 = vadd.f32 %v6619_v57, %v3397_v15  ;;  %v3478_v57 = vsel %vm3477_vm1, %v5329_v25, %v3474_v22 }
0x30b5   :  { %v3483_v44 = vsel %vm3480_vm2, %v3482_v21, %v3478_v57 }
0x30b6   :  { %3421 = vrot.lane.b32.xlu1 %v3398_v1, %s5737_s4  ;;  %v3400_v14 = vadd.f32 %v3398_v1, %v3374_v13  ;;  %v3496_v50 = vsub.f32 1.0, %v3483_v44  ;;  %v3502_v52 = vmul.f32 %v3483_v44, %v6739_v56 }
0x30b8   :  { %v5003_v6 = vmul.f32 -1.442695, %v3400_v14 }
0x30ba   :  { %5330 = vpow2.f32 %v5003_v6 }
0x30c0   :  { %v5331_v17 = vpop.eup %5330 }
0x30c1   :  { %v3404_v28 = vadd.f32 1.0, %v5331_v17 }
0x30c3   :  { %5332 = vrcp.f32 %v3404_v28  ;;  %v3416_v36 = vand.u32 2147483648, %v3404_v28  ;;  %vm3410_vm0 = vweird.f32 %v3404_v28  ;;  %v3414_v37 = vand.u32 2147483647, %v3404_v28 }
0x30c5   :  { %v3417_v18 = vor.u32 1.1754944e-38, %v3416_v36  ;;  %vm3415_vm5 = vcmp.eq.f32.partialorder %v3414_v37, 8.507059e+37 }
0x30c9   :  { %v5333_v32 = vpop.eup %5332 }
0x30ca   :  { %v3406_v33 = vmul.f32 %v5333_v32, %v3404_v28  ;;  %vm3411_vm3 = vweird.f32 %v5333_v32 }
0x30cb   :  { %vm3412_vm4 = vmor %vm3410_vm0, %vm3411_vm3 }
0x30cc   :  { %v3407_v34 = vsub.f32 1.0, %v3406_v33 }
0x30ce   :  { %v3408_v35 = vmul.f32 %v5333_v32, %v3407_v34 }
0x30d0   :  { %v3409_v12 = vadd.f32 %v5333_v32, %v3408_v35 }
0x30d2   :  { %v3413_v38 = vsel %vm3412_vm4, %v5333_v32, %v3409_v12 }
0x30d3   :  { %v3418_v41 = vsel %vm3415_vm5, %v3417_v18, %v3413_v38 }
0x30d4   :  { %v3431_v60 = vsub.f32 1.0, %v3418_v41  ;;  %v3437_v62 = vmul.f32 %v3418_v41, %v6744_v61  ;;  %v6799_v61 = vld [vmem:[#allocation16] sm:$0xff] }
0x30f2   :  { %v3487_v3 = vpop.permute.xlu2 %3486 }
0x30f3   :  { %v3489_v24 = vmul.f32 %v3487_v3, %v3483_v44  ;;  %v3504_v3 = vld [vmem:[#allocation4 + $0xc] sm:$0x3] }
0x30f5   :  { %3491 = vrot.lane.b32.xlu1 %v3489_v24, %s5737_s4 }
0x3128   :  { %v3422_v39 = vpop.permute.xlu1 %3421 }
0x3129   :  { %v3424_v42 = vmul.f32 %v3422_v39, %v3418_v41 }
0x312b   :  { %3426 = vrot.lane.b32.xlu0 %v3424_v42, %s5737_s4 }
0x3167   :  { %v3492_v43 = vpop.permute.xlu1 %3491 }
0x3168   :  { %v3494_v45 = vadd.f32 %v3492_v43, %v3439_v5  ;;  %v6812_v5 = vld [vmem:[%s7068_s13] ss:$0 sm:$0xff] }
0x316a   :  { %5334 = vtanh.f32 %v3494_v45 }
0x3170   :  { %v5335_v46 = vpop.eup %5334 }
0x3171   :  { %3498 = vrot.lane.b32.xlu0 %v5335_v46, %s5738_s8 }
0x319d   :  { %v3427_v47 = vpop.permute.xlu0 %3426 }
0x319e   :  { %v3429_v48 = vadd.f32 %v3427_v47, %v3374_v13 }
0x31a0   :  { %5336 = vtanh.f32 %v3429_v48 }
0x31a6   :  { %v5337_v49 = vpop.eup %5336 }
0x31a7   :  { %3433 = vrot.lane.b32.xlu2 %v5337_v49, %s5738_s8 }
0x31e3   :  { %v3499_v51 = vpop.permute.xlu0 %3498 }
0x31e4   :  { %v3501_v53 = vmul.f32 %v3499_v51, %v3496_v50 }
0x31e6   :  { %v6781_v55 = vadd.f32 %v3502_v52, %v3501_v53 }
0x31e8   :  { %3571 = vrot.lane.b32.xlu2 %v6781_v55, %s5738_s8 }
0x3201   :  { %v3434_v2 = vpop.permute.xlu2 %3433 }
0x3202   :  { %v3436_v8 = vmul.f32 %v3434_v2, %v3431_v60 }
0x3204   :  { %v6786_v0 = vadd.f32 %v3437_v62, %v3436_v8 }
0x3206   :  { %3506 = vrot.lane.b32.xlu1 %v6786_v0, %s5738_s8 }
0x3242   :  { %v3572_v40 = vpop.permute.xlu2 %3571 }
0x3243   :  { %5008 = vmatmul.msk.f32.vlgmr.msra.gmra.mxu2 %vm282_vm6, %v3572_v40 }
0x3244   :  { %4107 = vmatpush.msra.mxu2 %v6749_v54 }
0x3246   :  { %4108 = vmatpush.msra.mxu2 %v6752_v58 }
0x3248   :  { %4109 = vmatpush.msra.mxu2 %v6755_v7 }
0x324a   :  { %4110 = vmatpush.msra.mxu2 %v6758_v30 }
0x3278   :  { %v3507_v56 = vpop.permute.xlu1 %3506 }
0x3279   :  { %5006 = vmatmul.msk.f32.vlgmr.msra.gmra.mxu1 %vm282_vm6, %v3507_v56 }
0x327a   :  { %4042 = vmatpush.msra.mxu1 %v6762_v59 }
0x327c   :  { %4043 = vmatpush.msra.mxu1 %v6765_v23 }
0x327e   :  { %4044 = vmatpush.msra.mxu1 %v6768_v26 }
0x3280   :  { %4045 = vmatpush.msra.mxu1 %v6799_v61 }
0x32c6   :  { %v3592_v11 = vpop.f32.mrf.mxu2 }
0x32c7   :  { %v3593_v15 = vadd.f32 %v6805_v63, %v3592_v11 }
0x32c9   :  { %3616 = vrot.lane.b32.xlu1 %v3593_v15, %s5737_s4  ;;  %v3595_v20 = vadd.f32 %v3593_v15, %v3569_v10 }
0x32cb   :  { %v5009_v27 = vmul.f32 -1.442695, %v3595_v20 }
0x32cd   :  { %5338 = vpow2.f32 %v5009_v27  ;;  %v3699_v27 = vld [vmem:[#allocation5 + $0x10] sm:$0x3] }
0x32d3   :  { %v5339_v25 = vpop.eup %5338 }
0x32d4   :  { %v3599_v19 = vadd.f32 1.0, %v5339_v25 }
0x32d6   :  { %5340 = vrcp.f32 %v3599_v19  ;;  %v3611_v57 = vand.u32 2147483648, %v3599_v19  ;;  %vm3605_vm8 = vweird.f32 %v3599_v19  ;;  %v3609_v21 = vand.u32 2147483647, %v3599_v19 }
0x32d8   :  { %v3612_v24 = vor.u32 1.1754944e-38, %v3611_v57  ;;  %vm3610_vm10 = vcmp.eq.f32.partialorder %v3609_v21, 8.507059e+37 }
0x32dc   :  { %v5341_v16 = vpop.eup %5340 }
0x32dd   :  { %v3601_v9 = vmul.f32 %v5341_v16, %v3599_v19  ;;  %vm3606_vm7 = vweird.f32 %v5341_v16 }
0x32de   :  { %vm3607_vm9 = vmor %vm3605_vm8, %vm3606_vm7 }
0x32df   :  { %v3602_v22 = vsub.f32 1.0, %v3601_v9 }
0x32e1   :  { %v3603_v31 = vmul.f32 %v5341_v16, %v3602_v22 }
0x32e3   :  { %v3604_v29 = vadd.f32 %v5341_v16, %v3603_v31  ;;  %v3634_v31 = vld [vmem:[#allocation4 + $0xe] sm:$0x3] }
0x32e5   :  { %v3608_v44 = vsel %vm3607_vm9, %v5341_v16, %v3604_v29 }
0x32e6   :  { %v3613_v6 = vsel %vm3610_vm10, %v3612_v24, %v3608_v44 }
0x32e7   :  { %v3626_v52 = vsub.f32 1.0, %v3613_v6  ;;  %v3632_v60 = vmul.f32 %v3613_v6, %v6781_v55 }
0x32f6   :  { %v3527_v1 = vpop.f32.mrf.mxu1 }
0x32f7   :  { %v3528_v4 = vadd.f32 %v6812_v5, %v3527_v1 }
0x32f9   :  { %3551 = vrot.lane.b32.xlu0 %v3528_v4, %s5737_s4  ;;  %v3530_v13 = vadd.f32 %v3528_v4, %v3504_v3 }
0x32fb   :  { %v5007_v28 = vmul.f32 -1.442695, %v3530_v13 }
0x32fd   :  { %5342 = vpow2.f32 %v5007_v28 }
0x3303   :  { %v5343_v32 = vpop.eup %5342 }
0x3304   :  { %v3534_v33 = vadd.f32 1.0, %v5343_v32 }
0x3306   :  { %5344 = vrcp.f32 %v3534_v33  ;;  %v3546_v38 = vand.u32 2147483648, %v3534_v33  ;;  %vm3540_vm12 = vweird.f32 %v3534_v33  ;;  %v3544_v18 = vand.u32 2147483647, %v3534_v33 }
0x3308   :  { %v3547_v41 = vor.u32 1.1754944e-38, %v3546_v38  ;;  %vm3545_vm14 = vcmp.eq.f32.partialorder %v3544_v18, 8.507059e+37 }
0x330c   :  { %v5345_v34 = vpop.eup %5344 }
0x330d   :  { %v3536_v35 = vmul.f32 %v5345_v34, %v3534_v33  ;;  %vm3541_vm11 = vweird.f32 %v5345_v34 }
0x330e   :  { %vm3542_vm13 = vmor %vm3540_vm12, %vm3541_vm11 }
0x330f   :  { %v3537_v12 = vsub.f32 1.0, %v3536_v35 }
0x3311   :  { %v3538_v36 = vmul.f32 %v5345_v34, %v3537_v12 }
0x3313   :  { %v3539_v37 = vadd.f32 %v5345_v34, %v3538_v36 }
0x3315   :  { %v3543_v39 = vsel %vm3542_vm13, %v5345_v34, %v3539_v37 }
0x3316   :  { %v3548_v43 = vsel %vm3545_vm14, %v3547_v41, %v3543_v39 }
0x3317   :  { %v3561_v8 = vsub.f32 1.0, %v3548_v43  ;;  %v3567_v56 = vmul.f32 %v3548_v43, %v6786_v0 }
0x333b   :  { %v3617_v14 = vpop.permute.xlu1 %3616 }
0x333c   :  { %v3619_v17 = vmul.f32 %v3617_v14, %v3613_v6 }
0x333e   :  { %3621 = vrot.lane.b32.xlu0 %v3619_v17, %s5737_s4 }
0x336b   :  { %v3552_v42 = vpop.permute.xlu0 %3551 }
0x336c   :  { %v3554_v45 = vmul.f32 %v3552_v42, %v3548_v43 }
0x336e   :  { %3556 = vrot.lane.b32.xlu2 %v3554_v45, %s5737_s4 }
0x33b0   :  { %v3622_v46 = vpop.permute.xlu0 %3621 }
0x33b1   :  { %v3624_v47 = vadd.f32 %v3622_v46, %v3569_v10 }
0x33b3   :  { %5346 = vtanh.f32 %v3624_v47 }
0x33b9   :  { %v5347_v48 = vpop.eup %5346 }
0x33ba   :  { %3628 = vrot.lane.b32.xlu2 %v5347_v48, %s5738_s8 }
0x33c8   :  { %v3557_v49 = vpop.permute.xlu2 %3556 }
0x33c9   :  { %v3559_v50 = vadd.f32 %v3557_v49, %v3504_v3 }
0x33cb   :  { %5348 = vtanh.f32 %v3559_v50 }
0x33d1   :  { %v5349_v51 = vpop.eup %5348 }
0x33d2   :  { %3563 = vrot.lane.b32.xlu1 %v5349_v51, %s5738_s8 }
0x3414   :  { %v3629_v53 = vpop.permute.xlu2 %3628 }
0x3415   :  { %v3631_v2 = vmul.f32 %v3629_v53, %v3626_v52 }
0x3417   :  { %v6821_v62 = vadd.f32 %v3632_v60, %v3631_v2 }
0x3419   :  { %3701 = vrot.lane.b32.xlu1 %v6821_v62, %s5738_s8 }
0x3444   :  { %v3564_v40 = vpop.permute.xlu1 %3563 }
0x3445   :  { %v3566_v11 = vmul.f32 %v3564_v40, %v3561_v8 }
0x3447   :  { %v6826_v15 = vadd.f32 %v3567_v56, %v3566_v11 }
0x3449   :  { %3636 = vrot.lane.b32.xlu0 %v6826_v15, %s5738_s8 }
0x348b   :  { %v3702_v1 = vpop.permute.xlu1 %3701 }
0x348c   :  { %5012 = vmatmul.msk.f32.vlgmr.msra.gmra.mxu0 %vm282_vm6, %v3702_v1 }
0x348d   :  { %4237 = vmatpush.msra.mxu0 %v6749_v54 }
0x348f   :  { %4238 = vmatpush.msra.mxu0 %v6752_v58 }
0x3491   :  { %4239 = vmatpush.msra.mxu0 %v6755_v7 }
0x3493   :  { %4240 = vmatpush.msra.mxu0 %v6758_v30 }
0x34bb   :  { %v3637_v55 = vpop.permute.xlu0 %3636 }
0x34bc   :  { %5010 = vmatmul.msk.f32.vlgmr.msrb.gmra.mxu3 %vm282_vm6, %v3637_v55 }
0x34bd   :  { %4172 = vmatpush.msrb.mxu3 %v6762_v59 }
0x34bf   :  { %4173 = vmatpush.msrb.mxu3 %v6765_v23 }
0x34c1   :  { %4174 = vmatpush.msrb.mxu3 %v6768_v26 }
0x34c3   :  { %4175 = vmatpush.msrb.mxu3 %v6799_v61 }
0x3509   :  { %v3722_v0 = vpop.f32.mrf.mxu0 }
0x350a   :  { %v3723_v4 = vadd.f32 %v6805_v63, %v3722_v0 }
0x350c   :  { %3746 = vrot.lane.b32.xlu0 %v3723_v4, %s5737_s4  ;;  %v3725_v25 = vadd.f32 %v3723_v4, %v3699_v27 }
0x350e   :  { %v5013_v19 = vmul.f32 -1.442695, %v3725_v25 }
0x3510   :  { %5350 = vpow2.f32 %v5013_v19  ;;  %v3829_v19 = vld [vmem:[#allocation5 + $0xe] sm:$0x3] }
0x3516   :  { %v5351_v16 = vpop.eup %5350 }
0x3517   :  { %v3729_v9 = vadd.f32 1.0, %v5351_v16 }
0x3519   :  { %5352 = vrcp.f32 %v3729_v9  ;;  %v3741_v13 = vand.u32 2147483648, %v3729_v9  ;;  %vm3735_vm1 = vweird.f32 %v3729_v9  ;;  %v3739_v6 = vand.u32 2147483647, %v3729_v9 }
0x351b   :  { %v3742_v32 = vor.u32 1.1754944e-38, %v3741_v13  ;;  %vm3740_vm3 = vcmp.eq.f32.partialorder %v3739_v6, 8.507059e+37  ;;  %v3764_v6 = vld [vmem:[#allocation4 + $0x10] sm:$0x3] }
0x351f   :  { %v5353_v22 = vpop.eup %5352 }
0x3520   :  { %v3731_v57 = vmul.f32 %v5353_v22, %v3729_v9  ;;  %vm3736_vm15 = vweird.f32 %v5353_v22 }
0x3521   :  { %vm3737_vm2 = vmor %vm3735_vm1, %vm3736_vm15 }
0x3522   :  { %v3732_v44 = vsub.f32 1.0, %v3731_v57 }
0x3524   :  { %v3733_v3 = vmul.f32 %v5353_v22, %v3732_v44 }
0x3526   :  { %v3734_v24 = vadd.f32 %v5353_v22, %v3733_v3 }
0x3528   :  { %v3738_v17 = vsel %vm3737_vm2, %v5353_v22, %v3734_v24 }
0x3529   :  { %v3743_v34 = vsel %vm3740_vm3, %v3742_v32, %v3738_v17 }
0x352a   :  { %v3756_v60 = vsub.f32 1.0, %v3743_v34  ;;  %v3762_v8 = vmul.f32 %v3743_v34, %v6821_v62 }
0x353f   :  { %v3657_v10 = vpop.f32.mrf.mxu3 }
0x3540   :  { %v3658_v20 = vadd.f32 %v6812_v5, %v3657_v10 }
0x3542   :  { %3681 = vrot.lane.b32.xlu2 %v3658_v20, %s5737_s4  ;;  %v3660_v29 = vadd.f32 %v3658_v20, %v3634_v31 }
0x3544   :  { %v5011_v21 = vmul.f32 -1.442695, %v3660_v29 }
0x3546   :  { %5354 = vpow2.f32 %v5011_v21 }
0x354c   :  { %v5355_v14 = vpop.eup %5354 }
0x354d   :  { %v3664_v28 = vadd.f32 1.0, %v5355_v14 }
0x354f   :  { %5356 = vrcp.f32 %v3664_v28  ;;  %v3676_v39 = vand.u32 2147483648, %v3664_v28  ;;  %vm3670_vm4 = vweird.f32 %v3664_v28  ;;  %v3674_v41 = vand.u32 2147483647, %v3664_v28 }
0x3551   :  { %v3677_v43 = vor.u32 1.1754944e-38, %v3676_v39  ;;  %vm3675_vm7 = vcmp.eq.f32.partialorder %v3674_v41, 8.507059e+37 }
0x3555   :  { %v5357_v12 = vpop.eup %5356 }
0x3556   :  { %v3666_v36 = vmul.f32 %v5357_v12, %v3664_v28  ;;  %vm3671_vm0 = vweird.f32 %v5357_v12 }
0x3557   :  { %vm3672_vm5 = vmor %vm3670_vm4, %vm3671_vm0 }
0x3558   :  { %v3667_v37 = vsub.f32 1.0, %v3666_v36 }
0x355a   :  { %v3668_v38 = vmul.f32 %v5357_v12, %v3667_v37 }
0x355c   :  { %v3669_v18 = vadd.f32 %v5357_v12, %v3668_v38 }
0x355e   :  { %v3673_v42 = vsel %vm3672_vm5, %v5357_v12, %v3669_v18 }
0x355f   :  { %v3678_v45 = vsel %vm3675_vm7, %v3677_v43, %v3673_v42 }
0x3560   :  { %v3691_v11 = vsub.f32 1.0, %v3678_v45  ;;  %v3697_v55 = vmul.f32 %v3678_v45, %v6826_v15 }
0x357e   :  { %v3747_v33 = vpop.permute.xlu0 %3746 }
0x357f   :  { %v3749_v35 = vmul.f32 %v3747_v33, %v3743_v34 }
0x3581   :  { %3751 = vrot.lane.b32.xlu2 %v3749_v35, %s5737_s4 }
0x359c   :  { %v3682_v46 = vpop.permute.xlu2 %3681 }
0x359d   :  { %v3684_v47 = vmul.f32 %v3682_v46, %v3678_v45 }
0x359f   :  { %3686 = vrot.lane.b32.xlu1 %v3684_v47, %s5737_s4 }
0x35db   :  { %v3752_v48 = vpop.permute.xlu2 %3751 }
0x35dc   :  { %v3754_v49 = vadd.f32 %v3752_v48, %v3699_v27 }
0x35de   :  { %5358 = vtanh.f32 %v3754_v49 }
0x35e4   :  { %v5359_v50 = vpop.eup %5358 }
0x35e5   :  { %3758 = vrot.lane.b32.xlu1 %v5359_v50, %s5738_s8 }
0x3611   :  { %v3687_v51 = vpop.permute.xlu1 %3686 }
0x3612   :  { %v3689_v52 = vadd.f32 %v3687_v51, %v3634_v31 }
0x3614   :  { %5360 = vtanh.f32 %v3689_v52 }
0x361a   :  { %v5361_v53 = vpop.eup %5360 }
0x361b   :  { %3693 = vrot.lane.b32.xlu0 %v5361_v53, %s5738_s8 }
0x3657   :  { %v3759_v2 = vpop.permute.xlu1 %3758 }
0x3658   :  { %v3761_v40 = vmul.f32 %v3759_v2, %v3756_v60 }
0x365a   :  { %v6849_v56 = vadd.f32 %v3762_v8, %v3761_v40 }
0x365c   :  { %3831 = vrot.lane.b32.xlu0 %v6849_v56, %s5738_s8 }
0x368d   :  { %v3694_v1 = vpop.permute.xlu0 %3693 }
0x368e   :  { %v3696_v0 = vmul.f32 %v3694_v1, %v3691_v11 }
0x3690   :  { %v6854_v4 = vadd.f32 %v3697_v55, %v3696_v0 }
0x3692   :  { %3766 = vrot.lane.b32.xlu2 %v6854_v4, %s5738_s8 }
0x36ce   :  { %v3832_v10 = vpop.permute.xlu0 %3831 }
0x36cf   :  { %5016 = vmatmul.msk.f32.vlgmr.msrb.gmra.mxu2 %vm282_vm6, %v3832_v10 }
0x36d0   :  { %4367 = vmatpush.msrb.mxu2 %v6749_v54 }
0x36d2   :  { %4368 = vmatpush.msrb.mxu2 %v6752_v58 }
0x36d4   :  { %4369 = vmatpush.msrb.mxu2 %v6755_v7 }
0x36d6   :  { %4370 = vmatpush.msrb.mxu2 %v6758_v30 }
0x36ec   :  { %v3767_v62 = vpop.permute.xlu2 %3766 }
0x36ed   :  { %5014 = vmatmul.msk.f32.vlgmr.msrb.gmra.mxu1 %vm282_vm6, %v3767_v62 }
0x36ee   :  { %4302 = vmatpush.msrb.mxu1 %v6762_v59 }
0x36f0   :  { %4303 = vmatpush.msrb.mxu1 %v6765_v23 }
0x36f2   :  { %4304 = vmatpush.msrb.mxu1 %v6768_v26 }
0x36f4   :  { %4305 = vmatpush.msrb.mxu1 %v6799_v61 }
0x3752   :  { %v3852_v15 = vpop.f32.mrf.mxu2 }
0x3753   :  { %v3853_v20 = vadd.f32 %v6805_v63, %v3852_v15 }
0x3755   :  { %3876 = vrot.lane.b32.xlu2 %v3853_v20, %s5737_s4  ;;  %v3855_v16 = vadd.f32 %v3853_v20, %v3829_v19 }
0x3757   :  { %v5017_v9 = vmul.f32 -1.442695, %v3855_v16 }
0x3759   :  { %5362 = vpow2.f32 %v5017_v9  ;;  %v3959_v9 = vld [vmem:[#allocation5 + $0xc] sm:$0x3] }
0x375f   :  { %v5363_v22 = vpop.eup %5362 }
0x3760   :  { %v3859_v31 = vadd.f32 1.0, %v5363_v22 }
0x3762   :  { %5364 = vrcp.f32 %v3859_v31  ;;  %v3871_v24 = vand.u32 2147483648, %v3859_v31  ;;  %vm3865_vm9 = vweird.f32 %v3859_v31  ;;  %v3869_v13 = vand.u32 2147483647, %v3859_v31 }
0x3764   :  { %v3872_v17 = vor.u32 1.1754944e-38, %v3871_v24  ;;  %vm3870_vm11 = vcmp.eq.f32.partialorder %v3869_v13, 8.507059e+37 }
0x3768   :  { %v5365_v29 = vpop.eup %5364 }
0x3769   :  { %v3861_v57 = vmul.f32 %v5365_v29, %v3859_v31  ;;  %vm3866_vm8 = vweird.f32 %v5365_v29 }
0x376a   :  { %v3787_v27 = vpop.f32.mrf.mxu1  ;;  %vm3867_vm10 = vmor %vm3865_vm9, %vm3866_vm8 }
0x376b   :  { %v3788_v25 = vadd.f32 %v6812_v5, %v3787_v27  ;;  %v3862_v21 = vsub.f32 1.0, %v3861_v57 }
0x376d   :  { %3811 = vrot.lane.b32.xlu1 %v3788_v25, %s5737_s4  ;;  %v3863_v44 = vmul.f32 %v5365_v29, %v3862_v21  ;;  %v3790_v28 = vadd.f32 %v3788_v25, %v3764_v6 }
0x376f   :  { %v3864_v3 = vadd.f32 %v5365_v29, %v3863_v44  ;;  %v5015_v35 = vmul.f32 -1.442695, %v3790_v28 }
0x3771   :  { %v3868_v14 = vsel %vm3867_vm10, %v5365_v29, %v3864_v3  ;;  %5366 = vpow2.f32 %v5015_v35  ;;  %v3894_v35 = vld [vmem:[#allocation4 + $0x12] sm:$0x3] }
0x3772   :  { %v3873_v32 = vsel %vm3870_vm11, %v3872_v17, %v3868_v14 }
0x3773   :  { %v3886_v8 = vsub.f32 1.0, %v3873_v32  ;;  %v3892_v11 = vmul.f32 %v3873_v32, %v6849_v56 }
0x3777   :  { %v5367_v12 = vpop.eup %5366 }
0x3778   :  { %v3794_v36 = vadd.f32 1.0, %v5367_v12 }
0x377a   :  { %5368 = vrcp.f32 %v3794_v36  ;;  %v3806_v42 = vand.u32 2147483648, %v3794_v36  ;;  %vm3800_vm13 = vweird.f32 %v3794_v36  ;;  %v3804_v43 = vand.u32 2147483647, %v3794_v36 }
0x377c   :  { %v3807_v46 = vor.u32 1.1754944e-38, %v3806_v42  ;;  %vm3805_vm15 = vcmp.eq.f32.partialorder %v3804_v43, 8.507059e+37 }
0x3780   :  { %v5369_v37 = vpop.eup %5368 }
0x3781   :  { %v3796_v38 = vmul.f32 %v5369_v37, %v3794_v36  ;;  %vm3801_vm12 = vweird.f32 %v5369_v37 }
0x3782   :  { %vm3802_vm14 = vmor %vm3800_vm13, %vm3801_vm12 }
0x3783   :  { %v3797_v18 = vsub.f32 1.0, %v3796_v38 }
0x3785   :  { %v3798_v39 = vmul.f32 %v5369_v37, %v3797_v18 }
0x3787   :  { %v3799_v41 = vadd.f32 %v5369_v37, %v3798_v39 }
0x3789   :  { %v3803_v45 = vsel %vm3802_vm14, %v5369_v37, %v3799_v41 }
0x378a   :  { %v3808_v48 = vsel %vm3805_vm15, %v3807_v46, %v3803_v45 }
0x378b   :  { %v3821_v0 = vsub.f32 1.0, %v3808_v48  ;;  %v3827_v62 = vmul.f32 %v3808_v48, %v6854_v4 }
0x37af   :  { %v3877_v33 = vpop.permute.xlu2 %3876 }
0x37b0   :  { %v3879_v34 = vmul.f32 %v3877_v33, %v3873_v32 }
0x37b2   :  { %3881 = vrot.lane.b32.xlu1 %v3879_v34, %s5737_s4 }
0x37df   :  { %v3812_v47 = vpop.permute.xlu1 %3811 }
0x37e0   :  { %v3814_v49 = vmul.f32 %v3812_v47, %v3808_v48 }
0x37e2   :  { %3816 = vrot.lane.b32.xlu0 %v3814_v49, %s5737_s4 }
0x3824   :  { %v3882_v50 = vpop.permute.xlu1 %3881 }
0x3825   :  { %v3884_v51 = vadd.f32 %v3882_v50, %v3829_v19 }
0x3827   :  { %5370 = vtanh.f32 %v3884_v51 }
0x382d   :  { %v5371_v52 = vpop.eup %5370 }
0x382e   :  { %3888 = vrot.lane.b32.xlu0 %v5371_v52, %s5738_s8 }
0x3854   :  { %v3817_v53 = vpop.permute.xlu0 %3816 }
0x3855   :  { %v3819_v60 = vadd.f32 %v3817_v53, %v3764_v6 }
0x3857   :  { %5372 = vtanh.f32 %v3819_v60 }
0x385d   :  { %v5373_v2 = vpop.eup %5372 }
0x385e   :  { %3823 = vrot.lane.b32.xlu2 %v5373_v2, %s5738_s8 }
0x38a0   :  { %v3889_v40 = vpop.permute.xlu0 %3888 }
0x38a1   :  { %v3891_v1 = vmul.f32 %v3889_v40, %v3886_v8 }
0x38a3   :  { %v6877_v55 = vadd.f32 %v3892_v11, %v3891_v1 }
0x38a5   :  { %3961 = vrot.lane.b32.xlu2 %v6877_v55, %s5738_s8 }
0x38b8   :  { %v3824_v10 = vpop.permute.xlu2 %3823 }
0x38b9   :  { %v3826_v15 = vmul.f32 %v3824_v10, %v3821_v0 }
0x38bb   :  { %v6882_v20 = vadd.f32 %v3827_v62, %v3826_v15 }
0x38bd   :  { %3896 = vrot.lane.b32.xlu1 %v6882_v20, %s5738_s8 }
0x38ff   :  { %v3962_v27 = vpop.permute.xlu2 %3961 }
0x3900   :  { %5020 = vmatmul.msk.f32.vlgmr.msrb.gmra.mxu0 %vm282_vm6, %v3962_v27 }
0x3901   :  { %4497 = vmatpush.msrb.mxu0 %v6749_v54 }
0x3903   :  { %4498 = vmatpush.msrb.mxu0 %v6752_v58 }
0x3905   :  { %4499 = vmatpush.msrb.mxu0 %v6755_v7 }
0x3907   :  { %4500 = vmatpush.msrb.mxu0 %v6758_v30 }
0x392f   :  { %v3897_v56 = vpop.permute.xlu1 %3896 }
0x3930   :  { %5018 = vmatmul.msk.f32.vlgmr.msra.gmra.mxu3 %vm282_vm6, %v3897_v56 }
0x3931   :  { %4432 = vmatpush.msra.mxu3 %v6762_v59 }
0x3933   :  { %4433 = vmatpush.msra.mxu3 %v6765_v23 }
0x3935   :  { %4434 = vmatpush.msra.mxu3 %v6768_v26 }
0x3937   :  { %4435 = vmatpush.msra.mxu3 %v6799_v61 }
0x397d   :  { %v3982_v4 = vpop.f32.mrf.mxu0 }
0x397e   :  { %v3983_v25 = vadd.f32 %v6805_v63, %v3982_v4 }
0x3980   :  { %4006 = vrot.lane.b32.xlu1 %v3983_v25, %s5737_s4  ;;  %v3985_v22 = vadd.f32 %v3983_v25, %v3959_v9 }
0x3982   :  { %v5021_v31 = vmul.f32 -1.442695, %v3985_v22 }
0x3984   :  { %5374 = vpow2.f32 %v5021_v31 }
0x398a   :  { %v5375_v29 = vpop.eup %5374 }
0x398b   :  { %v3989_v57 = vadd.f32 1.0, %v5375_v29 }
0x398d   :  { %5376 = vrcp.f32 %v3989_v57  ;;  %v4001_v14 = vand.u32 2147483648, %v3989_v57  ;;  %vm3995_vm2 = vweird.f32 %v3989_v57  ;;  %v3999_v6 = vand.u32 2147483647, %v3989_v57 }
0x398f   :  { %v4002_v28 = vor.u32 1.1754944e-38, %v4001_v14  ;;  %vm4000_vm0 = vcmp.eq.f32.partialorder %v3999_v6, 8.507059e+37 }
0x3993   :  { %v5377_v21 = vpop.eup %5376 }
0x3994   :  { %v3991_v44 = vmul.f32 %v5377_v21, %v3989_v57  ;;  %vm3996_vm1 = vweird.f32 %v5377_v21 }
0x3995   :  { %vm3997_vm3 = vmor %vm3995_vm2, %vm3996_vm1 }
0x3996   :  { %v3992_v3 = vsub.f32 1.0, %v3991_v44 }
0x3998   :  { %v3993_v24 = vmul.f32 %v5377_v21, %v3992_v3 }
0x399a   :  { %v3994_v13 = vadd.f32 %v5377_v21, %v3993_v24 }
0x399c   :  { %v3998_v17 = vsel %vm3997_vm3, %v5377_v21, %v3994_v13 }
0x399d   :  { %v4003_v33 = vsel %vm4000_vm0, %v4002_v28, %v3998_v17 }
0x399e   :  { %v4016_v11 = vsub.f32 1.0, %v4003_v33  ;;  %v4022_v0 = vmul.f32 %v4003_v33, %v6877_v55 }
0x39b3   :  { %v3917_v19 = vpop.f32.mrf.mxu3 }
0x39b4   :  { %v3918_v16 = vadd.f32 %v6812_v5, %v3917_v19 }
0x39b6   :  { %3941 = vrot.lane.b32.xlu0 %v3918_v16, %s5737_s4  ;;  %v3920_v12 = vadd.f32 %v3918_v16, %v3894_v35 }
0x39b8   :  { %v5019_v36 = vmul.f32 -1.442695, %v3920_v12 }
0x39ba   :  { %5378 = vpow2.f32 %v5019_v36 }
0x39c0   :  { %v5379_v37 = vpop.eup %5378 }
0x39c1   :  { %v3924_v38 = vadd.f32 1.0, %v5379_v37 }
0x39c3   :  { %5380 = vrcp.f32 %v3924_v38  ;;  %v3936_v45 = vand.u32 2147483648, %v3924_v38  ;;  %vm3930_vm5 = vweird.f32 %v3924_v38  ;;  %v3934_v46 = vand.u32 2147483647, %v3924_v38 }
0x39c5   :  { %v3937_v48 = vor.u32 1.1754944e-38, %v3936_v45  ;;  %vm3935_vm8 = vcmp.eq.f32.partialorder %v3934_v46, 8.507059e+37 }
0x39c9   :  { %v5381_v18 = vpop.eup %5380 }
0x39ca   :  { %v3926_v39 = vmul.f32 %v5381_v18, %v3924_v38  ;;  %vm3931_vm4 = vweird.f32 %v5381_v18 }
0x39cb   :  { %vm3932_vm7 = vmor %vm3930_vm5, %vm3931_vm4 }
0x39cc   :  { %v3927_v41 = vsub.f32 1.0, %v3926_v39 }
0x39ce   :  { %v3928_v42 = vmul.f32 %v5381_v18, %v3927_v41 }
0x39d0   :  { %v3929_v43 = vadd.f32 %v5381_v18, %v3928_v42 }
0x39d2   :  { %v3933_v47 = vsel %vm3932_vm7, %v5381_v18, %v3929_v43 }
0x39d3   :  { %v3938_v50 = vsel %vm3935_vm8, %v3937_v48, %v3933_v47 }
0x39d4   :  { %v3951_v15 = vsub.f32 1.0, %v3938_v50  ;;  %v3957_v56 = vmul.f32 %v3938_v50, %v6882_v20 }
0x39f2   :  { %v4007_v32 = vpop.permute.xlu1 %4006 }
0x39f3   :  { %v4009_v34 = vmul.f32 %v4007_v32, %v4003_v33 }
0x39f5   :  { %4011 = vrot.lane.b32.xlu0 %v4009_v34, %s5737_s4 }
0x3a28   :  { %v3942_v49 = vpop.permute.xlu0 %3941 }
0x3a29   :  { %v3944_v51 = vmul.f32 %v3942_v49, %v3938_v50 }
0x3a2b   :  { %3946 = vrot.lane.b32.xlu2 %v3944_v51, %s5737_s4 }
0x3a67   :  { %v4012_v52 = vpop.permute.xlu0 %4011 }
0x3a68   :  { %v4014_v53 = vadd.f32 %v4012_v52, %v3959_v9 }
0x3a6a   :  { %5382 = vtanh.f32 %v4014_v53 }
0x3a70   :  { %v5383_v60 = vpop.eup %5382 }
0x3a71   :  { %4018 = vrot.lane.b32.xlu2 %v5383_v60, %s5738_s8 }
0x3a85   :  { %v3947_v2 = vpop.permute.xlu2 %3946 }
0x3a86   :  { %v3949_v8 = vadd.f32 %v3947_v2, %v3894_v35 }
0x3a88   :  { %5384 = vtanh.f32 %v3949_v8 }
0x3a8e   :  { %v5385_v40 = vpop.eup %5384 }
0x3a8f   :  { %3953 = vrot.lane.b32.xlu1 %v5385_v40, %s5738_s8 }
0x3acb   :  { %v4019_v1 = vpop.permute.xlu2 %4018 }
0x3acc   :  { %v4021_v10 = vmul.f32 %v4019_v1, %v4016_v11 }
0x3ace   :  { %v6905_v62 = vadd.f32 %v4022_v0, %v4021_v10 }
0x3ad0   :  { %4091 = vrot.lane.b32.xlu1 %v6905_v62, %s5738_s8 }
0x3b01   :  { %v3954_v27 = vpop.permute.xlu1 %3953 }
0x3b02   :  { %v3956_v4 = vmul.f32 %v3954_v27, %v3951_v15 }
0x3b04   :  { %v6910_v25 = vadd.f32 %v3957_v56, %v3956_v4  ;;  %v5489_v56 = vld [vmem:[#allocation19 + $0x10] sm:$0xff]  ;;  %v5490_v4 = vld [vmem:[#allocation19 + $0x8] sm:$0xff] }
0x3b06   :  { %4026 = vrot.lane.b32.xlu0 %v6910_v25, %s5738_s8 }
0x3b42   :  { %v4092_v19 = vpop.permute.xlu1 %4091 }
0x3b43   :  { %5024 = vmatmul.msk.f32.vlgmr.msra.gmra.mxu2 %vm282_vm6, %v4092_v19  ;;  %v5491_v19 = vld [vmem:[#allocation19] sm:$0xff] }
0x3b44   :  { %4627 = vmatpush.msra.mxu2 %v6749_v54 }
0x3b46   :  { %4628 = vmatpush.msra.mxu2 %v6752_v58 }
0x3b48   :  { %4629 = vmatpush.msra.mxu2 %v6755_v7 }
0x3b4a   :  { %4630 = vmatpush.msra.mxu2 %v6758_v30  ;;  %v4089_v30 = vld [vmem:[#allocation5 + $0xa] sm:$0x3] }
0x3b78   :  { %v4027_v55 = vpop.permute.xlu0 %4026 }
0x3b79   :  { %5022 = vmatmul.msk.f32.vlgmr.msra.gmra.mxu1 %vm282_vm6, %v4027_v55 }
0x3b7a   :  { %4562 = vmatpush.msra.mxu1 %v6762_v59 }
0x3b7c   :  { %4563 = vmatpush.msra.mxu1 %v6765_v23 }
0x3b7e   :  { %4564 = vmatpush.msra.mxu1 %v6768_v26  ;;  %v4024_v26 = vld [vmem:[#allocation4 + $0x14] sm:$0x3] }
0x3b80   :  { %4565 = vmatpush.msra.mxu1 %v6799_v61 }
0x3bc6   :  { %v4112_v20 = vpop.f32.mrf.mxu2 }
0x3bc7   :  { %v4113_v54 = vadd.f32 %v6805_v63, %v4112_v20  ;;  %v5493_v20 = vld [vmem:[#allocation16 + $0x10] sm:$0xff] }
0x3bc9   :  { %4136 = vrot.lane.b32.xlu0 %v4113_v54, %s5737_s4  ;;  %v4115_v16 = vadd.f32 %v4113_v54, %v4089_v30  ;;  %v5494_v54 = vld [vmem:[#allocation16 + $0x8] sm:$0xff] }
0x3bcb   :  { %v5025_v9 = vmul.f32 -1.442695, %v4115_v16 }
0x3bcd   :  { %5386 = vpow2.f32 %v5025_v9  ;;  %v4219_v9 = vld [vmem:[#allocation5 + $0x8] sm:$0x3] }
0x3bd3   :  { %v5387_v59 = vpop.eup %5386 }
0x3bd4   :  { %v4119_v23 = vadd.f32 1.0, %v5387_v59 }
0x3bd6   :  { %5388 = vrcp.f32 %v4119_v23  ;;  %v4131_v14 = vand.u32 2147483648, %v4119_v23  ;;  %vm4125_vm10 = vweird.f32 %v4119_v23  ;;  %v4129_v6 = vand.u32 2147483647, %v4119_v23 }
0x3bd8   :  { %v4132_v28 = vor.u32 1.1754944e-38, %v4131_v14  ;;  %vm4130_vm12 = vcmp.eq.f32.partialorder %v4129_v6, 8.507059e+37  ;;  %v4154_v6 = vld [vmem:[#allocation4 + $0x16] sm:$0x3] }
0x3bdc   :  { %v5389_v31 = vpop.eup %5388 }
0x3bdd   :  { %v4121_v57 = vmul.f32 %v5389_v31, %v4119_v23  ;;  %vm4126_vm9 = vweird.f32 %v5389_v31 }
0x3bde   :  { %vm4127_vm11 = vmor %vm4125_vm10, %vm4126_vm9 }
0x3bdf   :  { %v4122_v21 = vsub.f32 1.0, %v4121_v57 }
0x3be1   :  { %v4123_v3 = vmul.f32 %v5389_v31, %v4122_v21 }
0x3be3   :  { %v4124_v13 = vadd.f32 %v5389_v31, %v4123_v3 }
0x3be5   :  { %v4128_v17 = vsel %vm4127_vm11, %v5389_v31, %v4124_v13 }
0x3be6   :  { %v4133_v33 = vsel %vm4130_vm12, %v4132_v28, %v4128_v17 }
0x3be7   :  { %v4146_v53 = vsub.f32 1.0, %v4133_v33  ;;  %v4152_v2 = vmul.f32 %v4133_v33, %v6905_v62  ;;  %v5488_v62 = vld [vmem:[#allocation19 + $0x18] sm:$0xff] }
0x3bf6   :  { %v4047_v58 = vpop.f32.mrf.mxu1 }
0x3bf7   :  { %v4048_v7 = vadd.f32 %v6812_v5, %v4047_v58 }
0x3bf9   :  { %4071 = vrot.lane.b32.xlu2 %v4048_v7, %s5737_s4  ;;  %v4050_v22 = vadd.f32 %v4048_v7, %v4024_v26 }
0x3bfb   :  { %v5023_v29 = vmul.f32 -1.442695, %v4050_v22 }
0x3bfd   :  { %5390 = vpow2.f32 %v5023_v29 }
0x3c03   :  { %v5391_v44 = vpop.eup %5390 }
0x3c04   :  { %v4054_v24 = vadd.f32 1.0, %v5391_v44 }
0x3c06   :  { %5392 = vrcp.f32 %v4054_v24  ;;  %v4066_v18 = vand.u32 2147483648, %v4054_v24  ;;  %vm4060_vm14 = vweird.f32 %v4054_v24  ;;  %v4064_v39 = vand.u32 2147483647, %v4054_v24 }
0x3c08   :  { %v4067_v42 = vor.u32 1.1754944e-38, %v4066_v18  ;;  %vm4065_vm1 = vcmp.eq.f32.partialorder %v4064_v39, 8.507059e+37 }
0x3c0c   :  { %v5393_v35 = vpop.eup %5392 }
0x3c0d   :  { %v4056_v12 = vmul.f32 %v5393_v35, %v4054_v24  ;;  %vm4061_vm13 = vweird.f32 %v5393_v35 }
0x3c0e   :  { %vm4062_vm15 = vmor %vm4060_vm14, %vm4061_vm13 }
0x3c0f   :  { %v4057_v36 = vsub.f32 1.0, %v4056_v12 }
0x3c11   :  { %v4058_v37 = vmul.f32 %v5393_v35, %v4057_v36 }
0x3c13   :  { %v4059_v38 = vadd.f32 %v5393_v35, %v4058_v37 }
0x3c15   :  { %v4063_v41 = vsel %vm4062_vm15, %v5393_v35, %v4059_v38 }
0x3c16   :  { %v4068_v43 = vsel %vm4065_vm1, %v4067_v42, %v4063_v41 }
0x3c17   :  { %v4081_v11 = vsub.f32 1.0, %v4068_v43  ;;  %v4087_v0 = vmul.f32 %v4068_v43, %v6910_v25  ;;  %v5492_v25 = vld [vmem:[#allocation16 + $0x18] sm:$0xff] }
0x3c3b   :  { %v4137_v32 = vpop.permute.xlu0 %4136 }
0x3c3c   :  { %v4139_v34 = vmul.f32 %v4137_v32, %v4133_v33 }
0x3c3e   :  { %4141 = vrot.lane.b32.xlu2 %v4139_v34, %s5737_s4 }
0x3c53   :  { %v4072_v45 = vpop.permute.xlu2 %4071 }
0x3c54   :  { %v4074_v46 = vmul.f32 %v4072_v45, %v4068_v43 }
0x3c56   :  { %4076 = vrot.lane.b32.xlu1 %v4074_v46, %s5737_s4 }
0x3c98   :  { %v4142_v47 = vpop.permute.xlu2 %4141 }
0x3c99   :  { %v4144_v48 = vadd.f32 %v4142_v47, %v4089_v30 }
0x3c9b   :  { %5394 = vtanh.f32 %v4144_v48 }
0x3ca1   :  { %v5395_v49 = vpop.eup %5394 }
0x3ca2   :  { %4148 = vrot.lane.b32.xlu1 %v5395_v49, %s5738_s8 }
0x3cc8   :  { %v4077_v50 = vpop.permute.xlu1 %4076 }
0x3cc9   :  { %v4079_v51 = vadd.f32 %v4077_v50, %v4024_v26 }
0x3ccb   :  { %5396 = vtanh.f32 %v4079_v51 }
0x3cd1   :  { %v5397_v52 = vpop.eup %5396 }
0x3cd2   :  { %4083 = vrot.lane.b32.xlu0 %v5397_v52, %s5738_s8 }
0x3d14   :  { %v4149_v60 = vpop.permute.xlu1 %4148 }
0x3d15   :  { %v4151_v8 = vmul.f32 %v4149_v60, %v4146_v53 }
0x3d17   :  { %v6933_v40 = vadd.f32 %v4152_v2, %v4151_v8 }
0x3d19   :  { %4221 = vrot.lane.b32.xlu0 %v6933_v40, %s5738_s8 }
0x3d44   :  { %v4084_v1 = vpop.permute.xlu0 %4083 }
0x3d45   :  { %v4086_v10 = vmul.f32 %v4084_v1, %v4081_v11 }
0x3d47   :  { %v6938_v15 = vadd.f32 %v4087_v0, %v4086_v10 }
0x3d49   :  { %4156 = vrot.lane.b32.xlu2 %v6938_v15, %s5738_s8 }
0x3d8b   :  { %v4222_v27 = vpop.permute.xlu0 %4221 }
0x3d8c   :  { %5028 = vmatmul.msk.f32.vlgmr.msra.gmra.mxu0 %vm282_vm6, %v4222_v27 }
0x3d8d   :  { %4757 = vmatpush.msra.mxu0 %v5488_v62 }
0x3d8f   :  { %4758 = vmatpush.msra.mxu0 %v5489_v56 }
0x3d91   :  { %4759 = vmatpush.msra.mxu0 %v5490_v4  ;;  %v6968_v4 = vld [vmem:[%s7072_s17] ss:$0 sm:$0xff] }
0x3d93   :  { %4760 = vmatpush.msra.mxu0 %v5491_v19 }
0x3da3   :  { %v4157_v55 = vpop.permute.xlu2 %4156 }
0x3da4   :  { %5026 = vmatmul.msk.f32.vlgmr.msrb.gmra.mxu3 %vm282_vm6, %v4157_v55  ;;  %v6975_v55 = vld [vmem:[%s7068_s13] ss:$0 sm:$0xff] }
0x3da5   :  { %4692 = vmatpush.msrb.mxu3 %v5492_v25 }
0x3da7   :  { %4693 = vmatpush.msrb.mxu3 %v5493_v20  ;;  %v4349_v20 = vld [vmem:[#allocation5 + $0x6] sm:$0x3] }
0x3da9   :  { %4694 = vmatpush.msrb.mxu3 %v5494_v54 }
0x3dab   :  { %4695 = vmatpush.msrb.mxu3 %v6799_v61 }
0x3e09   :  { %v4242_v58 = vpop.f32.mrf.mxu0 }
0x3e0a   :  { %v4243_v7 = vadd.f32 %v6805_v63, %v4242_v58 }
0x3e0c   :  { %4266 = vrot.lane.b32.xlu2 %v4243_v7, %s5737_s4  ;;  %v4245_v59 = vadd.f32 %v4243_v7, %v4219_v9 }
0x3e0e   :  { %v5029_v23 = vmul.f32 -1.442695, %v4245_v59 }
0x3e10   :  { %5398 = vpow2.f32 %v5029_v23 }
0x3e16   :  { %v5399_v26 = vpop.eup %5398 }
0x3e17   :  { %v4249_v22 = vadd.f32 1.0, %v5399_v26 }
0x3e19   :  { %5400 = vrcp.f32 %v4249_v22  ;;  %v4261_v63 = vand.u32 2147483648, %v4249_v22  ;;  %vm4255_vm3 = vweird.f32 %v4249_v22  ;;  %v4259_v44 = vand.u32 2147483647, %v4249_v22 }
0x3e1b   :  { %v4262_v3 = vor.u32 1.1754944e-38, %v4261_v63  ;;  %vm4260_vm4 = vcmp.eq.f32.partialorder %v4259_v44, 8.507059e+37 }
0x3e1f   :  { %v5401_v31 = vpop.eup %5400 }
0x3e20   :  { %v4251_v29 = vmul.f32 %v5401_v31, %v4249_v22  ;;  %vm4256_vm2 = vweird.f32 %v5401_v31 }
0x3e21   :  { %vm4257_vm0 = vmor %vm4255_vm3, %vm4256_vm2 }
0x3e22   :  { %v4252_v61 = vsub.f32 1.0, %v4251_v29 }
0x3e24   :  { %v4253_v57 = vmul.f32 %v5401_v31, %v4252_v61  ;;  %v4284_v61 = vld [vmem:[#allocation4 + $0x18] sm:$0x3] }
0x3e26   :  { %v4254_v21 = vadd.f32 %v5401_v31, %v4253_v57 }
0x3e27   :  { %v4177_v30 = vpop.f32.mrf.mxu3 }
0x3e28   :  { %v4178_v16 = vadd.f32 %v6812_v5, %v4177_v30  ;;  %v4258_v5 = vsel %vm4257_vm0, %v5401_v31, %v4254_v21 }
0x3e29   :  { %v4263_v24 = vsel %vm4260_vm4, %v4262_v3, %v4258_v5 }
0x3e2a   :  { %4201 = vrot.lane.b32.xlu1 %v4178_v16, %s5737_s4  ;;  %v4180_v17 = vadd.f32 %v4178_v16, %v4154_v6  ;;  %v4276_v52 = vsub.f32 1.0, %v4263_v24  ;;  %v4282_v60 = vmul.f32 %v4263_v24, %v6933_v40 }
0x3e2c   :  { %v5027_v28 = vmul.f32 -1.442695, %v4180_v17 }
0x3e2e   :  { %5402 = vpow2.f32 %v5027_v28 }
0x3e34   :  { %v5403_v32 = vpop.eup %5402 }
0x3e35   :  { %v4184_v33 = vadd.f32 1.0, %v5403_v32 }
0x3e37   :  { %5404 = vrcp.f32 %v4184_v33  ;;  %v4196_v38 = vand.u32 2147483648, %v4184_v33  ;;  %vm4190_vm7 = vweird.f32 %v4184_v33  ;;  %v4194_v18 = vand.u32 2147483647, %v4184_v33 }
0x3e39   :  { %v4197_v41 = vor.u32 1.1754944e-38, %v4196_v38  ;;  %vm4195_vm9 = vcmp.eq.f32.partialorder %v4194_v18, 8.507059e+37 }
0x3e3d   :  { %v5405_v34 = vpop.eup %5404 }
0x3e3e   :  { %v4186_v35 = vmul.f32 %v5405_v34, %v4184_v33  ;;  %vm4191_vm5 = vweird.f32 %v5405_v34 }
0x3e3f   :  { %vm4192_vm8 = vmor %vm4190_vm7, %vm4191_vm5 }
0x3e40   :  { %v4187_v12 = vsub.f32 1.0, %v4186_v35 }
0x3e42   :  { %v4188_v36 = vmul.f32 %v5405_v34, %v4187_v12 }
0x3e44   :  { %v4189_v37 = vadd.f32 %v5405_v34, %v4188_v36 }
0x3e46   :  { %v4193_v39 = vsel %vm4192_vm8, %v5405_v34, %v4189_v37 }
0x3e47   :  { %v4198_v43 = vsel %vm4195_vm9, %v4197_v41, %v4193_v39 }
0x3e48   :  { %v4211_v11 = vsub.f32 1.0, %v4198_v43  ;;  %v4217_v0 = vmul.f32 %v4198_v43, %v6938_v15 }
0x3e66   :  { %v4267_v13 = vpop.permute.xlu2 %4266 }
0x3e67   :  { %v4269_v14 = vmul.f32 %v4267_v13, %v4263_v24 }
0x3e69   :  { %4271 = vrot.lane.b32.xlu1 %v4269_v14, %s5737_s4 }
0x3e9c   :  { %v4202_v42 = vpop.permute.xlu1 %4201 }
0x3e9d   :  { %v4204_v45 = vmul.f32 %v4202_v42, %v4198_v43 }
0x3e9f   :  { %4206 = vrot.lane.b32.xlu0 %v4204_v45, %s5737_s4 }
0x3edb   :  { %v4272_v46 = vpop.permute.xlu1 %4271 }
0x3edc   :  { %v4274_v47 = vadd.f32 %v4272_v46, %v4219_v9 }
0x3ede   :  { %5406 = vtanh.f32 %v4274_v47 }
0x3ee4   :  { %v5407_v48 = vpop.eup %5406 }
0x3ee5   :  { %4278 = vrot.lane.b32.xlu0 %v5407_v48, %s5738_s8 }
0x3f11   :  { %v4207_v49 = vpop.permute.xlu0 %4206 }
0x3f12   :  { %v4209_v50 = vadd.f32 %v4207_v49, %v4154_v6 }
0x3f14   :  { %5408 = vtanh.f32 %v4209_v50 }
0x3f1a   :  { %v5409_v51 = vpop.eup %5408 }
0x3f1b   :  { %4213 = vrot.lane.b32.xlu2 %v5409_v51, %s5738_s8 }
0x3f57   :  { %v4279_v53 = vpop.permute.xlu0 %4278 }
0x3f58   :  { %v4281_v2 = vmul.f32 %v4279_v53, %v4276_v52 }
0x3f5a   :  { %v6954_v8 = vadd.f32 %v4282_v60, %v4281_v2 }
0x3f5c   :  { %4351 = vrot.lane.b32.xlu2 %v6954_v8, %s5738_s8 }
0x3f75   :  { %v4214_v1 = vpop.permute.xlu2 %4213 }
0x3f76   :  { %v4216_v10 = vmul.f32 %v4214_v1, %v4211_v11 }
0x3f78   :  { %v6959_v27 = vadd.f32 %v4217_v0, %v4216_v10 }
0x3f7a   :  { %4286 = vrot.lane.b32.xlu1 %v6959_v27, %s5738_s8 }
0x3fb6   :  { %v4352_v62 = vpop.permute.xlu2 %4351 }
0x3fb7   :  { %5032 = vmatmul.msk.f32.vlgmr.msrb.gmra.mxu2 %vm282_vm6, %v4352_v62  ;;  %v4479_v62 = vld [vmem:[#allocation5 + $0x4] sm:$0x3] }
0x3fec   :  { %v4287_v40 = vpop.permute.xlu1 %4286 }
0x3fed   :  { %5030 = vmatmul.msk.f32.vlgmr.msrb.gmra.mxu1 %vm282_vm6, %v4287_v40 }
0x403a   :  { %v4372_v56 = vpop.f32.mrf.mxu2 }
0x403b   :  { %v4373_v15 = vadd.f32 %v6968_v4, %v4372_v56 }
0x403d   :  { %4396 = vrot.lane.b32.xlu1 %v4373_v15, %s5737_s4  ;;  %v4375_v54 = vadd.f32 %v4373_v15, %v4349_v20 }
0x403f   :  { %v5033_v58 = vmul.f32 -1.442695, %v4375_v54 }
0x4041   :  { %5410 = vpow2.f32 %v5033_v58 }
0x4047   :  { %v5411_v7 = vpop.eup %5410 }
0x4048   :  { %v4379_v30 = vadd.f32 1.0, %v5411_v7 }
0x404a   :  { %5412 = vrcp.f32 %v4379_v30  ;;  %v4391_v22 = vand.u32 2147483648, %v4379_v30  ;;  %vm4385_vm11 = vweird.f32 %v4379_v30  ;;  %v4389_v31 = vand.u32 2147483647, %v4379_v30 }
0x404c   :  { %v4392_v57 = vor.u32 1.1754944e-38, %v4391_v22  ;;  %vm4390_vm13 = vcmp.eq.f32.partialorder %v4389_v31, 8.507059e+37 }
0x4050   :  { %v5413_v16 = vpop.eup %5412 }
0x4051   :  { %v4381_v9 = vmul.f32 %v5413_v16, %v4379_v30  ;;  %vm4386_vm10 = vweird.f32 %v5413_v16 }
0x4052   :  { %vm4387_vm12 = vmor %vm4385_vm11, %vm4386_vm10 }
0x4053   :  { %v4382_v59 = vsub.f32 1.0, %v4381_v9 }
0x4055   :  { %v4383_v23 = vmul.f32 %v5413_v16, %v4382_v59 }
0x4057   :  { %v4384_v26 = vadd.f32 %v5413_v16, %v4383_v23 }
0x4059   :  { %v4388_v29 = vsel %vm4387_vm12, %v5413_v16, %v4384_v26 }
0x405a   :  { %v4393_v44 = vsel %vm4390_vm13, %v4392_v57, %v4388_v29 }
0x405b   :  { %v4406_v46 = vsub.f32 1.0, %v4393_v44  ;;  %v4412_v48 = vmul.f32 %v4393_v44, %v6954_v8 }
0x406a   :  { %v4307_v19 = vpop.f32.mrf.mxu1 }
0x406b   :  { %v4308_v25 = vadd.f32 %v6975_v55, %v4307_v19 }
0x406d   :  { %4331 = vrot.lane.b32.xlu0 %v4308_v25, %s5737_s4  ;;  %v4310_v21 = vadd.f32 %v4308_v25, %v4284_v61 }
0x406f   :  { %v5031_v3 = vmul.f32 -1.442695, %v4310_v21 }
0x4071   :  { %5414 = vpow2.f32 %v5031_v3 }
0x4077   :  { %v5415_v24 = vpop.eup %5414 }
0x4078   :  { %v4314_v13 = vadd.f32 1.0, %v5415_v24 }
0x407a   :  { %5416 = vrcp.f32 %v4314_v13  ;;  %v4326_v33 = vand.u32 2147483648, %v4314_v13  ;;  %vm4320_vm15 = vweird.f32 %v4314_v13  ;;  %v4324_v34 = vand.u32 2147483647, %v4314_v13 }
0x407c   :  { %v4327_v12 = vor.u32 1.1754944e-38, %v4326_v33  ;;  %vm4325_vm2 = vcmp.eq.f32.partialorder %v4324_v34, 8.507059e+37 }
0x4080   :  { %v5417_v14 = vpop.eup %5416 }
0x4081   :  { %v4316_v6 = vmul.f32 %v5417_v14, %v4314_v13  ;;  %vm4321_vm14 = vweird.f32 %v5417_v14 }
0x4082   :  { %vm4322_vm1 = vmor %vm4320_vm15, %vm4321_vm14 }
0x4083   :  { %v4317_v17 = vsub.f32 1.0, %v4316_v6 }
0x4085   :  { %v4318_v28 = vmul.f32 %v5417_v14, %v4317_v17 }
0x4087   :  { %v4319_v32 = vadd.f32 %v5417_v14, %v4318_v28 }
0x4089   :  { %v4323_v35 = vsel %vm4322_vm1, %v5417_v14, %v4319_v32 }
0x408a   :  { %v4328_v37 = vsel %vm4325_vm2, %v4327_v12, %v4323_v35 }
0x408b   :  { %v4341_v51 = vsub.f32 1.0, %v4328_v37  ;;  %v4347_v53 = vmul.f32 %v4328_v37, %v6959_v27 }
0x40af   :  { %v4397_v63 = vpop.permute.xlu1 %4396 }
0x40b0   :  { %v4399_v5 = vmul.f32 %v4397_v63, %v4393_v44 }
0x40b2   :  { %4401 = vrot.lane.b32.xlu0 %v4399_v5, %s5737_s4 }
0x40df   :  { %v4332_v36 = vpop.permute.xlu0 %4331 }
0x40e0   :  { %v4334_v38 = vmul.f32 %v4332_v36, %v4328_v37 }
0x40e2   :  { %4336 = vrot.lane.b32.xlu2 %v4334_v38, %s5737_s4 }
0x4124   :  { %v4402_v18 = vpop.permute.xlu0 %4401 }
0x4125   :  { %v4404_v39 = vadd.f32 %v4402_v18, %v4349_v20  ;;  %v4414_v20 = vld [vmem:[#allocation4 + $0x1a] sm:$0x3] }
0x4127   :  { %5418 = vtanh.f32 %v4404_v39 }
0x412d   :  { %v5419_v41 = vpop.eup %5418 }
0x412e   :  { %4408 = vrot.lane.b32.xlu2 %v5419_v41, %s5738_s8 }
0x413c   :  { %v4337_v42 = vpop.permute.xlu2 %4336 }
0x413d   :  { %v4339_v43 = vadd.f32 %v4337_v42, %v4284_v61 }
0x413f   :  { %5420 = vtanh.f32 %v4339_v43 }
0x4145   :  { %v5421_v45 = vpop.eup %5420 }
0x4146   :  { %4343 = vrot.lane.b32.xlu1 %v5421_v45, %s5738_s8 }
0x4188   :  { %v4409_v47 = vpop.permute.xlu2 %4408 }
0x4189   :  { %v4411_v49 = vmul.f32 %v4409_v47, %v4406_v46 }
0x418b   :  { %v6984_v50 = vadd.f32 %v4412_v48, %v4411_v49 }
0x418d   :  { %4481 = vrot.lane.b32.xlu1 %v6984_v50, %s5738_s8 }
0x41b8   :  { %v4344_v52 = vpop.permute.xlu1 %4343 }
0x41b9   :  { %v4346_v60 = vmul.f32 %v4344_v52, %v4341_v51 }
0x41bb   :  { %v6989_v2 = vadd.f32 %v4347_v53, %v4346_v60 }
0x41bd   :  { %4416 = vrot.lane.b32.xlu0 %v6989_v2, %s5738_s8 }
0x41ff   :  { %v4482_v11 = vpop.permute.xlu1 %4481 }
0x4200   :  { %5036 = vmatmul.msk.f32.vlgmr.msrb.gmra.mxu0 %vm282_vm6, %v4482_v11  ;;  %v4609_v11 = vld [vmem:[#allocation5 + $0x2] sm:$0x3] }
0x422f   :  { %v4417_v8 = vpop.permute.xlu0 %4416 }
0x4230   :  { %5034 = vmatmul.msk.f32.vlgmr.msra.gmra.mxu3 %vm282_vm6, %v4417_v8 }
0x427d   :  { %v4502_v1 = vpop.f32.mrf.mxu0 }
0x427e   :  { %v4503_v0 = vadd.f32 %v6968_v4, %v4502_v1 }
0x4280   :  { %4526 = vrot.lane.b32.xlu0 %v4503_v0, %s5737_s4  ;;  %v4505_v40 = vadd.f32 %v4503_v0, %v4479_v62 }
0x4282   :  { %v5037_v56 = vmul.f32 -1.442695, %v4505_v40 }
0x4284   :  { %5422 = vpow2.f32 %v5037_v56 }
0x428a   :  { %v5423_v15 = vpop.eup %5422 }
0x428b   :  { %v4509_v19 = vadd.f32 1.0, %v5423_v15 }
0x428d   :  { %5424 = vrcp.f32 %v4509_v19  ;;  %v4521_v59 = vand.u32 2147483648, %v4509_v19  ;;  %vm4515_vm0 = vweird.f32 %v4509_v19  ;;  %v4519_v26 = vand.u32 2147483647, %v4509_v19 }
0x428f   :  { %v4522_v29 = vor.u32 1.1754944e-38, %v4521_v59  ;;  %vm4520_vm5 = vcmp.eq.f32.partialorder %v4519_v26, 8.507059e+37 }
0x4293   :  { %v5425_v25 = vpop.eup %5424 }
0x4294   :  { %v4511_v58 = vmul.f32 %v5425_v25, %v4509_v19  ;;  %vm4516_vm3 = vweird.f32 %v5425_v25 }
0x4295   :  { %vm4517_vm4 = vmor %vm4515_vm0, %vm4516_vm3 }
0x4296   :  { %v4512_v30 = vsub.f32 1.0, %v4511_v58 }
0x4298   :  { %v4513_v16 = vmul.f32 %v5425_v25, %v4512_v30 }
0x429a   :  { %v4514_v9 = vadd.f32 %v5425_v25, %v4513_v16 }
0x429c   :  { %v4518_v22 = vsel %vm4517_vm4, %v5425_v25, %v4514_v9 }
0x429d   :  { %v4523_v57 = vsel %vm4520_vm5, %v4522_v29, %v4518_v22 }
0x429e   :  { %v4536_v18 = vsub.f32 1.0, %v4523_v57  ;;  %v4542_v41 = vmul.f32 %v4523_v57, %v6984_v50 }
0x42b3   :  { %v4437_v10 = vpop.f32.mrf.mxu3 }
0x42b4   :  { %v4438_v27 = vadd.f32 %v6975_v55, %v4437_v10 }
0x42b6   :  { %4461 = vrot.lane.b32.xlu2 %v4438_v27, %s5737_s4  ;;  %v4440_v54 = vadd.f32 %v4438_v27, %v4414_v20 }
0x42b8   :  { %v5035_v7 = vmul.f32 -1.442695, %v4440_v54  ;;  %v4544_v54 = vld [vmem:[#allocation4 + $0x1c] sm:$0x3] }
0x42ba   :  { %5426 = vpow2.f32 %v5035_v7 }
0x42c0   :  { %v5427_v23 = vpop.eup %5426 }
0x42c1   :  { %v4444_v31 = vadd.f32 1.0, %v5427_v23 }
0x42c3   :  { %5428 = vrcp.f32 %v4444_v31  ;;  %v4456_v13 = vand.u32 2147483648, %v4444_v31  ;;  %vm4450_vm8 = vweird.f32 %v4444_v31  ;;  %v4454_v14 = vand.u32 2147483647, %v4444_v31 }
0x42c5   :  { %v4457_v17 = vor.u32 1.1754944e-38, %v4456_v13  ;;  %vm4455_vm10 = vcmp.eq.f32.partialorder %v4454_v14, 8.507059e+37 }
0x42c9   :  { %v5429_v63 = vpop.eup %5428 }
0x42ca   :  { %v4446_v44 = vmul.f32 %v5429_v63, %v4444_v31  ;;  %vm4451_vm7 = vweird.f32 %v5429_v63 }
0x42cb   :  { %vm4452_vm9 = vmor %vm4450_vm8, %vm4451_vm7 }
0x42cc   :  { %v4447_v5 = vsub.f32 1.0, %v4446_v44 }
0x42ce   :  { %v4448_v3 = vmul.f32 %v5429_v63, %v4447_v5 }
0x42d0   :  { %v4449_v24 = vadd.f32 %v5429_v63, %v4448_v3 }
0x42d2   :  { %v4453_v6 = vsel %vm4452_vm9, %v5429_v63, %v4449_v24 }
0x42d3   :  { %v4458_v28 = vsel %vm4455_vm10, %v4457_v17, %v4453_v6 }
0x42d4   :  { %v4471_v45 = vsub.f32 1.0, %v4458_v28  ;;  %v4477_v47 = vmul.f32 %v4458_v28, %v6989_v2 }
0x42f2   :  { %v4527_v61 = vpop.permute.xlu0 %4526 }
0x42f3   :  { %v4529_v21 = vmul.f32 %v4527_v61, %v4523_v57 }
0x42f5   :  { %4531 = vrot.lane.b32.xlu2 %v4529_v21, %s5737_s4 }
0x4310   :  { %v4462_v32 = vpop.permute.xlu2 %4461 }
0x4311   :  { %v4464_v33 = vmul.f32 %v4462_v32, %v4458_v28 }
0x4313   :  { %4466 = vrot.lane.b32.xlu1 %v4464_v33, %s5737_s4 }
0x434f   :  { %v4532_v34 = vpop.permute.xlu2 %4531 }
0x4350   :  { %v4534_v35 = vadd.f32 %v4532_v34, %v4479_v62 }
0x4352   :  { %5430 = vtanh.f32 %v4534_v35 }
0x4358   :  { %v5431_v12 = vpop.eup %5430 }
0x4359   :  { %4538 = vrot.lane.b32.xlu1 %v5431_v12, %s5738_s8 }
0x4385   :  { %v4467_v36 = vpop.permute.xlu1 %4466 }
0x4386   :  { %v4469_v37 = vadd.f32 %v4467_v36, %v4414_v20 }
0x4388   :  { %5432 = vtanh.f32 %v4469_v37 }
0x438e   :  { %v5433_v38 = vpop.eup %5432 }
0x438f   :  { %4473 = vrot.lane.b32.xlu0 %v5433_v38, %s5738_s8 }
0x43cb   :  { %v4539_v39 = vpop.permute.xlu1 %4538 }
0x43cc   :  { %v4541_v42 = vmul.f32 %v4539_v39, %v4536_v18 }
0x43ce   :  { %v7004_v43 = vadd.f32 %v4542_v41, %v4541_v42 }
0x43d0   :  { %4611 = vrot.lane.b32.xlu0 %v7004_v43, %s5738_s8 }
0x4401   :  { %v4474_v46 = vpop.permute.xlu0 %4473 }
0x4402   :  { %v4476_v48 = vmul.f32 %v4474_v46, %v4471_v45 }
0x4404   :  { %v7009_v49 = vadd.f32 %v4477_v47, %v4476_v48 }
0x4406   :  { %4546 = vrot.lane.b32.xlu2 %v7009_v49, %s5738_s8 }
0x4442   :  { %v4612_v51 = vpop.permute.xlu0 %4611 }
0x4443   :  { %5040 = vmatmul.msk.f32.vlgmr.msra.gmra.mxu2 %vm282_vm6, %v4612_v51  ;;  %v4739_v51 = vld [vmem:[#allocation5] sm:$0x3] }
0x4460   :  { %v4547_v50 = vpop.permute.xlu2 %4546 }
0x4461   :  { %5038 = vmatmul.msk.f32.vlgmr.msra.gmra.mxu1 %vm282_vm6, %v4547_v50 }
0x44c6   :  { %v4632_v52 = vpop.f32.mrf.mxu2 }
0x44c7   :  { %v4633_v53 = vadd.f32 %v6968_v4, %v4632_v52 }
0x44c9   :  { %4656 = vrot.lane.b32.xlu2 %v4633_v53, %s5737_s4  ;;  %v4635_v8 = vadd.f32 %v4633_v53, %v4609_v11 }
0x44cb   :  { %v5041_v1 = vmul.f32 -1.442695, %v4635_v8 }
0x44cd   :  { %5434 = vpow2.f32 %v5041_v1 }
0x44d3   :  { %v5435_v0 = vpop.eup %5434 }
0x44d4   :  { %v4639_v10 = vadd.f32 1.0, %v5435_v0 }
0x44d6   :  { %5436 = vrcp.f32 %v4639_v10  ;;  %v4651_v19 = vand.u32 2147483648, %v4639_v10  ;;  %vm4645_vm12 = vweird.f32 %v4639_v10  ;;  %v4649_v25 = vand.u32 2147483647, %v4639_v10 }
0x44d8   :  { %v4652_v58 = vor.u32 1.1754944e-38, %v4651_v19  ;;  %vm4650_vm14 = vcmp.eq.f32.partialorder %v4649_v25, 8.507059e+37 }
0x44dc   :  { %v5437_v27 = vpop.eup %5436 }
0x44dd   :  { %v4641_v62 = vmul.f32 %v5437_v27, %v4639_v10  ;;  %vm4646_vm11 = vweird.f32 %v5437_v27 }
0x44de   :  { %v4567_v60 = vpop.f32.mrf.mxu1  ;;  %vm4647_vm13 = vmor %vm4645_vm12, %vm4646_vm11 }
0x44df   :  { %v4568_v2 = vadd.f32 %v6975_v55, %v4567_v60  ;;  %v4642_v40 = vsub.f32 1.0, %v4641_v62 }
0x44e1   :  { %4591 = vrot.lane.b32.xlu1 %v4568_v2, %s5737_s4  ;;  %v4643_v56 = vmul.f32 %v5437_v27, %v4642_v40  ;;  %v4570_v7 = vadd.f32 %v4568_v2, %v4544_v54 }
0x44e3   :  { %v4644_v15 = vadd.f32 %v5437_v27, %v4643_v56  ;;  %v5039_v59 = vmul.f32 -1.442695, %v4570_v7 }
0x44e5   :  { %v4648_v20 = vsel %vm4647_vm13, %v5437_v27, %v4644_v15  ;;  %5438 = vpow2.f32 %v5039_v59  ;;  %v4674_v15 = vld [vmem:[#allocation4 + $0x1e] sm:$0x3] }
0x44e6   :  { %v4653_v30 = vsel %vm4650_vm14, %v4652_v58, %v4648_v20 }
0x44e7   :  { %v4666_v34 = vsub.f32 1.0, %v4653_v30  ;;  %v4672_v12 = vmul.f32 %v4653_v30, %v7004_v43 }
0x44eb   :  { %v5439_v23 = vpop.eup %5438 }
0x44ec   :  { %v4574_v26 = vadd.f32 1.0, %v5439_v23 }
0x44ee   :  { %5440 = vrcp.f32 %v4574_v26  ;;  %v4586_v21 = vand.u32 2147483648, %v4574_v26  ;;  %vm4580_vm1 = vweird.f32 %v4574_v26  ;;  %v4584_v63 = vand.u32 2147483647, %v4574_v26 }
0x44f0   :  { %v4587_v5 = vor.u32 1.1754944e-38, %v4586_v21  ;;  %vm4585_vm3 = vcmp.eq.f32.partialorder %v4584_v63, 8.507059e+37 }
0x44f4   :  { %v5441_v22 = vpop.eup %5440 }
0x44f5   :  { %v4576_v31 = vmul.f32 %v5441_v22, %v4574_v26  ;;  %vm4581_vm15 = vweird.f32 %v5441_v22 }
0x44f6   :  { %vm4582_vm2 = vmor %vm4580_vm1, %vm4581_vm15 }
0x44f7   :  { %v4577_v29 = vsub.f32 1.0, %v4576_v31 }
0x44f9   :  { %v4578_v61 = vmul.f32 %v5441_v22, %v4577_v29 }
0x44fb   :  { %v4579_v57 = vadd.f32 %v5441_v22, %v4578_v61 }
0x44fd   :  { %v4583_v44 = vsel %vm4582_vm2, %v5441_v22, %v4579_v57 }
0x44fe   :  { %v4588_v24 = vsel %vm4585_vm3, %v4587_v5, %v4583_v44 }
0x44ff   :  { %v4601_v38 = vsub.f32 1.0, %v4588_v24  ;;  %v4607_v39 = vmul.f32 %v4588_v24, %v7009_v49 }
0x4523   :  { %v4657_v16 = vpop.permute.xlu2 %4656 }
0x4524   :  { %v4659_v9 = vmul.f32 %v4657_v16, %v4653_v30 }
0x4526   :  { %4661 = vrot.lane.b32.xlu1 %v4659_v9, %s5737_s4 }
0x4553   :  { %v4592_v3 = vpop.permute.xlu1 %4591 }
0x4554   :  { %v4594_v13 = vmul.f32 %v4592_v3, %v4588_v24 }
0x4556   :  { %4596 = vrot.lane.b32.xlu0 %v4594_v13, %s5737_s4 }
0x4598   :  { %v4662_v14 = vpop.permute.xlu1 %4661 }
0x4599   :  { %v4664_v6 = vadd.f32 %v4662_v14, %v4609_v11 }
0x459b   :  { %5442 = vtanh.f32 %v4664_v6 }
0x45a1   :  { %v5443_v17 = vpop.eup %5442 }
0x45a2   :  { %4668 = vrot.lane.b32.xlu0 %v5443_v17, %s5738_s8 }
0x45c8   :  { %v4597_v28 = vpop.permute.xlu0 %4596 }
0x45c9   :  { %v4599_v32 = vadd.f32 %v4597_v28, %v4544_v54  ;;  %v4811_v28 = vld [vmem:[#allocation20 + $0x38] sm:$0xff] }
0x45ca   :  { %4829 = vmatpush.msrb.mxu1 %v4811_v28 }
0x45cb   :  { %5444 = vtanh.f32 %v4599_v32  ;;  %v4810_v32 = vld [vmem:[#allocation20 + $0x30] sm:$0xff] }
0x45cc   :  { %4830 = vmatpush.msrb.mxu1 %v4810_v32 }
0x45d1   :  { %v5445_v33 = vpop.eup %5444 }
0x45d2   :  { %4603 = vrot.lane.b32.xlu2 %v5445_v33, %s5738_s8  ;;  %v4809_v33 = vld [vmem:[#allocation20 + $0x28] sm:$0xff] }
0x45d3   :  { %4831 = vmatpush.msrb.mxu1 %v4809_v33 }
0x4614   :  { %v4669_v35 = vpop.permute.xlu0 %4668 }
0x4615   :  { %v4671_v36 = vmul.f32 %v4669_v35, %v4666_v34  ;;  %v4808_v34 = vld [vmem:[#allocation20 + $0x20] sm:$0xff] }
0x4616   :  { %4832 = vmatpush.msrb.mxu1 %v4808_v34 }
0x4617   :  { %v7024_v37 = vadd.f32 %v4672_v12, %v4671_v36 }
0x4619   :  { %4741 = vrot.lane.b32.xlu2 %v7024_v37, %s5738_s8 }
0x462c   :  { %v4604_v18 = vpop.permute.xlu2 %4603 }
0x462d   :  { %v4606_v41 = vmul.f32 %v4604_v18, %v4601_v38 }
0x462f   :  { %v7029_v42 = vadd.f32 %v4607_v39, %v4606_v41  ;;  %v4806_v39 = vld [vmem:[#allocation20 + $0x10] sm:$0xff]  ;;  %v4805_v41 = vld [vmem:[#allocation20 + $0x8] sm:$0xff] }
0x4631   :  { %4676 = vrot.lane.b32.xlu1 %v7029_v42, %s5738_s8 }
0x4673   :  { %v4742_v45 = vpop.permute.xlu2 %4741 }
0x4674   :  { %5044 = vmatmul.msk.f32.vlgmr.msra.gmra.mxu0 %vm282_vm6, %v4742_v45  ;;  %v4804_v45 = vld [vmem:[#allocation20] sm:$0xff] }
0x46a3   :  { %v4677_v43 = vpop.permute.xlu1 %4676 }
0x46a4   :  { %5042 = vmatmul.msk.f32.vlgmr.msrb.gmra.mxu3 %vm282_vm6, %v4677_v43 }
0x46f1   :  { %v4762_v46 = vpop.f32.mrf.mxu0 }
0x46f2   :  { %v4763_v47 = vadd.f32 %v6968_v4, %v4762_v46 }
0x46f4   :  { %4786 = vrot.lane.b32.xlu1 %v4763_v47, %s5737_s4  ;;  %v4765_v50 = vadd.f32 %v4763_v47, %v4739_v51 }
0x46f6   :  { %v5045_v52 = vmul.f32 -1.442695, %v4765_v50 }
0x46f8   :  { %5446 = vpow2.f32 %v5045_v52 }
0x46fe   :  { %v5447_v53 = vpop.eup %5446 }
0x46ff   :  { %v4769_v60 = vadd.f32 1.0, %v5447_v53 }
0x4701   :  { %5448 = vrcp.f32 %v4769_v60  ;;  %v4781_v4 = vand.u32 2147483648, %v4769_v60  ;;  %vm4775_vm4 = vweird.f32 %v4769_v60  ;;  %v4779_v10 = vand.u32 2147483647, %v4769_v60 }
0x4703   :  { %v4782_v27 = vor.u32 1.1754944e-38, %v4781_v4  ;;  %vm4780_vm7 = vcmp.eq.f32.partialorder %v4779_v10, 8.507059e+37 }
0x4707   :  { %v5449_v2 = vpop.eup %5448 }
0x4708   :  { %v4771_v11 = vmul.f32 %v5449_v2, %v4769_v60  ;;  %vm4776_vm0 = vweird.f32 %v5449_v2 }
0x4709   :  { %vm4777_vm5 = vmor %vm4775_vm4, %vm4776_vm0 }
0x470a   :  { %v4772_v8 = vsub.f32 1.0, %v4771_v11 }
0x470c   :  { %v4773_v1 = vmul.f32 %v5449_v2, %v4772_v8 }
0x470e   :  { %v4774_v0 = vadd.f32 %v5449_v2, %v4773_v1 }
0x4727   :  { %v4697_v48 = vpop.f32.mrf.mxu3 }
0x4728   :  { %v4698_v49 = vadd.f32 %v6975_v55, %v4697_v48  ;;  %v4778_v55 = vsel %vm4777_vm5, %v5449_v2, %v4774_v0 }
0x4729   :  { %v4783_v40 = vsel %vm4780_vm7, %v4782_v27, %v4778_v55 }
0x472a   :  { %4721 = vrot.lane.b32.xlu0 %v4698_v49, %s5737_s4  ;;  %v4700_v19 = vadd.f32 %v4698_v49, %v4674_v15  ;;  %v4796_v24 = vsub.f32 1.0, %v4783_v40  ;;  %v4802_v14 = vmul.f32 %v4783_v40, %v7024_v37  ;;  %v4807_v37 = vld [vmem:[#allocation20 + $0x18] sm:$0xff] }
0x472b   :  { %4854 = vmatpush.msrb.mxu2 %v4807_v37 }
0x472c   :  { %v5043_v25 = vmul.f32 -1.442695, %v4700_v19 }
0x472d   :  { %4855 = vmatpush.msrb.mxu2 %v4806_v39 }
0x472e   :  { %5450 = vpow2.f32 %v5043_v25 }
0x472f   :  { %4856 = vmatpush.msrb.mxu2 %v4805_v41 }
0x4731   :  { %4857 = vmatpush.msrb.mxu2 %v4804_v45 }
0x4734   :  { %v5451_v20 = vpop.eup %5450 }
0x4735   :  { %v4704_v54 = vadd.f32 1.0, %v5451_v20 }
0x4737   :  { %5452 = vrcp.f32 %v4704_v54  ;;  %v4716_v59 = vand.u32 2147483648, %v4704_v54  ;;  %vm4710_vm9 = vweird.f32 %v4704_v54  ;;  %v4714_v23 = vand.u32 2147483647, %v4704_v54 }
0x4739   :  { %v4717_v22 = vor.u32 1.1754944e-38, %v4716_v59  ;;  %vm4715_vm11 = vcmp.eq.f32.partialorder %v4714_v23, 8.507059e+37 }
0x473d   :  { %v5453_v58 = vpop.eup %5452 }
0x473e   :  { %v4706_v7 = vmul.f32 %v5453_v58, %v4704_v54  ;;  %vm4711_vm8 = vweird.f32 %v5453_v58 }
0x473f   :  { %vm4712_vm10 = vmor %vm4710_vm9, %vm4711_vm8 }
0x4740   :  { %v4707_v30 = vsub.f32 1.0, %v4706_v7 }
0x4742   :  { %v4708_v16 = vmul.f32 %v5453_v58, %v4707_v30 }
0x4744   :  { %v4709_v9 = vadd.f32 %v5453_v58, %v4708_v16 }
0x4746   :  { %v4713_v26 = vsel %vm4712_vm10, %v5453_v58, %v4709_v9 }
0x4747   :  { %v4718_v29 = vsel %vm4715_vm11, %v4717_v22, %v4713_v26 }
0x4748   :  { %v4731_v35 = vsub.f32 1.0, %v4718_v29  ;;  %v4737_v36 = vmul.f32 %v4718_v29, %v7029_v42  ;;  %v5073_v42 = vld [vmem:[%s7074_s19] ss:$0 sm:$0xff] }
0x4766   :  { %v4787_v62 = vpop.permute.xlu1 %4786 }
0x4767   :  { %v4789_v56 = vmul.f32 %v4787_v62, %v4783_v40 }
0x4769   :  { %4791 = vrot.lane.b32.xlu0 %v4789_v56, %s5737_s4 }
0x479c   :  { %v4722_v31 = vpop.permute.xlu0 %4721 }
0x479d   :  { %v4724_v61 = vmul.f32 %v4722_v31, %v4718_v29 }
0x479f   :  { %4726 = vrot.lane.b32.xlu2 %v4724_v61, %s5737_s4  ;;  %s5739_s4 = smov [#allocation22]  }
0x47db   :  { %v4792_v57 = vpop.permute.xlu0 %4791 }
0x47dc   :  { %v4794_v21 = vadd.f32 %v4792_v57, %v4739_v51 }
0x47de   :  { %5454 = vtanh.f32 %v4794_v21 }
0x47e4   :  { %v5455_v63 = vpop.eup %5454 }
0x47e5   :  { %4798 = vrot.lane.b32.xlu2 %v5455_v63, %s5738_s8 }
0x47f9   :  { %v4727_v44 = vpop.permute.xlu2 %4726 }
0x47fa   :  { %v4729_v5 = vadd.f32 %v4727_v44, %v4674_v15 }
0x47fc   :  { %5456 = vtanh.f32 %v4729_v5 }
0x4802   :  { %v5457_v3 = vpop.eup %5456 }
0x4803   :  { %4733 = vrot.lane.b32.xlu1 %v5457_v3, %s5738_s8 }
0x483f   :  { %v4799_v13 = vpop.permute.xlu2 %4798 }
0x4840   :  { %v4801_v6 = vmul.f32 %v4799_v13, %v4796_v24 }
0x4842   :  { %v4803_v17 = vadd.f32 %v4802_v14, %v4801_v6 }
0x4844   :  { %4813 = vrot.lane.b32.xlu1 %v4803_v17, %s5738_s8 }
0x4875   :  { %v4734_v12 = vpop.permute.xlu1 %4733 }
0x4876   :  { %v4736_v38 = vmul.f32 %v4734_v12, %v4731_v35 }
0x4878   :  { %v4738_v18 = vadd.f32 %v4737_v36, %v4736_v38 }
0x487a   :  { %4838 = vrot.lane.b32.xlu0 %v4738_v18, %s5738_s8  ;;  %s4873_s8 = sshll.u32 %s5739_s4, 4  ;;  %s4874_s8 = int_to_ptr.vmem [resolvable:$true] %s4873_s8 }
0x48b6   :  { %v4814_v43 = vpop.permute.xlu1 %4813 }
0x48b7   :  { %5046 = vmatmul.msk.f32.vlgmr.msrb.gmra.mxu1 %vm282_vm6, %v4814_v43 }
0x48ec   :  { %v4839_v46 = vpop.permute.xlu0 %4838 }
0x48ed   :  { %5047 = vmatmul.msk.f32.vlgmr.msrb.gmra.mxu2 %vm282_vm6, %v4839_v46 }
0x4934   :  { %v4834_v47 = vpop.f32.mrf.mxu1 }
0x4970   :  { %v4859_v48 = vpop.f32.mrf.mxu2 }
0x4971   :  { %v4860_v49 = vadd.f32 %v4859_v48, %v4834_v47 }
0x4973   :  { %v4866_v51 = vadd.f32 %v5073_v42, %v4860_v49 }
0x4975   :  { %4867 = vst [vmem:[#allocation22] sm:$0x3] %v4866_v51 }
0x4976   :  { %4878 = dma.vmem_to_hbm [thread:$0]  %s4874_s8, 32, %s4876_s22, [#allocation10]  }
0x4977   :  { %5723 = dma.done.wait [#allocation10], 32  }
0x4978   :  { %5724 = vsyncadd [#allocation10], 4294967264 }
0x4979   :  { %4883 = vsyncpa [#allocation9], 1 }
0x497a   :  { %4884 = vsyncpa [#allocation12], 1 }
0x497b   :  { %4885 = vsyncpa [#allocation15], 1 }
0x497c   :  { %4886 = vsyncpa [#allocation18], 1 }
0x497d   :  { %4887 = vsyncpa [#allocation21], 1 }
0x497e   :  { %4888 = vsyncpa [#allocation10], 1 }

</bundles_post_ra>
